<compile_context>
chip_gen: v6e
topology: v6e:2x2x1
jax: 0.10.0
libtpu: 0.0.40
codegen_flags: <defaults>
</compile_context>

<pallas_src>
import jax
import jax.numpy as jnp
import numpy as np
from jax.experimental import pallas as pl
from jax.experimental.pallas import tpu as pltpu


# ----------------------------- kernels --------------------------------------

def _affine_dot(ts_ref, fp_ref):
    """Packed affine on the MXU: (tm, KA) @ (KA, LANES) -> (tm, LANES).

    ts_ref columns: [ts packed rows..., 1.0 (phase), 0 padding]
    fp_ref rows:    [kron(I_P, basis_freq)..., phase row, 0 padding]
    precision=HIGHEST keeps the cos argument f32-exact (within a few ULP);
    the cross terms multiply exact zeros so the packing adds no error.
    """
    return jnp.dot(ts_ref[...], fp_ref[...],
                   precision=jax.lax.Precision.HIGHEST,
                   preferred_element_type=jnp.float32)


def _time_emb_kernel(ts_ref, fp_ref, out_ref):
    out_ref[...] = jnp.cos(_affine_dot(ts_ref, fp_ref)).astype(out_ref.dtype)


def _time_emb_linear_kernel(ts_ref, fp_ref, wt_ref, out_ref):
    # wt_ref: (LANES, LANES) == kron(I_P, W^T) so the packed layout feeds the
    # MXU directly and output stores stay lane-dense.
    harmonic = jnp.cos(_affine_dot(ts_ref, fp_ref))
    out_ref[...] = jnp.dot(harmonic, wt_ref[...],
                           precision=jax.lax.Precision.HIGHEST,
                           preferred_element_type=jnp.float32
                           ).astype(out_ref.dtype)


# ----------------------------- wrapper ---------------------------------------

def _round_up(x, m):
    return (x + m - 1) // m * m


def time_embedding(ts, basis_freq, phase, dense_weight=None, *,
                   block_e=8192, out_dtype=jnp.float32):
    """Pallas TimeEmbedding forward.

    ts:           [E] or [E, 1] float32 time intervals
    basis_freq:   [D] float32
    phase:        [D] float32
    dense_weight: optional [D, D] float32 (PyTorch nn.Linear layout: out = h @ W.T)
    block_e:      ts rows processed per grid step (amortizes ~0.35us/step;
                  capped so v7x's 2 TCs get a balanced grid)
    out_dtype:    float32 matches the module; bfloat16 halves HBM writeback.
    returns:      [E, D] out_dtype
    """
    ts = jnp.asarray(ts, jnp.float32)
    if ts.ndim == 2:
        assert ts.shape[1] == 1, "ts must be [E] or [E, 1]"
    ts = ts.reshape(-1)
    E = ts.shape[0]
    D = int(basis_freq.shape[0])

    # Lane packing: P consecutive rows side-by-side -> unmasked 128-lane vst.
    P = 128 // D if (D < 128 and 128 % D == 0) else 1
    LANES = P * D
    KA = _round_up(P + 1, 8)          # matmul contraction dim (ts cols + ones + pad)
    out_itemsize = np.dtype(out_dtype).itemsize

    # --- tile sizing ---------------------------------------------------------
    g_needed = pl.cdiv(E, P)          # packed rows before tile padding
    # 1) big tiles to amortize per-step overhead
    tm = max(8, (block_e // P) // 8 * 8)
    # 2) keep >= 4 grid steps so v7x's two TensorCores split the E axis evenly
    MIN_STEPS = 4
    tm = min(tm, max(8, _round_up(pl.cdiv(g_needed, MIN_STEPS), 8)))
    # 3) VMEM clamp (double-buffered in + out), accounting for lane padding to
    #    128: the (tm, KA) ts tile occupies tm*128*4 B in VMEM, not tm*KA*4.
    ts_lanes_vmem = _round_up(KA, 128)
    out_lanes_vmem = _round_up(LANES, 128)
    bytes_per_tm_row = 2 * (ts_lanes_vmem * 4 + out_lanes_vmem * out_itemsize)
    vmem_budget = 24 * 1024 * 1024    # headroom under v7x's 32 MiB scoped default
    max_tm = max(8, (vmem_budget // bytes_per_tm_row) // 8 * 8)
    tm = min(tm, max_tm)

    block_rows = tm * P               # original ts rows per grid step
    E_pad = pl.cdiv(E, block_rows) * block_rows
    g = E_pad // P                    # total packed rows
    grid = (g // tm,)

    # --- operand packing -----------------------------------------------------
    if E_pad != E:
        # TODO(synk): masked tail store inside the last grid step would avoid
        # this extra pad pass over ts (~6% of HBM traffic when memory-bound).
        ts = jnp.pad(ts, (0, E_pad - E))
    ts_packed = ts.reshape(g, P)
    ts_aug = jnp.concatenate(
        [ts_packed,
         jnp.ones((g, 1), jnp.float32),
         jnp.zeros((g, KA - P - 1), jnp.float32)], axis=1)        # (g, KA)

    basis_freq = jnp.asarray(basis_freq, jnp.float32).reshape(-1)
    phase = jnp.asarray(phase, jnp.float32).reshape(-1)
    freq_rows = jnp.kron(jnp.eye(P, dtype=jnp.float32),
                         basis_freq.reshape(1, D))                # (P, LANES)
    phase_row = jnp.tile(phase.reshape(1, D), (1, P))             # (1, LANES)
    freq_phase = jnp.concatenate(
        [freq_rows, phase_row,
         jnp.zeros((KA - P - 1, LANES), jnp.float32)], axis=0)    # (KA, LANES)

    ts_spec = pl.BlockSpec((tm, KA), lambda i: (i, 0))
    fp_spec = pl.BlockSpec((KA, LANES), lambda i: (0, 0))
    out_spec = pl.BlockSpec((tm, LANES), lambda i: (i, 0))
    out_shape = jax.ShapeDtypeStruct((g, LANES), out_dtype)
    cparams = pltpu.CompilerParams(dimension_semantics=("parallel",))

    if dense_weight is None:
        out_packed = pl.pallas_call(
            _time_emb_kernel,
            out_shape=out_shape,
            grid_spec=pltpu.PrefetchScalarGridSpec(
                num_scalar_prefetch=0, grid=grid,
                in_specs=[ts_spec, fp_spec], out_specs=out_spec),
            compiler_params=cparams,
        )(ts_aug, freq_phase)
    else:
        # NOTE: for static weights, callers should pre-build this packed
        # block-diagonal weight once instead of per call.
        wt = jnp.asarray(dense_weight, jnp.float32).T             # W^T
        wt_block = jnp.kron(jnp.eye(P, dtype=jnp.float32), wt)    # (LANES, LANES)
        w_spec = pl.BlockSpec((LANES, LANES), lambda i: (0, 0))
        out_packed = pl.pallas_call(
            _time_emb_linear_kernel,
            out_shape=out_shape,
            grid_spec=pltpu.PrefetchScalarGridSpec(
                num_scalar_prefetch=0, grid=grid,
                in_specs=[ts_spec, fp_spec, w_spec], out_specs=out_spec),
            compiler_params=cparams,
        )(ts_aug, freq_phase, wt_block)

    out = out_packed.reshape(E_pad, D)    # contiguous: metadata-only reshape
    if E_pad != E:
        out = out[:E]
    return out


# ----------------------------- reference & main -------------------------------

def time_embedding_ref(ts, basis_freq, phase, dense_weight=None):
    ts = jnp.asarray(ts, jnp.float32).reshape(-1, 1)
    map_ts = ts * basis_freq.reshape(1, -1) + phase.reshape(1, -1)
    harmonic = jnp.cos(map_ts)
    if dense_weight is not None:
        # HIGHEST so the reference is f32-grade too (default XLA matmul would
        # itself be a single bf16 pass and dominate the comparison error).
        harmonic = jnp.dot(harmonic, dense_weight.T,
                           precision=jax.lax.Precision.HIGHEST)
    return harmonic


if __name__ == "__main__":
    E = 5000        # not a multiple of the tile -> exercises padding/tail
    D = 32          # time_dim == expand_dim

    key = jax.random.PRNGKey(0)
    k_ts, k_w = jax.random.split(key)

    # ts ~ time intervals, shape [E, 1]
    ts = jax.random.uniform(k_ts, (E, 1), dtype=jnp.float32) * 100.0

    # Parameters, initialized exactly as the module's __init__ does.
    basis_freq = jnp.asarray(1.0 / 10.0 ** np.linspace(0, 9, D), dtype=jnp.float32)
    phase = jnp.zeros((D,), dtype=jnp.float32)

    # xavier_normal_ for nn.Linear(D, D, bias=False): std = sqrt(2/(D+D))
    xavier_std = float(np.sqrt(2.0 / (D + D)))
    dense_weight = jax.random.normal(k_w, (D, D), dtype=jnp.float32) * xavier_std

    # --- path 1: use_linear_trans = False ---
    out_plain = jax.block_until_ready(time_embedding(ts, basis_freq, phase, None))
    ref_plain = time_embedding_ref(ts, basis_freq, phase, None)
    # Tolerance: the packed affine runs on the MXU at precision=HIGHEST
    # (bf16_6x, f32-grade).  For |map_ts| up to ~100 that differs from the
    # elementwise-f32 reference by a few ULP (~3e-5 absolute in the cos
    # argument); real packing/indexing bugs would show O(1) errors.
    np.testing.assert_allclose(np.asarray(out_plain), np.asarray(ref_plain),
                               rtol=1e-5, atol=1e-4)

    # --- path 2: use_linear_trans = True (1-D ts exercises the reshape path) ---
    out_lt = jax.block_until_ready(
        time_embedding(ts.reshape(-1), basis_freq, phase, dense_weight))
    ref_lt = time_embedding_ref(ts, basis_freq, phase, dense_weight)
    # Both matmuls are explicit precision=HIGHEST; remaining differences are
    # the few-ULP cos-argument deltas above propagated through W (K=32).
    np.testing.assert_allclose(np.asarray(out_lt), np.asarray(ref_lt),
                               rtol=1e-4, atol=1e-3)

    print("KERNEL_OK")
</pallas_src>

<mosaic_0001>
module attributes {stable_mosaic.version = 11 : i64} {
  func.func @_time_emb_kernel(%arg0: i32, %arg1: memref<320x8xf32, #tpu.memory_space<vmem>>, %arg2: memref<8x128xf32, #tpu.memory_space<vmem>>, %arg3: memref<320x128xf32, #tpu.memory_space<vmem>>) attributes {dimension_semantics = [#tpu.dimension_semantics<parallel>], iteration_bounds = array<i64: 4>, scalar_prefetch = 0 : i64, scratch_operands = 0 : i64, tpu.core_type = #tpu.core_type<tc>, window_params = [{transform_indices = @transform_0, window_bounds = array<i64: 320, 8>}, {pipeline_mode = #tpu.pipeline_mode<synchronous>, transform_indices = @transform_1, window_bounds = array<i64: 8, 128>}, {transform_indices = @transform_2, window_bounds = array<i64: 320, 128>}]} {
    %c0 = arith.constant 0 : index
    %c0_0 = arith.constant 0 : index
    %0 = vector.load %arg1[%c0, %c0_0] : memref<320x8xf32, #tpu.memory_space<vmem>>, vector<320x8xf32>
    %c0_1 = arith.constant 0 : index
    %c0_2 = arith.constant 0 : index
    %1 = vector.load %arg2[%c0_1, %c0_2] : memref<8x128xf32, #tpu.memory_space<vmem>>, vector<8x128xf32>
    %cst = arith.constant dense<0.000000e+00> : vector<320x128xf32>
    %2 = tpu.matmul %0, %1, %cst {dimension_numbers = #tpu.dot_dimension_numbers<[1], [0], [0], [1], [0, 0, 1, 1], [], []>, precision = #tpu.contract_precision<fp32>} : vector<320x8xf32>, vector<8x128xf32>, vector<320x128xf32> -> vector<320x128xf32>
    %3 = math.cos %2 : vector<320x128xf32>
    %c0_3 = arith.constant 0 : index
    %c0_4 = arith.constant 0 : index
    %4 = vector.load %arg3[%c0_3, %c0_4] : memref<320x128xf32, #tpu.memory_space<vmem>>, vector<320x128xf32>
    tpu.vector_store %arg3[%c0_3, %c0_4], %3 {strides = array<i32>} : memref<320x128xf32, #tpu.memory_space<vmem>>, vector<320x128xf32>,
    return
  }
  func.func @transform_0(%arg0: i32) -> (i32, i32) {
    %c0_i32 = arith.constant 0 : i32
    %c0_i32_0 = arith.constant 0 : i32
    return %arg0, %c0_i32 : i32, i32
  }
  func.func @transform_1(%arg0: i32) -> (i32, i32) {
    %c0_i32 = arith.constant 0 : i32
    %c0_i32_0 = arith.constant 0 : i32
    %c0_i32_1 = arith.constant 0 : i32
    return %c0_i32, %c0_i32_0 : i32, i32
  }
  func.func @transform_2(%arg0: i32) -> (i32, i32) {
    %c0_i32 = arith.constant 0 : i32
    %c0_i32_0 = arith.constant 0 : i32
    return %arg0, %c0_i32 : i32, i32
  }
}

</mosaic_0001>

<bundles_post_ra>
// kernel: tpu_custom_call.1
= control target key start
LH: loop header
LB: loop body
LE: loop exit
PB: predicated region body
PF: predicated region fallthrough
CT: control target
= control target key end

     0   :  { %7 = vsyncpa [#allocation3], 0  ;;  %s11977_s0 = inlined_call_operand.vmem [shape: f32[1280,8], index: 0, kind: input, shape index: {}]   ;;  %s11978_s1 = inlined_call_operand.vmem [shape: f32[8,128], index: 1, kind: input, shape index: {}]   ;;  %s11979_s2 = inlined_call_operand.hbm [shape: f32[1280,128], index: 2, kind: output, shape index: {}]  }
   0x1   :  { %9 = vsyncpa [#allocation3 + $0x1], 0  ;;  %s7907_s9 = smov 0   ;;  %s7909_s10 = smov 0  }
   0x2   :  { %s7911_s11 = smov 0   ;;  %s7913_s12 = smov 0  }
   0x3 LB: > { %s7928_s13 = sadd.s32 4294967295, %s7881_s12   ;;  %s6666_s14 = sadd.s32 4294967294, %s7881_s12   ;;  %s7881_s12 = sphi %s7913_s12, %s12321_s12   ;;  %s7877_s11 = sphi %s7911_s11, %s12320_s11   ;;  %s7873_s10 = sphi %s7909_s10, %s12319_s10   ;;  %s7869_s9 = sphi %s7907_s9, %s12318_s9  }
   0x4   : > { %s7932_s15 = sadd.s32 1, %s7881_s12   ;;  %s69_s16 = sadd.s32 1, %s7877_s11 }
   0x5   : > { %s66_s17 = ssub.s32 %s7881_s12, %s7932_s15  ;;  %p79_p0 = scmp.ne.s32.totalorder %s7877_s11, %s7873_s10 }
   0x6   : > { %p67_p1 = scmp.eq.s32.totalorder %s66_s17, 0  ;;  %p80_p2 = scmp.eq.s32.totalorder %s7928_s13, 3 }
   0x7   : > { %p85_p3 = scmp.ne.s32.totalorder %s7873_s10, %s7869_s9  ;;  %p86_p4 = scmp.eq.s32.totalorder %s6666_s14, 3 }
   0x8   : > { %s7943_s18 = scalar_select %p67_p1, %s7877_s11, %s69_s16  }
   0x9   : > { %p7945_p5 = por %p80_p2, %p79_p0  ;;  %p7949_p6 = por %p86_p4, %p85_p3 }
   0xa   : > { %p6669_p7 = scmp.ge.s32.totalorder %s7881_s12, 1  ;;  %p116_p8 = scmp.lt.s32.totalorder %s7881_s12, 5 }
   0xc   : > { %p117_p9 = pnand %p6669_p7, %p116_p8 }
   0xe   : > { %120 = sbr.rel (%p117_p9) target bundleno = 1443 (0x5a3), region = 28 }
  0x13   : > { %v185_v0 = vld [vmem:[%s11978_s1] sm:$0xff]  ;;  %s138_s23 = smul.u32 40, %s7928_s13  ;;  %vm186_vm0 = vcmask 64512   ;;  %s135_s28 = sand.u32 1, %s7873_s10  }
  0x14   : > { %v7959_v1 = vand.u32 4294901760, %v185_v0  ;;  %s7453_s29 = smul.u32 320, %s135_s28  ;;  %s11937_s8 = scalar_lea.sflag [#allocation3], %s135_s28 }
  0x15   : > { %p139_p10 = scmp.lt.s32.totalorder %s138_s23, 159  ;;  %s6834_s3 = smul.u32 5120, %s7928_s13 }
  0x16   : > { %7081 = vmatprep.subr.mxu0 %v7959_v1  ;;  %v7963_v2 = vsub.f32 %v185_v0, %v7959_v1  ;;  %s9140_s30 = scalar_lea.vmem [#allocation2], %s7453_s29  ;;  %s7889_s14 = smov [#allocation2]  }
  0x17   : > { %7082 = vmatpush3.msra.mxu0 %v7959_v1  ;;  %s12323_s23 = smov (!%p139_p10, %s138_s23), 159  ;;  %s6604_s4 = sshll.u32 %s9140_s30, 4  ;;  %s11932_s4 = int_to_ptr.vmem [resolvable:$true] %s6604_s4 }
  0x18   : > { %v7967_v3 = vand.u32 4294901760, %v7963_v2  ;;  %7205 = vmatprep.subr.mxu0 %v7963_v2  ;;  %s6670_s24 = sshll.u32 %s12323_s23, 3  ;;  %s11929_s7 = scalar_lea.hbm %s11979_s2, %s6834_s3 }
  0x19   : > { %s7975_s27 = scalar_lea.vmem %s11977_s0, %s6670_s24  ;;  %s7821_s13 = scalar_lea.vmem %s11932_s4, 5120 }
  0x1a   : > { %v807_v4 = vsub.f32 %v7963_v2, %v7967_v3  ;;  %v145_v5 = vld [vmem:[%s7975_s27] sm:$0xff]  ;;  %v146_v6 = vld [vmem:[%s7975_s27 + $0x8] sm:$0xff]  ;;  %v147_v7 = vld [vmem:[%s7975_s27 + $0x10] sm:$0xff]  ;;  %p7822_p11 = scmp.ne.s32.totalorder %s11932_s4, %s7821_s13  ;;  %s7825_s16 = sshll.u32 %s7889_s14, 4  ;;  %s7826_s16 = int_to_ptr.vmem [resolvable:$false] %s7825_s16 }
  0x1b   : > { %v188_v9 = vsel %vm186_vm0, %v145_v5, 0  ;;  %v191_v10 = vsel %vm186_vm0, %v146_v6, 0  ;;  %v194_v11 = vsel %vm186_vm0, %v147_v7, 0  ;;  %v148_v12 = vld [vmem:[%s7975_s27 + $0x18] sm:$0xff]  ;;  %v149_v13 = vld [vmem:[%s7975_s27 + $0x20] sm:$0xff]  ;;  %v150_v18 = vld [vmem:[%s7975_s27 + $0x28] sm:$0xff]  ;;  %p7828_p0 = scmp.lt.s32.totalorder %s11932_s4, %s7826_s16 }
  0x1c   : > { %v808_v8 = vand.u32 4294901760, %v807_v4  ;;  %v7985_v14 = vand.u32 4294901760, %v188_v9  ;;  %v7987_v15 = vand.u32 4294901760, %v191_v10  ;;  %v7989_v16 = vand.u32 4294901760, %v194_v11  ;;  %v151_v19 = vld [vmem:[%s7975_s27 + $0x30] sm:$0xff]  ;;  %v152_v24 = vld [vmem:[%s7975_s27 + $0x38] sm:$0xff]  ;;  %p7823_p12 = pnand %p7822_p11, %p7945_p5 }
  0x1d   : > { %v197_v17 = vsel %vm186_vm0, %v148_v12, 0  ;;  %v200_v21 = vsel %vm186_vm0, %v149_v13, 0  ;;  %v203_v22 = vsel %vm186_vm0, %v150_v18, 0  ;;  %v206_v23 = vsel %vm186_vm0, %v151_v19, 0  ;;  %v153_v49 = vld [vmem:[%s7975_s27 + $0x40] sm:$0xff]  ;;  %v154_v50 = vld [vmem:[%s7975_s27 + $0x48] sm:$0xff] }
  0x1e   : > { %7143 = vmatprep.subr.mxu1 %v808_v8  ;;  %v7994_v20 = vand.u32 4294901760, %v197_v17  ;;  %v8001_v25 = vsub.f32 %v188_v9, %v7985_v14  ;;  %7145 = vmatprep.mubr.f32.mxu1 %v7985_v14  ;;  %v8005_v26 = vsub.f32 %v191_v10, %v7987_v15  ;;  %v8008_v27 = vsub.f32 %v194_v11, %v7989_v16  ;;  %v155_v51 = vld [vmem:[%s7975_s27 + $0x50] sm:$0xff]  ;;  %v156_v59 = vld [vmem:[%s7975_s27 + $0x58] sm:$0xff]  ;;  %v157_v60 = vld [vmem:[%s7975_s27 + $0x60] sm:$0xff]  ;;  %p7824_p13 = pneg %p7823_p12  ;;  %s7827_s17 = scalar_lea.vmem %s7826_s16, 10240 }
  0x1f   : > { %7144 = vmatpush3.msra.mxu1 %v808_v8  ;;  %v8010_v28 = vand.u32 4294901760, %v200_v21  ;;  %v8017_v30 = vand.u32 4294901760, %v203_v22  ;;  %v8019_v31 = vand.u32 4294901760, %v206_v23  ;;  %v209_v32 = vsel %vm186_vm0, %v152_v24, 0  ;;  %v158_v8 = vld [vmem:[%s7975_s27 + $0x68] sm:$0xff]  ;;  %v159_v9 = vld [vmem:[%s7975_s27 + $0x70] sm:$0xff]  ;;  %p7829_p1 = scmp.lt.s32.totalorder %s7827_s17, %s7821_s13 }
  0x20   : > { %12078 = vst [vmem:[#allocation5_spill] sm:$0xff] %v7994_v20  ;;  %7146 = vmatmul.mubr.f32.vlgmr.msra.gmra.mxu1 %v7987_v15  ;;  %7267 = vmatprep.subr.mxu1 %v7959_v1  ;;  %v8015_v29 = vsub.f32 %v197_v17, %v7994_v20  ;;  %v11995_v33 = vand.u32 4294901760, %v8001_v25  ;;  %v11994_v34 = vand.u32 4294901760, %v8005_v26  ;;  %v11992_v35 = vand.u32 4294901760, %v8008_v27 }
  0x21   : > { %12079 = vst [vmem:[#allocation6_spill] sm:$0xff] %v8010_v28  ;;  %12080 = vst [vmem:[#allocation7_spill] sm:$0xff] %v8017_v30  ;;  %7268 = vmatpush3.msra.mxu1 %v7959_v1  ;;  %7148 = vmatprep.mubr.f32.mxu1 %v7989_v16  ;;  %v8028_v36 = vsub.f32 %v200_v21, %v8010_v28  ;;  %v8032_v38 = vsub.f32 %v203_v22, %v8017_v30  ;;  %v8037_v40 = vand.u32 4294901760, %v209_v32  ;;  %v160_v21 = vld [vmem:[%s7975_s27 + $0x78] sm:$0xff]  ;;  %p7830_p2 = por %p7829_p1, %p7828_p0 }
  0x22   : > { %12081 = vst [vmem:[#allocation8_spill] sm:$0xff] %v8019_v31  ;;  %v11991_v37 = vand.u32 4294901760, %v8015_v29  ;;  %v8035_v39 = vsub.f32 %v206_v23, %v8019_v31  ;;  %7391 = vmatprep.subr.mxu1 %v7959_v1  ;;  %v376_v41 = vsub.f32 %v8001_v25, %v11995_v33  ;;  %v386_v42 = vsub.f32 %v8005_v26, %v11994_v34  ;;  %v171_v33 = vld [vmem:[%s7975_s27 + $0xd0] sm:$0xff] }
  0x23   : > { %12082 = vst [vmem:[#allocation9_spill] sm:$0xff] %v8037_v40  ;;  %v396_v43 = vsub.f32 %v8008_v27, %v11992_v35  ;;  %v11990_v44 = vand.u32 4294901760, %v8028_v36  ;;  %v11988_v46 = vand.u32 4294901760, %v8032_v38  ;;  %v8057_v48 = vsub.f32 %v209_v32, %v8037_v40  ;;  %p7831_p3 = pnand %p7830_p2, %p7824_p13 }
  0x24   : > { %v406_v45 = vsub.f32 %v8015_v29, %v11991_v37  ;;  %7149 = vmatmul.mubr.f32.gmra.mxu1 %v7994_v20  ;;  %v11987_v47 = vand.u32 4294901760, %v8035_v39  ;;  %v377_v52 = vand.u32 4294901760, %v376_v41  ;;  %v387_v53 = vand.u32 4294901760, %v386_v42 }
  0x25   : > { %v397_v54 = vand.u32 4294901760, %v396_v43  ;;  %v416_v55 = vsub.f32 %v8028_v36, %v11990_v44  ;;  %7151 = vmatprep.mubr.f32.mxu1 %v8010_v28  ;;  %v426_v56 = vsub.f32 %v8032_v38, %v11988_v46  ;;  %v11985_v58 = vand.u32 4294901760, %v8057_v48 }
  0x26   : > { %v436_v57 = vsub.f32 %v8035_v39, %v11987_v47  ;;  %7083 = vmatprep.mubr.f32.mxu0 %v377_v52  ;;  %v407_v61 = vand.u32 4294901760, %v406_v45  ;;  %v212_v62 = vsel %vm186_vm0, %v153_v49, 0  ;;  %v215_v63 = vsel %vm186_vm0, %v154_v50, 0 }
  0x27   : > { %v218_v0 = vsel %vm186_vm0, %v155_v51, 0  ;;  %7084 = vmatmul.mubr.f32.vlgmr.msra.gmra.mxu0 %v387_v53  ;;  %v417_v4 = vand.u32 4294901760, %v416_v55  ;;  %v427_v5 = vand.u32 4294901760, %v426_v56  ;;  %v8079_v7 = vand.u32 4294901760, %v212_v62 }
  0x28   : > { %7152 = vmatmul.mubr.f32.gmra.mxu1 %v8017_v30  ;;  %v437_v6 = vand.u32 4294901760, %v436_v57  ;;  %7206 = vmatpush3.msra.mxu0 %v7963_v2  ;;  %v8084_v10 = vand.u32 4294901760, %v215_v63  ;;  %v8086_v11 = vand.u32 4294901760, %v218_v0  ;;  %v221_v12 = vsel %vm186_vm0, %v156_v59, 0  ;;  %v161_v59 = vld [vmem:[%s7975_s27 + $0x80] sm:$0xff] }
  0x29   : > { %12083 = vst [vmem:[#allocation10_spill] sm:$0xff] %v8079_v7  ;;  %7086 = vmatprep.mubr.f32.mxu0 %v397_v54  ;;  %v224_v13 = vsel %vm186_vm0, %v157_v60, 0  ;;  %7154 = vmatprep.mubr.f32.mxu1 %v8019_v31  ;;  %v446_v17 = vsub.f32 %v8057_v48, %v11985_v58  ;;  %v8095_v18 = vsub.f32 %v212_v62, %v8079_v7  ;;  %v8097_v19 = vand.u32 4294901760, %v221_v12  ;;  %v167_v58 = vld [vmem:[%s7975_s27 + $0xb0] sm:$0xff] }
  0x2a   : > { %12084 = vst [vmem:[#allocation11_spill] sm:$0xff] %v8084_v10  ;;  %12085 = vst [vmem:[#allocation12_spill] sm:$0xff] %v8086_v11  ;;  %v8099_v2 = vand.u32 4294901760, %v224_v13  ;;  %7329 = vmatprep.subr.mxu0 %v7967_v3  ;;  %v8104_v22 = vsub.f32 %v215_v63, %v8084_v10  ;;  %v8107_v23 = vsub.f32 %v218_v0, %v8086_v11  ;;  %v227_v24 = vsel %vm186_vm0, %v158_v8, 0  ;;  %v162_v63 = vld [vmem:[%s7975_s27 + $0x88] sm:$0xff] }
  0x2b   : > { %12086 = vst [vmem:[#allocation13_spill] sm:$0xff] %v8097_v19  ;;  %v230_v32 = vsel %vm186_vm0, %v159_v9, 0  ;;  %7087 = vmatmul.mubr.f32.gmra.mxu0 %v407_v61  ;;  %v11984_v41 = vand.u32 4294901760, %v8095_v18  ;;  %v8114_v42 = vsub.f32 %v221_v12, %v8097_v19  ;;  %v8119_v45 = vand.u32 4294901760, %v227_v24 }
  0x2c   : > { %12087 = vst [vmem:[#allocation14_spill] sm:$0xff] %v8099_v2  ;;  %7155 = vmatmul.mubr.f32.gmra.mxu1 %v8037_v40  ;;  %v8117_v43 = vsub.f32 %v224_v13, %v8099_v2  ;;  %7089 = vmatprep.mubr.f32.mxu0 %v417_v4  ;;  %v11983_v49 = vand.u32 4294901760, %v8104_v22  ;;  %v11982_v50 = vand.u32 4294901760, %v8107_v23  ;;  %v8124_v51 = vand.u32 4294901760, %v230_v32  ;;  %v177_v40 = vld [vmem:[%s7975_s27 + $0x100] sm:$0xff] }
  0x2d   : > { %12088 = vst [vmem:[#allocation15_spill] sm:$0xff] %v8119_v45  ;;  %7157 = vmatprep.mubr.f32.mxu1 %v8079_v7  ;;  %v233_v52 = vsel %vm186_vm0, %v160_v21, 0  ;;  %v456_v53 = vsub.f32 %v8095_v18, %v11984_v41  ;;  %v11981_v54 = vand.u32 4294901760, %v8114_v42  ;;  %v8133_v56 = vsub.f32 %v227_v24, %v8119_v45 }
  0x2e   : > { %12089 = vst [vmem:[#allocation16_spill] sm:$0xff] %v8124_v51  ;;  %v11980_v55 = vand.u32 4294901760, %v8117_v43  ;;  %v8135_v57 = vand.u32 4294901760, %v233_v52  ;;  %v447_v60 = vand.u32 4294901760, %v446_v17  ;;  %v466_v61 = vsub.f32 %v8104_v22, %v11983_v49 }
  0x2f   : > { %7090 = vmatmul.mubr.f32.gmra.mxu0 %v427_v5  ;;  %v8143_v62 = vsub.f32 %v230_v32, %v8124_v51  ;;  %v457_v0 = vand.u32 4294901760, %v456_v53  ;;  %v476_v4 = vsub.f32 %v8107_v23, %v11982_v50  ;;  %v163_v5 = vld [vmem:[%s7975_s27 + $0x90] sm:$0xff]  ;;  %v486_v8 = vsub.f32 %v8114_v42, %v11981_v54  ;;  %v165_v32 = vld [vmem:[%s7975_s27 + $0xa0] sm:$0xff]  ;;  %v166_v50 = vld [vmem:[%s7975_s27 + $0xa8] sm:$0xff] }
  0x30   : > { %12090 = vst [vmem:[#allocation17_spill] sm:$0xff] %v8135_v57  ;;  %7158 = vmatmul.mubr.f32.gmra.mxu1 %v8084_v10  ;;  %7092 = vmatprep.mubr.f32.mxu0 %v437_v6  ;;  %v496_v9 = vsub.f32 %v8117_v43, %v11980_v55  ;;  %v236_v12 = vsel %vm186_vm0, %v161_v59, 0  ;;  %v164_v6 = vld [vmem:[%s7975_s27 + $0x98] sm:$0xff]  ;;  %v11986_v13 = vand.u32 4294901760, %v8133_v56  ;;  %v8161_v17 = vsub.f32 %v233_v52, %v8135_v57  ;;  %v182_v10 = vld [vmem:[%s7975_s27 + $0x128] sm:$0xff] }
  0x31   : > { %7160 = vmatprep.mubr.f32.mxu1 %v8086_v11  ;;  %v8163_v21 = vand.u32 4294901760, %v236_v12  ;;  %v239_v24 = vsel %vm186_vm0, %v162_v63, 0  ;;  %v467_v53 = vand.u32 4294901760, %v466_v61  ;;  %v11989_v55 = vand.u32 4294901760, %v8143_v62 }
  0x32   : > { %v8169_v54 = vand.u32 4294901760, %v239_v24  ;;  %v242_v59 = vsel %vm186_vm0, %v163_v5, 0  ;;  %v477_v52 = vand.u32 4294901760, %v476_v4  ;;  %v245_v61 = vsel %vm186_vm0, %v164_v6, 0 }
  0x33   : > { %12091 = vst [vmem:[#allocation18_spill] sm:$0xff] %v8163_v21  ;;  %7093 = vmatmul.mubr.f32.gmra.mxu0 %v447_v60  ;;  %v8175_v63 = vsub.f32 %v236_v12, %v8163_v21  ;;  %v8177_v60 = vand.u32 4294901760, %v242_v59  ;;  %v248_v49 = vsel %vm186_vm0, %v165_v32, 0  ;;  %v487_v41 = vand.u32 4294901760, %v486_v8 }
  0x34   : > { %7161 = vmatmul.mubr.f32.gmra.mxu1 %v8097_v19  ;;  %12092 = vst [vmem:[#allocation19_spill] sm:$0xff] %v8169_v54  ;;  %7095 = vmatprep.mubr.f32.mxu0 %v457_v0  ;;  %v506_v5 = vsub.f32 %v8133_v56, %v11986_v13  ;;  %v11993_v0 = vand.u32 4294901760, %v8161_v17  ;;  %v251_v4 = vsel %vm186_vm0, %v166_v50, 0  ;;  %v516_v12 = vsub.f32 %v8143_v62, %v11989_v55  ;;  %v168_v13 = vld [vmem:[%s7975_s27 + $0xb8] sm:$0xff] }
  0x35   : > { %7163 = vmatprep.mubr.f32.mxu1 %v8099_v2  ;;  %12093 = vst [vmem:[#allocation20_spill] sm:$0xff] %v8177_v60  ;;  %v8192_v6 = vsub.f32 %v239_v24, %v8169_v54  ;;  %v8194_v8 = vand.u32 4294901760, %v245_v61  ;;  %v8196_v32 = vand.u32 4294901760, %v248_v49  ;;  %v497_v47 = vand.u32 4294901760, %v496_v9  ;;  %v169_v24 = vld [vmem:[%s7975_s27 + $0xc0] sm:$0xff] }
  0x36   : > { %v11996_v50 = vand.u32 4294901760, %v8175_v63  ;;  %v8204_v46 = vand.u32 4294901760, %v251_v4  ;;  %v254_v55 = vsel %vm186_vm0, %v167_v58, 0  ;;  %v507_v44 = vand.u32 4294901760, %v506_v5 }
  0x37   : > { %7096 = vmatmul.mubr.f32.gmra.mxu0 %v467_v53  ;;  %12094 = vst [vmem:[#allocation21_spill] sm:$0xff] %v8194_v8  ;;  %12095 = vst [vmem:[#allocation22_spill] sm:$0xff] %v8196_v32  ;;  %v8202_v53 = vsub.f32 %v242_v59, %v8177_v60  ;;  %v526_v37 = vsub.f32 %v8161_v17, %v11993_v0  ;;  %v257_v9 = vsel %vm186_vm0, %v168_v13, 0  ;;  %v12001_v59 = vand.u32 4294901760, %v8192_v6  ;;  %v170_v0 = vld [vmem:[%s7975_s27 + $0xc8] sm:$0xff] }
  0x38   : > { %7164 = vmatmul.mubr.f32.gmra.mxu1 %v8119_v45  ;;  %7098 = vmatprep.mubr.f32.mxu0 %v477_v52  ;;  %12096 = vst [vmem:[#allocation23_spill] sm:$0xff] %v8204_v46  ;;  %v517_v52 = vand.u32 4294901760, %v516_v12  ;;  %v8215_v35 = vsub.f32 %v245_v61, %v8194_v8  ;;  %v8218_v58 = vsub.f32 %v248_v49, %v8196_v32  ;;  %v8225_v13 = vand.u32 4294901760, %v254_v55 }
  0x39   : > { %7166 = vmatprep.mubr.f32.mxu1 %v8124_v51  ;;  %v536_v5 = vsub.f32 %v8175_v63, %v11996_v50  ;;  %v260_v12 = vsel %vm186_vm0, %v169_v24, 0  ;;  %v8230_v61 = vsub.f32 %v251_v4, %v8204_v46  ;;  %v8232_v49 = vand.u32 4294901760, %v257_v9  ;;  %v174_v51 = vld [vmem:[%s7975_s27 + $0xe8] sm:$0xff] }
  0x3a   : > { %12097 = vst [vmem:[#allocation24_spill] sm:$0xff] %v8225_v13  ;;  %v8234_v34 = vand.u32 4294901760, %v260_v12  ;;  %v546_v50 = vsub.f32 %v8192_v6, %v12001_v59  ;;  %v172_v59 = vld [vmem:[%s7975_s27 + $0xd8] sm:$0xff] }
  0x3b   : > { %7099 = vmatmul.mubr.f32.gmra.mxu0 %v487_v41  ;;  %12098 = vst [vmem:[#allocation25_spill] sm:$0xff] %v8232_v49  ;;  %v263_v41 = vsel %vm186_vm0, %v170_v0, 0  ;;  %v8254_v24 = vsub.f32 %v257_v9, %v8232_v49  ;;  %v266_v0 = vsel %vm186_vm0, %v171_v33, 0  ;;  %v12103_v9 = vand.u32 4294901760, %v8218_v58 }
  0x3c   : > { %7167 = vmatmul.mubr.f32.gmra.mxu1 %v8135_v57  ;;  %7101 = vmatprep.mubr.f32.mxu0 %v497_v47  ;;  %v527_v47 = vand.u32 4294901760, %v526_v37  ;;  %12099 = vst [vmem:[#allocation26_spill] sm:$0xff] %v8234_v34  ;;  %v12100_v37 = vand.u32 4294901760, %v8202_v53  ;;  %v547_v4 = vand.u32 4294901760, %v546_v50  ;;  %v8273_v50 = vand.u32 4294901760, %v266_v0 }
  0x3d   : > { %7169 = vmatprep.mubr.f32.mxu1 %v8163_v21  ;;  %v537_v21 = vand.u32 4294901760, %v536_v5  ;;  %v8260_v5 = vand.u32 4294901760, %v263_v41  ;;  %v576_v33 = vsub.f32 %v8218_v58, %v12103_v9  ;;  %v175_v9 = vld [vmem:[%s7975_s27 + $0xf0] sm:$0xff] }
  0x3e   : > { %v556_v57 = vsub.f32 %v8202_v53, %v12100_v37  ;;  %v173_v37 = vld [vmem:[%s7975_s27 + $0xe0] sm:$0xff]  ;;  %12104 = vst [vmem:[#allocation28_spill] sm:$0xff] %v8273_v50 }
  0x3f   : > { %7102 = vmatmul.mubr.f32.gmra.mxu0 %v507_v44  ;;  %v8249_v44 = vsub.f32 %v254_v55, %v8225_v13  ;;  %12101 = vst [vmem:[#allocation27_spill] sm:$0xff] %v8260_v5  ;;  %v12102_v55 = vand.u32 4294901760, %v8215_v35  ;;  %v272_v2 = vsel %vm186_vm0, %v173_v37, 0  ;;  %v577_v19 = vand.u32 4294901760, %v576_v33  ;;  %v179_v33 = vld [vmem:[%s7975_s27 + $0x110] sm:$0xff] }
  0x40   : > { %7170 = vmatmul.mubr.f32.gmra.mxu1 %v8169_v54  ;;  %7104 = vmatprep.mubr.f32.mxu0 %v517_v52  ;;  %v8258_v52 = vsub.f32 %v260_v12, %v8234_v34  ;;  %v269_v12 = vsel %vm186_vm0, %v172_v59, 0  ;;  %v557_v54 = vand.u32 4294901760, %v556_v57  ;;  %v8284_v57 = vsub.f32 %v263_v41, %v8260_v5 }
  0x41   : > { %7172 = vmatprep.mubr.f32.mxu1 %v8177_v60  ;;  %v566_v60 = vsub.f32 %v8215_v35, %v12102_v55  ;;  %v12105_v55 = vand.u32 4294901760, %v8230_v61  ;;  %v8286_v59 = vand.u32 4294901760, %v269_v12  ;;  %v12107_v37 = vand.u32 4294901760, %v8249_v44 }
  0x42   : > { %v8296_v41 = vsub.f32 %v266_v0, %v8273_v50  ;;  %v8298_v45 = vand.u32 4294901760, %v272_v2  ;;  %v290_v31 = vsel %vm186_vm0, %v179_v33, 0  ;;  %v12113_v30 = vand.u32 4294901760, %v8284_v57 }
  0x43   : > { %7105 = vmatmul.mubr.f32.gmra.mxu0 %v527_v47  ;;  %12106 = vst [vmem:[#allocation29_spill] sm:$0xff] %v8286_v59  ;;  %v178_v47 = vld [vmem:[%s7975_s27 + $0x108] sm:$0xff]  ;;  %v8313_v7 = vsub.f32 %v269_v12, %v8286_v59 }
  0x44   : > { %7173 = vmatmul.mubr.f32.gmra.mxu1 %v8194_v8  ;;  %7107 = vmatprep.mubr.f32.mxu0 %v537_v21  ;;  %v586_v8 = vsub.f32 %v8230_v61, %v12105_v55  ;;  %v275_v55 = vsel %vm186_vm0, %v174_v51, 0  ;;  %v596_v21 = vsub.f32 %v8249_v44, %v12107_v37  ;;  %12108 = vst [vmem:[#allocation30_spill] sm:$0xff] %v8298_v45  ;;  %v287_v37 = vsel %vm186_vm0, %v178_v47, 0 }
  0x45   : > { %7175 = vmatprep.mubr.f32.mxu1 %v8196_v32  ;;  %v567_v32 = vand.u32 4294901760, %v566_v60  ;;  %v278_v60 = vsel %vm186_vm0, %v175_v9, 0  ;;  %v8315_v9 = vand.u32 4294901760, %v275_v55 }
  0x46   : > { %v587_v51 = vand.u32 4294901760, %v586_v8  ;;  %v181_v8 = vld [vmem:[%s7975_s27 + $0x120] sm:$0xff]  ;;  %v597_v12 = vand.u32 4294901760, %v596_v21 }
  0x47   : > { %7108 = vmatmul.mubr.f32.gmra.mxu0 %v547_v4  ;;  %v176_v4 = vld [vmem:[%s7975_s27 + $0xf8] sm:$0xff]  ;;  %12111 = vst [vmem:[#allocation31_spill] sm:$0xff] %v8315_v9  ;;  %v296_v28 = vsel %vm186_vm0, %v181_v8, 0  ;;  %v8335_v33 = vsub.f32 %v275_v55, %v8315_v9  ;;  %v12114_v55 = vand.u32 4294901760, %v8296_v41 }
  0x48   : > { %7176 = vmatmul.mubr.f32.gmra.mxu1 %v8204_v46  ;;  %7110 = vmatprep.mubr.f32.mxu0 %v557_v54  ;;  %v180_v46 = vld [vmem:[%s7975_s27 + $0x118] sm:$0xff]  ;;  %v12109_v54 = vand.u32 4294901760, %v8254_v24  ;;  %v281_v47 = vsel %vm186_vm0, %v176_v4, 0  ;;  %v183_v4 = vld [vmem:[%s7975_s27 + $0x130] sm:$0xff] }
  0x49   : > { %7178 = vmatprep.mubr.f32.mxu1 %v8225_v13  ;;  %v12110_v13 = vand.u32 4294901760, %v8258_v52 }
  0x4a   : > { %v606_v11 = vsub.f32 %v8254_v24, %v12109_v54  ;;  %v8320_v54 = vand.u32 4294901760, %v278_v60 }
  0x4b   : > { %v616_v0 = vsub.f32 %v8258_v52, %v12110_v13  ;;  %7111 = vmatmul.mubr.f32.gmra.mxu0 %v567_v32  ;;  %v293_v13 = vsel %vm186_vm0, %v180_v46, 0  ;;  %v8329_v32 = vsub.f32 %v272_v2, %v8298_v45  ;;  %v8337_v46 = vand.u32 4294901760, %v281_v47 }
  0x4c   : > { %7179 = vmatmul.mubr.f32.gmra.mxu1 %v8232_v49  ;;  %7113 = vmatprep.mubr.f32.mxu0 %v577_v19  ;;  %v284_v49 = vsel %vm186_vm0, %v177_v40, 0  ;;  %v607_v20 = vand.u32 4294901760, %v606_v11  ;;  %v299_v19 = vsel %vm186_vm0, %v182_v10, 0  ;;  %v626_v2 = vsub.f32 %v8284_v57, %v12113_v30  ;;  %v184_v11 = vld [vmem:[%s7975_s27 + $0x138] sm:$0xff] }
  0x4d   : > { %7181 = vmatprep.mubr.f32.mxu1 %v8234_v34  ;;  %12112 = vst [vmem:[#allocation32_spill] sm:$0xff] %v8337_v46  ;;  %v617_v21 = vand.u32 4294901760, %v616_v0  ;;  %v8346_v8 = vsub.f32 %v278_v60, %v8320_v54  ;;  %v636_v34 = vsub.f32 %v8296_v41, %v12114_v55  ;;  %v302_v30 = vsel %vm186_vm0, %v183_v4, 0 }
  0x4e   : > { %v8359_v40 = vsub.f32 %v281_v47, %v8337_v46  ;;  %v305_v60 = vsel %vm186_vm0, %v184_v11, 0  ;;  %v12118_v0 = vand.u32 4294901760, %v8329_v32 }
  0x4f   : > { %7114 = vmatmul.mubr.f32.gmra.mxu0 %v587_v51  ;;  %v8354_v51 = vand.u32 4294901760, %v284_v49  ;;  %v637_v4 = vand.u32 4294901760, %v636_v34  ;;  %v12120_v34 = vand.u32 4294901760, %v8346_v8 }
  0x50   : > { %7182 = vmatmul.mubr.f32.gmra.mxu1 %v8260_v5  ;;  %7116 = vmatprep.mubr.f32.mxu0 %v597_v12  ;;  %v627_v12 = vand.u32 4294901760, %v626_v2  ;;  %v12116_v5 = vand.u32 4294901760, %v8313_v7  ;;  %v656_v47 = vsub.f32 %v8329_v32, %v12118_v0  ;;  %v8376_v2 = vand.u32 4294901760, %v290_v31 }
  0x51   : > { %7184 = vmatprep.mubr.f32.mxu1 %v8273_v50  ;;  %12115 = vst [vmem:[#allocation33_spill] sm:$0xff] %v8354_v51  ;;  %v8367_v50 = vand.u32 4294901760, %v287_v37  ;;  %v676_v0 = vsub.f32 %v8346_v8, %v12120_v34 }
  0x52   : > { %v646_v55 = vsub.f32 %v8313_v7, %v12116_v5  ;;  %v12119_v5 = vand.u32 4294901760, %v8335_v33 }
  0x53   : > { %7117 = vmatmul.mubr.f32.gmra.mxu0 %v607_v20  ;;  %12117 = vst [vmem:[#allocation34_spill] sm:$0xff] %v8367_v50  ;;  %v8374_v20 = vsub.f32 %v284_v49, %v8354_v51  ;;  %v8389_v49 = vand.u32 4294901760, %v293_v13 }
  0x54   : > { %7185 = vmatmul.mubr.f32.gmra.mxu1 %v8286_v59  ;;  %7119 = vmatprep.mubr.f32.mxu0 %v617_v21  ;;  %v666_v11 = vsub.f32 %v8335_v33, %v12119_v5  ;;  %v647_v21 = vand.u32 4294901760, %v646_v55  ;;  %v657_v59 = vand.u32 4294901760, %v656_v47  ;;  %v8396_v55 = vand.u32 4294901760, %v296_v28 }
  0x55   : > { %7187 = vmatprep.mubr.f32.mxu1 %v8298_v45  ;;  %v8387_v45 = vsub.f32 %v287_v37, %v8367_v50  ;;  %v677_v37 = vand.u32 4294901760, %v676_v0  ;;  %v8404_v47 = vsub.f32 %v293_v13, %v8389_v49  ;;  %v8406_v5 = vand.u32 4294901760, %v299_v19 }
  0x56   : > { %v667_v10 = vand.u32 4294901760, %v666_v11  ;;  %v8416_v0 = vand.u32 4294901760, %v302_v30 }
  0x57   : > { %7120 = vmatmul.mubr.f32.gmra.mxu0 %v627_v12  ;;  %v8394_v12 = vsub.f32 %v290_v31, %v8376_v2  ;;  %v12122_v31 = vand.u32 4294901760, %v8374_v20  ;;  %v12123_v13 = vand.u32 4294901760, %v8387_v45 }
  0x58   : > { %7188 = vmatmul.mubr.f32.gmra.mxu1 %v8315_v9  ;;  %7122 = vmatprep.mubr.f32.mxu0 %v637_v4  ;;  %v12121_v9 = vand.u32 4294901760, %v8359_v40 }
  0x59   : > { %7190 = vmatprep.mubr.f32.mxu1 %v8320_v54  ;;  %v696_v11 = vsub.f32 %v8374_v20, %v12122_v31  ;;  %v8424_v31 = vsub.f32 %v299_v19, %v8406_v5  ;;  %v12124_v19 = vand.u32 4294901760, %v8404_v47 }
  0x5a   : > { %v686_v34 = vsub.f32 %v8359_v40, %v12121_v9  ;;  %v12058_v9 = vand.u32 4294901760, %v8394_v12 }
  0x5b   : > { %7123 = vmatmul.mubr.f32.gmra.mxu0 %v647_v21  ;;  %v8414_v21 = vsub.f32 %v296_v28, %v8396_v55  ;;  %v697_v28 = vand.u32 4294901760, %v696_v11 }
  0x5c   : > { %7191 = vmatmul.mubr.f32.gmra.mxu1 %v8337_v46  ;;  %7125 = vmatprep.mubr.f32.mxu0 %v657_v59  ;;  %v687_v4 = vand.u32 4294901760, %v686_v34  ;;  %v706_v46 = vsub.f32 %v8387_v45, %v12123_v13  ;;  %v716_v34 = vsub.f32 %v8394_v12, %v12058_v9  ;;  %v8434_v13 = vsub.f32 %v302_v30, %v8416_v0 }
  0x5d   : > { %7193 = vmatprep.mubr.f32.mxu1 %v8354_v51  ;;  %v8426_v51 = vand.u32 4294901760, %v305_v60 }
  0x5e   : > { %v707_v59 = vand.u32 4294901760, %v706_v46  ;;  %v717_v9 = vand.u32 4294901760, %v716_v34  ;;  %v755_v46 = vand.u32 4294901760, %v8434_v13 }
  0x5f   : > { %7126 = vmatmul.mubr.f32.gmra.mxu0 %v667_v10  ;;  %v12059_v10 = vand.u32 4294901760, %v8414_v21  ;;  %v8442_v11 = vsub.f32 %v305_v60, %v8426_v51 }
  0x60   : > { %7194 = vmatmul.mubr.f32.gmra.mxu1 %v8367_v50  ;;  %7128 = vmatprep.mubr.f32.mxu0 %v677_v37  ;;  %v726_v50 = vsub.f32 %v8404_v47, %v12124_v19  ;;  %v12060_v37 = vand.u32 4294901760, %v8424_v31  ;;  %v756_v34 = vsub.f32 %v8434_v13, %v755_v46 }
  0x61   : > { %7196 = vmatprep.mubr.f32.mxu1 %v8376_v2  ;;  %v736_v30 = vsub.f32 %v8414_v21, %v12059_v10  ;;  %v765_v60 = vand.u32 4294901760, %v8442_v11 }
  0x62   : > { %v746_v19 = vsub.f32 %v8424_v31, %v12060_v37  ;;  %v12125_v37 = vand.u32 4294901760, %v8001_v25 }
  0x63   : > { %7129 = vmatmul.mubr.f32.gmra.mxu0 %v687_v4  ;;  %v727_v4 = vand.u32 4294901760, %v726_v50  ;;  %v766_v50 = vsub.f32 %v8442_v11, %v765_v60 }
  0x64   : > { %7197 = vmatmul.mubr.f32.gmra.mxu1 %v8389_v49  ;;  %7131 = vmatprep.mubr.f32.mxu0 %v697_v28  ;;  %v737_v28 = vand.u32 4294901760, %v736_v30  ;;  %v747_v10 = vand.u32 4294901760, %v746_v19  ;;  %v12126_v30 = vand.u32 4294901760, %v8005_v26  ;;  %v12128_v19 = vand.u32 4294901760, %v8015_v29 }
  0x65   : > { %7199 = vmatprep.mubr.f32.mxu1 %v8396_v55 }
  0x67   : > { %7132 = vmatmul.mubr.f32.gmra.mxu0 %v707_v59  ;;  %v757_v59 = vand.u32 4294901760, %v756_v34  ;;  %v12178_v34 = vld [vmem:[#allocation20_spill] sm:$0xff] }
  0x68   : > { %7200 = vmatmul.mubr.f32.gmra.mxu1 %v8406_v5  ;;  %7134 = vmatprep.mubr.f32.mxu0 %v717_v9  ;;  %v767_v9 = vand.u32 4294901760, %v766_v50 }
  0x69   : > { %7202 = vmatprep.mubr.f32.mxu1 %v8416_v0 }
  0x6b   : > { %7135 = vmatmul.mubr.f32.gmra.mxu0 %v727_v4  ;;  %v12127_v4 = vand.u32 4294901760, %v8008_v27 }
  0x6c   : > { %7203 = vmatmul.mubr.f32.gmra.mxu1 %v8426_v51  ;;  %7137 = vmatprep.mubr.f32.mxu0 %v737_v28  ;;  %v12129_v28 = vand.u32 4294901760, %v8028_v36 }
  0x6d   : > { %7269 = vmatprep.mubr.f32.mxu1 %v12125_v37  ;;  %v12132_v37 = vand.u32 4294901760, %v8057_v48 }
  0x6f   : > { %7138 = vmatmul.mubr.f32.gmra.mxu0 %v747_v10  ;;  %v12130_v10 = vand.u32 4294901760, %v8032_v38 }
  0x70   : > { %7270 = vmatmul.mubr.f32.vlgmr.msra.gmra.mxu1 %v12126_v30  ;;  %7140 = vmatprep.mubr.f32.mxu0 %v757_v59  ;;  %v12180_v30 = vld [vmem:[#allocation22_spill] sm:$0xff] }
  0x71   : > { %7392 = vmatpush3.msra.mxu1 %v7959_v1  ;;  %7272 = vmatprep.mubr.f32.mxu1 %v12127_v4  ;;  %v12131_v1 = vand.u32 4294901760, %v8035_v39 }
  0x73   : > { %7141 = vmatmul.mubr.f32.gmra.mxu0 %v767_v9  ;;  %v12179_v9 = vld [vmem:[#allocation21_spill] sm:$0xff] }
  0x74   : > { %7273 = vmatmul.mubr.f32.gmra.mxu1 %v12128_v19  ;;  %7207 = vmatprep.mubr.f32.mxu0 %v8001_v25  ;;  %v12133_v25 = vand.u32 4294901760, %v8095_v18 }
  0x75   : > { %7275 = vmatprep.mubr.f32.mxu1 %v12129_v28 }
  0x77   : > { %7208 = vmatmul.mubr.f32.vlgmr.msra.gmra.mxu0 %v8005_v26  ;;  %v12134_v26 = vand.u32 4294901760, %v8104_v22 }
  0x78   : > { %7276 = vmatmul.mubr.f32.gmra.mxu1 %v12130_v10  ;;  %7330 = vmatpush3.msra.mxu0 %v7967_v3  ;;  %v12135_v3 = vand.u32 4294901760, %v8107_v23  ;;  %v12181_v10 = vld [vmem:[#allocation23_spill] sm:$0xff] }
  0x79   : > { %7210 = vmatprep.mubr.f32.mxu0 %v8008_v27  ;;  %7278 = vmatprep.mubr.f32.mxu1 %v12131_v1  ;;  %v12136_v27 = vand.u32 4294901760, %v8114_v42 }
  0x7b   : > { %7211 = vmatmul.mubr.f32.gmra.mxu0 %v8015_v29  ;;  %v12137_v29 = vand.u32 4294901760, %v8117_v43 }
  0x7c   : > { %7279 = vmatmul.mubr.f32.gmra.mxu1 %v12132_v37  ;;  %7213 = vmatprep.mubr.f32.mxu0 %v8028_v36  ;;  %v12138_v36 = vand.u32 4294901760, %v8133_v56  ;;  %v12182_v37 = vld [vmem:[#allocation24_spill] sm:$0xff] }
  0x7d   : > { %7281 = vmatprep.mubr.f32.mxu1 %v12133_v25 }
  0x7f   : > { %7214 = vmatmul.mubr.f32.gmra.mxu0 %v8032_v38  ;;  %v12139_v38 = vand.u32 4294901760, %v8143_v62 }
  0x80   : > { %7282 = vmatmul.mubr.f32.gmra.mxu1 %v12134_v26  ;;  %7216 = vmatprep.mubr.f32.mxu0 %v8035_v39  ;;  %v12140_v39 = vand.u32 4294901760, %v8161_v17 }
  0x81   : > { %7284 = vmatprep.mubr.f32.mxu1 %v12135_v3 }
  0x83   : > { %7217 = vmatmul.mubr.f32.gmra.mxu0 %v8057_v48  ;;  %v12141_v48 = vand.u32 4294901760, %v8175_v63 }
  0x84   : > { %7285 = vmatmul.mubr.f32.gmra.mxu1 %v12136_v27  ;;  %7219 = vmatprep.mubr.f32.mxu0 %v8095_v18  ;;  %v12142_v18 = vand.u32 4294901760, %v8192_v6 }
  0x85   : > { %7287 = vmatprep.mubr.f32.mxu1 %v12137_v29 }
  0x87   : > { %7220 = vmatmul.mubr.f32.gmra.mxu0 %v8104_v22  ;;  %v12143_v22 = vand.u32 4294901760, %v8202_v53 }
  0x88   : > { %7288 = vmatmul.mubr.f32.gmra.mxu1 %v12138_v36  ;;  %7222 = vmatprep.mubr.f32.mxu0 %v8107_v23  ;;  %v12144_v23 = vand.u32 4294901760, %v8215_v35  ;;  %v12183_v36 = vld [vmem:[#allocation25_spill] sm:$0xff] }
  0x89   : > { %7290 = vmatprep.mubr.f32.mxu1 %v12139_v38 }
  0x8b   : > { %7223 = vmatmul.mubr.f32.gmra.mxu0 %v8114_v42  ;;  %v12145_v42 = vand.u32 4294901760, %v8218_v58 }
  0x8c   : > { %7291 = vmatmul.mubr.f32.gmra.mxu1 %v12140_v39  ;;  %7225 = vmatprep.mubr.f32.mxu0 %v8117_v43  ;;  %v12146_v43 = vand.u32 4294901760, %v8230_v61  ;;  %v12184_v39 = vld [vmem:[#allocation26_spill] sm:$0xff] }
  0x8d   : > { %7293 = vmatprep.mubr.f32.mxu1 %v12141_v48 }
  0x8f   : > { %7226 = vmatmul.mubr.f32.gmra.mxu0 %v8133_v56  ;;  %v12147_v56 = vand.u32 4294901760, %v8249_v44 }
  0x90   : > { %7294 = vmatmul.mubr.f32.gmra.mxu1 %v12142_v18  ;;  %7228 = vmatprep.mubr.f32.mxu0 %v8143_v62  ;;  %v12148_v62 = vand.u32 4294901760, %v8254_v24 }
  0x91   : > { %7296 = vmatprep.mubr.f32.mxu1 %v12143_v22 }
  0x93   : > { %7229 = vmatmul.mubr.f32.gmra.mxu0 %v8161_v17  ;;  %v12149_v17 = vand.u32 4294901760, %v8258_v52 }
  0x94   : > { %7297 = vmatmul.mubr.f32.gmra.mxu1 %v12144_v23  ;;  %7231 = vmatprep.mubr.f32.mxu0 %v8175_v63  ;;  %v12150_v63 = vand.u32 4294901760, %v8284_v57 }
  0x95   : > { %7299 = vmatprep.mubr.f32.mxu1 %v12145_v42 }
  0x97   : > { %7232 = vmatmul.mubr.f32.gmra.mxu0 %v8192_v6  ;;  %v12151_v6 = vand.u32 4294901760, %v8296_v41 }
  0x98   : > { %7300 = vmatmul.mubr.f32.gmra.mxu1 %v12146_v43  ;;  %7234 = vmatprep.mubr.f32.mxu0 %v8202_v53  ;;  %v12153_v53 = vand.u32 4294901760, %v8329_v32  ;;  %v12185_v43 = vld [vmem:[#allocation27_spill] sm:$0xff] }
  0x99   : > { %7302 = vmatprep.mubr.f32.mxu1 %v12147_v56 }
  0x9b   : > { %7235 = vmatmul.mubr.f32.gmra.mxu0 %v8215_v35  ;;  %v12152_v35 = vand.u32 4294901760, %v8313_v7 }
  0x9c   : > { %7303 = vmatmul.mubr.f32.gmra.mxu1 %v12148_v62  ;;  %7237 = vmatprep.mubr.f32.mxu0 %v8218_v58  ;;  %v12154_v58 = vand.u32 4294901760, %v8335_v33  ;;  %v12186_v62 = vld [vmem:[#allocation28_spill] sm:$0xff] }
  0x9d   : > { %7305 = vmatprep.mubr.f32.mxu1 %v12149_v17 }
  0x9f   : > { %7238 = vmatmul.mubr.f32.gmra.mxu0 %v8230_v61  ;;  %v12155_v61 = vand.u32 4294901760, %v8346_v8 }
  0xa0   : > { %7306 = vmatmul.mubr.f32.gmra.mxu1 %v12150_v63  ;;  %7240 = vmatprep.mubr.f32.mxu0 %v8249_v44  ;;  %v12157_v44 = vand.u32 4294901760, %v8374_v20 }
  0xa1   : > { %7308 = vmatprep.mubr.f32.mxu1 %v12151_v6 }
  0xa3   : > { %7241 = vmatmul.mubr.f32.gmra.mxu0 %v8254_v24  ;;  %v12156_v24 = vand.u32 4294901760, %v8359_v40 }
  0xa4   : > { %7309 = vmatmul.mubr.f32.gmra.mxu1 %v12152_v35  ;;  %7243 = vmatprep.mubr.f32.mxu0 %v8258_v52  ;;  %v12158_v52 = vand.u32 4294901760, %v8387_v45 }
  0xa5   : > { %7311 = vmatprep.mubr.f32.mxu1 %v12153_v53 }
  0xa7   : > { %7244 = vmatmul.mubr.f32.gmra.mxu0 %v8284_v57  ;;  %v12159_v57 = vand.u32 4294901760, %v8394_v12 }
  0xa8   : > { %7312 = vmatmul.mubr.f32.gmra.mxu1 %v12154_v58  ;;  %7246 = vmatprep.mubr.f32.mxu0 %v8296_v41  ;;  %v12161_v41 = vand.u32 4294901760, %v8414_v21  ;;  %v12187_v58 = vld [vmem:[#allocation29_spill] sm:$0xff] }
  0xa9   : > { %7314 = vmatprep.mubr.f32.mxu1 %v12155_v61 }
  0xab   : > { %7247 = vmatmul.mubr.f32.gmra.mxu0 %v8313_v7  ;;  %v12160_v7 = vand.u32 4294901760, %v8404_v47 }
  0xac   : > { %7315 = vmatmul.mubr.f32.gmra.mxu1 %v12156_v24  ;;  %7249 = vmatprep.mubr.f32.mxu0 %v8329_v32  ;;  %v12162_v32 = vand.u32 4294901760, %v8424_v31  ;;  %v12188_v24 = vld [vmem:[#allocation30_spill] sm:$0xff] }
  0xad   : > { %7317 = vmatprep.mubr.f32.mxu1 %v12157_v44 }
  0xaf   : > { %7250 = vmatmul.mubr.f32.gmra.mxu0 %v8335_v33  ;;  %v12164_v33 = vld [vmem:[#allocation6_spill] sm:$0xff] }
  0xb0   : > { %7318 = vmatmul.mubr.f32.gmra.mxu1 %v12158_v52  ;;  %7252 = vmatprep.mubr.f32.mxu0 %v8346_v8  ;;  %v12166_v8 = vld [vmem:[#allocation8_spill] sm:$0xff] }
  0xb1   : > { %7320 = vmatprep.mubr.f32.mxu1 %v12159_v57 }
  0xb3   : > { %7253 = vmatmul.mubr.f32.gmra.mxu0 %v8359_v40  ;;  %v12165_v40 = vld [vmem:[#allocation7_spill] sm:$0xff] }
  0xb4   : > { %7321 = vmatmul.mubr.f32.gmra.mxu1 %v12160_v7  ;;  %7255 = vmatprep.mubr.f32.mxu0 %v8374_v20  ;;  %v12167_v20 = vld [vmem:[#allocation9_spill] sm:$0xff] }
  0xb5   : > { %7323 = vmatprep.mubr.f32.mxu1 %v12161_v41 }
  0xb7   : > { %7256 = vmatmul.mubr.f32.gmra.mxu0 %v8387_v45  ;;  %v12163_v45 = vld [vmem:[#allocation5_spill] sm:$0xff] }
  0xb8   : > { %7324 = vmatmul.mubr.f32.gmra.mxu1 %v12162_v32  ;;  %7258 = vmatprep.mubr.f32.mxu0 %v8394_v12  ;;  %v12168_v12 = vld [vmem:[#allocation10_spill] sm:$0xff]  ;;  %v12189_v32 = vld [vmem:[#allocation31_spill] sm:$0xff] }
  0xb9   : > { %7326 = vmatprep.mubr.f32.mxu1 %v755_v46 }
  0xbb   : > { %7259 = vmatmul.mubr.f32.gmra.mxu0 %v8404_v47  ;;  %v12172_v47 = vld [vmem:[#allocation14_spill] sm:$0xff] }
  0xbc   : > { %7327 = vmatmul.mubr.f32.gmra.mxu1 %v765_v60  ;;  %7261 = vmatprep.mubr.f32.mxu0 %v8414_v21  ;;  %v12173_v21 = vld [vmem:[#allocation15_spill] sm:$0xff] }
  0xbd   : > { %7393 = vmatprep.mubr.f32.mxu1 %v7985_v14  ;;  %v12177_v60 = vld [vmem:[#allocation19_spill] sm:$0xff] }
  0xbf   : > { %7262 = vmatmul.mubr.f32.gmra.mxu0 %v8424_v31  ;;  %v12174_v31 = vld [vmem:[#allocation16_spill] sm:$0xff] }
  0xc0   : > { %7394 = vmatmul.mubr.f32.vlgmr.msra.gmra.mxu1 %v7987_v15  ;;  %7264 = vmatprep.mubr.f32.mxu0 %v8434_v13  ;;  %v12175_v13 = vld [vmem:[#allocation17_spill] sm:$0xff] }
  0xc1   : > { %7396 = vmatprep.mubr.f32.mxu1 %v7989_v16 }
  0xc3   : > { %7265 = vmatmul.mubr.f32.gmra.mxu0 %v8442_v11  ;;  %v12176_v11 = vld [vmem:[#allocation18_spill] sm:$0xff] }
  0xc4   : > { %7397 = vmatmul.mubr.f32.gmra.mxu1 %v12163_v45  ;;  %7331 = vmatprep.mubr.f32.mxu0 %v7985_v14  ;;  %v12169_v14 = vld [vmem:[#allocation11_spill] sm:$0xff] }
  0xc5   : > { %7399 = vmatprep.mubr.f32.mxu1 %v12164_v33 }
  0xc7   : > { %7332 = vmatmul.mubr.f32.vlgmr.msra.gmra.mxu0 %v7987_v15  ;;  %v12170_v15 = vld [vmem:[#allocation12_spill] sm:$0xff] }
  0xc8   : > { %7400 = vmatmul.mubr.f32.gmra.mxu1 %v12165_v40  ;;  %7334 = vmatprep.mubr.f32.mxu0 %v7989_v16  ;;  %v12171_v16 = vld [vmem:[#allocation13_spill] sm:$0xff] }
  0xc9   : > { %7402 = vmatprep.mubr.f32.mxu1 %v12166_v8 }
  0xcb   : > { %7335 = vmatmul.mubr.f32.gmra.mxu0 %v12163_v45 }
  0xcc   : > { %7403 = vmatmul.mubr.f32.gmra.mxu1 %v12167_v20  ;;  %7337 = vmatprep.mubr.f32.mxu0 %v12164_v33 }
  0xcd   : > { %7405 = vmatprep.mubr.f32.mxu1 %v12168_v12 }
  0xcf   : > { %7338 = vmatmul.mubr.f32.gmra.mxu0 %v12165_v40 }
  0xd0   : > { %7406 = vmatmul.mubr.f32.gmra.mxu1 %v12169_v14  ;;  %7340 = vmatprep.mubr.f32.mxu0 %v12166_v8 }
  0xd1   : > { %7408 = vmatprep.mubr.f32.mxu1 %v12170_v15 }
  0xd3   : > { %7341 = vmatmul.mubr.f32.gmra.mxu0 %v12167_v20 }
  0xd4   : > { %7409 = vmatmul.mubr.f32.gmra.mxu1 %v12171_v16  ;;  %7343 = vmatprep.mubr.f32.mxu0 %v12168_v12 }
  0xd5   : > { %7411 = vmatprep.mubr.f32.mxu1 %v12172_v47 }
  0xd7   : > { %7344 = vmatmul.mubr.f32.gmra.mxu0 %v12169_v14  ;;  %v12190_v14 = vld [vmem:[#allocation32_spill] sm:$0xff] }
  0xd8   : > { %7412 = vmatmul.mubr.f32.gmra.mxu1 %v12173_v21  ;;  %7346 = vmatprep.mubr.f32.mxu0 %v12170_v15 }
  0xd9   : > { %7414 = vmatprep.mubr.f32.mxu1 %v12174_v31 }
  0xdb   : > { %7347 = vmatmul.mubr.f32.gmra.mxu0 %v12171_v16  ;;  %v12191_v16 = vld [vmem:[#allocation33_spill] sm:$0xff] }
  0xdc   : > { %7415 = vmatmul.mubr.f32.gmra.mxu1 %v12175_v13  ;;  %7349 = vmatprep.mubr.f32.mxu0 %v12172_v47 }
  0xdd   : > { %7417 = vmatprep.mubr.f32.mxu1 %v12176_v11 }
  0xdf   : > { %7350 = vmatmul.mubr.f32.gmra.mxu0 %v12173_v21 }
  0xe0   : > { %v7147_v46 = vpop.f32.mrf.mxu1  ;;  %7418 = vmatmul.mubr.f32.gmra.mxu1 %v12177_v60  ;;  %7352 = vmatprep.mubr.f32.mxu0 %v12174_v31 }
  0xe1   : > { %7420 = vmatprep.mubr.f32.mxu1 %v12178_v34 }
  0xe2   : > { %v845_v50 = vpop.f32.mrf.mxu1 }
  0xe3   : > { %7353 = vmatmul.mubr.f32.gmra.mxu0 %v12175_v13 }
  0xe4   : > { %v7150_v59 = vpop.f32.mrf.mxu1  ;;  %7421 = vmatmul.mubr.f32.gmra.mxu1 %v12179_v9  ;;  %7355 = vmatprep.mubr.f32.mxu0 %v12176_v11 }
  0xe5   : > { %7423 = vmatprep.mubr.f32.mxu1 %v12180_v30 }
  0xe6   : > { %v857_v4 = vpop.f32.mrf.mxu1 }
  0xe7   : > { %v7085_v19 = vpop.f32.mrf.mxu0  ;;  %7356 = vmatmul.mubr.f32.gmra.mxu0 %v12177_v60 }
  0xe8   : > { %v7153_v28 = vpop.f32.mrf.mxu1  ;;  %7424 = vmatmul.mubr.f32.gmra.mxu1 %v12181_v10  ;;  %v8624_v1 = vadd.f32 %v7147_v46, %v7085_v19  ;;  %7358 = vmatprep.mubr.f32.mxu0 %v12178_v34  ;;  %v12192_v46 = vld [vmem:[#allocation34_spill] sm:$0xff] }
  0xe9   : > { %7426 = vmatprep.mubr.f32.mxu1 %v12182_v37  ;;  %v379_v25 = vpop.f32.mrf.mxu0 }
  0xea   : > { %v869_v26 = vpop.f32.mrf.mxu1  ;;  %v8628_v3 = vadd.f32 %v845_v50, %v379_v25 }
  0xeb   : > { %v7088_v27 = vpop.f32.mrf.mxu0  ;;  %7359 = vmatmul.mubr.f32.gmra.mxu0 %v12179_v9 }
  0xec   : > { %v7156_v29 = vpop.f32.mrf.mxu1  ;;  %7427 = vmatmul.mubr.f32.gmra.mxu1 %v12183_v36  ;;  %v8632_v38 = vadd.f32 %v7150_v59, %v7088_v27  ;;  %7361 = vmatprep.mubr.f32.mxu0 %v12180_v30 }
  0xed   : > { %7429 = vmatprep.mubr.f32.mxu1 %v12184_v39  ;;  %v399_v48 = vpop.f32.mrf.mxu0 }
  0xee   : > { %v881_v18 = vpop.f32.mrf.mxu1  ;;  %v8636_v22 = vadd.f32 %v857_v4, %v399_v48 }
  0xef   : > { %v7091_v23 = vpop.f32.mrf.mxu0  ;;  %7362 = vmatmul.mubr.f32.gmra.mxu0 %v12181_v10 }
  0xf0   : > { %v7159_v42 = vpop.f32.mrf.mxu1  ;;  %7430 = vmatmul.mubr.f32.gmra.mxu1 %v12185_v43  ;;  %v8640_v56 = vadd.f32 %v7153_v28, %v7091_v23  ;;  %7364 = vmatprep.mubr.f32.mxu0 %v12182_v37 }
  0xf1   : > { %7432 = vmatprep.mubr.f32.mxu1 %v12186_v62  ;;  %v419_v17 = vpop.f32.mrf.mxu0 }
  0xf2   : > { %v893_v63 = vpop.f32.mrf.mxu1  ;;  %v8644_v6 = vadd.f32 %v869_v26, %v419_v17 }
  0xf3   : > { %v7094_v35 = vpop.f32.mrf.mxu0  ;;  %7365 = vmatmul.mubr.f32.gmra.mxu0 %v12183_v36 }
  0xf4   : > { %v7162_v53 = vpop.f32.mrf.mxu1  ;;  %7433 = vmatmul.mubr.f32.gmra.mxu1 %v12187_v58  ;;  %v8648_v61 = vadd.f32 %v7156_v29, %v7094_v35  ;;  %7367 = vmatprep.mubr.f32.mxu0 %v12184_v39 }
  0xf5   : > { %7435 = vmatprep.mubr.f32.mxu1 %v12188_v24  ;;  %v439_v44 = vpop.f32.mrf.mxu0 }
  0xf6   : > { %v905_v52 = vpop.f32.mrf.mxu1  ;;  %v8652_v57 = vadd.f32 %v881_v18, %v439_v44 }
  0xf7   : > { %v7097_v7 = vpop.f32.mrf.mxu0  ;;  %7368 = vmatmul.mubr.f32.gmra.mxu0 %v12185_v43 }
  0xf8   : > { %v7165_v41 = vpop.f32.mrf.mxu1  ;;  %7436 = vmatmul.mubr.f32.gmra.mxu1 %v12189_v32  ;;  %v8656_v45 = vadd.f32 %v7159_v42, %v7097_v7  ;;  %7370 = vmatprep.mubr.f32.mxu0 %v12186_v62 }
  0xf9   : > { %7438 = vmatprep.mubr.f32.mxu1 %v8320_v54  ;;  %v459_v33 = vpop.f32.mrf.mxu0 }
  0xfa   : > { %v917_v40 = vpop.f32.mrf.mxu1  ;;  %v8660_v8 = vadd.f32 %v893_v63, %v459_v33 }
  0xfb   : > { %v7100_v20 = vpop.f32.mrf.mxu0  ;;  %7371 = vmatmul.mubr.f32.gmra.mxu0 %v12187_v58 }
  0xfc   : > { %v7168_v12 = vpop.f32.mrf.mxu1  ;;  %7439 = vmatmul.mubr.f32.gmra.mxu1 %v12190_v14  ;;  %v8664_v15 = vadd.f32 %v7162_v53, %v7100_v20  ;;  %7373 = vmatprep.mubr.f32.mxu0 %v12188_v24 }
  0xfd   : > { %7441 = vmatprep.mubr.f32.mxu1 %v12191_v16  ;;  %v479_v47 = vpop.f32.mrf.mxu0 }
  0xfe   : > { %v929_v21 = vpop.f32.mrf.mxu1  ;;  %v8668_v31 = vadd.f32 %v905_v52, %v479_v47 }
  0xff   : > { %v7103_v13 = vpop.f32.mrf.mxu0  ;;  %7374 = vmatmul.mubr.f32.gmra.mxu0 %v12189_v32 }
 0x100   : > { %v7171_v11 = vpop.f32.mrf.mxu1  ;;  %7442 = vmatmul.mubr.f32.gmra.mxu1 %v12192_v46  ;;  %v8672_v60 = vadd.f32 %v7165_v41, %v7103_v13  ;;  %7376 = vmatprep.mubr.f32.mxu0 %v8320_v54 }
 0x101   : > { %7444 = vmatprep.mubr.f32.mxu1 %v8376_v2  ;;  %v499_v34 = vpop.f32.mrf.mxu0 }
 0x102   : > { %v941_v50 = vpop.f32.mrf.mxu1  ;;  %v8676_v59 = vadd.f32 %v917_v40, %v499_v34 }
 0x103   : > { %v7106_v9 = vpop.f32.mrf.mxu0  ;;  %7377 = vmatmul.mubr.f32.gmra.mxu0 %v12190_v14 }
 0x104   : > { %v7174_v30 = vpop.f32.mrf.mxu1  ;;  %7445 = vmatmul.mubr.f32.gmra.mxu1 %v8389_v49  ;;  %v8680_v4 = vadd.f32 %v7168_v12, %v7106_v9  ;;  %7379 = vmatprep.mubr.f32.mxu0 %v12191_v16 }
 0x105   : > { %7447 = vmatprep.mubr.f32.mxu1 %v8396_v55  ;;  %v519_v19 = vpop.f32.mrf.mxu0 }
 0x106   : > { %v953_v54 = vpop.f32.mrf.mxu1  ;;  %v8684_v28 = vadd.f32 %v929_v21, %v519_v19 }
 0x107   : > { %v7109_v10 = vpop.f32.mrf.mxu0  ;;  %7380 = vmatmul.mubr.f32.gmra.mxu0 %v12192_v46 }
 0x108   : > { %v7177_v37 = vpop.f32.mrf.mxu1  ;;  %7448 = vmatmul.mubr.f32.gmra.mxu1 %v8406_v5  ;;  %v8688_v25 = vadd.f32 %v7171_v11, %v7109_v10  ;;  %7382 = vmatprep.mubr.f32.mxu0 %v8376_v2 }
 0x109   : > { %7450 = vmatprep.mubr.f32.mxu1 %v8416_v0  ;;  %v539_v26 = vpop.f32.mrf.mxu0 }
 0x10a   : > { %v965_v27 = vpop.f32.mrf.mxu1  ;;  %v8692_v29 = vadd.f32 %v941_v50, %v539_v26 }
 0x10b   : > { %v7112_v36 = vpop.f32.mrf.mxu0  ;;  %7383 = vmatmul.mubr.f32.gmra.mxu0 %v8389_v49 }
 0x10c   : > { %v7180_v39 = vpop.f32.mrf.mxu1  ;;  %7451 = vmatmul.mubr.f32.gmra.mxu1 %v8426_v51  ;;  %v8696_v48 = vadd.f32 %v7174_v30, %v7112_v36  ;;  %7385 = vmatprep.mubr.f32.mxu0 %v8396_v55 }
 0x10d   : > { %v559_v18 = vpop.f32.mrf.mxu0 }
 0x10e   : > { %v977_v23 = vpop.f32.mrf.mxu1  ;;  %v8699_v42 = vadd.f32 %v953_v54, %v559_v18 }
 0x10f   : > { %v7115_v2 = vpop.f32.mrf.mxu0  ;;  %7386 = vmatmul.mubr.f32.gmra.mxu0 %v8406_v5 }
 0x110   : > { %v7183_v43 = vpop.f32.mrf.mxu1  ;;  %v8702_v62 = vadd.f32 %v7177_v37, %v7115_v2  ;;  %7388 = vmatprep.mubr.f32.mxu0 %v8416_v0 }
 0x111   : > { %v579_v49 = vpop.f32.mrf.mxu0 }
 0x112   : > { %v989_v17 = vpop.f32.mrf.mxu1  ;;  %v8705_v63 = vadd.f32 %v965_v27, %v579_v49 }
 0x113   : > { %v7118_v35 = vpop.f32.mrf.mxu0  ;;  %7389 = vmatmul.mubr.f32.gmra.mxu0 %v8426_v51 }
 0x114   : > { %v7186_v55 = vpop.f32.mrf.mxu1  ;;  %v8708_v53 = vadd.f32 %v7180_v39, %v7118_v35 }
 0x115   : > { %v599_v58 = vpop.f32.mrf.mxu0 }
 0x116   : > { %v1001_v24 = vpop.f32.mrf.mxu1  ;;  %v8710_v44 = vadd.f32 %v977_v23, %v599_v58 }
 0x117   : > { %v7121_v5 = vpop.f32.mrf.mxu0 }
 0x118   : > { %v7189_v52 = vpop.f32.mrf.mxu1  ;;  %v8712_v7 = vadd.f32 %v7183_v43, %v7121_v5 }
 0x119   : > { %v619_v41 = vpop.f32.mrf.mxu0 }
 0x11a   : > { %v1013_v0 = vpop.f32.mrf.mxu1  ;;  %v8714_v32 = vadd.f32 %v989_v17, %v619_v41 }
 0x11b   : > { %v7124_v33 = vpop.f32.mrf.mxu0 }
 0x11c   : > { %v7192_v40 = vpop.f32.mrf.mxu1  ;;  %v8716_v20 = vadd.f32 %v7186_v55, %v7124_v33 }
 0x11d   : > { %v639_v51 = vpop.f32.mrf.mxu0 }
 0x11e   : > { %v1025_v12 = vpop.f32.mrf.mxu1  ;;  %v8718_v14 = vadd.f32 %v1001_v24, %v639_v51 }
 0x11f   : > { %v7127_v16 = vpop.f32.mrf.mxu0 }
 0x120   : > { %v7195_v47 = vpop.f32.mrf.mxu1  ;;  %v8720_v21 = vadd.f32 %v7189_v52, %v7127_v16 }
 0x121   : > { %v659_v13 = vpop.f32.mrf.mxu0 }
 0x122   : > { %v1037_v11 = vpop.f32.mrf.mxu1  ;;  %v8722_v46 = vadd.f32 %v1013_v0, %v659_v13 }
 0x123   : > { %v7130_v34 = vpop.f32.mrf.mxu0 }
 0x124   : > { %v7198_v50 = vpop.f32.mrf.mxu1  ;;  %v8724_v9 = vadd.f32 %v7192_v40, %v7130_v34 }
 0x125   : > { %v679_v30 = vpop.f32.mrf.mxu0 }
 0x126   : > { %v1049_v19 = vpop.f32.mrf.mxu1  ;;  %v8726_v54 = vadd.f32 %v1025_v12, %v679_v30 }
 0x127   : > { %v7133_v10 = vpop.f32.mrf.mxu0 }
 0x128   : > { %v7201_v37 = vpop.f32.mrf.mxu1  ;;  %v8728_v26 = vadd.f32 %v7195_v47, %v7133_v10 }
 0x129   : > { %v699_v27 = vpop.f32.mrf.mxu0 }
 0x12a   : > { %v1061_v36 = vpop.f32.mrf.mxu1  ;;  %v8730_v39 = vadd.f32 %v1037_v11, %v699_v27 }
 0x12b   : > { %v7136_v18 = vpop.f32.mrf.mxu0 }
 0x12c   : > { %v7204_v23 = vpop.f32.mrf.mxu1  ;;  %v8732_v2 = vadd.f32 %v7198_v50, %v7136_v18 }
 0x12d   : > { %v719_v43 = vpop.f32.mrf.mxu0 }
 0x12e   : > { %v1073_v49 = vpop.f32.mrf.mxu1  ;;  %v8734_v17 = vadd.f32 %v1049_v19, %v719_v43 }
 0x12f   : > { %v7139_v35 = vpop.f32.mrf.mxu0 }
 0x130   : > { %v7271_v55 = vpop.f32.mrf.mxu1  ;;  %v8736_v58 = vadd.f32 %v7201_v37, %v7139_v35 }
 0x131   : > { %v739_v24 = vpop.f32.mrf.mxu0 }
 0x132   : > { %v1500_v5 = vpop.f32.mrf.mxu1  ;;  %v8738_v52 = vadd.f32 %v1061_v36, %v739_v24 }
 0x133   : > { %v7142_v41 = vpop.f32.mrf.mxu0 }
 0x134   : > { %v7274_v0 = vpop.f32.mrf.mxu1  ;;  %v8740_v33 = vadd.f32 %v7204_v23, %v7142_v41 }
 0x135   : > { %v759_v40 = vpop.f32.mrf.mxu0 }
 0x136   : > { %v1516_v51 = vpop.f32.mrf.mxu1  ;;  %v8742_v12 = vadd.f32 %v1073_v49, %v759_v40 }
 0x137   : > { %v7209_v16 = vpop.f32.mrf.mxu0 }
 0x138   : > { %v7277_v47 = vpop.f32.mrf.mxu1  ;;  %v1161_v13 = vadd.f32 %v7209_v16, %v8624_v1 }
 0x139   : > { %v1153_v11 = vpop.f32.mrf.mxu0 }
 0x13a   : > { %v1532_v34 = vpop.f32.mrf.mxu1  ;;  %v8745_v50 = vadd.f32 %v7271_v55, %v1161_v13  ;;  %v1154_v30 = vadd.f32 %v1153_v11, %v8628_v3 }
 0x13b   : > { %v7212_v19 = vpop.f32.mrf.mxu0 }
 0x13c   : > { %v7280_v10 = vpop.f32.mrf.mxu1  ;;  %v8748_v37 = vadd.f32 %v1500_v5, %v1154_v30  ;;  %v1175_v27 = vadd.f32 %v7212_v19, %v8632_v38 }
 0x13d   : > { %v1167_v36 = vpop.f32.mrf.mxu0 }
 0x13e   : > { %v1548_v18 = vpop.f32.mrf.mxu1  ;;  %v8751_v23 = vadd.f32 %v7274_v0, %v1175_v27  ;;  %v1168_v43 = vadd.f32 %v1167_v36, %v8636_v22 }
 0x13f   : > { %v7215_v49 = vpop.f32.mrf.mxu0 }
 0x140   : > { %v7283_v1 = vpop.f32.mrf.mxu1  ;;  %v8754_v35 = vadd.f32 %v1516_v51, %v1168_v43  ;;  %v1189_v55 = vadd.f32 %v7215_v49, %v8640_v56 }
 0x141   : > { %v1181_v24 = vpop.f32.mrf.mxu0 }
 0x142   : > { %v1564_v3 = vpop.f32.mrf.mxu1  ;;  %v8757_v41 = vadd.f32 %v7277_v47, %v1189_v55  ;;  %v1182_v5 = vadd.f32 %v1181_v24, %v8644_v6 }
 0x143   : > { %v7218_v40 = vpop.f32.mrf.mxu0 }
 0x144   : > { %v7286_v38 = vpop.f32.mrf.mxu1  ;;  %v8760_v16 = vadd.f32 %v1532_v34, %v1182_v5  ;;  %v1203_v0 = vadd.f32 %v7218_v40, %v8648_v61 }
 0x145   : > { %v1195_v13 = vpop.f32.mrf.mxu0 }
 0x146   : > { %v1580_v22 = vpop.f32.mrf.mxu1  ;;  %v8763_v11 = vadd.f32 %v7280_v10, %v1203_v0  ;;  %v1196_v51 = vadd.f32 %v1195_v13, %v8652_v57 }
 0x147   : > { %v7221_v30 = vpop.f32.mrf.mxu0 }
 0x148   : > { %v7289_v56 = vpop.f32.mrf.mxu1  ;;  %v8766_v19 = vadd.f32 %v1548_v18, %v1196_v51  ;;  %v1217_v47 = vadd.f32 %v7221_v30, %v8656_v45 }
 0x149   : > { %v1209_v27 = vpop.f32.mrf.mxu0 }
 0x14a   : > { %v1596_v6 = vpop.f32.mrf.mxu1  ;;  %v8769_v36 = vadd.f32 %v7283_v1, %v1217_v47  ;;  %v1210_v34 = vadd.f32 %v1209_v27, %v8660_v8 }
 0x14b   : > { %v7224_v43 = vpop.f32.mrf.mxu0 }
 0x14c   : > { %v7292_v61 = vpop.f32.mrf.mxu1  ;;  %v8772_v49 = vadd.f32 %v1564_v3, %v1210_v34  ;;  %v1231_v10 = vadd.f32 %v7224_v43, %v8664_v15 }
 0x14d   : > { %v1223_v55 = vpop.f32.mrf.mxu0 }
 0x14e   : > { %v1612_v57 = vpop.f32.mrf.mxu1  ;;  %v8775_v24 = vadd.f32 %v7286_v38, %v1231_v10  ;;  %v1224_v18 = vadd.f32 %v1223_v55, %v8668_v31 }
 0x14f   : > { %v7227_v5 = vpop.f32.mrf.mxu0 }
 0x150   : > { %v7295_v45 = vpop.f32.mrf.mxu1  ;;  %v8778_v40 = vadd.f32 %v1580_v22, %v1224_v18  ;;  %v1245_v1 = vadd.f32 %v7227_v5, %v8672_v60 }
 0x151   : > { %v1237_v0 = vpop.f32.mrf.mxu0 }
 0x152   : > { %v1628_v8 = vpop.f32.mrf.mxu1  ;;  %v8781_v13 = vadd.f32 %v7289_v56, %v1245_v1  ;;  %v1238_v3 = vadd.f32 %v1237_v0, %v8676_v59 }
 0x153   : > { %v7230_v51 = vpop.f32.mrf.mxu0 }
 0x154   : > { %v7298_v15 = vpop.f32.mrf.mxu1  ;;  %v8784_v30 = vadd.f32 %v1596_v6, %v1238_v3  ;;  %v1259_v38 = vadd.f32 %v7230_v51, %v8680_v4 }
 0x155   : > { %v1251_v47 = vpop.f32.mrf.mxu0 }
 0x156   : > { %v1644_v31 = vpop.f32.mrf.mxu1  ;;  %v8787_v27 = vadd.f32 %v7292_v61, %v1259_v38  ;;  %v1252_v22 = vadd.f32 %v1251_v47, %v8684_v28 }
 0x157   : > { %v7233_v34 = vpop.f32.mrf.mxu0 }
 0x158   : > { %v7301_v60 = vpop.f32.mrf.mxu1  ;;  %v8790_v43 = vadd.f32 %v1612_v57, %v1252_v22  ;;  %v1273_v56 = vadd.f32 %v7233_v34, %v8688_v25 }
 0x159   : > { %v1265_v10 = vpop.f32.mrf.mxu0 }
 0x15a   : > { %v1660_v59 = vpop.f32.mrf.mxu1  ;;  %v8793_v55 = vadd.f32 %v7295_v45, %v1273_v56  ;;  %v1266_v6 = vadd.f32 %v1265_v10, %v8692_v29 }
 0x15b   : > { %v7236_v18 = vpop.f32.mrf.mxu0 }
 0x15c   : > { %v7304_v4 = vpop.f32.mrf.mxu1  ;;  %v8796_v5 = vadd.f32 %v1628_v8, %v1266_v6  ;;  %v1287_v61 = vadd.f32 %v7236_v18, %v8696_v48 }
 0x15d   : > { %v1279_v1 = vpop.f32.mrf.mxu0 }
 0x15e   : > { %v1676_v28 = vpop.f32.mrf.mxu1  ;;  %v8799_v0 = vadd.f32 %v7298_v15, %v1287_v61  ;;  %v1280_v57 = vadd.f32 %v1279_v1, %v8699_v42 }
 0x15f   : > { %v7239_v3 = vpop.f32.mrf.mxu0 }
 0x160   : > { %v7307_v25 = vpop.f32.mrf.mxu1  ;;  %v8802_v51 = vadd.f32 %v1644_v31, %v1280_v57  ;;  %v1301_v45 = vadd.f32 %v7239_v3, %v8702_v62 }
 0x161   : > { %v1293_v38 = vpop.f32.mrf.mxu0 }
 0x162   : > { %v1692_v29 = vpop.f32.mrf.mxu1  ;;  %v8805_v47 = vadd.f32 %v7301_v60, %v1301_v45  ;;  %v1294_v8 = vadd.f32 %v1293_v38, %v8705_v63 }
 0x163   : > { %v7242_v22 = vpop.f32.mrf.mxu0 }
 0x164   : > { %v7310_v48 = vpop.f32.mrf.mxu1  ;;  %v8808_v34 = vadd.f32 %v1660_v59, %v1294_v8  ;;  %v1315_v15 = vadd.f32 %v7242_v22, %v8708_v53 }
 0x165   : > { %v1307_v56 = vpop.f32.mrf.mxu0 }
 0x166   : > { %v1708_v42 = vpop.f32.mrf.mxu1  ;;  %v8811_v10 = vadd.f32 %v7304_v4, %v1315_v15  ;;  %v1308_v31 = vadd.f32 %v1307_v56, %v8710_v44 }
 0x167   : > { %v7245_v6 = vpop.f32.mrf.mxu0 }
 0x168   : > { %12193 = vst [vmem:[#allocation5_spill] sm:$0xff] %v8811_v10  ;;  %v7313_v62 = vpop.f32.mrf.mxu1  ;;  %v8814_v18 = vadd.f32 %v1676_v28, %v1308_v31  ;;  %v1329_v60 = vadd.f32 %v7245_v6, %v8712_v7 }
 0x169   : > { %v1321_v61 = vpop.f32.mrf.mxu0 }
 0x16a   : > { %12194 = vst [vmem:[#allocation6_spill] sm:$0xff] %v8814_v18  ;;  %v1724_v63 = vpop.f32.mrf.mxu1  ;;  %v8817_v1 = vadd.f32 %v7307_v25, %v1329_v60  ;;  %v1322_v59 = vadd.f32 %v1321_v61, %v8714_v32 }
 0x16b   : > { %v7248_v57 = vpop.f32.mrf.mxu0 }
 0x16c   : > { %12195 = vst [vmem:[#allocation7_spill] sm:$0xff] %v8817_v1  ;;  %v7316_v53 = vpop.f32.mrf.mxu1  ;;  %v8820_v3 = vadd.f32 %v1692_v29, %v1322_v59  ;;  %v1343_v4 = vadd.f32 %v7248_v57, %v8716_v20 }
 0x16d   : > { %v1335_v45 = vpop.f32.mrf.mxu0 }
 0x16e   : > { %12196 = vst [vmem:[#allocation8_spill] sm:$0xff] %v8820_v3  ;;  %v1740_v44 = vpop.f32.mrf.mxu1  ;;  %v8823_v38 = vadd.f32 %v7310_v48, %v1343_v4  ;;  %v1336_v28 = vadd.f32 %v1335_v45, %v8718_v14 }
 0x16f   : > { %v7251_v8 = vpop.f32.mrf.mxu0 }
 0x170   : > { %12197 = vst [vmem:[#allocation9_spill] sm:$0xff] %v8823_v38  ;;  %v7319_v7 = vpop.f32.mrf.mxu1  ;;  %v8826_v22 = vadd.f32 %v1708_v42, %v1336_v28  ;;  %v1357_v25 = vadd.f32 %v7251_v8, %v8720_v21 }
 0x171   : > { %v1349_v15 = vpop.f32.mrf.mxu0 }
 0x172   : > { %12198 = vst [vmem:[#allocation10_spill] sm:$0xff] %v8826_v22  ;;  %v1756_v32 = vpop.f32.mrf.mxu1  ;;  %v8829_v56 = vadd.f32 %v7313_v62, %v1357_v25  ;;  %v1350_v29 = vadd.f32 %v1349_v15, %v8722_v46 }
 0x173   : > { %v7254_v31 = vpop.f32.mrf.mxu0 }
 0x174   : > { %12199 = vst [vmem:[#allocation11_spill] sm:$0xff] %v8829_v56  ;;  %v7322_v20 = vpop.f32.mrf.mxu1  ;;  %v8832_v6 = vadd.f32 %v1724_v63, %v1350_v29  ;;  %v1371_v48 = vadd.f32 %v7254_v31, %v8724_v9 }
 0x175   : > { %v1363_v60 = vpop.f32.mrf.mxu0 }
 0x176   : > { %12200 = vst [vmem:[#allocation12_spill] sm:$0xff] %v8832_v6  ;;  %v1772_v14 = vpop.f32.mrf.mxu1  ;;  %v8835_v61 = vadd.f32 %v7316_v53, %v1371_v48  ;;  %v1364_v42 = vadd.f32 %v1363_v60, %v8726_v54 }
 0x177   : > { %v7257_v59 = vpop.f32.mrf.mxu0 }
 0x178   : > { %12201 = vst [vmem:[#allocation13_spill] sm:$0xff] %v8835_v61  ;;  %v7325_v21 = vpop.f32.mrf.mxu1  ;;  %v8838_v57 = vadd.f32 %v1740_v44, %v1364_v42  ;;  %v1385_v62 = vadd.f32 %v7257_v59, %v8728_v26 }
 0x179   : > { %v1377_v4 = vpop.f32.mrf.mxu0 }
 0x17a   : > { %12202 = vst [vmem:[#allocation14_spill] sm:$0xff] %v8838_v57  ;;  %v8841_v46 = vadd.f32 %v7319_v7, %v1385_v62  ;;  %v1378_v63 = vadd.f32 %v1377_v4, %v8730_v39  ;;  %v1788_v28 = vpop.f32.mrf.mxu1 }
 0x17b   : > { %v7260_v45 = vpop.f32.mrf.mxu0 }
 0x17c   : > { %12203 = vst [vmem:[#allocation15_spill] sm:$0xff] %v8841_v46  ;;  %v8844_v9 = vadd.f32 %v1756_v32, %v1378_v63  ;;  %v1399_v53 = vadd.f32 %v7260_v45, %v8732_v2  ;;  %v7328_v15 = vpop.f32.mrf.mxu1 }
 0x17d   : > { %v1391_v8 = vpop.f32.mrf.mxu0 }
 0x17e   : > { %12204 = vst [vmem:[#allocation16_spill] sm:$0xff] %v8844_v9  ;;  %v8847_v25 = vadd.f32 %v7322_v20, %v1399_v53  ;;  %v1392_v54 = vadd.f32 %v1391_v8, %v8734_v17  ;;  %v1804_v48 = vpop.f32.mrf.mxu1 }
 0x17f   : > { %v7263_v44 = vpop.f32.mrf.mxu0 }
 0x180   : > { %12205 = vst [vmem:[#allocation17_spill] sm:$0xff] %v8847_v25  ;;  %v8850_v29 = vadd.f32 %v1772_v14, %v1392_v54  ;;  %v1413_v26 = vadd.f32 %v7263_v44, %v8736_v58  ;;  %v7395_v59 = vpop.f32.mrf.mxu1 }
 0x181   : > { %v1405_v7 = vpop.f32.mrf.mxu0 }
 0x182   : > { %12206 = vst [vmem:[#allocation18_spill] sm:$0xff] %v8850_v29  ;;  %v8853_v31 = vadd.f32 %v7325_v21, %v1413_v26  ;;  %v1406_v39 = vadd.f32 %v1405_v7, %v8738_v52  ;;  %v2192_v63 = vpop.f32.mrf.mxu1 }
 0x183   : > { %v7266_v32 = vpop.f32.mrf.mxu0 }
 0x184   : > { %12207 = vst [vmem:[#allocation19_spill] sm:$0xff] %v8853_v31  ;;  %v8856_v60 = vadd.f32 %v1788_v28, %v1406_v39  ;;  %v1427_v2 = vadd.f32 %v7266_v32, %v8740_v33 }
 0x185   : > { %v1419_v20 = vpop.f32.mrf.mxu0 }
 0x186   : > { %12208 = vst [vmem:[#allocation20_spill] sm:$0xff] %v8856_v60  ;;  %v8859_v42 = vadd.f32 %v7328_v15, %v1427_v2  ;;  %v1420_v17 = vadd.f32 %v1419_v20, %v8742_v12  ;;  %v7398_v15 = vpop.f32.mrf.mxu1 }
 0x187   : > { %v7333_v14 = vpop.f32.mrf.mxu0 }
 0x188   : > { %12209 = vst [vmem:[#allocation21_spill] sm:$0xff] %v8859_v42  ;;  %v8862_v62 = vadd.f32 %v1804_v48, %v1420_v17  ;;  %v1893_v58 = vadd.f32 %v7333_v14, %v8745_v50 }
 0x189   : > { %v1886_v21 = vpop.f32.mrf.mxu0 }
 0x18a   : > { %12210 = vst [vmem:[#allocation22_spill] sm:$0xff] %v8862_v62  ;;  %v8865_v4 = vadd.f32 %v7395_v59, %v1893_v58  ;;  %v1887_v52 = vadd.f32 %v1886_v21, %v8748_v37  ;;  %v2204_v21 = vpop.f32.mrf.mxu1 }
 0x18b   : > { %v7336_v45 = vpop.f32.mrf.mxu0 }
 0x18c   : > { %v12062_v33 = vand.u32 2147483647, %v8865_v4  ;;  %v2536_v28 = vand.u32 2139095040, %v8865_v4  ;;  %v8870_v53 = vadd.f32 %v2192_v63, %v1887_v52  ;;  %v1905_v12 = vadd.f32 %v7336_v45, %v8751_v23 }
 0x18d   : > { %v1898_v37 = vpop.f32.mrf.mxu0  ;;  %vm2535_vm14 = vcmp.lt.s32.totalorder %v8865_v4, 0 }
 0x18e   : > { %v2537_v8 = vshrl.u32 %v2536_v28, 23  ;;  %v2540_v54 = vand.u32 8388607, %v12062_v33  ;;  %v12061_v50 = vand.u32 2147483647, %v8870_v53  ;;  %v2433_v44 = vand.u32 2139095040, %v8870_v53 }
 0x18f   : > { %v8877_v7 = vadd.f32 %v7398_v15, %v1905_v12  ;;  %v1899_v23 = vadd.f32 %v1898_v37, %v8754_v35  ;;  %v12063_v37 = vmov 2475754826   ;;  %v12073_v33 = vmov 1326507024  }
 0x190   : > { %v6675_v26 = vadd.s32 4294967169, %v2537_v8  ;;  %v2434_v39 = vshrl.u32 %v2433_v44, 23  ;;  %v2437_v32 = vand.u32 8388607, %v12061_v50  ;;  %v2541_v2 = vor.u32 8388608, %v2540_v54 }
 0x191   : > { %v2742_v14 = vand.u32 2139095040, %v8877_v7  ;;  %v8883_v45 = vadd.f32 %v2204_v21, %v1899_v23  ;;  %v12069_v44 = vmov 683565275   ;;  %vm2432_vm0 = vcmp.lt.s32.totalorder %v8870_v53, 0 }
 0x192   : > { %v2543_v48 = vadd.s32 1, %v6675_v26  ;;  %v6671_v20 = vadd.s32 4294967169, %v2434_v39  ;;  %v2438_v17 = vor.u32 8388608, %v2437_v32  ;;  %v8885_v28 = vshll.u32 %v2541_v2, 8 }
 0x193   : > { %v2743_v35 = vshrl.u32 %v2742_v14, 23  ;;  %v12065_v39 = vmov 2131351028   ;;  %v12071_v2 = vmov 920167782  }
 0x194   : > { %vm2544_vm1 = vcmp.gt.s32.totalorder %v2543_v48, 0  ;;  %v2440_v58 = vadd.s32 1, %v6671_v20  ;;  %v8887_v12 = vshll.u32 %v2438_v17, 8 }
 0x195   : > { %v2545_v59 = vsel %vm2544_vm1, %v2543_v48, 0  ;;  %v12067_v48 = vmov 2102212464  }
 0x196   : > { %v2546_v52 = vshrl.u32 %v2545_v59, 5  ;;  %v2547_v63 = vand.u32 31, %v2545_v59  ;;  %vm2441_vm2 = vcmp.gt.s32.totalorder %v2440_v58, 0 }
 0x198   : > { %v2548_v54 = vsub.s32 32, %v2547_v63  ;;  %v2550_v15 = vshll.u32 %v12069_v44, %v2547_v63  ;;  %v2553_v26 = vshll.u32 %v12063_v37, %v2547_v63  ;;  %v2556_v32 = vshll.u32 %v12065_v39, %v2547_v63 }
 0x199   : > { %v2559_v23 = vshll.u32 %v12067_v48, %v2547_v63  ;;  %v2562_v20 = vshll.u32 %v12071_v2, %v2547_v63  ;;  %vm2565_vm3 = vcmp.lt.s32.totalorder %v2546_v52, 1  ;;  %vm2566_vm4 = vcmp.lt.s32.totalorder %v2546_v52, 2 }
 0x19a   : > { %v2551_v17 = vshrl.u32 %v12063_v37, %v2548_v54  ;;  %v2554_v14 = vshrl.u32 %v12065_v39, %v2548_v54  ;;  %v2557_v59 = vshrl.u32 %v12067_v48, %v2548_v54  ;;  %v2549_v21 = vshrl.u32 %v12069_v44, %v2548_v54 }
 0x19b   : > { %v2560_v50 = vshrl.u32 %v12071_v2, %v2548_v54  ;;  %v2563_v8 = vshrl.u32 %v12073_v33, %v2548_v54  ;;  %vm2567_vm5 = vcmp.lt.s32.totalorder %v2546_v52, 3  ;;  %v2442_v63 = vsel %vm2441_vm2, %v2440_v58, 0 }
 0x19c   : > { %v2552_v62 = vor.u32 %v2551_v17, %v2550_v15  ;;  %v2555_v42 = vor.u32 %v2554_v14, %v2553_v26  ;;  %v2558_v60 = vor.u32 %v2557_v59, %v2556_v32  ;;  %vm2568_vm6 = vcmp.lt.s32.totalorder %v2546_v52, 4 }
 0x19d   : > { %v2561_v31 = vor.u32 %v2560_v50, %v2559_v23  ;;  %v2564_v37 = vor.u32 %v2563_v8, %v2562_v20  ;;  %v2444_v39 = vand.u32 31, %v2442_v63  ;;  %v6683_v8 = vadd.s32 4294967169, %v2743_v35 }
 0x19e   : > { %v2569_v48 = vsel %vm2565_vm3, %v2549_v21, %v2552_v62  ;;  %v2570_v29 = vsel %vm2568_vm6, %v2558_v60, 2102212464  ;;  %v2573_v44 = vsel %vm2565_vm3, %v2552_v62, %v2555_v42  ;;  %v2577_v2 = vsel %vm2565_vm3, %v2555_v42, %v2558_v60 }
 0x19f   : > { %v2571_v25 = vsel %vm2567_vm5, %v2555_v42, %v2570_v29  ;;  %v2574_v54 = vsel %vm2568_vm6, %v2561_v31, 920167782  ;;  %v2578_v33 = vsel %vm2568_vm6, %v2564_v37, 1326507024  ;;  %v2445_v15 = vsub.s32 32, %v2444_v39 }
 0x1a0   : > { %v2572_v26 = vsel %vm2566_vm4, %v2569_v48, %v2571_v25  ;;  %v2575_v58 = vsel %vm2567_vm5, %v2558_v60, %v2574_v54  ;;  %v2579_v50 = vsel %vm2567_vm5, %v2561_v31, %v2578_v33  ;;  %v2443_v20 = vshrl.u32 %v2442_v63, 5 }
 0x1a1   : > { %v2576_v32 = vsel %vm2566_vm4, %v2573_v44, %v2575_v58  ;;  %v2580_v23 = vsel %vm2566_vm4, %v2577_v2, %v2579_v50  ;;  %v12211_v62 = vmov 683565275   ;;  %v2588_v25 = vmul.u32 %v8885_v28, %v2572_v26 }
 0x1a2   : > { %v2447_v17 = vshll.u32 %v12211_v62, %v2444_v39  ;;  %v8913_v14 = vmul.u32.u64.low %v8885_v28, %v2580_v23  ;;  %v8914_v29 = vmul.u32.u64.high %v8885_v28, %v2580_v23, %v8913_v14  ;;  %v12212_v31 = vmov 2475754826  }
 0x1a3   : > { %v8917_v42 = vmul.u32.u64.low %v8885_v28, %v2576_v32  ;;  %v8918_v37 = vmul.u32.u64.high %v8885_v28, %v2576_v32, %v8917_v42  ;;  %v2448_v60 = vshrl.u32 %v12212_v31, %v2445_v15  ;;  %v2450_v33 = vshll.u32 %v12212_v31, %v2444_v39 }
 0x1a4   : > { %v12213_v52 = vmov 2131351028   ;;  %v12214_v48 = vmov 2102212464   ;;  %v12215_v21 = vmov 920167782   ;;  %v2446_v23 = vshrl.u32 %v12211_v62, %v2445_v15 }
 0x1a5   : > { %v2451_v35 = vshrl.u32 %v12213_v52, %v2445_v15  ;;  %v2453_v44 = vshll.u32 %v12213_v52, %v2444_v39  ;;  %v2454_v2 = vshrl.u32 %v12214_v48, %v2445_v15  ;;  %v2456_v59 = vshll.u32 %v12214_v48, %v2444_v39 }
 0x1a6   : > { %v2457_v63 = vshrl.u32 %v12215_v21, %v2445_v15  ;;  %v2449_v54 = vor.u32 %v2448_v60, %v2447_v17  ;;  %v2459_v50 = vshll.u32 %v12215_v21, %v2444_v39  ;;  %v12216_v32 = vmov 1326507024  }
 0x1a7   : > { %v2452_v58 = vor.u32 %v2451_v35, %v2450_v33  ;;  %v2460_v28 = vshrl.u32 %v12216_v32, %v2445_v15  ;;  %vm2590_vm7 = vc.u32 %v8914_v29, %v8917_v42  ;;  %v2591_v26 = vadd.s32 1, %v8918_v37 }
 0x1a8   : > { %v2455_v14 = vor.u32 %v2454_v2, %v2453_v44  ;;  %v2458_v9 = vor.u32 %v2457_v63, %v2456_v59  ;;  %vm2462_vm8 = vcmp.lt.s32.totalorder %v2443_v20, 1  ;;  %vm2463_vm9 = vcmp.lt.s32.totalorder %v2443_v20, 2 }
 0x1a9   : > { %v2461_v46 = vor.u32 %v2460_v28, %v2459_v50  ;;  %v2592_v57 = vsel %vm2590_vm7, %v2591_v26, %v8918_v37  ;;  %vm2464_vm10 = vcmp.lt.s32.totalorder %v2443_v20, 3  ;;  %vm2465_vm11 = vcmp.lt.s32.totalorder %v2443_v20, 4 }
 0x1aa   : > { %v2470_v17 = vsel %vm2462_vm8, %v2449_v54, %v2452_v58  ;;  %v2593_v39 = vadd.s32 %v2592_v57, %v2588_v25  ;;  %v2467_v60 = vsel %vm2465_vm11, %v2455_v14, 2102212464  ;;  %v2471_v33 = vsel %vm2465_vm11, %v2458_v9, 920167782 }
 0x1ab   : > { %v2474_v35 = vsel %vm2462_vm8, %v2452_v58, %v2455_v14  ;;  %v2466_v61 = vsel %vm2462_vm8, %v2446_v23, %v2449_v54  ;;  %v2472_v6 = vsel %vm2464_vm10, %v2455_v14, %v2471_v33  ;;  %v2475_v56 = vsel %vm2465_vm11, %v2461_v46, 1326507024  ;;  %v7339_v14 = vpop.f32.mrf.mxu0 }
 0x1ac   : > { %v2749_v22 = vadd.s32 1, %v6683_v8  ;;  %v2594_v38 = vadd.s32 536870912, %v2593_v39  ;;  %v2468_v15 = vsel %vm2464_vm10, %v2452_v58, %v2467_v60  ;;  %v2473_v44 = vsel %vm2463_vm9, %v2470_v17, %v2472_v6 }
 0x1ad   : > { %v2476_v2 = vsel %vm2464_vm10, %v2458_v9, %v2475_v56  ;;  %v8939_v37 = vmul.u32.u64.low %v8887_v12, %v2473_v44  ;;  %v8940_v63 = vmul.u32.u64.high %v8887_v12, %v2473_v44, %v8939_v37  ;;  %v12217_v57 = vand.u32 2147483647, %v8877_v7 }
 0x1ae   : > { %v2477_v59 = vsel %vm2463_vm9, %v2474_v35, %v2476_v2  ;;  %v8945_v50 = vshrl.u32 %v2594_v38, 30  ;;  %vm2750_vm12 = vcmp.gt.s32.totalorder %v2749_v22, 0  ;;  %v2469_v6 = vsel %vm2463_vm9, %v2466_v61, %v2468_v15 }
 0x1af   : > { %v2746_v25 = vand.u32 8388607, %v12217_v57  ;;  %v8948_v46 = vmul.u32.u64.low %v8887_v12, %v2477_v59  ;;  %v8949_v8 = vmul.u32.u64.high %v8887_v12, %v2477_v59, %v8948_v46  ;;  %v2751_v56 = vsel %vm2750_vm12, %v2749_v22, 0 }
 0x1b0   : > { %v2596_v9 = vshll.u32 %v8945_v50, 30  ;;  %v2753_v54 = vand.u32 31, %v2751_v56  ;;  %v2639_v58 = vand.u32 2139095040, %v8883_v45  ;;  %v2488_v28 = vadd.s32 1, %v8940_v63 }
 0x1b1   : > { %v2485_v38 = vmul.u32 %v8887_v12, %v2469_v6  ;;  %vm2487_vm13 = vc.u32 %v8949_v8, %v8939_v37  ;;  %v2747_v23 = vor.u32 8388608, %v2746_v25  ;;  %v12075_v33 = vand.u32 2147483647, %v8883_v45 }
 0x1b2   : > { %v8955_v26 = vsub.s32 %v2593_v39, %v2596_v9  ;;  %v2489_v20 = vsel %vm2487_vm13, %v2488_v28, %v8940_v63  ;;  %v2754_v61 = vsub.s32 32, %v2753_v54  ;;  %v2640_v60 = vshrl.u32 %v2639_v58, 23 }
 0x1b3   : > { %v2490_v17 = vadd.s32 %v2489_v20, %v2485_v38  ;;  %v8964_v35 = vadd.f32 %v7339_v14, %v8757_v41  ;;  %v2589_v12 = vadd.s32 %v8917_v42, %v8914_v29  ;;  %v2619_v15 = vsub.s32 4, %v8945_v50 }
 0x1b4   : > { %v2599_v22 = vsub.s32 0, %v8955_v26  ;;  %v8970_v44 = vshll.u32 %v2747_v23, 8  ;;  %v8972_v59 = vshrl.u32 %v2751_v56, 5  ;;  %v2757_v63 = vshrl.u32 %v12212_v31, %v2754_v61 }
 0x1b5   : > { %v2491_v2 = vadd.s32 536870912, %v2490_v17  ;;  %v2760_v57 = vshrl.u32 %v12213_v52, %v2754_v61  ;;  %v2763_v41 = vshrl.u32 %v12214_v48, %v2754_v61  ;;  %v2766_v46 = vshrl.u32 %v12215_v21, %v2754_v61 }
 0x1b6   : > { %v6676_v39 = vmin.u32 %v2599_v22, %v8955_v26  ;;  %v6679_v6 = vadd.s32 4294967169, %v2640_v60  ;;  %v2756_v42 = vshll.u32 %v12211_v62, %v2753_v54  ;;  %v2759_v9 = vshll.u32 %v12212_v31, %v2753_v54 }
 0x1b7   : > { %v2492_v29 = vshrl.u32 %v2491_v2, 30  ;;  %v2765_v58 = vshll.u32 %v12214_v48, %v2753_v54  ;;  %v2762_v56 = vshll.u32 %v12213_v52, %v2753_v54  ;;  %v2769_v38 = vshrl.u32 %v12216_v32, %v2754_v61 }
 0x1b8   : > { %v2601_v25 = vclz %v6676_v39  ;;  %v8985_v23 = vand.u32 8388607, %v12075_v33  ;;  %v2758_v20 = vor.u32 %v2757_v63, %v2756_v42  ;;  %v2761_v22 = vor.u32 %v2760_v57, %v2759_v9 }
 0x1b9   : > { %v2493_v14 = vshll.u32 %v2492_v29, 30  ;;  %v2767_v60 = vor.u32 %v2766_v46, %v2765_v58  ;;  %v2755_v39 = vshrl.u32 %v12211_v62, %v2754_v61  ;;  %v2764_v2 = vor.u32 %v2763_v41, %v2762_v56 }
 0x1ba   : > { %v6677_v28 = vadd.s32 4294967294, %v2601_v25  ;;  %v2768_v25 = vshll.u32 %v12215_v21, %v2753_v54  ;;  %vm2771_vm1 = vcmp.lt.s32.totalorder %v8972_v59, 1  ;;  %vm2772_vm2 = vcmp.lt.s32.totalorder %v8972_v59, 2 }
 0x1bb   : > { %v8991_v1 = vsub.s32 %v2490_v17, %v2493_v14  ;;  %vm2774_vm3 = vcmp.lt.s32.totalorder %v8972_v59, 4  ;;  %vm2773_vm4 = vcmp.lt.s32.totalorder %v8972_v59, 3  ;;  %v2779_v54 = vsel %vm2771_vm1, %v2758_v20, %v2761_v22 }
 0x1bc   : > { %vm6678_vm15 = vcmp.lt.s32.totalorder %v6677_v28, 0  ;;  %v2770_v46 = vor.u32 %v2769_v38, %v2768_v25  ;;  %v2780_v61 = vsel %vm2774_vm3, %v2767_v60, 920167782  ;;  %v12218_v17 = vand.u32 2147483647, %v8865_v4 }
 0x1bd   : > { %v2604_v3 = vsel %vm6678_vm15, 0, %v6677_v28  ;;  %v2496_v42 = vsub.s32 0, %v8991_v1  ;;  %v12221_v56 = vand.u32 2147483647, %v8870_v53  ;;  %v2781_v14 = vsel %vm2773_vm4, %v2764_v2, %v2780_v61 }
 0x1be   : > { %v2605_v63 = vsub.s32 32, %v2604_v3  ;;  %v2609_v57 = vsub.s32 4294967266, %v2604_v3  ;;  %vm9004_vm5 = vcmp.le.f32.partialorder %v12218_v17, 0.7853982  ;;  %v2606_v9 = vshll.u32 %v8955_v26, %v2604_v3 }
 0x1bf   : > { %vm9011_vm6 = vcmp.le.f32.partialorder %v12221_v56, 0.7853982  ;;  %v6672_v25 = vmin.u32 %v2496_v42, %v8991_v1  ;;  %v2516_v33 = vsub.s32 4, %v2492_v29  ;;  %v2776_v17 = vsel %vm2774_vm3, %v2764_v2, 2102212464 }
 0x1c0   : > { %v2607_v58 = vshrl.u32 %v2589_v12, %v2605_v63  ;;  %v2610_v28 = vadd.s32 127, %v2609_v57  ;;  %v2783_v3 = vsel %vm2771_vm1, %v2761_v22, %v2764_v2  ;;  %v2782_v63 = vsel %vm2772_vm2, %v2779_v54, %v2781_v14 }
 0x1c1   : > { %v2784_v57 = vsel %vm2774_vm3, %v2770_v46, 1326507024  ;;  %v2498_v56 = vclz %v6672_v25  ;;  %v9029_v42 = vmul.u32.u64.low %v8970_v44, %v2782_v63  ;;  %v9030_v18 = vmul.u32.u64.high %v8970_v44, %v2782_v63, %v9029_v42 }
 0x1c2   : > { %v2608_v26 = vor.u32 %v2607_v58, %v2606_v9  ;;  %v2611_v12 = vshll.u32 %v2610_v28, 23  ;;  %v2785_v61 = vsel %vm2773_vm4, %v2767_v60, %v2784_v57  ;;  %v2775_v2 = vsel %vm2771_vm1, %v2755_v39, %v2758_v20 }
 0x1c3   : > { %v2777_v9 = vsel %vm2773_vm4, %v2761_v22, %v2776_v17  ;;  %v2786_v54 = vsel %vm2772_vm2, %v2783_v3, %v2785_v61  ;;  %v2620_v46 = vsel %vm2535_vm14, %v2619_v15, %v8945_v50  ;;  %v6673_v60 = vadd.s32 4294967294, %v2498_v56 }
 0x1c4   : > { %v2612_v10 = vor.u32 4788187, %v2611_v12  ;;  %v9043_v58 = vmul.u32.u64.low %v8970_v44, %v2786_v54  ;;  %v9044_v28 = vmul.u32.u64.high %v8970_v44, %v2786_v54, %v9043_v58  ;;  %v2615_v25 = vcvt.s32.f32 %v2608_v26  ;;  %v7401_v12 = vpop.f32.mrf.mxu1 }
 0x1c5   : > { %v2517_v20 = vsel %vm2432_vm0, %v2516_v33, %v2492_v29  ;;  %v2646_v39 = vadd.s32 1, %v6679_v6  ;;  %vm6674_vm7 = vcmp.lt.s32.totalorder %v6673_v60, 0  ;;  %v2778_v22 = vsel %vm2772_vm2, %v2775_v2, %v2777_v9 }
 0x1c6   : > { %v2613_v14 = vand.u32 2147483647, %v2612_v10  ;;  %v2797_v17 = vadd.s32 1, %v9030_v18  ;;  %v9052_v50 = vadd.f32 %v7401_v12, %v8964_v35  ;;  %v2486_v3 = vadd.s32 %v8939_v37, %v8949_v8 }
 0x1c7   : > { %v2501_v10 = vsel %vm6674_vm7, 0, %v6673_v60  ;;  %vm2647_vm8 = vcmp.gt.s32.totalorder %v2646_v39, 0  ;;  %v2622_v33 = vsel %vm9004_vm5, 0, %v2620_v46  ;;  %v2519_v59 = vsel %vm9011_vm6, 0, %v2517_v20 }
 0x1c8   : > { %v2616_v15 = vmul.f32 %v2615_v25, %v2613_v14  ;;  %v2502_v6 = vsub.s32 32, %v2501_v10  ;;  %v2506_v29 = vsub.s32 4294967266, %v2501_v10  ;;  %v2794_v63 = vmul.u32 %v8970_v44, %v2778_v22 }
 0x1c9   : > { %vm2796_vm9 = vc.u32 %v9044_v28, %v9029_v42  ;;  %v2648_v35 = vsel %vm2647_vm8, %v2646_v39, 0  ;;  %v2503_v57 = vshll.u32 %v8991_v1, %v2501_v10  ;;  %v9070_v44 = vand.u32 3, %v2622_v33 }
 0x1ca   : > { %v2617_v26 = vxor.u32 2147483648, %v2616_v15  ;;  %v2504_v37 = vshrl.u32 %v2486_v3, %v2502_v6  ;;  %v2507_v8 = vadd.s32 127, %v2506_v29  ;;  %v2798_v56 = vsel %vm2796_vm9, %v2797_v17, %v9030_v18 }
 0x1cb   : > { %v2799_v2 = vadd.s32 %v2798_v56, %v2794_v63  ;;  %v2650_v9 = vand.u32 31, %v2648_v35  ;;  %v9072_v58 = vand.u32 3, %v2519_v59  ;;  %v2644_v25 = vor.u32 8388608, %v8985_v23 }
 0x1cc   : > { %v2618_v61 = vsel %vm2535_vm14, %v2617_v26, %v2616_v15  ;;  %v2505_v46 = vor.u32 %v2504_v37, %v2503_v57  ;;  %v2508_v60 = vshll.u32 %v2507_v8, 23  ;;  %v2945_v20 = vand.u32 2147483647, %v9052_v50 }
 0x1cd   : > { %v2621_v54 = vsel %vm9004_vm5, %v8865_v4, %v2618_v61  ;;  %v2800_v1 = vadd.s32 536870912, %v2799_v2  ;;  %v2651_v14 = vsub.s32 32, %v2650_v9  ;;  %v2948_v22 = vand.u32 2139095040, %v9052_v50 }
 0x1ce   : > { %7661 = vcosq.f32 %v2621_v54  ;;  %v2509_v18 = vor.u32 4788187, %v2508_v60  ;;  %v2512_v15 = vcvt.s32.f32 %v2505_v46  ;;  %v2659_v3 = vshll.u32 %v12213_v52, %v2650_v9 }
 0x1cf   : > { %7663 = vsinq.f32 %v2621_v54  ;;  %v9076_v39 = vshrl.u32 %v2800_v1, 30  ;;  %v2654_v41 = vshrl.u32 %v12212_v31, %v2651_v14  ;;  %v2657_v12 = vshrl.u32 %v12213_v52, %v2651_v14 }
 0x1d0   : > { %v2510_v17 = vand.u32 2147483647, %v2509_v18  ;;  %v2660_v10 = vshrl.u32 %v12214_v48, %v2651_v14  ;;  %v2649_v6 = vshrl.u32 %v2648_v35, 5  ;;  %v2653_v23 = vshll.u32 %v12211_v62, %v2650_v9 }
 0x1d1   : > { %v2802_v33 = vshll.u32 %v9076_v39, 30  ;;  %v2656_v29 = vshll.u32 %v12212_v31, %v2650_v9  ;;  %v2662_v63 = vshll.u32 %v12214_v48, %v2650_v9  ;;  %v2663_v57 = vshrl.u32 %v12215_v21, %v2651_v14 }
 0x1d2   : > { %v2513_v59 = vmul.f32 %v2512_v15, %v2510_v17  ;;  %v2661_v26 = vor.u32 %v2660_v10, %v2659_v3  ;;  %v2655_v8 = vor.u32 %v2654_v41, %v2653_v23  ;;  %v2666_v61 = vshrl.u32 %v12216_v32, %v2651_v14 }
 0x1d3   : > { %v9088_v37 = vsub.s32 %v2799_v2, %v2802_v33  ;;  %v2658_v56 = vor.u32 %v2657_v12, %v2656_v29  ;;  %vm2631_vm10 = vcmp.eq.s32.totalorder %v9070_v44, 2  ;;  %v2664_v54 = vor.u32 %v2663_v57, %v2662_v63 }
 0x1d4   : > { %v2514_v35 = vxor.u32 2147483648, %v2513_v59  ;;  %v2665_v46 = vshll.u32 %v12215_v21, %v2650_v9  ;;  %v9093_v60 = vshll.u32 %v2644_v25, 8  ;;  %vm2628_vm11 = vcmp.eq.s32.totalorder %v9070_v44, 0 }
 0x1d5   : > { %v2805_v1 = vsub.s32 0, %v9088_v37  ;;  %vm2668_vm12 = vcmp.lt.s32.totalorder %v2649_v6, 1  ;;  %vm2671_vm13 = vcmp.lt.s32.totalorder %v2649_v6, 4  ;;  %v2949_v2 = vshrl.u32 %v2948_v22, 23 }
 0x1d6   : > { %vm2627_vm14 = vcmp.lt.s32.totalorder %v9070_v44, 2  ;;  %v2515_v18 = vsel %vm2432_vm0, %v2514_v35, %v2513_v59  ;;  %v2652_v41 = vshrl.u32 %v12211_v62, %v2651_v14  ;;  %v2667_v12 = vor.u32 %v2666_v61, %v2665_v46 }
 0x1d7   : > { %v2673_v17 = vsel %vm2671_vm13, %v2661_v26, 2102212464  ;;  %vm2625_vm15 = vweird.f32 %v8865_v4  ;;  %v2518_v9 = vsel %vm9011_vm6, %v8870_v53, %v2515_v18  ;;  %v6684_v25 = vmin.u32 %v2805_v1, %v9088_v37 }
 0x1d8   : > { %vm2670_vm1 = vcmp.lt.s32.totalorder %v2649_v6, 3  ;;  %v2676_v22 = vsel %vm2668_vm12, %v2655_v8, %v2658_v56  ;;  %7665 = vcosq.f32 %v2518_v9  ;;  %v2672_v15 = vsel %vm2668_vm12, %v2652_v41, %v2655_v8 }
 0x1d9   : > { %v2674_v14 = vsel %vm2670_vm1, %v2658_v56, %v2673_v17  ;;  %v2677_v3 = vsel %vm2671_vm13, %v2664_v54, 920167782  ;;  %7667 = vsinq.f32 %v2518_v9  ;;  %v2807_v10 = vclz %v6684_v25 }
 0x1da   : > { %vm2669_vm0 = vcmp.lt.s32.totalorder %v2649_v6, 2  ;;  %v2678_v33 = vsel %vm2670_vm1, %v2661_v26, %v2677_v3  ;;  %v2680_v29 = vsel %vm2668_vm12, %v2658_v56, %v2661_v26  ;;  %v2681_v59 = vsel %vm2671_vm13, %v2667_v12, 1326507024 }
 0x1db   : > { %v7662_v23 = vpop.eup %7661  ;;  %v2679_v38 = vsel %vm2669_vm0, %v2676_v22, %v2678_v33  ;;  %v6691_v63 = vadd.s32 4294967169, %v2949_v2  ;;  %v6685_v61 = vadd.s32 4294967294, %v2807_v10  ;;  %v2675_v35 = vsel %vm2669_vm0, %v2672_v15, %v2674_v14 }
 0x1dc   : > { %v7664_v57 = vpop.eup %7663  ;;  %v2632_v8 = vxor.u32 2147483648, %v7662_v23  ;;  %v2682_v46 = vsel %vm2670_vm1, %v2664_v54, %v2681_v59  ;;  %v9119_v41 = vmul.u32.u64.low %v9093_v60, %v2679_v38  ;;  %v9120_v17 = vmul.u32.u64.high %v9093_v60, %v2679_v38, %v9119_v41 }
 0x1dd   : > { %v2629_v1 = vxor.u32 2147483648, %v7664_v57  ;;  %v2683_v18 = vsel %vm2669_vm0, %v2680_v29, %v2682_v46  ;;  %vm6686_vm2 = vcmp.lt.s32.totalorder %v6685_v61, 0  ;;  %v2795_v6 = vadd.s32 %v9029_v42, %v9044_v28  ;;  %v1910_v46 = vpop.f32.mrf.mxu0 }
 0x1de   : > { %v2633_v9 = vsel %vm2631_vm10, %v2632_v8, %v7664_v57  ;;  %v9126_v26 = vmul.u32.u64.low %v9093_v60, %v2683_v18  ;;  %v9127_v56 = vmul.u32.u64.high %v9093_v60, %v2683_v18, %v9126_v26  ;;  %v2810_v54 = vsel %vm6686_vm2, 0, %v6685_v61 }
 0x1df   : > { %v2630_v2 = vsel %vm2628_vm11, %v7662_v23, %v2629_v1  ;;  %v2955_v12 = vadd.s32 1, %v6691_v63  ;;  %v2811_v22 = vsub.s32 32, %v2810_v54  ;;  %v2815_v15 = vsub.s32 4294967266, %v2810_v54 }
 0x1e0   : > { %v2634_v25 = vsel %vm2627_vm14, %v2630_v2, %v2633_v9  ;;  %v2825_v14 = vsub.s32 4, %v9076_v39  ;;  %v2691_v10 = vmul.u32 %v9093_v60, %v2675_v35  ;;  %v2694_v33 = vadd.s32 1, %v9120_v17 }
 0x1e1   : > { %v2635_v3 = vsel %vm2625_vm15, nan, %v2634_v25  ;;  %vm2956_vm3 = vcmp.gt.s32.totalorder %v2955_v12, 0  ;;  %v2812_v42 = vshll.u32 %v9088_v37, %v2810_v54  ;;  %v2813_v28 = vshrl.u32 %v2795_v6, %v2811_v22 }
 0x1e2   : > { %6551 = vst [vmem:[%s9140_s30 + $0x8] sm:$0xff] %v2635_v3  ;;  %v2816_v44 = vadd.s32 127, %v2815_v15  ;;  %vm2693_vm4 = vc.u32 %v9127_v56, %v9119_v41  ;;  %vm2741_vm5 = vcmp.lt.s32.totalorder %v8877_v7, 0  ;;  %v2957_v23 = vsel %vm2956_vm3, %v2955_v12, 0 }
 0x1e3   : > { %v2695_v4 = vsel %vm2693_vm4, %v2694_v33, %v9120_v17  ;;  %v2814_v60 = vor.u32 %v2813_v28, %v2812_v42  ;;  %v9151_v29 = vsel %vm2741_vm5, %v2825_v14, %v9076_v39  ;;  %vm2522_vm6 = vweird.f32 %v8870_v53 }
 0x1e4   : > { %v2817_v38 = vshll.u32 %v2816_v44, 23  ;;  %v2696_v59 = vadd.s32 %v2695_v4, %v2691_v10  ;;  %v12224_v37 = vand.u32 2147483647, %v8877_v7  ;;  %v2952_v57 = vand.u32 8388607, %v2945_v20 }
 0x1e5   : > { %v2959_v8 = vand.u32 31, %v2957_v23  ;;  %v7666_v61 = vpop.eup %7665  ;;  %vm2524_vm8 = vcmp.lt.s32.totalorder %v9072_v58, 2  ;;  %vm2525_vm9 = vcmp.eq.s32.totalorder %v9072_v58, 0  ;;  %vm2528_vm10 = vcmp.eq.s32.totalorder %v9072_v58, 2 }
 0x1e6   : > { %vm9156_vm7 = vcmp.le.f32.partialorder %v12224_v37, 0.7853982  ;;  %v2818_v39 = vor.u32 4788187, %v2817_v38  ;;  %v2697_v35 = vadd.s32 536870912, %v2696_v59  ;;  %v7668_v1 = vpop.eup %7667  ;;  %v2529_v18 = vxor.u32 2147483648, %v7666_v61 }
 0x1e7   : > { %v2828_v17 = vsel %vm9156_vm7, 0, %v9151_v29  ;;  %v2960_v9 = vsub.s32 32, %v2959_v8  ;;  %v2526_v26 = vxor.u32 2147483648, %v7668_v1  ;;  %v2821_v6 = vcvt.s32.f32 %v2814_v60 }
 0x1e8   : > { %v2819_v2 = vand.u32 2147483647, %v2818_v39  ;;  %v9168_v54 = vshrl.u32 %v2697_v35, 30  ;;  %v2530_v12 = vsel %vm2528_vm10, %v2529_v18, %v7668_v1  ;;  %v2953_v25 = vor.u32 8388608, %v2952_v57 }
 0x1e9   : > { %v2963_v22 = vshrl.u32 %v12212_v31, %v2960_v9  ;;  %v1911_v15 = vadd.f32 %v1910_v46, %v8760_v16  ;;  %v2527_v14 = vsel %vm2525_vm9, %v7666_v61, %v2526_v26  ;;  %v2966_v33 = vshrl.u32 %v12213_v52, %v2960_v9 }
 0x1ea   : > { %v2822_v3 = vmul.f32 %v2821_v6, %v2819_v2  ;;  %v2699_v10 = vshll.u32 %v9168_v54, 30  ;;  %v2531_v42 = vsel %vm2524_vm8, %v2527_v14, %v2530_v12  ;;  %v2962_v28 = vshll.u32 %v12211_v62, %v2959_v8  ;;  %v2216_v2 = vpop.f32.mrf.mxu1 }
 0x1eb   : > { %v2965_v44 = vshll.u32 %v12212_v31, %v2959_v8  ;;  %v2969_v4 = vshrl.u32 %v12214_v48, %v2960_v9  ;;  %v2532_v16 = vsel %vm2522_vm6, nan, %v2531_v42  ;;  %v2968_v37 = vshll.u32 %v12213_v52, %v2959_v8 }
 0x1ec   : > { %v2823_v60 = vxor.u32 2147483648, %v2822_v3  ;;  %v9183_v38 = vsub.s32 %v2696_v59, %v2699_v10  ;;  %6550 = vst [vmem:[%s9140_s30] sm:$0xff] %v2532_v16  ;;  %v2958_v57 = vshrl.u32 %v2957_v23, 5  ;;  %v2964_v61 = vor.u32 %v2963_v22, %v2962_v28 }
 0x1ed   : > { %v2971_v58 = vshll.u32 %v12214_v48, %v2959_v8  ;;  %v2972_v39 = vshrl.u32 %v12215_v21, %v2960_v9  ;;  %v2967_v1 = vor.u32 %v2966_v33, %v2965_v44  ;;  %v2970_v53 = vor.u32 %v2969_v4, %v2968_v37 }
 0x1ee   : > { %v2824_v35 = vsel %vm2741_vm5, %v2823_v60, %v2822_v3  ;;  %v2702_v46 = vsub.s32 0, %v9183_v38  ;;  %v2974_v26 = vshll.u32 %v12215_v21, %v2959_v8  ;;  %v2975_v23 = vshrl.u32 %v12216_v32, %v2960_v9  ;;  %v7342_v8 = vpop.f32.mrf.mxu0 }
 0x1ef   : > { %v2827_v59 = vsel %vm9156_vm7, %v8877_v7, %v2824_v35  ;;  %v2973_v18 = vor.u32 %v2972_v39, %v2971_v58  ;;  %v9198_v12 = vshll.u32 %v2953_v25, 8  ;;  %v9200_v22 = vadd.f32 %v2216_v2, %v1911_v15  ;;  %v7404_v2 = vpop.f32.mrf.mxu1 }
 0x1f0   : > { %7669 = vcosq.f32 %v2827_v59  ;;  %v6680_v6 = vmin.u32 %v2702_v46, %v9183_v38  ;;  %v2961_v14 = vshrl.u32 %v12211_v62, %v2960_v9  ;;  %v2976_v3 = vor.u32 %v2975_v23, %v2974_v26 }
 0x1f1   : > { %7671 = vsinq.f32 %v2827_v59  ;;  %vm2977_vm11 = vcmp.lt.s32.totalorder %v2958_v57, 1  ;;  %vm2979_vm12 = vcmp.lt.s32.totalorder %v2958_v57, 3  ;;  %vm2980_vm13 = vcmp.lt.s32.totalorder %v2958_v57, 4 }
 0x1f2   : > { %v2704_v10 = vclz %v6680_v6  ;;  %v2985_v33 = vsel %vm2977_vm11, %v2964_v61, %v2967_v1  ;;  %v2982_v42 = vsel %vm2980_vm13, %v2970_v53, 2102212464  ;;  %v2986_v28 = vsel %vm2980_vm13, %v2973_v18, 920167782 }
 0x1f3   : > { %v2989_v44 = vsel %vm2977_vm11, %v2967_v1, %v2970_v53  ;;  %v2990_v4 = vsel %vm2980_vm13, %v2976_v3, 1326507024  ;;  %vm2978_vm14 = vcmp.lt.s32.totalorder %v2958_v57, 2  ;;  %v2987_v25 = vsel %vm2979_vm12, %v2970_v53, %v2986_v28 }
 0x1f4   : > { %v6681_v16 = vadd.s32 4294967294, %v2704_v10  ;;  %v2991_v15 = vsel %vm2979_vm12, %v2973_v18, %v2990_v4  ;;  %v2981_v60 = vsel %vm2977_vm11, %v2961_v14, %v2964_v61  ;;  %v2988_v9 = vsel %vm2978_vm14, %v2985_v33, %v2987_v25 }
 0x1f5   : > { %v2992_v37 = vsel %vm2978_vm14, %v2989_v44, %v2991_v15  ;;  %v1929_v58 = vadd.f32 %v7342_v8, %v8763_v11  ;;  %v2983_v39 = vsel %vm2979_vm12, %v2967_v1, %v2982_v42  ;;  %v2832_v53 = vand.u32 3, %v2828_v17 }
 0x1f6   : > { %vm6682_vm15 = vcmp.lt.s32.totalorder %v6681_v16, 0  ;;  %v9210_v35 = vmul.u32.u64.low %v9198_v12, %v2992_v37  ;;  %v9211_v46 = vmul.u32.u64.high %v9198_v12, %v2992_v37, %v9210_v35  ;;  %v2692_v11 = vadd.s32 %v9119_v41, %v9127_v56 }
 0x1f7   : > { %v2707_v59 = vsel %vm6682_vm15, 0, %v6681_v16  ;;  %v9218_v61 = vmul.u32.u64.low %v9198_v12, %v2988_v9  ;;  %v9219_v18 = vmul.u32.u64.high %v9198_v12, %v2988_v9, %v9218_v61  ;;  %v2722_v23 = vsub.s32 4, %v9168_v54 }
 0x1f8   : > { %v2708_v26 = vsub.s32 32, %v2707_v59  ;;  %v2712_v1 = vsub.s32 4294967266, %v2707_v59  ;;  %vm2638_vm1 = vcmp.lt.s32.totalorder %v8883_v45, 0  ;;  %v2984_v63 = vsel %vm2978_vm14, %v2981_v60, %v2983_v39 }
 0x1f9   : > { %v2845_v29 = vand.u32 2139095040, %v9200_v22  ;;  %v9228_v17 = vadd.f32 %v7404_v2, %v1929_v58  ;;  %vm2831_vm0 = vweird.f32 %v8877_v7  ;;  %v2709_v6 = vshll.u32 %v9183_v38, %v2707_v59 }
 0x1fa   : > { %v2710_v14 = vshrl.u32 %v2692_v11, %v2708_v26  ;;  %v2713_v3 = vadd.s32 127, %v2712_v1  ;;  %vm3002_vm2 = vc.u32 %v9211_v46, %v9218_v61  ;;  %vm2833_vm3 = vcmp.lt.s32.totalorder %v2832_v53, 2 }
 0x1fb   : > { %v12227_v41 = vand.u32 2147483647, %v8883_v45  ;;  %v3003_v57 = vadd.s32 1, %v9219_v18  ;;  %v2846_v10 = vshrl.u32 %v2845_v29, 23  ;;  %v2723_v38 = vsel %vm2638_vm1, %v2722_v23, %v9168_v54 }
 0x1fc   : > { %v2711_v33 = vor.u32 %v2710_v14, %v2709_v6  ;;  %v2714_v8 = vshll.u32 %v2713_v3, 23  ;;  %v3000_v42 = vmul.u32 %v9198_v12, %v2984_v63  ;;  %v2842_v4 = vand.u32 2147483647, %v9200_v22 }
 0x1fd   : > { %vm9236_vm4 = vcmp.le.f32.partialorder %v12227_v41, 0.7853982  ;;  %v7670_v28 = vpop.eup %7669  ;;  %v3004_v44 = vsel %vm3002_vm2, %v3003_v57, %v9219_v18  ;;  %v6687_v16 = vadd.s32 4294967169, %v2846_v10  ;;  %v3154_v25 = vand.u32 2139095040, %v9228_v17 }
 0x1fe   : > { %v7672_v15 = vpop.eup %7671  ;;  %vm2834_vm5 = vcmp.eq.s32.totalorder %v2832_v53, 0  ;;  %v2838_v60 = vxor.u32 2147483648, %v7670_v28  ;;  %v2715_v9 = vor.u32 4788187, %v2714_v8  ;;  %v3005_v37 = vadd.s32 %v3004_v44, %v3000_v42 }
 0x1ff   : > { %v2835_v58 = vxor.u32 2147483648, %v7672_v15  ;;  %vm2837_vm6 = vcmp.eq.s32.totalorder %v2832_v53, 2  ;;  %v2725_v54 = vsel %vm9236_vm4, 0, %v2723_v38  ;;  %v2852_v12 = vadd.s32 1, %v6687_v16 }
 0x200   : > { %v2839_v39 = vsel %vm2837_vm6, %v2838_v60, %v7672_v15  ;;  %v2716_v35 = vand.u32 2147483647, %v2715_v9  ;;  %v2718_v59 = vcvt.s32.f32 %v2711_v33  ;;  %v3006_v18 = vadd.s32 536870912, %v3005_v37 }
 0x201   : > { %v2836_v11 = vsel %vm2834_vm5, %v7670_v28, %v2835_v58  ;;  %v2849_v26 = vand.u32 8388607, %v2842_v4  ;;  %vm2853_vm7 = vcmp.gt.s32.totalorder %v2852_v12, 0  ;;  %v3155_v1 = vshrl.u32 %v3154_v25, 23 }
 0x202   : > { %v2840_v23 = vsel %vm2833_vm3, %v2836_v11, %v2839_v39  ;;  %v2719_v2 = vmul.f32 %v2718_v59, %v2716_v35  ;;  %v9253_v63 = vshrl.u32 %v3006_v18, 30  ;;  %v2854_v29 = vsel %vm2853_vm7, %v2852_v12, 0 }
 0x203   : > { %v2841_v6 = vsel %vm2831_vm0, nan, %v2840_v23  ;;  %v2856_v14 = vand.u32 31, %v2854_v29  ;;  %v9259_v57 = vand.u32 3, %v2725_v54  ;;  %v2850_v10 = vor.u32 8388608, %v2849_v26 }
 0x204   : > { %6553 = vst [vmem:[%s9140_s30 + $0x18] sm:$0xff] %v2841_v6  ;;  %v2720_v3 = vxor.u32 2147483648, %v2719_v2  ;;  %v3008_v41 = vshll.u32 %v9253_v63, 30  ;;  %v6699_v8 = vadd.s32 4294967169, %v3155_v1  ;;  %v2855_v42 = vshrl.u32 %v2854_v29, 5 }
 0x205   : > { %v2857_v33 = vsub.s32 32, %v2856_v14  ;;  %v2859_v28 = vshll.u32 %v12211_v62, %v2856_v14  ;;  %v2862_v16 = vshll.u32 %v12212_v31, %v2856_v14  ;;  %v2865_v25 = vshll.u32 %v12213_v52, %v2856_v14 }
 0x206   : > { %v2721_v53 = vsel %vm2638_vm1, %v2720_v3, %v2719_v2  ;;  %v9263_v38 = vsub.s32 %v3005_v37, %v3008_v41  ;;  %v2868_v9 = vshll.u32 %v12214_v48, %v2856_v14  ;;  %v9278_v12 = vshll.u32 %v2850_v10, 8 }
 0x207   : > { %v2724_v7 = vsel %vm9236_vm4, %v8883_v45, %v2721_v53  ;;  %v2860_v44 = vshrl.u32 %v12212_v31, %v2857_v33  ;;  %v2863_v60 = vshrl.u32 %v12213_v52, %v2857_v33  ;;  %v2866_v58 = vshrl.u32 %v12214_v48, %v2857_v33 }
 0x208   : > { %7673 = vcosq.f32 %v2724_v7  ;;  %v3011_v15 = vsub.s32 0, %v9263_v38  ;;  %v2869_v56 = vshrl.u32 %v12215_v21, %v2857_v33  ;;  %v3151_v39 = vand.u32 2147483647, %v9228_v17 }
 0x209   : > { %7675 = vsinq.f32 %v2724_v7  ;;  %v2861_v37 = vor.u32 %v2860_v44, %v2859_v28  ;;  %v3161_v35 = vadd.s32 1, %v6699_v8  ;;  %v2858_v59 = vshrl.u32 %v12211_v62, %v2857_v33 }
 0x20a   : > { %v6692_v54 = vmin.u32 %v3011_v15, %v9263_v38  ;;  %v2864_v18 = vor.u32 %v2863_v60, %v2862_v16  ;;  %v2867_v11 = vor.u32 %v2866_v58, %v2865_v25  ;;  %v2870_v26 = vor.u32 %v2869_v56, %v2868_v9  ;;  %v1922_v56 = vpop.f32.mrf.mxu0 }
 0x20b   : > { %v2871_v23 = vshll.u32 %v12215_v21, %v2856_v14  ;;  %v2872_v2 = vshrl.u32 %v12216_v32, %v2857_v33  ;;  %vm2874_vm8 = vcmp.lt.s32.totalorder %v2855_v42, 1  ;;  %vm2875_vm9 = vcmp.lt.s32.totalorder %v2855_v42, 2 }
 0x20c   : > { %v3013_v1 = vclz %v6692_v54  ;;  %vm2876_vm10 = vcmp.lt.s32.totalorder %v2855_v42, 3  ;;  %vm2877_vm11 = vcmp.lt.s32.totalorder %v2855_v42, 4  ;;  %v2882_v29 = vsel %vm2874_vm8, %v2861_v37, %v2864_v18 }
 0x20d   : > { %v2873_v3 = vor.u32 %v2872_v2, %v2871_v23  ;;  %v2879_v41 = vsel %vm2877_vm11, %v2867_v11, 2102212464  ;;  %v2883_v10 = vsel %vm2877_vm11, %v2870_v26, 920167782  ;;  %v2878_v8 = vsel %vm2874_vm8, %v2858_v59, %v2861_v37 }
 0x20e   : > { %v6693_v6 = vadd.s32 4294967294, %v3013_v1  ;;  %v2880_v53 = vsel %vm2876_vm10, %v2864_v18, %v2879_v41  ;;  %v2884_v28 = vsel %vm2876_vm10, %v2867_v11, %v2883_v10  ;;  %v2886_v7 = vsel %vm2874_vm8, %v2864_v18, %v2867_v11 }
 0x20f   : > { %v2885_v14 = vsel %vm2875_vm9, %v2882_v29, %v2884_v28  ;;  %v2887_v44 = vsel %vm2877_vm11, %v2873_v3, 1326507024  ;;  %vm3162_vm13 = vcmp.gt.s32.totalorder %v3161_v35, 0  ;;  %v3001_v60 = vadd.s32 %v9218_v61, %v9211_v46 }
 0x210   : > { %vm6694_vm12 = vcmp.lt.s32.totalorder %v6693_v6, 0  ;;  %v2888_v16 = vsel %vm2876_vm10, %v2870_v26, %v2887_v44  ;;  %v9289_v25 = vmul.u32.u64.low %v9278_v12, %v2885_v14  ;;  %v9290_v15 = vmul.u32.u64.high %v9278_v12, %v2885_v14, %v9289_v25 }
 0x211   : > { %v3016_v33 = vsel %vm6694_vm12, 0, %v6693_v6  ;;  %v2889_v58 = vsel %vm2875_vm9, %v2886_v7, %v2888_v16  ;;  %v2881_v54 = vsel %vm2875_vm9, %v2878_v8, %v2880_v53  ;;  %v3163_v11 = vsel %vm3162_vm13, %v3161_v35, 0 }
 0x212   : > { %v3017_v9 = vsub.s32 32, %v3016_v33  ;;  %v3021_v37 = vsub.s32 4294967266, %v3016_v33  ;;  %v9298_v59 = vmul.u32.u64.low %v9278_v12, %v2889_v58  ;;  %v9299_v18 = vmul.u32.u64.high %v9278_v12, %v2889_v58, %v9298_v59 }
 0x213   : > { %v3018_v26 = vshll.u32 %v9263_v38, %v3016_v33  ;;  %v3165_v2 = vand.u32 31, %v3163_v11  ;;  %vm2728_vm14 = vweird.f32 %v8883_v45  ;;  %v2900_v46 = vadd.s32 1, %v9290_v15 }
 0x214   : > { %v3019_v1 = vshrl.u32 %v3001_v60, %v3017_v9  ;;  %v3022_v23 = vadd.s32 127, %v3021_v37  ;;  %v3158_v61 = vand.u32 8388607, %v3151_v39  ;;  %v1923_v42 = vadd.f32 %v1922_v56, %v8766_v19 }
 0x215   : > { %v7674_v29 = vpop.eup %7673  ;;  %vm2734_vm15 = vcmp.eq.s32.totalorder %v9259_v57, 2  ;;  %vm2947_vm1 = vcmp.lt.s32.totalorder %v9052_v50, 0  ;;  %v2897_v10 = vmul.u32 %v9278_v12, %v2881_v54  ;;  %vm2899_vm0 = vc.u32 %v9299_v18, %v9289_v25 }
 0x216   : > { %v7676_v6 = vpop.eup %7675  ;;  %v2735_v3 = vxor.u32 2147483648, %v7674_v29  ;;  %v3020_v35 = vor.u32 %v3019_v1, %v3018_v26  ;;  %v3023_v41 = vshll.u32 %v3022_v23, 23  ;;  %v3166_v8 = vsub.s32 32, %v3165_v2 }
 0x217   : > { %v2732_v38 = vxor.u32 2147483648, %v7676_v6  ;;  %vm2731_vm2 = vcmp.eq.s32.totalorder %v9259_v57, 0  ;;  %v2901_v28 = vsel %vm2899_vm0, %v2900_v46, %v9290_v15  ;;  %vm2730_vm3 = vcmp.lt.s32.totalorder %v9259_v57, 2 }
 0x218   : > { %v2736_v53 = vsel %vm2734_vm15, %v2735_v3, %v7676_v6  ;;  %v3024_v19 = vor.u32 4788187, %v3023_v41  ;;  %v2902_v14 = vadd.s32 %v2901_v28, %v2897_v10  ;;  %v3159_v44 = vor.u32 8388608, %v3158_v61 }
 0x219   : > { %v2733_v7 = vsel %vm2731_vm2, %v7674_v29, %v2732_v38  ;;  %v3027_v60 = vcvt.s32.f32 %v3020_v35  ;;  %v3031_v12 = vsub.s32 4, %v9253_v63  ;;  %v3164_v58 = vshrl.u32 %v3163_v11, 5 }
 0x21a   : > { %v2737_v33 = vsel %vm2730_vm3, %v2733_v7, %v2736_v53  ;;  %v3025_v16 = vand.u32 2147483647, %v3024_v19  ;;  %v2903_v37 = vadd.s32 536870912, %v2902_v14  ;;  %v3169_v56 = vshrl.u32 %v12212_v31, %v3166_v8 }
 0x21b   : > { %v2738_v9 = vsel %vm2728_vm14, nan, %v2737_v33  ;;  %v3168_v15 = vshll.u32 %v12211_v62, %v3165_v2  ;;  %v3172_v57 = vshrl.u32 %v12213_v52, %v3166_v8  ;;  %v3175_v59 = vshrl.u32 %v12214_v48, %v3166_v8  ;;  %v2228_v33 = vpop.f32.mrf.mxu1 }
 0x21c   : > { %6552 = vst [vmem:[%s9140_s30 + $0x10] sm:$0xff] %v2738_v9  ;;  %v3028_v54 = vmul.f32 %v3027_v60, %v3025_v16  ;;  %v9323_v26 = vshrl.u32 %v2903_v37, 30  ;;  %v3174_v1 = vshll.u32 %v12213_v52, %v3165_v2  ;;  %v3178_v23 = vshrl.u32 %v12215_v21, %v3166_v8 }
 0x21d   : > { %v3181_v45 = vshrl.u32 %v12216_v32, %v3166_v8  ;;  %v3171_v11 = vshll.u32 %v12212_v31, %v3165_v2  ;;  %v3177_v46 = vshll.u32 %v12214_v48, %v3165_v2  ;;  %v3180_v61 = vshll.u32 %v12215_v21, %v3165_v2 }
 0x21e   : > { %v3029_v29 = vxor.u32 2147483648, %v3028_v54  ;;  %vm9333_vm4 = vcmp.le.f32.partialorder %v2945_v20, 0.7853982  ;;  %v2905_v3 = vshll.u32 %v9323_v26, 30  ;;  %v3170_v35 = vor.u32 %v3169_v56, %v3168_v15 }
 0x21f   : > { %v3176_v41 = vor.u32 %v3175_v59, %v3174_v1  ;;  %v3173_v10 = vor.u32 %v3172_v57, %v3171_v11  ;;  %v3179_v53 = vor.u32 %v3178_v23, %v3177_v46  ;;  %v3182_v19 = vor.u32 %v3181_v45, %v3180_v61 }
 0x220   : > { %v3030_v38 = vsel %vm2947_vm1, %v3029_v29, %v3028_v54  ;;  %v3032_v2 = vsel %vm2947_vm1, %v3031_v12, %v9253_v63  ;;  %v9346_v28 = vsub.s32 %v2902_v14, %v2905_v3  ;;  %v3199_v7 = vshll.u32 %v3159_v44, 8 }
 0x221   : > { %v3033_v20 = vsel %vm9333_vm4, %v9052_v50, %v3030_v38  ;;  %v3167_v16 = vshrl.u32 %v12211_v62, %v3166_v8  ;;  %vm3186_vm5 = vcmp.lt.s32.totalorder %v3164_v58, 4  ;;  %v9349_v60 = vadd.f32 %v2228_v33, %v1923_v42 }
 0x222   : > { %7677 = vcosq.f32 %v3033_v20  ;;  %v2908_v9 = vsub.s32 0, %v9346_v28  ;;  %vm3183_vm6 = vcmp.lt.s32.totalorder %v3164_v58, 1  ;;  %v3188_v37 = vsel %vm3186_vm5, %v3176_v41, 2102212464 }
 0x223   : > { %7679 = vsinq.f32 %v3033_v20  ;;  %v3191_v63 = vsel %vm3183_vm6, %v3170_v35, %v3173_v10  ;;  %v3192_v12 = vsel %vm3186_vm5, %v3179_v53, 920167782  ;;  %v3195_v56 = vsel %vm3183_vm6, %v3173_v10, %v3176_v41 }
 0x224   : > { %v3196_v54 = vsel %vm3186_vm5, %v3182_v19, 1326507024  ;;  %v3034_v14 = vsel %vm9333_vm4, 0, %v3032_v2  ;;  %v6688_v44 = vmin.u32 %v2908_v9, %v9346_v28  ;;  %vm3184_vm7 = vcmp.lt.s32.totalorder %v3164_v58, 2  ;;  %v7345_v2 = vpop.f32.mrf.mxu0 }
 0x225   : > { %vm3185_vm8 = vcmp.lt.s32.totalorder %v3164_v58, 3  ;;  %v3187_v8 = vsel %vm3183_vm6, %v3167_v16, %v3170_v35  ;;  %v3051_v45 = vand.u32 2139095040, %v9349_v60  ;;  %v3038_v35 = vand.u32 3, %v3034_v14 }
 0x226   : > { %v3189_v15 = vsel %vm3185_vm8, %v3173_v10, %v3188_v37  ;;  %v3193_v42 = vsel %vm3185_vm8, %v3176_v41, %v3192_v12  ;;  %v3197_v57 = vsel %vm3185_vm8, %v3179_v53, %v3196_v54  ;;  %v2910_v59 = vclz %v6688_v44 }
 0x227   : > { %v3194_v1 = vsel %vm3184_vm7, %v3191_v63, %v3193_v42  ;;  %v3198_v23 = vsel %vm3184_vm7, %v3195_v56, %v3197_v57  ;;  %v3052_v3 = vshrl.u32 %v3051_v45, 23  ;;  %vm2844_vm9 = vcmp.lt.s32.totalorder %v9200_v22, 0 }
 0x228   : > { %v9358_v29 = vmul.u32.u64.low %v3199_v7, %v3198_v23  ;;  %v9359_v11 = vmul.u32.u64.high %v3199_v7, %v3198_v23, %v9358_v29  ;;  %v9361_v46 = vmul.u32.u64.low %v3199_v7, %v3194_v1  ;;  %v9362_v61 = vmul.u32.u64.high %v3199_v7, %v3194_v1, %v9361_v46  ;;  %v7407_v1 = vpop.f32.mrf.mxu1 }
 0x229   : > { %v6689_v6 = vadd.s32 4294967294, %v2910_v59  ;;  %v3190_v41 = vsel %vm3184_vm7, %v3187_v8, %v3189_v15  ;;  %vm9369_vm10 = vcmp.le.f32.partialorder %v2842_v4, 0.7853982  ;;  %v2898_v10 = vadd.s32 %v9289_v25, %v9299_v18 }
 0x22a   : > { %v2928_v53 = vsub.s32 4, %v9323_v26  ;;  %v6695_v19 = vadd.s32 4294967169, %v3052_v3  ;;  %vm3037_vm12 = vweird.f32 %v9052_v50  ;;  %vm3208_vm13 = vc.u32 %v9359_v11, %v9361_v46 }
 0x22b   : > { %vm6690_vm11 = vcmp.lt.s32.totalorder %v6689_v6, 0  ;;  %v3209_v58 = vadd.s32 1, %v9362_v61  ;;  %v3048_v4 = vand.u32 2147483647, %v9349_v60  ;;  %v3206_v9 = vmul.u32 %v3199_v7, %v3190_v41 }
 0x22c   : > { %v2913_v20 = vsel %vm6690_vm11, 0, %v6689_v6  ;;  %v3058_v37 = vadd.s32 1, %v6695_v19  ;;  %vm3043_vm14 = vcmp.eq.s32.totalorder %v3038_v35, 2  ;;  %v1941_v63 = vadd.f32 %v7345_v2, %v8769_v36 }
 0x22d   : > { %v2914_v33 = vsub.s32 32, %v2913_v20  ;;  %v2918_v16 = vsub.s32 4294967266, %v2913_v20  ;;  %v2915_v25 = vshll.u32 %v9346_v28, %v2913_v20  ;;  %v3210_v18 = vsel %vm3208_vm13, %v3209_v58, %v9362_v61 }
 0x22e   : > { %v3211_v14 = vadd.s32 %v3210_v18, %v3206_v9  ;;  %vm3059_vm15 = vcmp.gt.s32.totalorder %v3058_v37, 0  ;;  %v9387_v15 = vsel %vm2844_vm9, %v2928_v53, %v9323_v26  ;;  %v3055_v7 = vand.u32 8388607, %v3048_v4 }
 0x22f   : > { %v7678_v12 = vpop.eup %7677  ;;  %v2916_v56 = vshrl.u32 %v2898_v10, %v2914_v33  ;;  %v2919_v54 = vadd.s32 127, %v2918_v16  ;;  %v3060_v28 = vsel %vm3059_vm15, %v3058_v37, 0  ;;  %vm3040_vm1 = vcmp.eq.s32.totalorder %v3038_v35, 0 }
 0x230   : > { %v7680_v44 = vpop.eup %7679  ;;  %v3044_v8 = vxor.u32 2147483648, %v7678_v12  ;;  %v3212_v36 = vadd.s32 536870912, %v3211_v14  ;;  %v3062_v45 = vand.u32 31, %v3060_v28  ;;  %v9392_v29 = vadd.f32 %v7407_v1, %v1941_v63 }
 0x231   : > { %v3041_v42 = vxor.u32 2147483648, %v7680_v44  ;;  %v2917_v57 = vor.u32 %v2916_v56, %v2915_v25  ;;  %v2920_v59 = vshll.u32 %v2919_v54, 23  ;;  %vm3039_vm0 = vcmp.lt.s32.totalorder %v3038_v35, 2 }
 0x232   : > { %v3045_v23 = vsel %vm3043_vm14, %v3044_v8, %v7680_v44  ;;  %v9394_v6 = vshrl.u32 %v3212_v36, 30  ;;  %v2931_v41 = vsel %vm9369_vm10, 0, %v9387_v15  ;;  %v3056_v10 = vor.u32 8388608, %v3055_v7 }
 0x233   : > { %v3042_v61 = vsel %vm3040_vm1, %v7678_v12, %v3041_v42  ;;  %v2921_v26 = vor.u32 4788187, %v2920_v59  ;;  %v3063_v53 = vsub.s32 32, %v3062_v45  ;;  %v2924_v20 = vcvt.s32.f32 %v2917_v57 }
 0x234   : > { %v3046_v3 = vsel %vm3039_vm0, %v3042_v61, %v3045_v23  ;;  %v3214_v58 = vshll.u32 %v9394_v6, 30  ;;  %v3065_v35 = vshll.u32 %v12211_v62, %v3062_v45  ;;  %v3360_v9 = vand.u32 2139095040, %v9392_v29 }
 0x235   : > { %v3047_v19 = vsel %vm3037_vm12, nan, %v3046_v3  ;;  %v2922_v2 = vand.u32 2147483647, %v2921_v26  ;;  %v3066_v33 = vshrl.u32 %v12212_v31, %v3063_v53  ;;  %v3069_v16 = vshrl.u32 %v12213_v52, %v3063_v53 }
 0x236   : > { %6555 = vst [vmem:[%s9140_s30 + $0x28] sm:$0xff] %v3047_v19  ;;  %v9407_v25 = vsub.s32 %v3211_v14, %v3214_v58  ;;  %v3068_v18 = vshll.u32 %v12212_v31, %v3062_v45  ;;  %v3072_v50 = vshrl.u32 %v12214_v48, %v3063_v53  ;;  %v3061_v63 = vshrl.u32 %v3060_v28, 5 }
 0x237   : > { %v2925_v37 = vmul.f32 %v2924_v20, %v2922_v2  ;;  %v3071_v12 = vshll.u32 %v12213_v52, %v3062_v45  ;;  %v9412_v56 = vshll.u32 %v3056_v10, 8  ;;  %v3357_v54 = vand.u32 2147483647, %v9392_v29 }
 0x238   : > { %v3217_v8 = vsub.s32 0, %v9407_v25  ;;  %v3067_v7 = vor.u32 %v3066_v33, %v3065_v35  ;;  %v3070_v42 = vor.u32 %v3069_v16, %v3068_v18  ;;  %v3074_v57 = vshll.u32 %v12214_v48, %v3062_v45 }
 0x239   : > { %v2926_v44 = vxor.u32 2147483648, %v2925_v37  ;;  %v3075_v14 = vshrl.u32 %v12215_v21, %v3063_v53  ;;  %v3077_v59 = vshll.u32 %v12215_v21, %v3062_v45  ;;  %v3078_v36 = vshrl.u32 %v12216_v32, %v3063_v53 }
 0x23a   : > { %v6700_v1 = vmin.u32 %v3217_v8, %v9407_v25  ;;  %v3073_v23 = vor.u32 %v3072_v50, %v3071_v12  ;;  %v3361_v61 = vshrl.u32 %v3360_v9, 23  ;;  %v3064_v3 = vshrl.u32 %v12211_v62, %v3063_v53 }
 0x23b   : > { %v2927_v28 = vsel %vm2844_vm9, %v2926_v44, %v2925_v37  ;;  %v3076_v10 = vor.u32 %v3075_v14, %v3074_v57  ;;  %v3079_v19 = vor.u32 %v3078_v36, %v3077_v59  ;;  %vm3080_vm2 = vcmp.lt.s32.totalorder %v3061_v63, 1 }
 0x23c   : > { %v2930_v26 = vsel %vm9369_vm10, %v9200_v22, %v2927_v28  ;;  %v3219_v2 = vclz %v6700_v1  ;;  %vm3081_vm3 = vcmp.lt.s32.totalorder %v3061_v63, 2  ;;  %vm3153_vm4 = vcmp.lt.s32.totalorder %v9228_v17, 0  ;;  %v1934_v1 = vpop.f32.mrf.mxu0 }
 0x23d   : > { %7681 = vcosq.f32 %v2930_v26  ;;  %vm3082_vm5 = vcmp.lt.s32.totalorder %v3061_v63, 3  ;;  %vm3083_vm6 = vcmp.lt.s32.totalorder %v3061_v63, 4  ;;  %v3088_v45 = vsel %vm3080_vm2, %v3067_v7, %v3070_v42 }
 0x23e   : > { %7683 = vsinq.f32 %v2930_v26  ;;  %v6701_v20 = vadd.s32 4294967294, %v3219_v2  ;;  %v3085_v58 = vsel %vm3083_vm6, %v3073_v23, 2102212464  ;;  %v3089_v35 = vsel %vm3083_vm6, %v3076_v10, 920167782 }
 0x23f   : > { %v3092_v33 = vsel %vm3080_vm2, %v3070_v42, %v3073_v23  ;;  %v3084_v16 = vsel %vm3080_vm2, %v3064_v3, %v3067_v7  ;;  %v3090_v9 = vsel %vm3082_vm5, %v3073_v23, %v3089_v35  ;;  %v3093_v37 = vsel %vm3083_vm6, %v3079_v19, 1326507024 }
 0x240   : > { %v6707_v53 = vadd.s32 4294967169, %v3361_v61  ;;  %vm9430_vm7 = vcmp.le.f32.partialorder %v3151_v39, 0.7853982  ;;  %vm6702_vm8 = vcmp.lt.s32.totalorder %v6701_v20, 0  ;;  %v3086_v50 = vsel %vm3082_vm5, %v3070_v42, %v3085_v58 }
 0x241   : > { %v3091_v12 = vsel %vm3081_vm3, %v3088_v45, %v3090_v9  ;;  %v3094_v44 = vsel %vm3082_vm5, %v3076_v10, %v3093_v37  ;;  %v3222_v8 = vsel %vm6702_vm8, 0, %v6701_v20  ;;  %v3207_v59 = vadd.s32 %v9361_v46, %v9359_v11 }
 0x242   : > { %v3095_v57 = vsel %vm3081_vm3, %v3092_v33, %v3094_v44  ;;  %v9437_v14 = vmul.u32.u64.low %v9412_v56, %v3091_v12  ;;  %v9438_v7 = vmul.u32.u64.high %v9412_v56, %v3091_v12, %v9437_v14  ;;  %v3223_v39 = vsub.s32 32, %v3222_v8 }
 0x243   : > { %v3227_v36 = vsub.s32 4294967266, %v3222_v8  ;;  %v3237_v28 = vsub.s32 4, %v9394_v6  ;;  %v2935_v42 = vand.u32 3, %v2931_v41  ;;  %v3367_v26 = vadd.s32 1, %v6707_v53 }
 0x244   : > { %v9449_v23 = vmul.u32.u64.low %v9412_v56, %v3095_v57  ;;  %v9450_v61 = vmul.u32.u64.high %v9412_v56, %v3095_v57, %v9449_v23  ;;  %v3224_v3 = vshll.u32 %v9407_v25, %v3222_v8  ;;  %v3225_v10 = vshrl.u32 %v3207_v59, %v3223_v39 }
 0x245   : > { %v3228_v19 = vadd.s32 127, %v3227_v36  ;;  %v3087_v11 = vsel %vm3081_vm3, %v3084_v16, %v3086_v50  ;;  %v3106_v46 = vadd.s32 1, %v9438_v7  ;;  %v9457_v2 = vand.u32 8388607, %v3357_v54 }
 0x246   : > { %vm3368_vm9 = vcmp.gt.s32.totalorder %v3367_v26, 0  ;;  %v1935_v38 = vadd.f32 %v1934_v1, %v8772_v49  ;;  %vm2934_vm10 = vweird.f32 %v9200_v22  ;;  %v3226_v15 = vor.u32 %v3225_v10, %v3224_v3 }
 0x247   : > { %v3229_v41 = vshll.u32 %v3228_v19, 23  ;;  %v3238_v25 = vsel %vm3153_vm4, %v3237_v28, %v9394_v6  ;;  %v3369_v45 = vsel %vm3368_vm9, %v3367_v26, 0  ;;  %vm2936_vm11 = vcmp.lt.s32.totalorder %v2935_v42, 2 }
 0x248   : > { %v3103_v63 = vmul.u32 %v9412_v56, %v3087_v11  ;;  %vm3105_vm12 = vc.u32 %v9450_v61, %v9437_v14  ;;  %v3371_v20 = vand.u32 31, %v3369_v45  ;;  %vm2937_vm13 = vcmp.eq.s32.totalorder %v2935_v42, 0 }
 0x249   : > { %vm2940_vm14 = vcmp.eq.s32.totalorder %v2935_v42, 2  ;;  %v3230_v58 = vor.u32 4788187, %v3229_v41  ;;  %v3107_v49 = vsel %vm3105_vm12, %v3106_v46, %v9438_v7  ;;  %v3240_v33 = vsel %vm9430_vm7, 0, %v3238_v25 }
 0x24a   : > { %v7682_v35 = vpop.eup %7681  ;;  %v3108_v16 = vadd.s32 %v3107_v49, %v3103_v63  ;;  %v3365_v6 = vor.u32 8388608, %v9457_v2  ;;  %v3372_v9 = vsub.s32 32, %v3371_v20  ;;  %v3233_v50 = vcvt.s32.f32 %v3226_v15 }
 0x24b   : > { %v7684_v37 = vpop.eup %7683  ;;  %v2941_v53 = vxor.u32 2147483648, %v7682_v35  ;;  %v3231_v56 = vand.u32 2147483647, %v3230_v58  ;;  %v9471_v12 = vshrl.u32 %v3369_v45, 5  ;;  %v3374_v57 = vshll.u32 %v12211_v62, %v3371_v20 }
 0x24c   : > { %v2938_v44 = vxor.u32 2147483648, %v7684_v37  ;;  %v3109_v8 = vadd.s32 536870912, %v3108_v16  ;;  %v3375_v7 = vshrl.u32 %v12212_v31, %v3372_v9  ;;  %v3377_v36 = vshll.u32 %v12212_v31, %v3371_v20 }
 0x24d   : > { %v2942_v59 = vsel %vm2940_vm14, %v2941_v53, %v7684_v37  ;;  %v3234_v39 = vmul.f32 %v3233_v50, %v3231_v56  ;;  %v3378_v28 = vshrl.u32 %v12213_v52, %v3372_v9  ;;  %v3381_v26 = vshrl.u32 %v12214_v48, %v3372_v9  ;;  %v2240_v37 = vpop.f32.mrf.mxu1 }
 0x24e   : > { %v2939_v1 = vsel %vm2937_vm13, %v7682_v35, %v2938_v44  ;;  %v9479_v23 = vshrl.u32 %v3109_v8, 30  ;;  %v3384_v3 = vshrl.u32 %v12215_v21, %v3372_v9  ;;  %v3380_v11 = vshll.u32 %v12213_v52, %v3371_v20 }
 0x24f   : > { %v2943_v10 = vsel %vm2936_vm11, %v2939_v1, %v2942_v59  ;;  %v3235_v19 = vxor.u32 2147483648, %v3234_v39  ;;  %v3383_v46 = vshll.u32 %v12214_v48, %v3371_v20  ;;  %v3376_v41 = vor.u32 %v3375_v7, %v3374_v57 }
 0x250   : > { %v2944_v2 = vsel %vm2934_vm10, nan, %v2943_v10  ;;  %v3111_v15 = vshll.u32 %v9479_v23, 30  ;;  %v3379_v25 = vor.u32 %v3378_v28, %v3377_v36  ;;  %v3386_v42 = vshll.u32 %v12215_v21, %v3371_v20 }
 0x251   : > { %6554 = vst [vmem:[%s9140_s30 + $0x20] sm:$0xff] %v2944_v2  ;;  %v3236_v45 = vsel %vm3153_vm4, %v3235_v19, %v3234_v39  ;;  %v3385_v63 = vor.u32 %v3384_v3, %v3383_v46  ;;  %v3387_v58 = vshrl.u32 %v12216_v32, %v3372_v9  ;;  %v3382_v22 = vor.u32 %v3381_v26, %v3380_v11  ;;  %v7348_v26 = vpop.f32.mrf.mxu0 }
 0x252   : > { %v3239_v49 = vsel %vm9430_vm7, %v9228_v17, %v3236_v45  ;;  %v9497_v35 = vsub.s32 %v3108_v16, %v3111_v15  ;;  %v9499_v53 = vand.u32 3, %v3240_v33  ;;  %v9501_v50 = vadd.f32 %v2240_v37, %v1935_v38  ;;  %v7410_v37 = vpop.f32.mrf.mxu1 }
 0x253   : > { %7685 = vcosq.f32 %v3239_v49  ;;  %v3388_v56 = vor.u32 %v3387_v58, %v3386_v42  ;;  %vm3389_vm15 = vcmp.lt.s32.totalorder %v9471_v12, 1  ;;  %vm3392_vm1 = vcmp.lt.s32.totalorder %v9471_v12, 4 }
 0x254   : > { %7687 = vsinq.f32 %v3239_v49  ;;  %v3114_v44 = vsub.s32 0, %v9497_v35  ;;  %v3373_v18 = vshrl.u32 %v12211_v62, %v3372_v9  ;;  %v3397_v20 = vsel %vm3389_vm15, %v3376_v41, %v3379_v25 }
 0x255   : > { %v3398_v16 = vsel %vm3392_vm1, %v3385_v63, 920167782  ;;  %v3405_v8 = vshll.u32 %v3365_v6, 8  ;;  %v3134_v33 = vsub.s32 4, %v9479_v23  ;;  %vm3391_vm0 = vcmp.lt.s32.totalorder %v9471_v12, 3 }
 0x256   : > { %v6696_v57 = vmin.u32 %v3114_v44, %v9497_v35  ;;  %v3394_v38 = vsel %vm3392_vm1, %v3382_v22, 2102212464  ;;  %vm3390_vm2 = vcmp.lt.s32.totalorder %v9471_v12, 2  ;;  %v3399_v7 = vsel %vm3391_vm0, %v3382_v22, %v3398_v16 }
 0x257   : > { %v3401_v59 = vsel %vm3389_vm15, %v3379_v25, %v3382_v22  ;;  %v3402_v39 = vsel %vm3392_vm1, %v3388_v56, 1326507024  ;;  %v3393_v28 = vsel %vm3389_vm15, %v3373_v18, %v3376_v41  ;;  %v3400_v9 = vsel %vm3390_vm2, %v3397_v20, %v3399_v7 }
 0x258   : > { %v3116_v36 = vclz %v6696_v57  ;;  %v3403_v1 = vsel %vm3391_vm0, %v3385_v63, %v3402_v39  ;;  %v3395_v6 = vsel %vm3391_vm0, %v3379_v25, %v3394_v38  ;;  %v3257_v15 = vand.u32 2139095040, %v9501_v50 }
 0x259   : > { %v3404_v3 = vsel %vm3390_vm2, %v3401_v59, %v3403_v1  ;;  %v9515_v10 = vmul.u32.u64.low %v3405_v8, %v3400_v9  ;;  %v9516_v19 = vmul.u32.u64.high %v3405_v8, %v3400_v9, %v9515_v10  ;;  %vm9525_vm3 = vcmp.le.f32.partialorder %v3048_v4, 0.7853982 }
 0x25a   : > { %v6697_v11 = vadd.s32 4294967294, %v3116_v36  ;;  %v9519_v46 = vmul.u32.u64.low %v3405_v8, %v3404_v3  ;;  %v9520_v2 = vmul.u32.u64.high %v3405_v8, %v3404_v3, %v9519_v46  ;;  %vm3050_vm4 = vcmp.lt.s32.totalorder %v9349_v60, 0 }
 0x25b   : > { %v1953_v25 = vadd.f32 %v7348_v26, %v8775_v24  ;;  %vm3245_vm5 = vcmp.lt.s32.totalorder %v9499_v53, 2  ;;  %v3396_v45 = vsel %vm3390_vm2, %v3393_v28, %v3395_v6  ;;  %v3258_v63 = vshrl.u32 %v3257_v15, 23 }
 0x25c   : > { %vm6698_vm6 = vcmp.lt.s32.totalorder %v6697_v11, 0  ;;  %vm3243_vm7 = vweird.f32 %v9228_v17  ;;  %vm3246_vm8 = vcmp.eq.s32.totalorder %v9499_v53, 0  ;;  %v3415_v4 = vadd.s32 1, %v9516_v19 }
 0x25d   : > { %v3119_v42 = vsel %vm6698_vm6, 0, %v6697_v11  ;;  %v3254_v58 = vand.u32 2147483647, %v9501_v50  ;;  %v3104_v49 = vadd.s32 %v9437_v14, %v9450_v61  ;;  %v3135_v12 = vsel %vm3050_vm4, %v3134_v33, %v9479_v23 }
 0x25e   : > { %v3120_v24 = vsub.s32 32, %v3119_v42  ;;  %v3124_v22 = vsub.s32 4294967266, %v3119_v42  ;;  %v3412_v56 = vmul.u32 %v3405_v8, %v3396_v45  ;;  %vm3414_vm9 = vc.u32 %v9520_v2, %v9515_v10 }
 0x25f   : > { %v6703_v44 = vadd.s32 4294967169, %v3258_v63  ;;  %v9545_v18 = vadd.f32 %v7410_v37, %v1953_v25  ;;  %v3121_v16 = vshll.u32 %v9497_v35, %v3119_v42  ;;  %v3416_v14 = vsel %vm3414_vm9, %v3415_v4, %v9516_v19  ;;  %v1946_v19 = vpop.f32.mrf.mxu0 }
 0x260   : > { %v7686_v20 = vpop.eup %7685  ;;  %v3122_v57 = vshrl.u32 %v3104_v49, %v3120_v24  ;;  %v3125_v38 = vadd.s32 127, %v3124_v22  ;;  %v3417_v59 = vadd.s32 %v3416_v14, %v3412_v56  ;;  %v3261_v23 = vand.u32 8388607, %v3254_v58 }
 0x261   : > { %v7688_v61 = vpop.eup %7687  ;;  %v3250_v7 = vxor.u32 2147483648, %v7686_v20  ;;  %v3264_v8 = vadd.s32 1, %v6703_v44  ;;  %vm3249_vm10 = vcmp.eq.s32.totalorder %v9499_v53, 2  ;;  %v3137_v35 = vsel %vm9525_vm3, 0, %v3135_v12 }
 0x262   : > { %v3247_v33 = vxor.u32 2147483648, %v7688_v61  ;;  %v3123_v39 = vor.u32 %v3122_v57, %v3121_v16  ;;  %v3126_v36 = vshll.u32 %v3125_v38, 23  ;;  %v3418_v9 = vadd.s32 536870912, %v3417_v59 }
 0x263   : > { %v3251_v28 = vsel %vm3249_vm10, %v3250_v7, %v7688_v61  ;;  %vm3265_vm11 = vcmp.gt.s32.totalorder %v3264_v8, 0  ;;  %v3566_v3 = vand.u32 2139095040, %v9545_v18  ;;  %v3262_v15 = vor.u32 8388608, %v3261_v23 }
 0x264   : > { %v3248_v1 = vsel %vm3246_vm8, %v7686_v20, %v3247_v33  ;;  %v3127_v26 = vor.u32 4788187, %v3126_v36  ;;  %v3266_v6 = vsel %vm3265_vm11, %v3264_v8, 0  ;;  %v9559_v46 = vshrl.u32 %v3418_v9, 30 }
 0x265   : > { %v3252_v11 = vsel %vm3245_vm5, %v3248_v1, %v3251_v28  ;;  %v3268_v25 = vand.u32 31, %v3266_v6  ;;  %v3130_v42 = vcvt.s32.f32 %v3123_v39  ;;  %v9566_v24 = vadd.f32 %v1946_v19, %v8778_v40 }
 0x266   : > { %v3253_v45 = vsel %vm3243_vm7, nan, %v3252_v11  ;;  %v3128_v63 = vand.u32 2147483647, %v3127_v26  ;;  %v3420_v4 = vshll.u32 %v9559_v46, 30  ;;  %v9568_v12 = vand.u32 3, %v3137_v35 }
 0x267   : > { %6557 = vst [vmem:[%s9140_s30 + $0x38] sm:$0xff] %v3253_v45  ;;  %v3269_v49 = vsub.s32 32, %v3268_v25  ;;  %v3563_v53 = vand.u32 2147483647, %v9545_v18  ;;  %v3567_v37 = vshrl.u32 %v3566_v3, 23  ;;  %v3267_v44 = vshrl.u32 %v3266_v6, 5 }
 0x268   : > { %v3131_v22 = vmul.f32 %v3130_v42, %v3128_v63  ;;  %v9571_v56 = vsub.s32 %v3417_v59, %v3420_v4  ;;  %v9574_v20 = vshll.u32 %v3262_v15, 8  ;;  %v3271_v57 = vshll.u32 %v12211_v62, %v3268_v25 }
 0x269   : > { %v3272_v17 = vshrl.u32 %v12212_v31, %v3269_v49  ;;  %v3275_v38 = vshrl.u32 %v12213_v52, %v3269_v49  ;;  %v3278_v40 = vshrl.u32 %v12214_v48, %v3269_v49  ;;  %v3274_v61 = vshll.u32 %v12212_v31, %v3268_v25 }
 0x26a   : > { %v3132_v16 = vxor.u32 2147483648, %v3131_v22  ;;  %v3423_v14 = vsub.s32 0, %v9571_v56  ;;  %v3277_v7 = vshll.u32 %v12213_v52, %v3268_v25  ;;  %v3281_v59 = vshrl.u32 %v12215_v21, %v3269_v49 }
 0x26b   : > { %v3273_v8 = vor.u32 %v3272_v17, %v3271_v57  ;;  %v3280_v33 = vshll.u32 %v12214_v48, %v3268_v25  ;;  %v6715_v39 = vadd.s32 4294967169, %v3567_v37  ;;  %v3276_v35 = vor.u32 %v3275_v38, %v3274_v61 }
 0x26c   : > { %v3133_v23 = vsel %vm3050_vm4, %v3132_v16, %v3131_v22  ;;  %v6708_v28 = vmin.u32 %v3423_v14, %v9571_v56  ;;  %v3279_v9 = vor.u32 %v3278_v40, %v3277_v7  ;;  %v3283_v26 = vshll.u32 %v12215_v21, %v3268_v25 }
 0x26d   : > { %v3136_v36 = vsel %vm9525_vm3, %v9349_v60, %v3133_v23  ;;  %v3282_v1 = vor.u32 %v3281_v59, %v3280_v33  ;;  %v3284_v6 = vshrl.u32 %v12216_v32, %v3269_v49  ;;  %v3270_v19 = vshrl.u32 %v12211_v62, %v3269_v49 }
 0x26e   : > { %7689 = vcosq.f32 %v3136_v36  ;;  %v3425_v3 = vclz %v6708_v28  ;;  %vm3286_vm12 = vcmp.lt.s32.totalorder %v3267_v44, 1  ;;  %vm3287_vm13 = vcmp.lt.s32.totalorder %v3267_v44, 2 }
 0x26f   : > { %7691 = vsinq.f32 %v3136_v36  ;;  %v3285_v11 = vor.u32 %v3284_v6, %v3283_v26  ;;  %vm3288_vm14 = vcmp.lt.s32.totalorder %v3267_v44, 3  ;;  %vm3289_vm15 = vcmp.lt.s32.totalorder %v3267_v44, 4 }
 0x270   : > { %vm3359_vm1 = vcmp.lt.s32.totalorder %v9392_v29, 0  ;;  %v6709_v41 = vadd.s32 4294967294, %v3425_v3  ;;  %v3291_v15 = vsel %vm3289_vm15, %v3279_v9, 2102212464  ;;  %v3294_v45 = vsel %vm3286_vm12, %v3273_v8, %v3276_v35 }
 0x271   : > { %v3295_v63 = vsel %vm3289_vm15, %v3282_v1, 920167782  ;;  %v3290_v42 = vsel %vm3286_vm12, %v3270_v19, %v3273_v8  ;;  %v3298_v25 = vsel %vm3286_vm12, %v3276_v35, %v3279_v9  ;;  %v3299_v22 = vsel %vm3289_vm15, %v3285_v11, 1326507024 }
 0x272   : > { %v3296_v4 = vsel %vm3288_vm14, %v3279_v9, %v3295_v63  ;;  %vm6710_vm0 = vcmp.lt.s32.totalorder %v6709_v41, 0  ;;  %v3292_v37 = vsel %vm3288_vm14, %v3276_v35, %v3291_v15  ;;  %v3300_v49 = vsel %vm3288_vm14, %v3282_v1, %v3299_v22  ;;  %v2252_v1 = vpop.f32.mrf.mxu1 }
 0x273   : > { %v3297_v17 = vsel %vm3287_vm13, %v3294_v45, %v3296_v4  ;;  %v3428_v16 = vsel %vm6710_vm0, 0, %v6709_v41  ;;  %v3301_v57 = vsel %vm3287_vm13, %v3298_v25, %v3300_v49  ;;  %vm9603_vm2 = vcmp.le.f32.partialorder %v3357_v54, 0.7853982 }
 0x274   : > { %v9597_v38 = vmul.u32.u64.low %v9574_v20, %v3297_v17  ;;  %v9598_v40 = vmul.u32.u64.high %v9574_v20, %v3297_v17, %v9597_v38  ;;  %v3413_v61 = vadd.s32 %v9515_v10, %v9520_v2  ;;  %v3429_v7 = vsub.s32 32, %v3428_v16 }
 0x275   : > { %v3433_v59 = vsub.s32 4294967266, %v3428_v16  ;;  %v3443_v23 = vsub.s32 4, %v9559_v46  ;;  %v9611_v8 = vmul.u32.u64.low %v9574_v20, %v3301_v57  ;;  %v9612_v33 = vmul.u32.u64.high %v9574_v20, %v3301_v57, %v9611_v8 }
 0x276   : > { %v3573_v36 = vadd.s32 1, %v6715_v39  ;;  %v3430_v28 = vshll.u32 %v9571_v56, %v3428_v16  ;;  %v3431_v35 = vshrl.u32 %v3413_v61, %v3429_v7  ;;  %v3293_v54 = vsel %vm3287_vm13, %v3290_v42, %v3292_v37 }
 0x277   : > { %v3434_v9 = vadd.s32 127, %v3433_v59  ;;  %vm3140_vm3 = vweird.f32 %v9349_v60  ;;  %vm3142_vm4 = vcmp.lt.s32.totalorder %v9568_v12, 2  ;;  %v3312_v10 = vadd.s32 1, %v9598_v40 }
 0x278   : > { %v9621_v2 = vand.u32 8388607, %v3563_v53  ;;  %vm3574_vm5 = vcmp.gt.s32.totalorder %v3573_v36, 0  ;;  %v3432_v26 = vor.u32 %v3431_v35, %v3430_v28  ;;  %v9624_v56 = vadd.f32 %v2252_v1, %v9566_v24 }
 0x279   : > { %v3435_v39 = vshll.u32 %v3434_v9, 23  ;;  %v3575_v6 = vsel %vm3574_vm5, %v3573_v36, 0  ;;  %v3444_v44 = vsel %vm3359_vm1, %v3443_v23, %v9559_v46  ;;  %v3309_v3 = vmul.u32 %v9574_v20, %v3293_v54 }
 0x27a   : > { %vm3311_vm6 = vc.u32 %v9612_v33, %v9597_v38  ;;  %v3577_v19 = vand.u32 31, %v3575_v6  ;;  %vm3143_vm7 = vcmp.eq.s32.totalorder %v9568_v12, 0  ;;  %vm3146_vm8 = vcmp.eq.s32.totalorder %v9568_v12, 2 }
 0x27b   : > { %v7690_v11 = vpop.eup %7689  ;;  %v3436_v41 = vor.u32 4788187, %v3435_v39  ;;  %v3313_v15 = vsel %vm3311_vm6, %v3312_v10, %v9598_v40  ;;  %v3571_v42 = vor.u32 8388608, %v9621_v2  ;;  %v3439_v25 = vcvt.s32.f32 %v3432_v26 }
 0x27c   : > { %v7692_v24 = vpop.eup %7691  ;;  %v3147_v45 = vxor.u32 2147483648, %v7690_v11  ;;  %v3314_v63 = vadd.s32 %v3313_v15, %v3309_v3  ;;  %v3578_v46 = vsub.s32 32, %v3577_v19  ;;  %v3446_v22 = vsel %vm9603_vm2, 0, %v3444_v44 }
 0x27d   : > { %v3144_v4 = vxor.u32 2147483648, %v7692_v24  ;;  %v3437_v20 = vand.u32 2147483647, %v3436_v41  ;;  %v3463_v16 = vand.u32 2139095040, %v9624_v56  ;;  %v3576_v61 = vshrl.u32 %v3575_v6, 5 }
 0x27e   : > { %v3148_v37 = vsel %vm3146_vm8, %v3147_v45, %v7692_v24  ;;  %v3315_v17 = vadd.s32 536870912, %v3314_v63  ;;  %v3581_v49 = vshrl.u32 %v12212_v31, %v3578_v46  ;;  %v3584_v7 = vshrl.u32 %v12213_v52, %v3578_v46 }
 0x27f   : > { %v3145_v57 = vsel %vm3143_vm7, %v7690_v11, %v3144_v4  ;;  %v3440_v40 = vmul.f32 %v3439_v25, %v3437_v20  ;;  %v3580_v8 = vshll.u32 %v12211_v62, %v3577_v19  ;;  %v3587_v36 = vshrl.u32 %v12214_v48, %v3578_v46 }
 0x280   : > { %v3149_v59 = vsel %vm3142_vm4, %v3145_v57, %v3148_v37  ;;  %v9645_v23 = vshrl.u32 %v3315_v17, 30  ;;  %v3583_v9 = vshll.u32 %v12212_v31, %v3577_v19  ;;  %v3586_v54 = vshll.u32 %v12213_v52, %v3577_v19 }
 0x281   : > { %v3150_v28 = vsel %vm3140_vm3, nan, %v3149_v59  ;;  %v3441_v35 = vxor.u32 2147483648, %v3440_v40  ;;  %v3582_v2 = vor.u32 %v3581_v49, %v3580_v8  ;;  %v3589_v12 = vshll.u32 %v12214_v48, %v3577_v19 }
 0x282   : > { %6556 = vst [vmem:[%s9140_s30 + $0x30] sm:$0xff] %v3150_v28  ;;  %v3317_v10 = vshll.u32 %v9645_v23, 30  ;;  %v3590_v1 = vshrl.u32 %v12215_v21, %v3578_v46  ;;  %v3585_v39 = vor.u32 %v3584_v7, %v3583_v9  ;;  %v3592_v60 = vshll.u32 %v12215_v21, %v3577_v19 }
 0x283   : > { %v3442_v26 = vsel %vm3359_vm1, %v3441_v35, %v3440_v40  ;;  %v3593_v6 = vshrl.u32 %v12216_v32, %v3578_v46  ;;  %v3588_v11 = vor.u32 %v3587_v36, %v3586_v54  ;;  %v9666_v15 = vand.u32 3, %v3446_v22 }
 0x284   : > { %v3445_v44 = vsel %vm9603_vm2, %v9392_v29, %v3442_v26  ;;  %v9664_v3 = vsub.s32 %v3314_v63, %v3317_v10  ;;  %v3591_v41 = vor.u32 %v3590_v1, %v3589_v12  ;;  %vm3595_vm9 = vcmp.lt.s32.totalorder %v3576_v61, 1 }
 0x285   : > { %7693 = vcosq.f32 %v3445_v44  ;;  %v3594_v24 = vor.u32 %v3593_v6, %v3592_v60  ;;  %vm3598_vm10 = vcmp.lt.s32.totalorder %v3576_v61, 4  ;;  %v3603_v19 = vsel %vm3595_vm9, %v3582_v2, %v3585_v39 }
 0x286   : > { %7695 = vsinq.f32 %v3445_v44  ;;  %v3320_v45 = vsub.s32 0, %v9664_v3  ;;  %v3604_v4 = vsel %vm3598_vm10, %v3591_v41, 920167782  ;;  %v3611_v20 = vshll.u32 %v3571_v42, 8  ;;  %v7351_v44 = vpop.f32.mrf.mxu0 }
 0x287   : > { %v3464_v25 = vshrl.u32 %v3463_v16, 23  ;;  %v3579_v63 = vshrl.u32 %v12211_v62, %v3578_v46  ;;  %vm3597_vm11 = vcmp.lt.s32.totalorder %v3576_v61, 3  ;;  %v3600_v37 = vsel %vm3598_vm10, %v3588_v11, 2102212464 }
 0x288   : > { %v6704_v14 = vmin.u32 %v3320_v45, %v9664_v3  ;;  %vm3596_vm12 = vcmp.lt.s32.totalorder %v3576_v61, 2  ;;  %v3605_v17 = vsel %vm3597_vm11, %v3588_v11, %v3604_v4  ;;  %v3607_v22 = vsel %vm3595_vm9, %v3585_v39, %v3588_v11 }
 0x289   : > { %v3608_v49 = vsel %vm3598_vm10, %v3594_v24, 1326507024  ;;  %v3599_v40 = vsel %vm3595_vm9, %v3579_v63, %v3582_v2  ;;  %v3606_v7 = vsel %vm3596_vm12, %v3603_v19, %v3605_v17  ;;  %v3601_v8 = vsel %vm3597_vm11, %v3585_v39, %v3600_v37  ;;  %v1958_v17 = vpop.f32.mrf.mxu0 }
 0x28a   : > { %v3322_v57 = vclz %v6704_v14  ;;  %v3609_v59 = vsel %vm3597_vm11, %v3591_v41, %v3608_v49  ;;  %v9673_v42 = vmul.u32.u64.low %v3611_v20, %v3606_v7  ;;  %v9674_v16 = vmul.u32.u64.high %v3611_v20, %v3606_v7, %v9673_v42 }
 0x28b   : > { %v3610_v36 = vsel %vm3596_vm12, %v3607_v22, %v3609_v59  ;;  %v6711_v9 = vadd.s32 4294967169, %v3464_v25  ;;  %vm3256_vm13 = vcmp.lt.s32.totalorder %v9501_v50, 0  ;;  %v3602_v54 = vsel %vm3596_vm12, %v3599_v40, %v3601_v8 }
 0x28c   : > { %v6705_v28 = vadd.s32 4294967294, %v3322_v57  ;;  %v9677_v46 = vmul.u32.u64.low %v3611_v20, %v3610_v36  ;;  %v9678_v35 = vmul.u32.u64.high %v3611_v20, %v3610_v36, %v9677_v46  ;;  %vm3449_vm15 = vweird.f32 %v9392_v29 }
 0x28d   : > { %v3470_v10 = vadd.s32 1, %v6711_v9  ;;  %vm3452_vm1 = vcmp.eq.s32.totalorder %v9666_v15, 0  ;;  %v3621_v12 = vadd.s32 1, %v9674_v16  ;;  %v3460_v1 = vand.u32 2147483647, %v9624_v56 }
 0x28e   : > { %vm6706_vm14 = vcmp.lt.s32.totalorder %v6705_v28, 0  ;;  %v3310_v26 = vadd.s32 %v9597_v38, %v9612_v33  ;;  %v3340_v6 = vsub.s32 4, %v9645_v23  ;;  %v3618_v11 = vmul.u32 %v3611_v20, %v3602_v54 }
 0x28f   : > { %v3325_v2 = vsel %vm6706_vm14, 0, %v6705_v28  ;;  %vm3620_vm0 = vc.u32 %v9678_v35, %v9673_v42  ;;  %vm3471_vm2 = vcmp.gt.s32.totalorder %v3470_v10, 0  ;;  %vm3455_vm3 = vcmp.eq.s32.totalorder %v9666_v15, 2 }
 0x290   : > { %v3326_v39 = vsub.s32 32, %v3325_v2  ;;  %v3330_v60 = vsub.s32 4294967266, %v3325_v2  ;;  %v3327_v61 = vshll.u32 %v9664_v3, %v3325_v2  ;;  %v3622_v19 = vsel %vm3620_vm0, %v3621_v12, %v9674_v16 }
 0x291   : > { %v3472_v4 = vsel %vm3471_vm2, %v3470_v10, 0  ;;  %v3623_v33 = vadd.s32 %v3622_v19, %v3618_v11  ;;  %v9697_v20 = vsel %vm3256_vm13, %v3340_v6, %v9645_v23  ;;  %v3467_v57 = vand.u32 8388607, %v3460_v1 }
 0x292   : > { %v7694_v41 = vpop.eup %7693  ;;  %v3328_v24 = vshrl.u32 %v3310_v26, %v3326_v39  ;;  %v3331_v45 = vadd.s32 127, %v3330_v60  ;;  %v3474_v14 = vand.u32 31, %v3472_v4  ;;  %vm3451_vm4 = vcmp.lt.s32.totalorder %v9666_v15, 2 }
 0x293   : > { %v7696_v25 = vpop.eup %7695  ;;  %v3456_v38 = vxor.u32 2147483648, %v7694_v41  ;;  %v3624_v49 = vadd.s32 536870912, %v3623_v33  ;;  %vm9706_vm5 = vcmp.le.f32.partialorder %v3254_v58, 0.7853982  ;;  %v1965_v16 = vadd.f32 %v7351_v44, %v8781_v13 }
 0x294   : > { %v3453_v63 = vxor.u32 2147483648, %v7696_v25  ;;  %v3329_v37 = vor.u32 %v3328_v24, %v3327_v61  ;;  %v3332_v3 = vshll.u32 %v3331_v45, 23  ;;  %v3475_v40 = vsub.s32 32, %v3474_v14  ;;  %v7413_v45 = vpop.f32.mrf.mxu1 }
 0x295   : > { %v3457_v22 = vsel %vm3455_vm3, %v3456_v38, %v7696_v25  ;;  %v9710_v36 = vshrl.u32 %v3624_v49, 30  ;;  %v9714_v28 = vadd.f32 %v1958_v17, %v8784_v30  ;;  %v3343_v58 = vsel %vm9706_vm5, 0, %v9697_v20 }
 0x296   : > { %v3454_v7 = vsel %vm3452_vm1, %v7694_v41, %v3453_v63  ;;  %v3333_v23 = vor.u32 4788187, %v3332_v3  ;;  %v3336_v9 = vcvt.s32.f32 %v3329_v37  ;;  %v3468_v10 = vor.u32 8388608, %v3467_v57 }
 0x297   : > { %v3458_v8 = vsel %vm3451_vm4, %v3454_v7, %v3457_v22  ;;  %v3626_v54 = vshll.u32 %v9710_v36, 30  ;;  %v3478_v2 = vshrl.u32 %v12212_v31, %v3475_v40  ;;  %v3481_v13 = vshrl.u32 %v12213_v52, %v3475_v40 }
 0x298   : > { %v3459_v46 = vsel %vm3449_vm15, nan, %v3458_v8  ;;  %v3334_v15 = vand.u32 2147483647, %v3333_v23  ;;  %v3473_v30 = vshrl.u32 %v3472_v4, 5  ;;  %v3484_v26 = vshrl.u32 %v12214_v48, %v3475_v40 }
 0x299   : > { %6559 = vst [vmem:[%s9140_s30 + $0x48] sm:$0xff] %v3459_v46  ;;  %v3487_v29 = vshrl.u32 %v12215_v21, %v3475_v40  ;;  %v9727_v39 = vsub.s32 %v3623_v33, %v3626_v54  ;;  %v3477_v60 = vshll.u32 %v12211_v62, %v3474_v14  ;;  %v3480_v6 = vshll.u32 %v12212_v31, %v3474_v14 }
 0x29a   : > { %v3337_v12 = vmul.f32 %v3336_v9, %v3334_v15  ;;  %v3483_v44 = vshll.u32 %v12213_v52, %v3474_v14  ;;  %v3486_v11 = vshll.u32 %v12214_v48, %v3474_v14  ;;  %v3489_v41 = vshll.u32 %v12215_v21, %v3474_v14 }
 0x29b   : > { %v3490_v24 = vshrl.u32 %v12216_v32, %v3475_v40  ;;  %v3629_v19 = vsub.s32 0, %v9727_v39  ;;  %v3479_v4 = vor.u32 %v3478_v2, %v3477_v60  ;;  %v3482_v25 = vor.u32 %v3481_v13, %v3480_v6 }
 0x29c   : > { %v3338_v61 = vxor.u32 2147483648, %v3337_v12  ;;  %v9736_v38 = vadd.f32 %v7413_v45, %v1965_v16  ;;  %v3485_v63 = vor.u32 %v3484_v26, %v3483_v44  ;;  %v3488_v37 = vor.u32 %v3487_v29, %v3486_v11 }
 0x29d   : > { %v3491_v3 = vor.u32 %v3490_v24, %v3489_v41  ;;  %v6716_v14 = vmin.u32 %v3629_v19, %v9727_v39  ;;  %v3476_v17 = vshrl.u32 %v12211_v62, %v3475_v40  ;;  %v3508_v22 = vshll.u32 %v3468_v10, 8 }
 0x29e   : > { %v3339_v33 = vsel %vm3256_vm13, %v3338_v61, %v3337_v12  ;;  %v3649_v49 = vsub.s32 4, %v9710_v36  ;;  %vm3492_vm6 = vcmp.lt.s32.totalorder %v3473_v30, 1  ;;  %vm3494_vm7 = vcmp.lt.s32.totalorder %v3473_v30, 3 }
 0x29f   : > { %v3342_v20 = vsel %vm9706_vm5, %v9501_v50, %v3339_v33  ;;  %v3631_v57 = vclz %v6716_v14  ;;  %vm3495_vm8 = vcmp.lt.s32.totalorder %v3473_v30, 4  ;;  %v3500_v7 = vsel %vm3492_vm6, %v3479_v4, %v3482_v25 }
 0x2a0   : > { %7697 = vcosq.f32 %v3342_v20  ;;  %v3497_v23 = vsel %vm3495_vm8, %v3485_v63, 2102212464  ;;  %v3501_v8 = vsel %vm3495_vm8, %v3488_v37, 920167782  ;;  %v3504_v16 = vsel %vm3492_vm6, %v3482_v25, %v3485_v63 }
 0x2a1   : > { %7699 = vsinq.f32 %v3342_v20  ;;  %v3505_v46 = vsel %vm3495_vm8, %v3491_v3, 1326507024  ;;  %v6717_v59 = vadd.s32 4294967294, %v3631_v57  ;;  %vm3493_vm9 = vcmp.lt.s32.totalorder %v3473_v30, 2 }
 0x2a2   : > { %v3502_v15 = vsel %vm3494_vm7, %v3485_v63, %v3501_v8  ;;  %v3506_v40 = vsel %vm3494_vm7, %v3488_v37, %v3505_v46  ;;  %vm9750_vm10 = vcmp.le.f32.partialorder %v3563_v53, 0.7853982  ;;  %v3496_v54 = vsel %vm3492_vm6, %v3476_v17, %v3479_v4 }
 0x2a3   : > { %v3503_v10 = vsel %vm3493_vm9, %v3500_v7, %v3502_v15  ;;  %v3507_v2 = vsel %vm3493_vm9, %v3504_v16, %v3506_v40  ;;  %v3772_v13 = vand.u32 2139095040, %v9736_v38  ;;  %vm6718_vm11 = vcmp.lt.s32.totalorder %v6717_v59, 0 }
 0x2a4   : > { %v3498_v12 = vsel %vm3494_vm7, %v3482_v25, %v3497_v23  ;;  %v9758_v26 = vmul.u32.u64.low %v3508_v22, %v3507_v2  ;;  %v9759_v29 = vmul.u32.u64.high %v3508_v22, %v3507_v2, %v9758_v26  ;;  %v3634_v60 = vsel %vm6718_vm11, 0, %v6717_v59 }
 0x2a5   : > { %v9761_v6 = vmul.u32.u64.low %v3508_v22, %v3503_v10  ;;  %v9762_v44 = vmul.u32.u64.high %v3508_v22, %v3503_v10, %v9761_v6  ;;  %v3773_v53 = vshrl.u32 %v3772_v13, 23  ;;  %v3347_v61 = vand.u32 3, %v3343_v58  ;;  %v2264_v58 = vpop.f32.mrf.mxu1 }
 0x2a6   : > { %v3619_v11 = vadd.s32 %v9673_v42, %v9678_v35  ;;  %v3635_v41 = vsub.s32 32, %v3634_v60  ;;  %v3639_v24 = vsub.s32 4294967266, %v3634_v60  ;;  %vm3565_vm12 = vcmp.lt.s32.totalorder %v9545_v18, 0 }
 0x2a7   : > { %v3499_v45 = vsel %vm3493_vm9, %v3496_v54, %v3498_v12  ;;  %v3769_v19 = vand.u32 2147483647, %v9736_v38  ;;  %v6723_v4 = vadd.s32 4294967169, %v3773_v53  ;;  %v3636_v25 = vshll.u32 %v9727_v39, %v3634_v60 }
 0x2a8   : > { %v3637_v33 = vshrl.u32 %v3619_v11, %v3635_v41  ;;  %v3640_v63 = vadd.s32 127, %v3639_v24  ;;  %vm3517_vm13 = vc.u32 %v9759_v29, %v9761_v6  ;;  %vm3346_vm14 = vweird.f32 %v9501_v50 }
 0x2a9   : > { %v3650_v42 = vsel %vm3565_vm12, %v3649_v49, %v9710_v36  ;;  %v3518_v35 = vadd.s32 1, %v9762_v44  ;;  %v3779_v30 = vadd.s32 1, %v6723_v4  ;;  %v9779_v37 = vadd.f32 %v2264_v58, %v9714_v28 }
 0x2aa   : > { %vm3348_vm15 = vcmp.lt.s32.totalorder %v3347_v61, 2  ;;  %v3638_v39 = vor.u32 %v3637_v33, %v3636_v25  ;;  %v3641_v3 = vshll.u32 %v3640_v63, 23  ;;  %v3515_v20 = vmul.u32 %v3508_v22, %v3499_v45 }
 0x2ab   : > { %vm3349_vm1 = vcmp.eq.s32.totalorder %v3347_v61, 0  ;;  %v3519_v14 = vsel %vm3517_vm13, %v3518_v35, %v9762_v44  ;;  %v3776_v17 = vand.u32 8388607, %v3769_v19  ;;  %vm3780_vm0 = vcmp.gt.s32.totalorder %v3779_v30, 0 }
 0x2ac   : > { %v3642_v7 = vor.u32 4788187, %v3641_v3  ;;  %v3652_v36 = vsel %vm9750_vm10, 0, %v3650_v42  ;;  %v3520_v49 = vadd.s32 %v3519_v14, %v3515_v20  ;;  %v3781_v23 = vsel %vm3780_vm0, %v3779_v30, 0 }
 0x2ad   : > { %v7698_v57 = vpop.eup %7697  ;;  %vm3352_vm2 = vcmp.eq.s32.totalorder %v3347_v61, 2  ;;  %v3783_v16 = vand.u32 31, %v3781_v23  ;;  %v3669_v22 = vand.u32 2139095040, %v9779_v37  ;;  %v3645_v15 = vcvt.s32.f32 %v3638_v39 }
 0x2ae   : > { %v7700_v28 = vpop.eup %7699  ;;  %v3353_v8 = vxor.u32 2147483648, %v7698_v57  ;;  %v3643_v59 = vand.u32 2147483647, %v3642_v7  ;;  %v3521_v40 = vadd.s32 536870912, %v3520_v49  ;;  %v9787_v10 = vand.u32 3, %v3652_v36 }
 0x2af   : > { %v3350_v46 = vxor.u32 2147483648, %v7700_v28  ;;  %v3777_v2 = vor.u32 8388608, %v3776_v17  ;;  %v3784_v13 = vsub.s32 32, %v3783_v16  ;;  %v3666_v44 = vand.u32 2147483647, %v9779_v37 }
 0x2b0   : > { %v3354_v54 = vsel %vm3352_vm2, %v3353_v8, %v7700_v28  ;;  %v3646_v26 = vmul.f32 %v3645_v15, %v3643_v59  ;;  %v9790_v60 = vshrl.u32 %v3521_v40, 30  ;;  %v3670_v24 = vshrl.u32 %v3669_v22, 23 }
 0x2b1   : > { %v3351_v12 = vsel %vm3349_vm1, %v7698_v57, %v3350_v46  ;;  %v3787_v11 = vshrl.u32 %v12212_v31, %v3784_v13  ;;  %v3790_v41 = vshrl.u32 %v12213_v52, %v3784_v13  ;;  %v3782_v33 = vshrl.u32 %v3781_v23, 5 }
 0x2b2   : > { %v3355_v53 = vsel %vm3348_vm15, %v3351_v12, %v3354_v54  ;;  %v3647_v4 = vxor.u32 2147483648, %v3646_v26  ;;  %v3523_v25 = vshll.u32 %v9790_v60, 30  ;;  %v3786_v63 = vshll.u32 %v12211_v62, %v3783_v16 }
 0x2b3   : > { %v3356_v45 = vsel %vm3346_vm14, nan, %v3355_v53  ;;  %v3789_v58 = vshll.u32 %v12212_v31, %v3783_v16  ;;  %v3792_v61 = vshll.u32 %v12213_v52, %v3783_v16  ;;  %v3793_v42 = vshrl.u32 %v12214_v48, %v3784_v13 }
 0x2b4   : > { %6558 = vst [vmem:[%s9140_s30 + $0x40] sm:$0xff] %v3356_v45  ;;  %v3648_v35 = vsel %vm3565_vm12, %v3647_v4, %v3646_v26  ;;  %v9806_v30 = vsub.s32 %v3520_v49, %v3523_v25  ;;  %v3795_v50 = vshll.u32 %v12214_v48, %v3783_v16  ;;  %v3796_v39 = vshrl.u32 %v12215_v21, %v3784_v13 }
 0x2b5   : > { %v3651_v3 = vsel %vm9750_vm10, %v9545_v18, %v3648_v35  ;;  %v3788_v20 = vor.u32 %v3787_v11, %v3786_v63  ;;  %v3791_v14 = vor.u32 %v3790_v41, %v3789_v58  ;;  %v9813_v17 = vshll.u32 %v3777_v2, 8  ;;  %v7354_v41 = vpop.f32.mrf.mxu0 }
 0x2b6   : > { %7701 = vcosq.f32 %v3651_v3  ;;  %v3526_v57 = vsub.s32 0, %v9806_v30  ;;  %v3794_v7 = vor.u32 %v3793_v42, %v3792_v61  ;;  %v3797_v36 = vor.u32 %v3796_v39, %v3795_v50 }
 0x2b7   : > { %7703 = vsinq.f32 %v3651_v3  ;;  %v3785_v49 = vshrl.u32 %v12211_v62, %v3784_v13  ;;  %v3798_v23 = vshll.u32 %v12215_v21, %v3783_v16  ;;  %v3799_v28 = vshrl.u32 %v12216_v32, %v3784_v13 }
 0x2b8   : > { %v6712_v8 = vmin.u32 %v3526_v57, %v9806_v30  ;;  %vm3801_vm3 = vcmp.lt.s32.totalorder %v3782_v33, 1  ;;  %vm3802_vm4 = vcmp.lt.s32.totalorder %v3782_v33, 2  ;;  %v6719_v9 = vadd.s32 4294967169, %v3670_v24 }
 0x2b9   : > { %v3800_v22 = vor.u32 %v3799_v28, %v3798_v23  ;;  %vm3803_vm5 = vcmp.lt.s32.totalorder %v3782_v33, 3  ;;  %vm3804_vm6 = vcmp.lt.s32.totalorder %v3782_v33, 4  ;;  %v3805_v46 = vsel %vm3801_vm3, %v3785_v49, %v3788_v20 }
 0x2ba   : > { %v3528_v59 = vclz %v6712_v8  ;;  %v3806_v15 = vsel %vm3804_vm6, %v3794_v7, 2102212464  ;;  %v3809_v40 = vsel %vm3801_vm3, %v3788_v20, %v3791_v14  ;;  %v3810_v54 = vsel %vm3804_vm6, %v3797_v36, 920167782 }
 0x2bb   : > { %v3807_v2 = vsel %vm3803_vm5, %v3791_v14, %v3806_v15  ;;  %v3811_v12 = vsel %vm3803_vm5, %v3794_v7, %v3810_v54  ;;  %v3813_v26 = vsel %vm3801_vm3, %v3791_v14, %v3794_v7  ;;  %v3814_v53 = vsel %vm3804_vm6, %v3800_v22, 1326507024 }
 0x2bc   : > { %v6713_v16 = vadd.s32 4294967294, %v3528_v59  ;;  %v3812_v13 = vsel %vm3802_vm4, %v3809_v40, %v3811_v12  ;;  %v3815_v11 = vsel %vm3803_vm5, %v3797_v36, %v3814_v53  ;;  %vm3462_vm7 = vcmp.lt.s32.totalorder %v9624_v56, 0  ;;  %v7416_v59 = vpop.f32.mrf.mxu1 }
 0x2bd   : > { %v3808_v24 = vsel %vm3802_vm4, %v3805_v46, %v3807_v2  ;;  %v3816_v45 = vsel %vm3802_vm4, %v3813_v26, %v3815_v11  ;;  %v9825_v4 = vmul.u32.u64.low %v9813_v17, %v3812_v13  ;;  %v9826_v25 = vmul.u32.u64.high %v9813_v17, %v3812_v13, %v9825_v4 }
 0x2be   : > { %vm6714_vm8 = vcmp.lt.s32.totalorder %v6713_v16, 0  ;;  %v9830_v63 = vmul.u32.u64.low %v9813_v17, %v3816_v45  ;;  %v9831_v58 = vmul.u32.u64.high %v9813_v17, %v3816_v45, %v9830_v63  ;;  %v3676_v61 = vadd.s32 1, %v6719_v9 }
 0x2bf   : > { %vm3657_vm9 = vcmp.lt.s32.totalorder %v9787_v10, 2  ;;  %v3531_v42 = vsel %vm6714_vm8, 0, %v6713_v16  ;;  %v3673_v35 = vand.u32 8388607, %v3666_v44  ;;  %v1977_v33 = vadd.f32 %v7354_v41, %v8787_v27 }
 0x2c0   : > { %vm3655_vm10 = vweird.f32 %v9545_v18  ;;  %v3516_v50 = vadd.s32 %v9761_v6, %v9759_v29  ;;  %v3532_v39 = vsub.s32 32, %v3531_v42  ;;  %v3536_v3 = vsub.s32 4294967266, %v3531_v42 }
 0x2c1   : > { %vm3677_vm11 = vcmp.gt.s32.totalorder %v3676_v61, 0  ;;  %v3546_v20 = vsub.s32 4, %v9790_v60  ;;  %v3824_v14 = vmul.u32 %v9813_v17, %v3808_v24  ;;  %v3827_v57 = vadd.s32 1, %v9826_v25 }
 0x2c2   : > { %v3678_v7 = vsel %vm3677_vm11, %v3676_v61, 0  ;;  %v3533_v36 = vshll.u32 %v9806_v30, %v3531_v42  ;;  %v3534_v49 = vshrl.u32 %v3516_v50, %v3532_v39  ;;  %v3537_v23 = vadd.s32 127, %v3536_v3 }
 0x2c3   : > { %vm3826_vm12 = vc.u32 %v9831_v58, %v9825_v4  ;;  %v7702_v27 = vpop.eup %7701  ;;  %vm3658_vm13 = vcmp.eq.s32.totalorder %v9787_v10, 0  ;;  %v3674_v6 = vor.u32 8388608, %v3673_v35  ;;  %v3680_v28 = vand.u32 31, %v3678_v7 }
 0x2c4   : > { %v3828_v29 = vsel %vm3826_vm12, %v3827_v57, %v9826_v25  ;;  %v7704_v8 = vpop.eup %7703  ;;  %v3662_v9 = vxor.u32 2147483648, %v7702_v27  ;;  %v3535_v17 = vor.u32 %v3534_v49, %v3533_v36  ;;  %v3538_v22 = vshll.u32 %v3537_v23, 23 }
 0x2c5   : > { %v3829_v46 = vadd.s32 %v3828_v29, %v3824_v14  ;;  %v3659_v15 = vxor.u32 2147483648, %v7704_v8  ;;  %vm3661_vm14 = vcmp.eq.s32.totalorder %v9787_v10, 2  ;;  %v3681_v30 = vsub.s32 32, %v3680_v28 }
 0x2c6   : > { %v9849_v40 = vadd.f32 %v7416_v59, %v1977_v33  ;;  %v3663_v54 = vsel %vm3661_vm14, %v3662_v9, %v7704_v8  ;;  %vm9853_vm15 = vcmp.le.f32.partialorder %v3460_v1, 0.7853982  ;;  %v3539_v12 = vor.u32 4788187, %v3538_v22 }
 0x2c7   : > { %v9860_v26 = vsel %vm3462_vm7, %v3546_v20, %v9790_v60  ;;  %v3830_v53 = vadd.s32 536870912, %v3829_v46  ;;  %v3660_v16 = vsel %vm3658_vm13, %v7702_v27, %v3659_v15  ;;  %v3542_v13 = vcvt.s32.f32 %v3535_v17 }
 0x2c8   : > { %v3684_v11 = vshrl.u32 %v12212_v31, %v3681_v30  ;;  %v9865_v41 = vshll.u32 %v3674_v6, 8  ;;  %v3664_v1 = vsel %vm3657_vm9, %v3660_v16, %v3663_v54  ;;  %v3540_v24 = vand.u32 2147483647, %v3539_v12 }
 0x2c9   : > { %v9869_v45 = vshrl.u32 %v3830_v53, 30  ;;  %v3687_v25 = vshrl.u32 %v12213_v52, %v3681_v30  ;;  %v3665_v60 = vsel %vm3655_vm10, nan, %v3664_v1  ;;  %v3679_v63 = vshrl.u32 %v3678_v7, 5 }
 0x2ca   : > { %v3690_v61 = vshrl.u32 %v12214_v48, %v3681_v30  ;;  %v3978_v42 = vand.u32 2139095040, %v9849_v40  ;;  %6561 = vst [vmem:[%s9140_s30 + $0x58] sm:$0xff] %v3665_v60  ;;  %v3543_v35 = vmul.f32 %v3542_v13, %v3540_v24  ;;  %v3683_v10 = vshll.u32 %v12211_v62, %v3680_v28 }
 0x2cb   : > { %v3832_v33 = vshll.u32 %v9869_v45, 30  ;;  %v3686_v50 = vshll.u32 %v12212_v31, %v3680_v28  ;;  %v3689_v39 = vshll.u32 %v12213_v52, %v3680_v28  ;;  %v3692_v3 = vshll.u32 %v12214_v48, %v3680_v28 }
 0x2cc   : > { %v3693_v18 = vshrl.u32 %v12215_v21, %v3681_v30  ;;  %v3696_v20 = vshrl.u32 %v12216_v32, %v3681_v30  ;;  %v3544_v14 = vxor.u32 2147483648, %v3543_v35  ;;  %v3685_v7 = vor.u32 %v3684_v11, %v3683_v10 }
 0x2cd   : > { %v9884_v57 = vsub.s32 %v3829_v46, %v3832_v33  ;;  %v3688_v36 = vor.u32 %v3687_v25, %v3686_v50  ;;  %v3691_v49 = vor.u32 %v3690_v61, %v3689_v39  ;;  %v3695_v27 = vshll.u32 %v12215_v21, %v3680_v28 }
 0x2ce   : > { %v3694_v23 = vor.u32 %v3693_v18, %v3692_v3  ;;  %v3975_v29 = vand.u32 2147483647, %v9849_v40  ;;  %v3545_v6 = vsel %vm3462_vm7, %v3544_v14, %v3543_v35  ;;  %v3682_v9 = vshrl.u32 %v12211_v62, %v3681_v30 }
 0x2cf   : > { %v3835_v8 = vsub.s32 0, %v9884_v57  ;;  %v3979_v17 = vshrl.u32 %v3978_v42, 23  ;;  %v3548_v22 = vsel %vm9853_vm15, %v9624_v56, %v3545_v6  ;;  %v3697_v46 = vor.u32 %v3696_v20, %v3695_v27 }
 0x2d0   : > { %vm3698_vm1 = vcmp.lt.s32.totalorder %v3679_v63, 1  ;;  %vm3699_vm0 = vcmp.lt.s32.totalorder %v3679_v63, 2  ;;  %7705 = vcosq.f32 %v3548_v22  ;;  %vm3701_vm2 = vcmp.lt.s32.totalorder %v3679_v63, 4 }
 0x2d1   : > { %v6724_v28 = vmin.u32 %v3835_v8, %v9884_v57  ;;  %v3706_v59 = vsel %vm3698_vm1, %v3685_v7, %v3688_v36  ;;  %7707 = vsinq.f32 %v3548_v22  ;;  %vm3700_vm3 = vcmp.lt.s32.totalorder %v3679_v63, 3 }
 0x2d2   : > { %v3703_v15 = vsel %vm3701_vm2, %v3691_v49, 2102212464  ;;  %v3707_v54 = vsel %vm3701_vm2, %v3694_v23, 920167782  ;;  %v3702_v53 = vsel %vm3698_vm1, %v3682_v9, %v3685_v7  ;;  %v3710_v16 = vsel %vm3698_vm1, %v3688_v36, %v3691_v49 }
 0x2d3   : > { %v3837_v12 = vclz %v6724_v28  ;;  %v3708_v30 = vsel %vm3700_vm3, %v3691_v49, %v3707_v54  ;;  %v3704_v13 = vsel %vm3700_vm3, %v3688_v36, %v3703_v15  ;;  %v3711_v1 = vsel %vm3701_vm2, %v3697_v46, 1326507024  ;;  %v1970_v36 = vpop.f32.mrf.mxu0 }
 0x2d4   : > { %v3709_v11 = vsel %vm3699_vm0, %v3706_v59, %v3708_v30  ;;  %v6731_v24 = vadd.s32 4294967169, %v3979_v17  ;;  %v3712_v60 = vsel %vm3700_vm3, %v3694_v23, %v3711_v1  ;;  %v3549_v35 = vsel %vm9853_vm15, 0, %v9860_v26 }
 0x2d5   : > { %v6725_v25 = vadd.s32 4294967294, %v3837_v12  ;;  %v9898_v61 = vmul.u32.u64.low %v9865_v41, %v3709_v11  ;;  %v9899_v42 = vmul.u32.u64.high %v9865_v41, %v3709_v11, %v9898_v61  ;;  %v3713_v33 = vsel %vm3699_vm0, %v3710_v16, %v3712_v60  ;;  %v2276_v16 = vpop.f32.mrf.mxu1 }
 0x2d6   : > { %v3985_v10 = vadd.s32 1, %v6731_v24  ;;  %v3705_v50 = vsel %vm3699_vm0, %v3702_v53, %v3704_v13  ;;  %v9908_v39 = vmul.u32.u64.low %v9865_v41, %v3713_v33  ;;  %v9909_v3 = vmul.u32.u64.high %v9865_v41, %v3713_v33, %v9908_v39 }
 0x2d7   : > { %vm6726_vm4 = vcmp.lt.s32.totalorder %v6725_v25, 0  ;;  %v3982_v20 = vand.u32 8388607, %v3975_v29  ;;  %v3825_v14 = vadd.s32 %v9825_v4, %v9831_v58  ;;  %v3724_v7 = vadd.s32 1, %v9899_v42 }
 0x2d8   : > { %v3840_v18 = vsel %vm6726_vm4, 0, %v6725_v25  ;;  %vm3986_vm5 = vcmp.gt.s32.totalorder %v3985_v10, 0  ;;  %v3553_v49 = vand.u32 3, %v3549_v35  ;;  %v3855_v63 = vsub.s32 4, %v9869_v45 }
 0x2d9   : > { %v3841_v2 = vsub.s32 32, %v3840_v18  ;;  %v3845_v26 = vsub.s32 4294967266, %v3840_v18  ;;  %v3721_v23 = vmul.u32 %v9865_v41, %v3705_v50  ;;  %v3987_v27 = vsel %vm3986_vm5, %v3985_v10, 0 }
 0x2da   : > { %vm3552_vm6 = vweird.f32 %v9624_v56  ;;  %v3842_v6 = vshll.u32 %v9884_v57, %v3840_v18  ;;  %vm3723_vm7 = vc.u32 %v9909_v3, %v9898_v61  ;;  %v3983_v58 = vor.u32 8388608, %v3982_v20 }
 0x2db   : > { %v3843_v8 = vshrl.u32 %v3825_v14, %v3841_v2  ;;  %v3846_v9 = vadd.s32 127, %v3845_v26  ;;  %v3725_v4 = vsel %vm3723_vm7, %v3724_v7, %v9899_v42  ;;  %v3989_v17 = vand.u32 31, %v3987_v27 }
 0x2dc   : > { %v1971_v22 = vadd.f32 %v1970_v36, %v8790_v43  ;;  %vm3771_vm8 = vcmp.lt.s32.totalorder %v9736_v38, 0  ;;  %v3726_v28 = vadd.s32 %v3725_v4, %v3721_v23  ;;  %vm3554_vm9 = vcmp.lt.s32.totalorder %v3553_v49, 2 }
 0x2dd   : > { %v3844_v46 = vor.u32 %v3843_v8, %v3842_v6  ;;  %v3847_v41 = vshll.u32 %v3846_v9, 23  ;;  %v7706_v59 = vpop.eup %7705  ;;  %vm3555_vm10 = vcmp.eq.s32.totalorder %v3553_v49, 0  ;;  %vm3558_vm11 = vcmp.eq.s32.totalorder %v3553_v49, 2 }
 0x2de   : > { %v3990_v57 = vsub.s32 32, %v3989_v17  ;;  %v7708_v15 = vpop.eup %7707  ;;  %v3559_v54 = vxor.u32 2147483648, %v7706_v59  ;;  %vm9927_vm12 = vcmp.le.f32.partialorder %v3769_v19, 0.7853982  ;;  %v9934_v43 = vsel %vm3771_vm8, %v3855_v63, %v9869_v45 }
 0x2df   : > { %v3848_v53 = vor.u32 4788187, %v3847_v41  ;;  %v3727_v30 = vadd.s32 536870912, %v3726_v28  ;;  %v3556_v13 = vxor.u32 2147483648, %v7708_v15  ;;  %v3988_v11 = vshrl.u32 %v3987_v27, 5 }
 0x2e0   : > { %v9936_v1 = vshll.u32 %v3983_v58, 8  ;;  %v9938_v24 = vadd.f32 %v2276_v16, %v1971_v22  ;;  %v3560_v25 = vsel %vm3558_vm11, %v3559_v54, %v7708_v15  ;;  %v3851_v60 = vcvt.s32.f32 %v3844_v46 }
 0x2e1   : > { %v3849_v19 = vand.u32 2147483647, %v3848_v53  ;;  %v9940_v42 = vshrl.u32 %v3727_v30, 30  ;;  %v3557_v35 = vsel %vm3555_vm10, %v7706_v59, %v3556_v13  ;;  %v3993_v33 = vshrl.u32 %v12212_v31, %v3990_v57 }
 0x2e2   : > { %v3996_v45 = vshrl.u32 %v12213_v52, %v3990_v57  ;;  %v3999_v10 = vshrl.u32 %v12214_v48, %v3990_v57  ;;  %v3561_v50 = vsel %vm3554_vm9, %v3557_v35, %v3560_v25  ;;  %v3992_v20 = vshll.u32 %v12211_v62, %v3989_v17 }
 0x2e3   : > { %v3852_v39 = vmul.f32 %v3851_v60, %v3849_v19  ;;  %v3729_v18 = vshll.u32 %v9940_v42, 30  ;;  %v3562_v14 = vsel %vm3552_vm6, nan, %v3561_v50  ;;  %v3995_v2 = vshll.u32 %v12212_v31, %v3989_v17 }
 0x2e4   : > { %v3998_v26 = vshll.u32 %v12213_v52, %v3989_v17  ;;  %v4002_v7 = vshrl.u32 %v12215_v21, %v3990_v57  ;;  %6560 = vst [vmem:[%s9140_s30 + $0x50] sm:$0xff] %v3562_v14  ;;  %v4001_v49 = vshll.u32 %v12214_v48, %v3989_v17  ;;  %v4005_v23 = vshrl.u32 %v12216_v32, %v3990_v57 }
 0x2e5   : > { %v3853_v36 = vxor.u32 2147483648, %v3852_v39  ;;  %v9955_v63 = vsub.s32 %v3726_v28, %v3729_v18  ;;  %v3994_v27 = vor.u32 %v3993_v33, %v3992_v20  ;;  %v3997_v6 = vor.u32 %v3996_v45, %v3995_v2 }
 0x2e6   : > { %v4000_v8 = vor.u32 %v3999_v10, %v3998_v26  ;;  %v4004_v56 = vshll.u32 %v12215_v21, %v3989_v17  ;;  %v4003_v58 = vor.u32 %v4002_v7, %v4001_v49  ;;  %v3875_v22 = vand.u32 2139095040, %v9938_v24 }
 0x2e7   : > { %v3854_v9 = vsel %vm3771_vm8, %v3853_v36, %v3852_v39  ;;  %v3732_v4 = vsub.s32 0, %v9955_v63  ;;  %v3991_v41 = vshrl.u32 %v12211_v62, %v3990_v57  ;;  %vm4007_vm13 = vcmp.lt.s32.totalorder %v3988_v11, 1 }
 0x2e8   : > { %v3857_v46 = vsel %vm9927_vm12, %v9736_v38, %v3854_v9  ;;  %v4006_v28 = vor.u32 %v4005_v23, %v4004_v56  ;;  %vm4008_vm14 = vcmp.lt.s32.totalorder %v3988_v11, 2  ;;  %vm4010_vm15 = vcmp.lt.s32.totalorder %v3988_v11, 4 }
 0x2e9   : > { %7709 = vcosq.f32 %v3857_v46  ;;  %v6720_v59 = vmin.u32 %v3732_v4, %v9955_v63  ;;  %vm4009_vm1 = vcmp.lt.s32.totalorder %v3988_v11, 3  ;;  %v4012_v17 = vsel %vm4010_vm15, %v4000_v8, 2102212464 }
 0x2ea   : > { %7711 = vsinq.f32 %v3857_v46  ;;  %v4015_v15 = vsel %vm4007_vm13, %v3994_v27, %v3997_v6  ;;  %v4011_v53 = vsel %vm4007_vm13, %v3991_v41, %v3994_v27  ;;  %v4016_v30 = vsel %vm4010_vm15, %v4003_v58, 920167782  ;;  %v7357_v46 = vpop.f32.mrf.mxu0 }
 0x2eb   : > { %v3734_v54 = vclz %v6720_v59  ;;  %v4019_v16 = vsel %vm4007_vm13, %v3997_v6, %v4000_v8  ;;  %v4013_v13 = vsel %vm4009_vm1, %v3997_v6, %v4012_v17  ;;  %v4017_v25 = vsel %vm4009_vm1, %v4000_v8, %v4016_v30 }
 0x2ec   : > { %v4020_v19 = vsel %vm4010_vm15, %v4006_v28, 1326507024  ;;  %v3876_v60 = vshrl.u32 %v3875_v22, 23  ;;  %v3858_v57 = vsel %vm9927_vm12, 0, %v9934_v43  ;;  %v4018_v33 = vsel %vm4008_vm14, %v4015_v15, %v4017_v25 }
 0x2ed   : > { %v6721_v35 = vadd.s32 4294967294, %v3734_v54  ;;  %v4021_v45 = vsel %vm4009_vm1, %v4003_v58, %v4020_v19  ;;  %v9975_v50 = vmul.u32.u64.low %v9936_v1, %v4018_v33  ;;  %v9976_v39 = vmul.u32.u64.high %v9936_v1, %v4018_v33, %v9975_v50 }
 0x2ee   : > { %v4022_v10 = vsel %vm4008_vm14, %v4019_v16, %v4021_v45  ;;  %v6727_v18 = vadd.s32 4294967169, %v3876_v60  ;;  %v4014_v20 = vsel %vm4008_vm14, %v4011_v53, %v4013_v13  ;;  %vm3668_vm2 = vcmp.lt.s32.totalorder %v9779_v37, 0 }
 0x2ef   : > { %vm6722_vm0 = vcmp.lt.s32.totalorder %v6721_v35, 0  ;;  %v9981_v14 = vmul.u32.u64.low %v9936_v1, %v4022_v10  ;;  %v9982_v2 = vmul.u32.u64.high %v9936_v1, %v4022_v10, %v9981_v14  ;;  %v3752_v43 = vsub.s32 4, %v9940_v42 }
 0x2f0   : > { %v3737_v12 = vsel %vm6722_vm0, 0, %v6721_v35  ;;  %v3882_v26 = vadd.s32 1, %v6727_v18  ;;  %v3862_v7 = vand.u32 3, %v3858_v57  ;;  %v3722_v36 = vadd.s32 %v9898_v61, %v9909_v3 }
 0x2f1   : > { %v3738_v49 = vsub.s32 32, %v3737_v12  ;;  %v3742_v23 = vsub.s32 4294967266, %v3737_v12  ;;  %v4030_v27 = vmul.u32 %v9936_v1, %v4014_v20  ;;  %v4033_v11 = vadd.s32 1, %v9976_v39  ;;  %v7419_v20 = vpop.f32.mrf.mxu1 }
 0x2f2   : > { %v3872_v6 = vand.u32 2147483647, %v9938_v24  ;;  %vm3883_vm3 = vcmp.gt.s32.totalorder %v3882_v26, 0  ;;  %v3739_v8 = vshll.u32 %v9955_v63, %v3737_v12  ;;  %vm4032_vm4 = vc.u32 %v9982_v2, %v9975_v50 }
 0x2f3   : > { %v3740_v56 = vshrl.u32 %v3722_v36, %v3738_v49  ;;  %v3743_v9 = vadd.s32 127, %v3742_v23  ;;  %vm3861_vm5 = vweird.f32 %v9736_v38  ;;  %v3753_v61 = vsel %vm3668_vm2, %v3752_v43, %v9940_v42 }
 0x2f4   : > { %v4034_v3 = vsel %vm4032_vm4, %v4033_v11, %v9976_v39  ;;  %v3884_v1 = vsel %vm3883_vm3, %v3882_v26, 0  ;;  %vm10001_vm6 = vcmp.le.f32.partialorder %v3666_v44, 0.7853982  ;;  %vm3863_vm7 = vcmp.lt.s32.totalorder %v3862_v7, 2 }
 0x2f5   : > { %v3741_v63 = vor.u32 %v3740_v56, %v3739_v8  ;;  %v3744_v58 = vshll.u32 %v3743_v9, 23  ;;  %v4035_v22 = vadd.s32 %v4034_v3, %v4030_v27  ;;  %vm3864_vm8 = vcmp.eq.s32.totalorder %v3862_v7, 0 }
 0x2f6   : > { %v7710_v41 = vpop.eup %7709  ;;  %v3879_v28 = vand.u32 8388607, %v3872_v6  ;;  %v3886_v42 = vand.u32 31, %v3884_v1  ;;  %v3755_v44 = vsel %vm10001_vm6, 0, %v3753_v61  ;;  %vm3867_vm9 = vcmp.eq.s32.totalorder %v3862_v7, 2 }
 0x2f7   : > { %v7712_v59 = vpop.eup %7711  ;;  %v3868_v17 = vxor.u32 2147483648, %v7710_v41  ;;  %v3745_v15 = vor.u32 4788187, %v3744_v58  ;;  %v4036_v54 = vadd.s32 536870912, %v4035_v22  ;;  %v1989_v16 = vadd.f32 %v7357_v46, %v8793_v55 }
 0x2f8   : > { %v3865_v53 = vxor.u32 2147483648, %v7712_v59  ;;  %v3887_v30 = vsub.s32 32, %v3886_v42  ;;  %v3748_v19 = vcvt.s32.f32 %v3741_v63  ;;  %v10013_v35 = vand.u32 3, %v3755_v44 }
 0x2f9   : > { %v3869_v13 = vsel %vm3867_vm9, %v3868_v17, %v7712_v59  ;;  %v3746_v25 = vand.u32 2147483647, %v3745_v15  ;;  %v10010_v60 = vshrl.u32 %v4036_v54, 30  ;;  %v3880_v33 = vor.u32 8388608, %v3879_v28 }
 0x2fa   : > { %v3866_v57 = vsel %vm3864_vm8, %v7710_v41, %v3865_v53  ;;  %v3890_v45 = vshrl.u32 %v12212_v31, %v3887_v30  ;;  %v3893_v55 = vshrl.u32 %v12213_v52, %v3887_v30  ;;  %v3889_v12 = vshll.u32 %v12211_v62, %v3886_v42 }
 0x2fb   : > { %v3870_v10 = vsel %vm3863_vm7, %v3866_v57, %v3869_v13  ;;  %v3749_v39 = vmul.f32 %v3748_v19, %v3746_v25  ;;  %v4038_v18 = vshll.u32 %v10010_v60, 30  ;;  %v3896_v43 = vshrl.u32 %v12214_v48, %v3887_v30 }
 0x2fc   : > { %v3871_v14 = vsel %vm3861_vm5, nan, %v3870_v10  ;;  %v10023_v26 = vadd.f32 %v7419_v20, %v1989_v16  ;;  %v3885_v7 = vshrl.u32 %v3884_v1, 5  ;;  %v3892_v23 = vshll.u32 %v12212_v31, %v3886_v42 }
 0x2fd   : > { %6563 = vst [vmem:[%s9140_s30 + $0x68] sm:$0xff] %v3871_v14  ;;  %v3750_v36 = vxor.u32 2147483648, %v3749_v39  ;;  %v10026_v49 = vsub.s32 %v4035_v22, %v4038_v18  ;;  %v3891_v27 = vor.u32 %v3890_v45, %v3889_v12  ;;  %v3895_v11 = vshll.u32 %v12213_v52, %v3886_v42 }
 0x2fe   : > { %v3898_v8 = vshll.u32 %v12214_v48, %v3886_v42  ;;  %v3899_v38 = vshrl.u32 %v12215_v21, %v3887_v30  ;;  %v3894_v61 = vor.u32 %v3893_v55, %v3892_v23  ;;  %v3902_v3 = vshrl.u32 %v12216_v32, %v3887_v30 }
 0x2ff   : > { %v3751_v56 = vsel %vm3668_vm2, %v3750_v36, %v3749_v39  ;;  %v4041_v9 = vsub.s32 0, %v10026_v49  ;;  %v3897_v63 = vor.u32 %v3896_v43, %v3895_v11  ;;  %v3901_v22 = vshll.u32 %v12215_v21, %v3886_v42 }
 0x300   : > { %v3754_v1 = vsel %vm10001_vm6, %v9779_v37, %v3751_v56  ;;  %v3900_v58 = vor.u32 %v3899_v38, %v3898_v8  ;;  %v3920_v41 = vshll.u32 %v3880_v33, 8  ;;  %v4184_v28 = vand.u32 2139095040, %v10023_v26 }
 0x301   : > { %7713 = vcosq.f32 %v3754_v1  ;;  %v6732_v46 = vmin.u32 %v4041_v9, %v10026_v49  ;;  %v3888_v59 = vshrl.u32 %v12211_v62, %v3887_v30  ;;  %v3903_v17 = vor.u32 %v3902_v3, %v3901_v22 }
 0x302   : > { %7715 = vsinq.f32 %v3754_v1  ;;  %vm3904_vm10 = vcmp.lt.s32.totalorder %v3885_v7, 1  ;;  %vm3906_vm11 = vcmp.lt.s32.totalorder %v3885_v7, 3  ;;  %vm3907_vm12 = vcmp.lt.s32.totalorder %v3885_v7, 4  ;;  %v1982_v1 = vpop.f32.mrf.mxu0 }
 0x303   : > { %v4043_v15 = vclz %v6732_v46  ;;  %v3912_v4 = vsel %vm3904_vm10, %v3891_v27, %v3894_v61  ;;  %v3909_v44 = vsel %vm3907_vm12, %v3897_v63, 2102212464  ;;  %v3913_v54 = vsel %vm3907_vm12, %v3900_v58, 920167782 }
 0x304   : > { %v3916_v53 = vsel %vm3904_vm10, %v3894_v61, %v3897_v63  ;;  %v3917_v16 = vsel %vm3907_vm12, %v3903_v17, 1326507024  ;;  %vm3905_vm13 = vcmp.lt.s32.totalorder %v3885_v7, 2  ;;  %v3914_v13 = vsel %vm3906_vm11, %v3897_v63, %v3913_v54 }
 0x305   : > { %v6733_v42 = vadd.s32 4294967294, %v4043_v15  ;;  %v3918_v25 = vsel %vm3906_vm11, %v3900_v58, %v3917_v16  ;;  %v3908_v19 = vsel %vm3904_vm10, %v3888_v59, %v3891_v27  ;;  %v3915_v57 = vsel %vm3905_vm13, %v3912_v4, %v3914_v13 }
 0x306   : > { %v3919_v30 = vsel %vm3905_vm13, %v3916_v53, %v3918_v25  ;;  %v4185_v33 = vshrl.u32 %v4184_v28, 23  ;;  %v3910_v45 = vsel %vm3906_vm11, %v3894_v61, %v3909_v44  ;;  %vm3977_vm15 = vcmp.lt.s32.totalorder %v9849_v40, 0 }
 0x307   : > { %vm6734_vm14 = vcmp.lt.s32.totalorder %v6733_v42, 0  ;;  %v10048_v10 = vmul.u32.u64.low %v3920_v41, %v3919_v30  ;;  %v10049_v39 = vmul.u32.u64.high %v3920_v41, %v3919_v30, %v10048_v10  ;;  %v4031_v12 = vadd.s32 %v9975_v50, %v9982_v2 }
 0x308   : > { %v4046_v18 = vsel %vm6734_vm14, 0, %v6733_v42  ;;  %v10051_v55 = vmul.u32.u64.low %v3920_v41, %v3915_v57  ;;  %v10052_v20 = vmul.u32.u64.high %v3920_v41, %v3915_v57, %v10051_v55  ;;  %v6739_v14 = vadd.s32 4294967169, %v4185_v33 }
 0x309   : > { %v4047_v43 = vsub.s32 32, %v4046_v18  ;;  %v4051_v36 = vsub.s32 4294967266, %v4046_v18  ;;  %v4061_v23 = vsub.s32 4, %v10010_v60  ;;  %v3911_v27 = vsel %vm3905_vm13, %v3908_v19, %v3910_v45 }
 0x30a   : > { %v4181_v11 = vand.u32 2147483647, %v10023_v26  ;;  %v4191_v8 = vadd.s32 1, %v6739_v14  ;;  %vm3758_vm1 = vweird.f32 %v9779_v37  ;;  %v4048_v38 = vshll.u32 %v10026_v49, %v4046_v18 }
 0x30b   : > { %v4049_v56 = vshrl.u32 %v4031_v12, %v4047_v43  ;;  %v4052_v9 = vadd.s32 127, %v4051_v36  ;;  %vm3929_vm0 = vc.u32 %v10049_v39, %v10051_v55  ;;  %vm3760_vm2 = vcmp.lt.s32.totalorder %v10013_v35, 2 }
 0x30c   : > { %vm10068_vm3 = vcmp.le.f32.partialorder %v3975_v29, 0.7853982  ;;  %v3930_v2 = vadd.s32 1, %v10052_v20  ;;  %vm4192_vm4 = vcmp.gt.s32.totalorder %v4191_v8, 0  ;;  %v3927_v3 = vmul.u32 %v3920_v41, %v3911_v27 }
 0x30d   : > { %v4050_v7 = vor.u32 %v4049_v56, %v4048_v38  ;;  %v4053_v61 = vshll.u32 %v4052_v9, 23  ;;  %v4193_v49 = vsel %vm4192_vm4, %v4191_v8, 0  ;;  %vm3761_vm5 = vcmp.eq.s32.totalorder %v10013_v35, 0 }
 0x30e   : > { %v7714_v63 = vpop.eup %7713  ;;  %v3931_v58 = vsel %vm3929_vm0, %v3930_v2, %v10052_v20  ;;  %v4188_v22 = vand.u32 8388607, %v4181_v11  ;;  %v4195_v29 = vand.u32 31, %v4193_v49  ;;  %v4062_v17 = vsel %vm3977_vm15, %v4061_v23, %v10010_v60 }
 0x30f   : > { %v7716_v46 = vpop.eup %7715  ;;  %v3765_v28 = vxor.u32 2147483648, %v7714_v63  ;;  %v4054_v59 = vor.u32 4788187, %v4053_v61  ;;  %v3932_v15 = vadd.s32 %v3931_v58, %v3927_v3  ;;  %vm3764_vm6 = vcmp.eq.s32.totalorder %v10013_v35, 2 }
 0x310   : > { %v3762_v41 = vxor.u32 2147483648, %v7716_v46  ;;  %v4196_v4 = vsub.s32 32, %v4195_v29  ;;  %v1983_v44 = vadd.f32 %v1982_v1, %v8796_v5  ;;  %v4057_v16 = vcvt.s32.f32 %v4050_v7 }
 0x311   : > { %v3766_v54 = vsel %vm3764_vm6, %v3765_v28, %v7716_v46  ;;  %v4055_v53 = vand.u32 2147483647, %v4054_v59  ;;  %v3933_v42 = vadd.s32 536870912, %v3932_v15  ;;  %v4064_v25 = vsel %vm10068_vm3, 0, %v4062_v17  ;;  %v7360_v28 = vpop.f32.mrf.mxu0 }
 0x312   : > { %v3763_v13 = vsel %vm3761_vm5, %v7714_v63, %v3762_v41  ;;  %v4189_v19 = vor.u32 8388608, %v4188_v22  ;;  %v4199_v60 = vshrl.u32 %v12212_v31, %v4196_v4  ;;  %v4202_v5 = vshrl.u32 %v12213_v52, %v4196_v4 }
 0x313   : > { %v3767_v57 = vsel %vm3760_vm2, %v3763_v13, %v3766_v54  ;;  %v4058_v30 = vmul.f32 %v4057_v16, %v4055_v53  ;;  %v10089_v33 = vshrl.u32 %v3933_v42, 30  ;;  %v4194_v10 = vshrl.u32 %v4193_v49, 5  ;;  %v2288_v49 = vpop.f32.mrf.mxu1 }
 0x314   : > { %v3768_v45 = vsel %vm3758_vm1, nan, %v3767_v57  ;;  %v4198_v18 = vshll.u32 %v12211_v62, %v4195_v29  ;;  %v4205_v20 = vshrl.u32 %v12214_v48, %v4196_v4  ;;  %v4201_v35 = vshll.u32 %v12212_v31, %v4195_v29 }
 0x315   : > { %6562 = vst [vmem:[%s9140_s30 + $0x60] sm:$0xff] %v3768_v45  ;;  %v4059_v14 = vxor.u32 2147483648, %v4058_v30  ;;  %v3935_v12 = vshll.u32 %v10089_v33, 30  ;;  %v4204_v43 = vshll.u32 %v12213_v52, %v4195_v29  ;;  %v4207_v36 = vshll.u32 %v12214_v48, %v4195_v29 }
 0x316   : > { %v4208_v23 = vshrl.u32 %v12215_v21, %v4196_v4  ;;  %v4210_v37 = vshll.u32 %v12215_v21, %v4195_v29  ;;  %v4211_v27 = vshrl.u32 %v12216_v32, %v4196_v4  ;;  %v4200_v56 = vor.u32 %v4199_v60, %v4198_v18 }
 0x317   : > { %v4060_v8 = vsel %vm3977_vm15, %v4059_v14, %v4058_v30  ;;  %v10106_v38 = vsub.s32 %v3932_v15, %v3935_v12  ;;  %v4203_v9 = vor.u32 %v4202_v5, %v4201_v35  ;;  %v4206_v7 = vor.u32 %v4205_v20, %v4204_v43  ;;  %v7422_v14 = vpop.f32.mrf.mxu1 }
 0x318   : > { %v4063_v2 = vsel %vm10068_vm3, %v9849_v40, %v4060_v8  ;;  %v4209_v61 = vor.u32 %v4208_v23, %v4207_v36  ;;  %v4212_v3 = vor.u32 %v4211_v27, %v4210_v37  ;;  %v10111_v1 = vand.u32 3, %v4064_v25 }
 0x319   : > { %7717 = vcosq.f32 %v4063_v2  ;;  %v3938_v63 = vsub.s32 0, %v10106_v38  ;;  %v10114_v58 = vadd.f32 %v2288_v49, %v1983_v44  ;;  %v4197_v22 = vshrl.u32 %v12211_v62, %v4196_v4 }
 0x31a   : > { %7719 = vsinq.f32 %v4063_v2  ;;  %vm4213_vm7 = vcmp.lt.s32.totalorder %v4194_v10, 1  ;;  %v4229_v29 = vshll.u32 %v4189_v19, 8  ;;  %vm4215_vm8 = vcmp.lt.s32.totalorder %v4194_v10, 3 }
 0x31b   : > { %v6728_v46 = vmin.u32 %v3938_v63, %v10106_v38  ;;  %vm4216_vm9 = vcmp.lt.s32.totalorder %v4194_v10, 4  ;;  %v4221_v50 = vsel %vm4213_vm7, %v4200_v56, %v4203_v9  ;;  %v4225_v15 = vsel %vm4213_vm7, %v4203_v9, %v4206_v7 }
 0x31c   : > { %v4218_v59 = vsel %vm4216_vm9, %v4206_v7, 2102212464  ;;  %v4222_v17 = vsel %vm4216_vm9, %v4209_v61, 920167782  ;;  %v4226_v41 = vsel %vm4216_vm9, %v4212_v3, 1326507024  ;;  %v4217_v16 = vsel %vm4213_vm7, %v4197_v22, %v4200_v56 }
 0x31d   : > { %v3940_v54 = vclz %v6728_v46  ;;  %vm4214_vm10 = vcmp.lt.s32.totalorder %v4194_v10, 2  ;;  %v4223_v44 = vsel %vm4215_vm8, %v4206_v7, %v4222_v17  ;;  %v4227_v53 = vsel %vm4215_vm8, %v4209_v61, %v4226_v41 }
 0x31e   : > { %v4224_v4 = vsel %vm4214_vm10, %v4221_v50, %v4223_v44  ;;  %v4228_v42 = vsel %vm4214_vm10, %v4225_v15, %v4227_v53  ;;  %v2001_v13 = vadd.f32 %v7360_v28, %v8799_v0  ;;  %v4219_v19 = vsel %vm4215_vm8, %v4203_v9, %v4218_v59 }
 0x31f   : > { %v6729_v25 = vadd.s32 4294967294, %v3940_v54  ;;  %v10124_v60 = vmul.u32.u64.low %v4229_v29, %v4228_v42  ;;  %v10125_v57 = vmul.u32.u64.high %v4229_v29, %v4228_v42, %v10124_v60  ;;  %v3958_v30 = vsub.s32 4, %v10089_v33 }
 0x320   : > { %v10128_v5 = vmul.u32.u64.low %v4229_v29, %v4224_v4  ;;  %v10129_v45 = vmul.u32.u64.high %v4229_v29, %v4224_v4, %v10128_v5  ;;  %v4081_v18 = vand.u32 2139095040, %v10114_v58  ;;  %vm10134_vm11 = vcmp.le.f32.partialorder %v3872_v6, 0.7853982 }
 0x321   : > { %vm3874_vm12 = vcmp.lt.s32.totalorder %v9938_v24, 0  ;;  %vm6730_vm13 = vcmp.lt.s32.totalorder %v6729_v25, 0  ;;  %v4078_v0 = vand.u32 2147483647, %v10114_v58  ;;  %v4220_v35 = vsel %vm4214_vm10, %v4217_v16, %v4219_v19 }
 0x322   : > { %v3943_v12 = vsel %vm6730_vm13, 0, %v6729_v25  ;;  %v4082_v43 = vshrl.u32 %v4081_v18, 23  ;;  %v10141_v36 = vadd.f32 %v7422_v14, %v2001_v13  ;;  %vm4067_vm14 = vweird.f32 %v9849_v40 }
 0x323   : > { %vm4069_vm15 = vcmp.lt.s32.totalorder %v10111_v1, 2  ;;  %v3928_v6 = vadd.s32 %v10051_v55, %v10049_v39  ;;  %v3944_v23 = vsub.s32 32, %v3943_v12  ;;  %v3948_v37 = vsub.s32 4294967266, %v3943_v12 }
 0x324   : > { %v3959_v27 = vsel %vm3874_vm12, %v3958_v30, %v10089_v33  ;;  %vm4238_vm1 = vc.u32 %v10125_v57, %v10128_v5  ;;  %v4239_v10 = vadd.s32 1, %v10129_v45  ;;  %v6735_v8 = vadd.s32 4294967169, %v4082_v43 }
 0x325   : > { %v3945_v56 = vshll.u32 %v10106_v38, %v3943_v12  ;;  %v3946_v9 = vshrl.u32 %v3928_v6, %v3944_v23  ;;  %v3949_v2 = vadd.s32 127, %v3948_v37  ;;  %v4236_v7 = vmul.u32 %v4229_v29, %v4220_v35 }
 0x326   : > { %v7718_v61 = vpop.eup %7717  ;;  %v4240_v3 = vsel %vm4238_vm1, %v4239_v10, %v10129_v45  ;;  %v4085_v39 = vand.u32 8388607, %v4078_v0  ;;  %v4088_v55 = vadd.s32 1, %v6735_v8  ;;  %v4390_v49 = vand.u32 2139095040, %v10141_v36 }
 0x327   : > { %v7720_v33 = vpop.eup %7719  ;;  %v4074_v63 = vxor.u32 2147483648, %v7718_v61  ;;  %v3947_v22 = vor.u32 %v3946_v9, %v3945_v56  ;;  %v3950_v46 = vshll.u32 %v3949_v2, 23  ;;  %v4241_v50 = vadd.s32 %v4240_v3, %v4236_v7 }
 0x328   : > { %vm4070_vm0 = vcmp.eq.s32.totalorder %v10111_v1, 0  ;;  %v4071_v38 = vxor.u32 2147483648, %v7720_v33  ;;  %vm4073_vm2 = vcmp.eq.s32.totalorder %v10111_v1, 2  ;;  %vm4089_vm3 = vcmp.gt.s32.totalorder %v4088_v55, 0 }
 0x329   : > { %v4075_v29 = vsel %vm4073_vm2, %v4074_v63, %v7720_v33  ;;  %v3951_v28 = vor.u32 4788187, %v3950_v46  ;;  %v3961_v59 = vsel %vm10134_vm11, 0, %v3959_v27  ;;  %v4242_v17 = vadd.s32 536870912, %v4241_v50 }
 0x32a   : > { %v4072_v15 = vsel %vm4070_vm0, %v7718_v61, %v4071_v38  ;;  %v4086_v41 = vor.u32 8388608, %v4085_v39  ;;  %v4090_v54 = vsel %vm4089_vm3, %v4088_v55, 0  ;;  %v4391_v44 = vshrl.u32 %v4390_v49, 23 }
 0x32b   : > { %v4076_v53 = vsel %vm4069_vm15, %v4072_v15, %v4075_v29  ;;  %v3952_v16 = vand.u32 2147483647, %v3951_v28  ;;  %v3954_v4 = vcvt.s32.f32 %v3947_v22  ;;  %v10163_v42 = vshrl.u32 %v4242_v17, 30 }
 0x32c   : > { %v4077_v13 = vsel %vm4067_vm14, nan, %v4076_v53  ;;  %v4092_v25 = vand.u32 31, %v4090_v54  ;;  %v10168_v60 = vand.u32 3, %v3961_v59  ;;  %v4237_v45 = vadd.s32 %v10128_v5, %v10125_v57 }
 0x32d   : > { %6565 = vst [vmem:[%s9140_s30 + $0x78] sm:$0xff] %v4077_v13  ;;  %v3955_v19 = vmul.f32 %v3954_v4, %v3952_v16  ;;  %v4244_v30 = vshll.u32 %v10163_v42, 30  ;;  %v10172_v14 = vshll.u32 %v4086_v41, 8  ;;  %v6747_v1 = vadd.s32 4294967169, %v4391_v44 }
 0x32e   : > { %v4093_v18 = vsub.s32 32, %v4092_v25  ;;  %v4091_v43 = vshrl.u32 %v4090_v54, 5  ;;  %v4095_v40 = vshll.u32 %v12211_v62, %v4092_v25  ;;  %v4098_v23 = vshll.u32 %v12212_v31, %v4092_v25 }
 0x32f   : > { %v3956_v12 = vxor.u32 2147483648, %v3955_v19  ;;  %v10174_v35 = vsub.s32 %v4241_v50, %v4244_v30  ;;  %v4101_v27 = vshll.u32 %v12213_v52, %v4092_v25  ;;  %v4104_v8 = vshll.u32 %v12214_v48, %v4092_v25 }
 0x330   : > { %v4096_v6 = vshrl.u32 %v12212_v31, %v4093_v18  ;;  %v4099_v37 = vshrl.u32 %v12213_v52, %v4093_v18  ;;  %v4102_v10 = vshrl.u32 %v12214_v48, %v4093_v18  ;;  %v4105_v7 = vshrl.u32 %v12215_v21, %v4093_v18 }
 0x331   : > { %v3957_v57 = vsel %vm3874_vm12, %v3956_v12, %v3955_v19  ;;  %v4247_v5 = vsub.s32 0, %v10174_v35  ;;  %v4387_v3 = vand.u32 2147483647, %v10141_v36  ;;  %v4397_v39 = vadd.s32 1, %v6747_v1 }
 0x332   : > { %v3960_v56 = vsel %vm10134_vm11, %v9938_v24, %v3957_v57  ;;  %v4097_v9 = vor.u32 %v4096_v6, %v4095_v40  ;;  %v4100_v2 = vor.u32 %v4099_v37, %v4098_v23  ;;  %v4103_v55 = vor.u32 %v4102_v10, %v4101_v27 }
 0x333   : > { %7721 = vcosq.f32 %v3960_v56  ;;  %v6740_v61 = vmin.u32 %v4247_v5, %v10174_v35  ;;  %v4106_v49 = vor.u32 %v4105_v7, %v4104_v8  ;;  %vm4110_vm4 = vcmp.lt.s32.totalorder %v4091_v43, 1  ;;  %v1994_v5 = vpop.f32.mrf.mxu0 }
 0x334   : > { %7723 = vsinq.f32 %v3960_v56  ;;  %v4094_v63 = vshrl.u32 %v12211_v62, %v4093_v18  ;;  %v4107_v20 = vshll.u32 %v12215_v21, %v4092_v25  ;;  %v4108_v22 = vshrl.u32 %v12216_v32, %v4093_v18 }
 0x335   : > { %v4249_v33 = vclz %v6740_v61  ;;  %vm4111_vm5 = vcmp.lt.s32.totalorder %v4091_v43, 2  ;;  %vm4112_vm6 = vcmp.lt.s32.totalorder %v4091_v43, 3  ;;  %vm4113_vm7 = vcmp.lt.s32.totalorder %v4091_v43, 4 }
 0x336   : > { %v4118_v46 = vsel %vm4110_vm4, %v4097_v9, %v4100_v2  ;;  %v4109_v38 = vor.u32 %v4108_v22, %v4107_v20  ;;  %v4115_v29 = vsel %vm4113_vm7, %v4103_v55, 2102212464  ;;  %v4119_v28 = vsel %vm4113_vm7, %v4106_v49, 920167782 }
 0x337   : > { %v6741_v50 = vadd.s32 4294967294, %v4249_v33  ;;  %v4114_v59 = vsel %vm4110_vm4, %v4094_v63, %v4097_v9  ;;  %v4116_v17 = vsel %vm4112_vm6, %v4100_v2, %v4115_v29  ;;  %v4120_v15 = vsel %vm4112_vm6, %v4103_v55, %v4119_v28 }
 0x338   : > { %v4122_v41 = vsel %vm4110_vm4, %v4100_v2, %v4103_v55  ;;  %v4121_v54 = vsel %vm4111_vm5, %v4118_v46, %v4120_v15  ;;  %v4123_v44 = vsel %vm4113_vm7, %v4109_v38, 1326507024  ;;  %vm4398_vm9 = vcmp.gt.s32.totalorder %v4397_v39, 0 }
 0x339   : > { %vm6742_vm8 = vcmp.lt.s32.totalorder %v6741_v50, 0  ;;  %v4124_v16 = vsel %vm4112_vm6, %v4106_v49, %v4123_v44  ;;  %v10203_v4 = vmul.u32.u64.low %v10172_v14, %v4121_v54  ;;  %v10204_v13 = vmul.u32.u64.high %v10172_v14, %v4121_v54, %v10203_v4 }
 0x33a   : > { %v4252_v53 = vsel %vm6742_vm8, 0, %v6741_v50  ;;  %v4125_v30 = vsel %vm4111_vm5, %v4122_v41, %v4124_v16  ;;  %v10210_v18 = vand.u32 8388607, %v4387_v3  ;;  %v4117_v1 = vsel %vm4111_vm5, %v4114_v59, %v4116_v17 }
 0x33b   : > { %v4253_v25 = vsub.s32 32, %v4252_v53  ;;  %v4257_v19 = vsub.s32 4294967266, %v4252_v53  ;;  %v10214_v12 = vmul.u32.u64.low %v10172_v14, %v4125_v30  ;;  %v10215_v40 = vmul.u32.u64.high %v10172_v14, %v4125_v30, %v10214_v12 }
 0x33c   : > { %v4399_v6 = vsel %vm4398_vm9, %v4397_v39, 0  ;;  %vm3964_vm10 = vweird.f32 %v9938_v24  ;;  %v4254_v23 = vshll.u32 %v10174_v35, %v4252_v53  ;;  %vm3966_vm11 = vcmp.lt.s32.totalorder %v10168_v60, 2 }
 0x33d   : > { %v4255_v37 = vshrl.u32 %v4237_v45, %v4253_v25  ;;  %v4258_v27 = vadd.s32 127, %v4257_v19  ;;  %v4401_v57 = vand.u32 31, %v4399_v6  ;;  %vm4183_vm12 = vcmp.lt.s32.totalorder %v10023_v26, 0 }
 0x33e   : > { %v4267_v43 = vsub.s32 4, %v10163_v42  ;;  %v4136_v10 = vadd.s32 1, %v10204_v13  ;;  %vm3967_vm13 = vcmp.eq.s32.totalorder %v10168_v60, 0  ;;  %vm3970_vm14 = vcmp.eq.s32.totalorder %v10168_v60, 2 }
 0x33f   : > { %v4256_v8 = vor.u32 %v4255_v37, %v4254_v23  ;;  %v4259_v56 = vshll.u32 %v4258_v27, 23  ;;  %v4133_v45 = vmul.u32 %v10172_v14, %v4117_v1  ;;  %vm4135_vm15 = vc.u32 %v10215_v40, %v10203_v4 }
 0x340   : > { %v7722_v9 = vpop.eup %7721  ;;  %v4402_v35 = vsub.s32 32, %v4401_v57  ;;  %v1995_v2 = vadd.f32 %v1994_v5, %v8802_v51  ;;  %v4137_v55 = vsel %vm4135_vm15, %v4136_v10, %v10204_v13  ;;  %v4395_v49 = vor.u32 8388608, %v10210_v18 }
 0x341   : > { %v7724_v7 = vpop.eup %7723  ;;  %v3971_v61 = vxor.u32 2147483648, %v7722_v9  ;;  %v4260_v39 = vor.u32 4788187, %v4259_v56  ;;  %v10234_v63 = vsel %vm4183_vm12, %v4267_v43, %v10163_v42  ;;  %v4138_v14 = vadd.s32 %v4137_v55, %v4133_v45  ;;  %v2300_v43 = vpop.f32.mrf.mxu1 }
 0x342   : > { %v3968_v33 = vxor.u32 2147483648, %v7724_v7  ;;  %v10236_v20 = vshrl.u32 %v4399_v6, 5  ;;  %v4263_v46 = vcvt.s32.f32 %v4256_v8  ;;  %v4404_v50 = vshll.u32 %v12211_v62, %v4401_v57 }
 0x343   : > { %v3972_v22 = vsel %vm3970_vm14, %v3971_v61, %v7724_v7  ;;  %v4261_v51 = vand.u32 2147483647, %v4260_v39  ;;  %v4139_v29 = vadd.s32 536870912, %v4138_v14  ;;  %v4405_v28 = vshrl.u32 %v12212_v31, %v4402_v35 }
 0x344   : > { %v3969_v38 = vsel %vm3967_vm13, %v7722_v9, %v3968_v33  ;;  %v4411_v42 = vshrl.u32 %v12214_v48, %v4402_v35  ;;  %v4407_v15 = vshll.u32 %v12212_v31, %v4401_v57  ;;  %v4408_v41 = vshrl.u32 %v12213_v52, %v4402_v35 }
 0x345   : > { %v3973_v59 = vsel %vm3966_vm11, %v3969_v38, %v3972_v22  ;;  %v4264_v17 = vmul.f32 %v4263_v46, %v4261_v51  ;;  %v4140_v44 = vshrl.u32 %v4139_v29, 30  ;;  %v4410_v53 = vshll.u32 %v12213_v52, %v4401_v57 }
 0x346   : > { %v3974_v54 = vsel %vm3964_vm10, nan, %v3973_v59  ;;  %v4414_v16 = vshrl.u32 %v12215_v21, %v4402_v35  ;;  %v4413_v25 = vshll.u32 %v12214_v48, %v4401_v57  ;;  %v4416_v60 = vshll.u32 %v12215_v21, %v4401_v57 }
 0x347   : > { %6564 = vst [vmem:[%s9140_s30 + $0x70] sm:$0xff] %v3974_v54  ;;  %v4265_v13 = vxor.u32 2147483648, %v4264_v17  ;;  %v4417_v19 = vshrl.u32 %v12216_v32, %v4402_v35  ;;  %vm10259_vm1 = vcmp.le.f32.partialorder %v4181_v11, 0.7853982  ;;  %v4141_v24 = vshll.u32 %v4140_v44, 30 }
 0x348   : > { %v4406_v18 = vor.u32 %v4405_v28, %v4404_v50  ;;  %v4412_v1 = vor.u32 %v4411_v42, %v4410_v53  ;;  %v4409_v6 = vor.u32 %v4408_v41, %v4407_v15  ;;  %v4415_v23 = vor.u32 %v4414_v16, %v4413_v25  ;;  %v7363_v50 = vpop.f32.mrf.mxu0 }
 0x349   : > { %v4266_v12 = vsel %vm4183_vm12, %v4265_v13, %v4264_v17  ;;  %v4418_v37 = vor.u32 %v4417_v19, %v4416_v60  ;;  %v4270_v11 = vsel %vm10259_vm1, 0, %v10234_v63  ;;  %v10271_v57 = vsub.s32 %v4138_v14, %v4141_v24 }
 0x34a   : > { %v4269_v27 = vsel %vm10259_vm1, %v10023_v26, %v4266_v12  ;;  %v4435_v5 = vshll.u32 %v4395_v49, 8  ;;  %v4403_v10 = vshrl.u32 %v12211_v62, %v4402_v35  ;;  %vm4422_vm0 = vcmp.lt.s32.totalorder %v10236_v20, 4 }
 0x34b   : > { %7725 = vcosq.f32 %v4269_v27  ;;  %v10275_v8 = vadd.f32 %v2300_v43, %v1995_v2  ;;  %v4144_v56 = vsub.s32 0, %v10271_v57  ;;  %vm4419_vm2 = vcmp.lt.s32.totalorder %v10236_v20, 1 }
 0x34c   : > { %7727 = vsinq.f32 %v4269_v27  ;;  %v4424_v9 = vsel %vm4422_vm0, %v4412_v1, 2102212464  ;;  %v4427_v45 = vsel %vm4419_vm2, %v4406_v18, %v4409_v6  ;;  %v4428_v7 = vsel %vm4422_vm0, %v4415_v23, 920167782 }
 0x34d   : > { %v4431_v61 = vsel %vm4419_vm2, %v4409_v6, %v4412_v1  ;;  %v4432_v39 = vsel %vm4422_vm0, %v4418_v37, 1326507024  ;;  %v6736_v55 = vmin.u32 %v4144_v56, %v10271_v57  ;;  %v4164_v49 = vsub.s32 4, %v4140_v44 }
 0x34e   : > { %vm4420_vm3 = vcmp.lt.s32.totalorder %v10236_v20, 2  ;;  %vm4421_vm4 = vcmp.lt.s32.totalorder %v10236_v20, 3  ;;  %v4423_v35 = vsel %vm4419_vm2, %v4403_v10, %v4406_v18  ;;  %v4287_v46 = vand.u32 2139095040, %v10275_v8 }
 0x34f   : > { %v4425_v2 = vsel %vm4421_vm4, %v4409_v6, %v4424_v9  ;;  %v4429_v33 = vsel %vm4421_vm4, %v4412_v1, %v4428_v7  ;;  %v4433_v63 = vsel %vm4421_vm4, %v4415_v23, %v4432_v39  ;;  %v4146_v14 = vclz %v6736_v55 }
 0x350   : > { %v4430_v22 = vsel %vm4420_vm3, %v4427_v45, %v4429_v33  ;;  %v4434_v51 = vsel %vm4420_vm3, %v4431_v61, %v4433_v63  ;;  %vm4080_vm5 = vcmp.lt.s32.totalorder %v10114_v58, 0  ;;  %v4288_v17 = vshrl.u32 %v4287_v46, 23 }
 0x351   : > { %v10287_v38 = vmul.u32.u64.low %v4435_v5, %v4434_v51  ;;  %v10288_v29 = vmul.u32.u64.high %v4435_v5, %v4434_v51, %v10287_v38  ;;  %v10290_v28 = vmul.u32.u64.low %v4435_v5, %v4430_v22  ;;  %v10291_v42 = vmul.u32.u64.high %v4435_v5, %v4430_v22, %v10290_v28 }
 0x352   : > { %v6737_v59 = vadd.s32 4294967294, %v4146_v14  ;;  %v4274_v15 = vand.u32 3, %v4270_v11  ;;  %vm10297_vm6 = vcmp.le.f32.partialorder %v4078_v0, 0.7853982  ;;  %v4426_v54 = vsel %vm4420_vm3, %v4423_v35, %v4425_v2 }
 0x353   : > { %v2013_v53 = vadd.f32 %v7363_v50, %v8805_v47  ;;  %v4134_v16 = vadd.s32 %v10203_v4, %v10215_v40  ;;  %v4165_v13 = vsel %vm4080_vm5, %v4164_v49, %v4140_v44  ;;  %v6743_v25 = vadd.s32 4294967169, %v4288_v17  ;;  %v7425_v4 = vpop.f32.mrf.mxu1 }
 0x354   : > { %vm6738_vm7 = vcmp.lt.s32.totalorder %v6737_v59, 0  ;;  %vm4273_vm8 = vweird.f32 %v10023_v26  ;;  %vm4444_vm9 = vc.u32 %v10288_v29, %v10290_v28  ;;  %v4445_v0 = vadd.s32 1, %v10291_v42 }
 0x355   : > { %v4149_v60 = vsel %vm6738_vm7, 0, %v6737_v59  ;;  %v4284_v20 = vand.u32 2147483647, %v10275_v8  ;;  %v4442_v30 = vmul.u32 %v4435_v5, %v4426_v54  ;;  %v4294_v24 = vadd.s32 1, %v6743_v25 }
 0x356   : > { %v4150_v19 = vsub.s32 32, %v4149_v60  ;;  %v4154_v47 = vsub.s32 4294967266, %v4149_v60  ;;  %vm4279_vm10 = vcmp.eq.s32.totalorder %v4274_v15, 2  ;;  %v4151_v40 = vshll.u32 %v10271_v57, %v4149_v60 }
 0x357   : > { %v4446_v44 = vsel %vm4444_vm9, %v4445_v0, %v10291_v42  ;;  %v10315_v18 = vadd.f32 %v7425_v4, %v2013_v53  ;;  %vm4295_vm11 = vcmp.gt.s32.totalorder %v4294_v24, 0  ;;  %v4167_v11 = vsel %vm10297_vm6, 0, %v4165_v13 }
 0x358   : > { %v7726_v1 = vpop.eup %7725  ;;  %v4152_v12 = vshrl.u32 %v4134_v16, %v4150_v19  ;;  %v4155_v6 = vadd.s32 127, %v4154_v47  ;;  %v4447_v23 = vadd.s32 %v4446_v44, %v4442_v30  ;;  %v4291_v5 = vand.u32 8388607, %v4284_v20 }
 0x359   : > { %v7728_v37 = vpop.eup %7727  ;;  %v4280_v27 = vxor.u32 2147483648, %v7726_v1  ;;  %v4296_v43 = vsel %vm4295_vm11, %v4294_v24, 0  ;;  %vm4276_vm12 = vcmp.eq.s32.totalorder %v4274_v15, 0  ;;  %v4596_v61 = vand.u32 2139095040, %v10315_v18 }
 0x35a   : > { %v4277_v10 = vxor.u32 2147483648, %v7728_v37  ;;  %v4153_v57 = vor.u32 %v4152_v12, %v4151_v40  ;;  %v4156_v56 = vshll.u32 %v4155_v6, 23  ;;  %v4448_v9 = vadd.s32 536870912, %v4447_v23 }
 0x35b   : > { %v4281_v45 = vsel %vm4279_vm10, %v4280_v27, %v7728_v37  ;;  %v4298_v7 = vand.u32 31, %v4296_v43  ;;  %vm4275_vm13 = vcmp.lt.s32.totalorder %v4274_v15, 2  ;;  %v10325_v2 = vand.u32 3, %v4167_v11 }
 0x35c   : > { %v4278_v39 = vsel %vm4276_vm12, %v7726_v1, %v4277_v10  ;;  %v4157_v55 = vor.u32 4788187, %v4156_v56  ;;  %v10323_v49 = vshrl.u32 %v4448_v9, 30  ;;  %v4292_v33 = vor.u32 8388608, %v4291_v5 }
 0x35d   : > { %v4282_v35 = vsel %vm4275_vm13, %v4278_v39, %v4281_v45  ;;  %v4299_v63 = vsub.s32 32, %v4298_v7  ;;  %v4160_v51 = vcvt.s32.f32 %v4153_v57  ;;  %v4301_v50 = vshll.u32 %v12211_v62, %v4298_v7 }
 0x35e   : > { %v4283_v14 = vsel %vm4273_vm8, nan, %v4282_v35  ;;  %v4158_v22 = vand.u32 2147483647, %v4157_v55  ;;  %v4450_v46 = vshll.u32 %v10323_v49, 30  ;;  %v4597_v59 = vshrl.u32 %v4596_v61, 23 }
 0x35f   : > { %6567 = vst [vmem:[%s9140_s30 + $0x88] sm:$0xff] %v4283_v14  ;;  %v4302_v38 = vshrl.u32 %v12212_v31, %v4299_v63  ;;  %v4305_v42 = vshrl.u32 %v12213_v52, %v4299_v63  ;;  %v4304_v54 = vshll.u32 %v12212_v31, %v4298_v7  ;;  %v4308_v26 = vshrl.u32 %v12214_v48, %v4299_v63 }
 0x360   : > { %v4161_v17 = vmul.f32 %v4160_v51, %v4158_v22  ;;  %v10334_v15 = vsub.s32 %v4447_v23, %v4450_v46  ;;  %v4297_v53 = vshrl.u32 %v4296_v43, 5  ;;  %v4307_v16 = vshll.u32 %v12213_v52, %v4298_v7 }
 0x361   : > { %v10339_v13 = vshll.u32 %v4292_v33, 8  ;;  %v4593_v25 = vand.u32 2147483647, %v10315_v18  ;;  %v4303_v19 = vor.u32 %v4302_v38, %v4301_v50  ;;  %v4306_v47 = vor.u32 %v4305_v42, %v4304_v54 }
 0x362   : > { %v4162_v60 = vxor.u32 2147483648, %v4161_v17  ;;  %v4453_v0 = vsub.s32 0, %v10334_v15  ;;  %v4310_v30 = vshll.u32 %v12214_v48, %v4298_v7  ;;  %v4311_v24 = vshrl.u32 %v12215_v21, %v4299_v63 }
 0x363   : > { %v4313_v4 = vshll.u32 %v12215_v21, %v4298_v7  ;;  %v4314_v40 = vshrl.u32 %v12216_v32, %v4299_v63  ;;  %v4309_v12 = vor.u32 %v4308_v26, %v4307_v16  ;;  %v6755_v6 = vadd.s32 4294967169, %v4597_v59 }
 0x364   : > { %v4163_v44 = vsel %vm4080_vm5, %v4162_v60, %v4161_v17  ;;  %v6748_v1 = vmin.u32 %v4453_v0, %v10334_v15  ;;  %v4300_v37 = vshrl.u32 %v12211_v62, %v4299_v63  ;;  %v4312_v27 = vor.u32 %v4311_v24, %v4310_v30  ;;  %v2006_v30 = vpop.f32.mrf.mxu0 }
 0x365   : > { %v4166_v23 = vsel %vm10297_vm6, %v10114_v58, %v4163_v44  ;;  %v4315_v11 = vor.u32 %v4314_v40, %v4313_v4  ;;  %vm4316_vm14 = vcmp.lt.s32.totalorder %v4297_v53, 1  ;;  %vm4317_vm15 = vcmp.lt.s32.totalorder %v4297_v53, 2 }
 0x366   : > { %7729 = vcosq.f32 %v4166_v23  ;;  %v4455_v5 = vclz %v6748_v1  ;;  %vm4318_vm1 = vcmp.lt.s32.totalorder %v4297_v53, 3  ;;  %vm4319_vm0 = vcmp.lt.s32.totalorder %v4297_v53, 4 }
 0x367   : > { %7731 = vsinq.f32 %v4166_v23  ;;  %v4324_v43 = vsel %vm4316_vm14, %v4303_v19, %v4306_v47  ;;  %v4321_v57 = vsel %vm4319_vm0, %v4309_v12, 2102212464  ;;  %v4325_v56 = vsel %vm4319_vm0, %v4312_v27, 920167782 }
 0x368   : > { %v6749_v10 = vadd.s32 4294967294, %v4455_v5  ;;  %v4328_v9 = vsel %vm4316_vm14, %v4306_v47, %v4309_v12  ;;  %v4320_v45 = vsel %vm4316_vm14, %v4300_v37, %v4303_v19  ;;  %v4326_v7 = vsel %vm4318_vm1, %v4309_v12, %v4325_v56 }
 0x369   : > { %v4329_v41 = vsel %vm4319_vm0, %v4315_v11, 1326507024  ;;  %v4603_v61 = vadd.s32 1, %v6755_v6  ;;  %v4322_v39 = vsel %vm4318_vm1, %v4306_v47, %v4321_v57  ;;  %v4327_v55 = vsel %vm4317_vm15, %v4324_v43, %v4326_v7 }
 0x36a   : > { %vm6750_vm2 = vcmp.lt.s32.totalorder %v6749_v10, 0  ;;  %v4330_v35 = vsel %vm4318_vm1, %v4312_v27, %v4329_v41  ;;  %v10357_v14 = vmul.u32.u64.low %v10339_v13, %v4327_v55  ;;  %v10358_v22 = vmul.u32.u64.high %v10339_v13, %v4327_v55, %v10357_v14 }
 0x36b   : > { %v4458_v33 = vsel %vm6750_vm2, 0, %v6749_v10  ;;  %v4331_v63 = vsel %vm4317_vm15, %v4328_v9, %v4330_v35  ;;  %v4443_v51 = vadd.s32 %v10290_v28, %v10288_v29  ;;  %v4473_v38 = vsub.s32 4, %v10323_v49 }
 0x36c   : > { %v4459_v46 = vsub.s32 32, %v4458_v33  ;;  %v4463_v50 = vsub.s32 4294967266, %v4458_v33  ;;  %v4323_v42 = vsel %vm4317_vm15, %v4320_v45, %v4322_v39  ;;  %vm4604_vm3 = vcmp.gt.s32.totalorder %v4603_v61, 0 }
 0x36d   : > { %v10366_v59 = vmul.u32.u64.low %v10339_v13, %v4331_v63  ;;  %v10367_v17 = vmul.u32.u64.high %v10339_v13, %v4331_v63, %v10366_v59  ;;  %v4460_v54 = vshll.u32 %v10334_v15, %v4458_v33  ;;  %v4605_v60 = vsel %vm4604_vm3, %v4603_v61, 0 }
 0x36e   : > { %v4461_v26 = vshrl.u32 %v4443_v51, %v4459_v46  ;;  %v4464_v16 = vadd.s32 127, %v4463_v50  ;;  %vm4389_vm4 = vcmp.lt.s32.totalorder %v10141_v36, 0  ;;  %v4342_v29 = vadd.s32 1, %v10358_v22 }
 0x36f   : > { %v4600_v28 = vand.u32 8388607, %v4593_v25  ;;  %v4607_v0 = vand.u32 31, %v4605_v60  ;;  %vm4170_vm5 = vweird.f32 %v10114_v58  ;;  %vm10377_vm6 = vcmp.le.f32.partialorder %v4387_v3, 0.7853982 }
 0x370   : > { %v4462_v15 = vor.u32 %v4461_v26, %v4460_v54  ;;  %v4465_v19 = vshll.u32 %v4464_v16, 23  ;;  %v4474_v47 = vsel %vm4389_vm4, %v4473_v38, %v10323_v49  ;;  %vm4172_vm7 = vcmp.lt.s32.totalorder %v10325_v2, 2 }
 0x371   : > { %v4339_v24 = vmul.u32 %v10339_v13, %v4323_v42  ;;  %vm4341_vm8 = vc.u32 %v10367_v17, %v10357_v14  ;;  %v4608_v4 = vsub.s32 32, %v4607_v0  ;;  %vm4173_vm9 = vcmp.eq.s32.totalorder %v10325_v2, 0 }
 0x372   : > { %vm4176_vm10 = vcmp.eq.s32.totalorder %v10325_v2, 2  ;;  %v4466_v3 = vor.u32 4788187, %v4465_v19  ;;  %v4343_v40 = vsel %vm4341_vm8, %v4342_v29, %v10358_v22  ;;  %v4476_v49 = vsel %vm10377_vm6, 0, %v4474_v47 }
 0x373   : > { %v7730_v44 = vpop.eup %7729  ;;  %v4344_v1 = vadd.s32 %v4343_v40, %v4339_v24  ;;  %v4601_v12 = vor.u32 8388608, %v4600_v28  ;;  %v2007_v6 = vadd.f32 %v2006_v30, %v8808_v34  ;;  %v4469_v27 = vcvt.s32.f32 %v4462_v15 }
 0x374   : > { %v7732_v13 = vpop.eup %7731  ;;  %v4177_v23 = vxor.u32 2147483648, %v7730_v44  ;;  %v4467_v37 = vand.u32 2147483647, %v4466_v3  ;;  %v10394_v11 = vshrl.u32 %v4605_v60, 5  ;;  %v4610_v10 = vshll.u32 %v12211_v62, %v4607_v0 }
 0x375   : > { %v4174_v5 = vxor.u32 2147483648, %v7732_v13  ;;  %v4345_v43 = vadd.s32 536870912, %v4344_v1  ;;  %v4611_v57 = vshrl.u32 %v12212_v31, %v4608_v4  ;;  %v4613_v45 = vshll.u32 %v12212_v31, %v4607_v0 }
 0x376   : > { %v4178_v56 = vsel %vm4176_vm10, %v4177_v23, %v7732_v13  ;;  %v4470_v9 = vmul.f32 %v4469_v27, %v4467_v37  ;;  %v4614_v34 = vshrl.u32 %v12213_v52, %v4608_v4  ;;  %v4617_v61 = vshrl.u32 %v12214_v48, %v4608_v4  ;;  %v7366_v13 = vpop.f32.mrf.mxu0 }
 0x377   : > { %v4175_v7 = vsel %vm4173_vm9, %v7730_v44, %v4174_v5  ;;  %v10404_v41 = vshrl.u32 %v4345_v43, 30  ;;  %v4620_v39 = vshrl.u32 %v12215_v21, %v4608_v4  ;;  %v4619_v33 = vshll.u32 %v12214_v48, %v4607_v0 }
 0x378   : > { %v4179_v55 = vsel %vm4172_vm7, %v4175_v7, %v4178_v56  ;;  %v4471_v35 = vxor.u32 2147483648, %v4470_v9  ;;  %v4623_v63 = vshrl.u32 %v12216_v32, %v4608_v4  ;;  %v4612_v46 = vor.u32 %v4611_v57, %v4610_v10 }
 0x379   : > { %v4180_v22 = vsel %vm4170_vm5, nan, %v4179_v55  ;;  %v4347_v51 = vshll.u32 %v10404_v41, 30  ;;  %v4616_v50 = vshll.u32 %v12213_v52, %v4607_v0  ;;  %v4615_v42 = vor.u32 %v4614_v34, %v4613_v45  ;;  %v12262_v45 = vld [vmem:[#allocation5_spill] sm:$0xff] }
 0x37a   : > { %6566 = vst [vmem:[%s9140_s30 + $0x80] sm:$0xff] %v4180_v22  ;;  %v4472_v38 = vsel %vm4389_vm4, %v4471_v35, %v4470_v9  ;;  %v4621_v2 = vor.u32 %v4620_v39, %v4619_v33  ;;  %v4622_v59 = vshll.u32 %v12215_v21, %v4607_v0  ;;  %v10425_v16 = vand.u32 3, %v4476_v49  ;;  %v2312_v0 = vpop.f32.mrf.mxu1 }
 0x37b   : > { %v4475_v54 = vsel %vm10377_vm6, %v10141_v36, %v4472_v38  ;;  %v10423_v26 = vsub.s32 %v4344_v1, %v4347_v51  ;;  %v4618_v58 = vor.u32 %v4617_v61, %v4616_v50  ;;  %v4641_v29 = vshll.u32 %v4601_v12, 8 }
 0x37c   : > { %7733 = vcosq.f32 %v4475_v54  ;;  %v4624_v60 = vor.u32 %v4623_v63, %v4622_v59  ;;  %vm4625_vm11 = vcmp.lt.s32.totalorder %v10394_v11, 1  ;;  %vm4628_vm12 = vcmp.lt.s32.totalorder %v10394_v11, 4  ;;  %v7428_v22 = vpop.f32.mrf.mxu1 }
 0x37d   : > { %7735 = vsinq.f32 %v4475_v54  ;;  %v4350_v28 = vsub.s32 0, %v10423_v26  ;;  %v4609_v15 = vshrl.u32 %v12211_v62, %v4608_v4  ;;  %v4633_v53 = vsel %vm4625_vm11, %v4612_v46, %v4615_v42 }
 0x37e   : > { %v4634_v19 = vsel %vm4628_vm12, %v4621_v2, 920167782  ;;  %v10433_v47 = vadd.f32 %v2312_v0, %v2007_v6  ;;  %vm4627_vm13 = vcmp.lt.s32.totalorder %v10394_v11, 3  ;;  %v4630_v24 = vsel %vm4628_vm12, %v4618_v58, 2102212464 }
 0x37f   : > { %v6744_v30 = vmin.u32 %v4350_v28, %v10423_v26  ;;  %v4637_v3 = vsel %vm4625_vm11, %v4615_v42, %v4618_v58  ;;  %v4370_v40 = vsub.s32 4, %v10404_v41  ;;  %vm4626_vm14 = vcmp.lt.s32.totalorder %v10394_v11, 2 }
 0x380   : > { %v4635_v44 = vsel %vm4627_vm13, %v4618_v58, %v4634_v19  ;;  %v4638_v4 = vsel %vm4628_vm12, %v4624_v60, 1326507024  ;;  %v4629_v1 = vsel %vm4625_vm11, %v4609_v15, %v4612_v46  ;;  %v4631_v23 = vsel %vm4627_vm13, %v4615_v42, %v4630_v24 }
 0x381   : > { %v4352_v49 = vclz %v6744_v30  ;;  %v4636_v12 = vsel %vm4626_vm14, %v4633_v53, %v4635_v44  ;;  %v4639_v6 = vsel %vm4627_vm13, %v4621_v2, %v4638_v4  ;;  %v4493_v56 = vand.u32 2139095040, %v10433_v47 }
 0x382   : > { %v4640_v37 = vsel %vm4626_vm14, %v4637_v3, %v4639_v6  ;;  %v10447_v27 = vmul.u32.u64.low %v4641_v29, %v4636_v12  ;;  %v10448_v5 = vmul.u32.u64.high %v4641_v29, %v4636_v12, %v10447_v27  ;;  %vm10457_vm15 = vcmp.le.f32.partialorder %v4284_v20, 0.7853982 }
 0x383   : > { %v6745_v43 = vadd.s32 4294967294, %v4352_v49  ;;  %v10451_v10 = vmul.u32.u64.low %v4641_v29, %v4640_v37  ;;  %v10452_v57 = vmul.u32.u64.high %v4641_v29, %v4640_v37, %v10451_v10  ;;  %vm4286_vm1 = vcmp.lt.s32.totalorder %v10275_v8, 0 }
 0x384   : > { %v2025_v34 = vadd.f32 %v7366_v13, %v12262_v45  ;;  %vm4481_vm0 = vcmp.lt.s32.totalorder %v10425_v16, 2  ;;  %v4632_v7 = vsel %vm4626_vm14, %v4629_v1, %v4631_v23  ;;  %v4494_v61 = vshrl.u32 %v4493_v56, 23 }
 0x385   : > { %vm6746_vm2 = vcmp.lt.s32.totalorder %v6745_v43, 0  ;;  %vm4479_vm3 = vweird.f32 %v10141_v36  ;;  %vm4482_vm4 = vcmp.eq.s32.totalorder %v10425_v16, 0  ;;  %v4651_v20 = vadd.s32 1, %v10448_v5 }
 0x386   : > { %v4355_v39 = vsel %vm6746_vm2, 0, %v6745_v43  ;;  %v4490_v55 = vand.u32 2147483647, %v10433_v47  ;;  %v4340_v35 = vadd.s32 %v10357_v14, %v10367_v17  ;;  %v4371_v11 = vsel %vm4286_vm1, %v4370_v40, %v10404_v41 }
 0x387   : > { %v4356_v33 = vsub.s32 32, %v4355_v39  ;;  %v4360_v63 = vsub.s32 4294967266, %v4355_v39  ;;  %v4648_v51 = vmul.u32 %v4641_v29, %v4632_v7  ;;  %vm4650_vm5 = vc.u32 %v10452_v57, %v10447_v27 }
 0x388   : > { %v6751_v46 = vadd.s32 4294967169, %v4494_v61  ;;  %v10477_v50 = vadd.f32 %v7428_v22, %v2025_v34  ;;  %v4357_v42 = vshll.u32 %v10423_v26, %v4355_v39  ;;  %v4652_v14 = vsel %vm4650_vm5, %v4651_v20, %v10448_v5 }
 0x389   : > { %v7734_v38 = vpop.eup %7733  ;;  %v4358_v2 = vshrl.u32 %v4340_v35, %v4356_v33  ;;  %v4361_v59 = vadd.s32 127, %v4360_v63  ;;  %v4653_v58 = vadd.s32 %v4652_v14, %v4648_v51  ;;  %v4497_v41 = vand.u32 8388607, %v4490_v55 }
 0x38a   : > { %v7736_v17 = vpop.eup %7735  ;;  %v4486_v54 = vxor.u32 2147483648, %v7734_v38  ;;  %v4500_v60 = vadd.s32 1, %v6751_v46  ;;  %vm4485_vm6 = vcmp.eq.s32.totalorder %v10425_v16, 2  ;;  %v4373_v26 = vsel %vm10457_vm15, 0, %v4371_v11 }
 0x38b   : > { %v4483_v29 = vxor.u32 2147483648, %v7736_v17  ;;  %v4359_v28 = vor.u32 %v4358_v2, %v4357_v42  ;;  %v4362_v0 = vshll.u32 %v4361_v59, 23  ;;  %v4654_v53 = vadd.s32 536870912, %v4653_v58 }
 0x38c   : > { %v4487_v15 = vsel %vm4485_vm6, %v4486_v54, %v7736_v17  ;;  %vm4501_vm7 = vcmp.gt.s32.totalorder %v4500_v60, 0  ;;  %v4802_v3 = vand.u32 2139095040, %v10477_v50  ;;  %v4498_v4 = vor.u32 8388608, %v4497_v41 }
 0x38d   : > { %v4484_v19 = vsel %vm4482_vm4, %v7734_v38, %v4483_v29  ;;  %v4363_v30 = vor.u32 4788187, %v4362_v0  ;;  %v4502_v24 = vsel %vm4501_vm7, %v4500_v60, 0  ;;  %v10491_v44 = vshrl.u32 %v4654_v53, 30 }
 0x38e   : > { %v4488_v40 = vsel %vm4481_vm0, %v4484_v19, %v4487_v15  ;;  %v4504_v49 = vand.u32 31, %v4502_v24  ;;  %v4366_v6 = vcvt.s32.f32 %v4359_v28  ;;  %v10497_v5 = vand.u32 3, %v4373_v26 }
 0x38f   : > { %v4489_v1 = vsel %vm4479_vm3, nan, %v4488_v40  ;;  %v4364_v12 = vand.u32 2147483647, %v4363_v30  ;;  %v4656_v13 = vshll.u32 %v10491_v44, 30  ;;  %v4799_v43 = vand.u32 2147483647, %v10477_v50  ;;  %v2018_v30 = vpop.f32.mrf.mxu0 }
 0x390   : > { %6569 = vst [vmem:[%s9140_s30 + $0x98] sm:$0xff] %v4489_v1  ;;  %v4505_v23 = vsub.s32 32, %v4504_v49  ;;  %v4803_v16 = vshrl.u32 %v4802_v3, 23  ;;  %v4503_v56 = vshrl.u32 %v4502_v24, 5  ;;  %v10503_v34 = vshll.u32 %v4498_v4, 8 }
 0x391   : > { %v4367_v37 = vmul.f32 %v4366_v6, %v4364_v12  ;;  %v10500_v10 = vsub.s32 %v4653_v58, %v4656_v13  ;;  %v4507_v7 = vshll.u32 %v12211_v62, %v4504_v49  ;;  %v4510_v35 = vshll.u32 %v12212_v31, %v4504_v49 }
 0x392   : > { %v4508_v45 = vshrl.u32 %v12212_v31, %v4505_v23  ;;  %v4511_v61 = vshrl.u32 %v12213_v52, %v4505_v23  ;;  %v4514_v39 = vshrl.u32 %v12214_v48, %v4505_v23  ;;  %v4513_v33 = vshll.u32 %v12213_v52, %v4504_v49 }
 0x393   : > { %v4368_v36 = vxor.u32 2147483648, %v4367_v37  ;;  %v4659_v20 = vsub.s32 0, %v10500_v10  ;;  %v4517_v63 = vshrl.u32 %v12215_v21, %v4505_v23  ;;  %v4516_v51 = vshll.u32 %v12214_v48, %v4504_v49 }
 0x394   : > { %v4509_v22 = vor.u32 %v4508_v45, %v4507_v7  ;;  %v6763_v46 = vadd.s32 4294967169, %v4803_v16  ;;  %v4512_v2 = vor.u32 %v4511_v61, %v4510_v35  ;;  %v4515_v59 = vor.u32 %v4514_v39, %v4513_v33  ;;  %v12265_v16 = vld [vmem:[#allocation6_spill] sm:$0xff] }
 0x395   : > { %v4369_v11 = vsel %vm4286_vm1, %v4368_v36, %v4367_v37  ;;  %v6756_v42 = vmin.u32 %v4659_v20, %v10500_v10  ;;  %v4518_v14 = vor.u32 %v4517_v63, %v4516_v51  ;;  %v4519_v17 = vshll.u32 %v12215_v21, %v4504_v49  ;;  %v2324_v63 = vpop.f32.mrf.mxu1 }
 0x396   : > { %v4372_v38 = vsel %vm10457_vm15, %v10275_v8, %v4369_v11  ;;  %v4520_v54 = vshrl.u32 %v12216_v32, %v4505_v23  ;;  %v4506_v41 = vshrl.u32 %v12211_v62, %v4505_v23  ;;  %vm4522_vm8 = vcmp.lt.s32.totalorder %v4503_v56, 1 }
 0x397   : > { %7737 = vcosq.f32 %v4372_v38  ;;  %v4661_v58 = vclz %v6756_v42  ;;  %vm4523_vm9 = vcmp.lt.s32.totalorder %v4503_v56, 2  ;;  %vm4524_vm10 = vcmp.lt.s32.totalorder %v4503_v56, 3 }
 0x398   : > { %7739 = vsinq.f32 %v4372_v38  ;;  %v4521_v60 = vor.u32 %v4520_v54, %v4519_v17  ;;  %vm4525_vm11 = vcmp.lt.s32.totalorder %v4503_v56, 4  ;;  %vm4595_vm12 = vcmp.lt.s32.totalorder %v10315_v18, 0 }
 0x399   : > { %v6757_v9 = vadd.s32 4294967294, %v4661_v58  ;;  %v4527_v29 = vsel %vm4525_vm11, %v4515_v59, 2102212464  ;;  %v4530_v28 = vsel %vm4522_vm8, %v4509_v22, %v4512_v2  ;;  %v4531_v0 = vsel %vm4525_vm11, %v4518_v14, 920167782 }
 0x39a   : > { %v4526_v15 = vsel %vm4522_vm8, %v4506_v41, %v4509_v22  ;;  %v4532_v26 = vsel %vm4524_vm10, %v4515_v59, %v4531_v0  ;;  %v4534_v53 = vsel %vm4522_vm8, %v4512_v2, %v4515_v59  ;;  %v4535_v19 = vsel %vm4525_vm11, %v4521_v60, 1326507024 }
 0x39b   : > { %vm6758_vm13 = vcmp.lt.s32.totalorder %v6757_v9, 0  ;;  %v4528_v24 = vsel %vm4524_vm10, %v4512_v2, %v4527_v29  ;;  %v4533_v3 = vsel %vm4523_vm9, %v4530_v28, %v4532_v26  ;;  %v4536_v40 = vsel %vm4524_vm10, %v4518_v14, %v4535_v19 }
 0x39c   : > { %vm10526_vm14 = vcmp.le.f32.partialorder %v4593_v25, 0.7853982  ;;  %v4664_v49 = vsel %vm6758_vm13, 0, %v6757_v9  ;;  %v4537_v1 = vsel %vm4523_vm9, %v4534_v53, %v4536_v40  ;;  %v4649_v13 = vadd.s32 %v10447_v27, %v10452_v57 }
 0x39d   : > { %v10532_v12 = vmul.u32.u64.low %v10503_v34, %v4533_v3  ;;  %v10533_v6 = vmul.u32.u64.high %v10503_v34, %v4533_v3, %v10532_v12  ;;  %v4665_v23 = vsub.s32 32, %v4664_v49  ;;  %v4669_v37 = vsub.s32 4294967266, %v4664_v49 }
 0x39e   : > { %v2019_v45 = vadd.f32 %v2018_v30, %v12265_v16  ;;  %v4679_v25 = vsub.s32 4, %v10491_v44  ;;  %v10541_v36 = vmul.u32.u64.low %v10503_v34, %v4537_v1  ;;  %v10542_v7 = vmul.u32.u64.high %v10503_v34, %v4537_v1, %v10541_v36 }
 0x39f   : > { %v4809_v61 = vadd.s32 1, %v6763_v46  ;;  %v4666_v39 = vshll.u32 %v10500_v10, %v4664_v49  ;;  %v4667_v20 = vshrl.u32 %v4649_v13, %v4665_v23  ;;  %v4670_v35 = vadd.s32 127, %v4669_v37 }
 0x3a0   : > { %v4529_v33 = vsel %vm4523_vm9, %v4526_v15, %v4528_v24  ;;  %vm4376_vm15 = vweird.f32 %v10275_v8  ;;  %vm4378_vm1 = vcmp.lt.s32.totalorder %v10497_v5, 2  ;;  %v4548_v27 = vadd.s32 1, %v10533_v6 }
 0x3a1   : > { %v10551_v57 = vand.u32 8388607, %v4799_v43  ;;  %vm4810_vm0 = vcmp.gt.s32.totalorder %v4809_v61, 0  ;;  %v4668_v11 = vor.u32 %v4667_v20, %v4666_v39  ;;  %v4671_v22 = vshll.u32 %v4670_v35, 23 }
 0x3a2   : > { %v4811_v51 = vsel %vm4810_vm0, %v4809_v61, 0  ;;  %v10553_v10 = vadd.f32 %v2324_v63, %v2019_v45  ;;  %v4680_v56 = vsel %vm4595_vm12, %v4679_v25, %v10491_v44  ;;  %v4545_v46 = vmul.u32 %v10503_v34, %v4529_v33 }
 0x3a3   : > { %vm4547_vm2 = vc.u32 %v10542_v7, %v10532_v12  ;;  %v4813_v38 = vand.u32 31, %v4811_v51  ;;  %vm4379_vm3 = vcmp.eq.s32.totalorder %v10497_v5, 0  ;;  %vm4382_vm4 = vcmp.eq.s32.totalorder %v10497_v5, 2 }
 0x3a4   : > { %v7738_v42 = vpop.eup %7737  ;;  %v4672_v2 = vor.u32 4788187, %v4671_v22  ;;  %v4549_v59 = vsel %vm4547_vm2, %v4548_v27, %v10533_v6  ;;  %v4807_v58 = vor.u32 8388608, %v10551_v57  ;;  %v4675_v60 = vcvt.s32.f32 %v4668_v11 }
 0x3a5   : > { %v7740_v14 = vpop.eup %7739  ;;  %v4383_v17 = vxor.u32 2147483648, %v7738_v42  ;;  %v4550_v54 = vadd.s32 %v4549_v59, %v4545_v46  ;;  %v4814_v44 = vsub.s32 32, %v4813_v38  ;;  %v4682_v9 = vsel %vm10526_vm14, 0, %v4680_v56 }
 0x3a6   : > { %v4380_v41 = vxor.u32 2147483648, %v7740_v14  ;;  %v4673_v34 = vand.u32 2147483647, %v4672_v2  ;;  %v4699_v15 = vand.u32 2139095040, %v10553_v10  ;;  %v4812_v19 = vshrl.u32 %v4811_v51, 5 }
 0x3a7   : > { %v4384_v29 = vsel %vm4382_vm4, %v4383_v17, %v7740_v14  ;;  %v4551_v28 = vadd.s32 536870912, %v4550_v54  ;;  %v4817_v0 = vshrl.u32 %v12212_v31, %v4814_v44  ;;  %v4820_v30 = vshrl.u32 %v12213_v52, %v4814_v44 }
 0x3a8   : > { %v4381_v26 = vsel %vm4379_vm3, %v7738_v42, %v4380_v41  ;;  %v4676_v53 = vmul.f32 %v4675_v60, %v4673_v34  ;;  %v4816_v40 = vshll.u32 %v12211_v62, %v4813_v38  ;;  %v4823_v49 = vshrl.u32 %v12214_v48, %v4814_v44 }
 0x3a9   : > { %v4385_v24 = vsel %vm4378_vm1, %v4381_v26, %v4384_v29  ;;  %v10574_v3 = vshrl.u32 %v4551_v28, 30  ;;  %v4819_v13 = vshll.u32 %v12212_v31, %v4813_v38  ;;  %v4822_v23 = vshll.u32 %v12213_v52, %v4813_v38 }
 0x3aa   : > { %v4386_v1 = vsel %vm4376_vm15, nan, %v4385_v24  ;;  %v4677_v6 = vxor.u32 2147483648, %v4676_v53  ;;  %v4818_v16 = vor.u32 %v4817_v0, %v4816_v40  ;;  %v4825_v5 = vshll.u32 %v12214_v48, %v4813_v38 }
 0x3ab   : > { %6568 = vst [vmem:[%s9140_s30 + $0x90] sm:$0xff] %v4386_v1  ;;  %v4553_v37 = vshll.u32 %v10574_v3, 30  ;;  %v4826_v45 = vshrl.u32 %v12215_v21, %v4814_v44  ;;  %v4821_v36 = vor.u32 %v4820_v30, %v4819_v13  ;;  %v4828_v8 = vshll.u32 %v12215_v21, %v4813_v38  ;;  %v7369_v13 = vpop.f32.mrf.mxu0 }
 0x3ac   : > { %v4678_v25 = vsel %vm4595_vm12, %v4677_v6, %v4676_v53  ;;  %v4829_v61 = vshrl.u32 %v12216_v32, %v4814_v44  ;;  %v4824_v35 = vor.u32 %v4823_v49, %v4822_v23  ;;  %v10595_v27 = vand.u32 3, %v4682_v9 }
 0x3ad   : > { %v4681_v39 = vsel %vm10526_vm14, %v10315_v18, %v4678_v25  ;;  %v10593_v20 = vsub.s32 %v4550_v54, %v4553_v37  ;;  %v4827_v33 = vor.u32 %v4826_v45, %v4825_v5  ;;  %vm4831_vm5 = vcmp.lt.s32.totalorder %v4812_v19, 1 }
 0x3ae   : > { %7741 = vcosq.f32 %v4681_v39  ;;  %v4830_v57 = vor.u32 %v4829_v61, %v4828_v8  ;;  %vm4834_vm6 = vcmp.lt.s32.totalorder %v4812_v19, 4  ;;  %v4839_v11 = vsel %vm4831_vm5, %v4818_v16, %v4821_v36 }
 0x3af   : > { %7743 = vsinq.f32 %v4681_v39  ;;  %v4556_v63 = vsub.s32 0, %v10593_v20  ;;  %v4840_v22 = vsel %vm4834_vm6, %v4827_v33, 920167782  ;;  %v4847_v51 = vshll.u32 %v4807_v58, 8 }
 0x3b0   : > { %v4700_v56 = vshrl.u32 %v4699_v15, 23  ;;  %v4815_v46 = vshrl.u32 %v12211_v62, %v4814_v44  ;;  %vm4833_vm7 = vcmp.lt.s32.totalorder %v4812_v19, 3  ;;  %v4836_v38 = vsel %vm4834_vm6, %v4824_v35, 2102212464 }
 0x3b1   : > { %v6752_v4 = vmin.u32 %v4556_v63, %v10593_v20  ;;  %vm4832_vm8 = vcmp.lt.s32.totalorder %v4812_v19, 2  ;;  %v4841_v42 = vsel %vm4833_vm7, %v4824_v35, %v4840_v22  ;;  %v4843_v2 = vsel %vm4831_vm5, %v4821_v36, %v4824_v35 }
 0x3b2   : > { %v4844_v59 = vsel %vm4834_vm6, %v4830_v57, 1326507024  ;;  %v4835_v17 = vsel %vm4831_vm5, %v4815_v46, %v4818_v16  ;;  %v4842_v54 = vsel %vm4832_vm8, %v4839_v11, %v4841_v42  ;;  %v4837_v34 = vsel %vm4833_vm7, %v4821_v36, %v4836_v38  ;;  %v12268_v38 = vld [vmem:[#allocation7_spill] sm:$0xff] }
 0x3b3   : > { %v4558_v14 = vclz %v6752_v4  ;;  %v4845_v41 = vsel %vm4833_vm7, %v4827_v33, %v4844_v59  ;;  %v10602_v58 = vmul.u32.u64.low %v4847_v51, %v4842_v54  ;;  %v10603_v9 = vmul.u32.u64.high %v4847_v51, %v4842_v54, %v10602_v58  ;;  %v2030_v33 = vpop.f32.mrf.mxu0 }
 0x3b4   : > { %v4846_v60 = vsel %vm4832_vm8, %v4843_v2, %v4845_v41  ;;  %v6759_v0 = vadd.s32 4294967169, %v4700_v56  ;;  %vm4492_vm9 = vcmp.lt.s32.totalorder %v10433_v47, 0  ;;  %v4838_v15 = vsel %vm4832_vm8, %v4835_v17, %v4837_v34  ;;  %v12269_v2 = vld [vmem:[#allocation8_spill] sm:$0xff] }
 0x3b5   : > { %v6753_v29 = vadd.s32 4294967294, %v4558_v14  ;;  %v10606_v44 = vmul.u32.u64.low %v4847_v51, %v4846_v60  ;;  %v10607_v28 = vmul.u32.u64.high %v4847_v51, %v4846_v60, %v10606_v44  ;;  %vm4685_vm11 = vweird.f32 %v10315_v18 }
 0x3b6   : > { %v4706_v26 = vadd.s32 1, %v6759_v0  ;;  %vm4688_vm12 = vcmp.eq.s32.totalorder %v10595_v27, 0  ;;  %v4857_v30 = vadd.s32 1, %v10603_v9  ;;  %v4696_v24 = vand.u32 2147483647, %v10553_v10 }
 0x3b7   : > { %vm6754_vm10 = vcmp.lt.s32.totalorder %v6753_v29, 0  ;;  %v4546_v40 = vadd.s32 %v10532_v12, %v10542_v7  ;;  %v4576_v6 = vsub.s32 4, %v10574_v3  ;;  %v4854_v23 = vmul.u32 %v4847_v51, %v4838_v15 }
 0x3b8   : > { %v4561_v53 = vsel %vm6754_vm10, 0, %v6753_v29  ;;  %vm4856_vm13 = vc.u32 %v10607_v28, %v10602_v58  ;;  %vm4707_vm14 = vcmp.gt.s32.totalorder %v4706_v26, 0  ;;  %vm4691_vm15 = vcmp.eq.s32.totalorder %v10595_v27, 2 }
 0x3b9   : > { %v4562_v49 = vsub.s32 32, %v4561_v53  ;;  %v4566_v1 = vsub.s32 4294967266, %v4561_v53  ;;  %v4563_v19 = vshll.u32 %v10593_v20, %v4561_v53  ;;  %v4858_v45 = vsel %vm4856_vm13, %v4857_v30, %v10603_v9 }
 0x3ba   : > { %v4708_v25 = vsel %vm4707_vm14, %v4706_v26, 0  ;;  %v4859_v7 = vadd.s32 %v4858_v45, %v4854_v23  ;;  %v10626_v35 = vsel %vm4492_vm9, %v4576_v6, %v10574_v3  ;;  %v4703_v11 = vand.u32 8388607, %v4696_v24  ;;  %v7431_v6 = vpop.f32.mrf.mxu1 }
 0x3bb   : > { %v7742_v37 = vpop.eup %7741  ;;  %v4564_v16 = vshrl.u32 %v4546_v40, %v4562_v49  ;;  %v4567_v5 = vadd.s32 127, %v4566_v1  ;;  %v4710_v8 = vand.u32 31, %v4708_v25  ;;  %vm4687_vm1 = vcmp.lt.s32.totalorder %v10595_v27, 2 }
 0x3bc   : > { %v7744_v36 = vpop.eup %7743  ;;  %v4692_v12 = vxor.u32 2147483648, %v7742_v37  ;;  %v4860_v63 = vadd.s32 536870912, %v4859_v7  ;;  %vm10635_vm0 = vcmp.le.f32.partialorder %v4490_v55, 0.7853982  ;;  %v2037_v42 = vadd.f32 %v7369_v13, %v12268_v38 }
 0x3bd   : > { %v4689_v61 = vxor.u32 2147483648, %v7744_v36  ;;  %v4565_v39 = vor.u32 %v4564_v16, %v4563_v19  ;;  %v4568_v20 = vshll.u32 %v4567_v5, 23  ;;  %v4711_v22 = vsub.s32 32, %v4710_v8 }
 0x3be   : > { %v4693_v57 = vsel %vm4691_vm15, %v4692_v12, %v7744_v36  ;;  %v10639_v46 = vshrl.u32 %v4860_v63, 30  ;;  %v10643_v59 = vadd.f32 %v2030_v33, %v12269_v2  ;;  %v4579_v55 = vsel %vm10635_vm0, 0, %v10626_v35 }
 0x3bf   : > { %v4690_v51 = vsel %vm4688_vm12, %v7742_v37, %v4689_v61  ;;  %v4569_v3 = vor.u32 4788187, %v4568_v20  ;;  %v4572_v17 = vcvt.s32.f32 %v4565_v39  ;;  %v4704_v41 = vor.u32 8388608, %v4703_v11 }
 0x3c0   : > { %v4694_v4 = vsel %vm4687_vm1, %v4690_v51, %v4693_v57  ;;  %v4862_v54 = vshll.u32 %v10639_v46, 30  ;;  %v4714_v34 = vshrl.u32 %v12212_v31, %v4711_v22  ;;  %v4717_v60 = vshrl.u32 %v12213_v52, %v4711_v22 }
 0x3c1   : > { %v4695_v14 = vsel %vm4685_vm11, nan, %v4694_v4  ;;  %v4570_v27 = vand.u32 2147483647, %v4569_v3  ;;  %v4709_v29 = vshrl.u32 %v4708_v25, 5  ;;  %v4720_v44 = vshrl.u32 %v12214_v48, %v4711_v22 }
 0x3c2   : > { %6571 = vst [vmem:[%s9140_s30 + $0xa8] sm:$0xff] %v4695_v14  ;;  %v4723_v18 = vshrl.u32 %v12215_v21, %v4711_v22  ;;  %v10656_v0 = vsub.s32 %v4859_v7, %v4862_v54  ;;  %v4713_v15 = vshll.u32 %v12211_v62, %v4710_v8  ;;  %v4716_v26 = vshll.u32 %v12212_v31, %v4710_v8 }
 0x3c3   : > { %v4573_v9 = vmul.f32 %v4572_v17, %v4570_v27  ;;  %v4719_v53 = vshll.u32 %v12213_v52, %v4710_v8  ;;  %v4722_v40 = vshll.u32 %v12214_v48, %v4710_v8  ;;  %v4725_v49 = vshll.u32 %v12215_v21, %v4710_v8 }
 0x3c4   : > { %v4726_v1 = vshrl.u32 %v12216_v32, %v4711_v22  ;;  %v4865_v13 = vsub.s32 0, %v10656_v0  ;;  %v4715_v19 = vor.u32 %v4714_v34, %v4713_v15  ;;  %v4718_v23 = vor.u32 %v4717_v60, %v4716_v26 }
 0x3c5   : > { %v4574_v30 = vxor.u32 2147483648, %v4573_v9  ;;  %v10665_v37 = vadd.f32 %v7431_v6, %v2037_v42  ;;  %v4721_v5 = vor.u32 %v4720_v44, %v4719_v53  ;;  %v4724_v45 = vor.u32 %v4723_v18, %v4722_v40 }
 0x3c6   : > { %v4727_v25 = vor.u32 %v4726_v1, %v4725_v49  ;;  %v6764_v12 = vmin.u32 %v4865_v13, %v10656_v0  ;;  %v4712_v7 = vshrl.u32 %v12211_v62, %v4711_v22  ;;  %v4744_v8 = vshll.u32 %v4704_v41, 8 }
 0x3c7   : > { %v4575_v16 = vsel %vm4492_vm9, %v4574_v30, %v4573_v9  ;;  %v4885_v61 = vsub.s32 4, %v10639_v46  ;;  %vm4728_vm2 = vcmp.lt.s32.totalorder %v4709_v29, 1  ;;  %vm4730_vm3 = vcmp.lt.s32.totalorder %v4709_v29, 3 }
 0x3c8   : > { %v4578_v36 = vsel %vm10635_vm0, %v10433_v47, %v4575_v16  ;;  %v4867_v39 = vclz %v6764_v12  ;;  %vm4731_vm4 = vcmp.lt.s32.totalorder %v4709_v29, 4  ;;  %v4736_v20 = vsel %vm4728_vm2, %v4715_v19, %v4718_v23 }
 0x3c9   : > { %7745 = vcosq.f32 %v4578_v36  ;;  %v4733_v35 = vsel %vm4731_vm4, %v4721_v5, 2102212464  ;;  %v4737_v33 = vsel %vm4731_vm4, %v4724_v45, 920167782  ;;  %v4740_v57 = vsel %vm4728_vm2, %v4718_v23, %v4721_v5 }
 0x3ca   : > { %7747 = vsinq.f32 %v4578_v36  ;;  %v4741_v63 = vsel %vm4731_vm4, %v4727_v25, 1326507024  ;;  %v6765_v11 = vadd.s32 4294967294, %v4867_v39  ;;  %vm4729_vm5 = vcmp.lt.s32.totalorder %v4709_v29, 2 }
 0x3cb   : > { %v4738_v51 = vsel %vm4730_vm3, %v4721_v5, %v4737_v33  ;;  %v4742_v22 = vsel %vm4730_vm3, %v4724_v45, %v4741_v63  ;;  %vm10679_vm6 = vcmp.le.f32.partialorder %v4799_v43, 0.7853982  ;;  %v4732_v3 = vsel %vm4728_vm2, %v4712_v7, %v4715_v19 }
 0x3cc   : > { %v4739_v4 = vsel %vm4729_vm5, %v4736_v20, %v4738_v51  ;;  %v4743_v38 = vsel %vm4729_vm5, %v4740_v57, %v4742_v22  ;;  %v5008_v42 = vand.u32 2139095040, %v10665_v37  ;;  %vm6766_vm7 = vcmp.lt.s32.totalorder %v6765_v11, 0 }
 0x3cd   : > { %v4734_v2 = vsel %vm4730_vm3, %v4718_v23, %v4733_v35  ;;  %v10687_v14 = vmul.u32.u64.low %v4744_v8, %v4743_v38  ;;  %v10688_v27 = vmul.u32.u64.high %v4744_v8, %v4743_v38, %v10687_v14  ;;  %v4870_v17 = vsel %vm6766_vm7, 0, %v6765_v11 }
 0x3ce   : > { %v10690_v54 = vmul.u32.u64.low %v4744_v8, %v4739_v4  ;;  %v10691_v41 = vmul.u32.u64.high %v4744_v8, %v4739_v4, %v10690_v54  ;;  %v5009_v43 = vshrl.u32 %v5008_v42, 23  ;;  %v4583_v34 = vand.u32 3, %v4579_v55  ;;  %v2336_v55 = vpop.f32.mrf.mxu1 }
 0x3cf   : > { %v4855_v60 = vadd.s32 %v10602_v58, %v10607_v28  ;;  %v4871_v9 = vsub.s32 32, %v4870_v17  ;;  %v4875_v44 = vsub.s32 4294967266, %v4870_v17  ;;  %vm4801_vm8 = vcmp.lt.s32.totalorder %v10477_v50, 0 }
 0x3d0   : > { %v4735_v18 = vsel %vm4729_vm5, %v4732_v3, %v4734_v2  ;;  %v5005_v15 = vand.u32 2147483647, %v10665_v37  ;;  %v6771_v26 = vadd.s32 4294967169, %v5009_v43  ;;  %v4872_v53 = vshll.u32 %v10656_v0, %v4870_v17 }
 0x3d1   : > { %v4873_v30 = vshrl.u32 %v4855_v60, %v4871_v9  ;;  %v4876_v40 = vadd.s32 127, %v4875_v44  ;;  %vm4753_vm9 = vc.u32 %v10688_v27, %v10690_v54  ;;  %vm4582_vm10 = vweird.f32 %v10433_v47 }
 0x3d2   : > { %v4886_v58 = vsel %vm4801_vm8, %v4885_v61, %v10639_v46  ;;  %v4754_v28 = vadd.s32 1, %v10691_v41  ;;  %v5015_v29 = vadd.s32 1, %v6771_v26  ;;  %v10708_v49 = vadd.f32 %v2336_v55, %v10643_v59 }
 0x3d3   : > { %vm4584_vm11 = vcmp.lt.s32.totalorder %v4583_v34, 2  ;;  %v4874_v0 = vor.u32 %v4873_v30, %v4872_v53  ;;  %v4877_v1 = vshll.u32 %v4876_v40, 23  ;;  %v4751_v6 = vmul.u32 %v4744_v8, %v4735_v18 }
 0x3d4   : > { %vm4585_vm12 = vcmp.eq.s32.totalorder %v4583_v34, 0  ;;  %v4755_v13 = vsel %vm4753_vm9, %v4754_v28, %v10691_v41  ;;  %v5012_v19 = vand.u32 8388607, %v5005_v15  ;;  %vm5016_vm13 = vcmp.gt.s32.totalorder %v5015_v29, 0 }
 0x3d5   : > { %v4878_v16 = vor.u32 4788187, %v4877_v1  ;;  %v4888_v46 = vsel %vm10679_vm6, 0, %v4886_v58  ;;  %v4756_v5 = vadd.s32 %v4755_v13, %v4751_v6  ;;  %v5017_v45 = vsel %vm5016_vm13, %v5015_v29, 0 }
 0x3d6   : > { %v7746_v23 = vpop.eup %7745  ;;  %vm4588_vm14 = vcmp.eq.s32.totalorder %v4583_v34, 2  ;;  %v5019_v36 = vand.u32 31, %v5017_v45  ;;  %v4905_v12 = vand.u32 2139095040, %v10708_v49  ;;  %v4881_v61 = vcvt.s32.f32 %v4874_v0 }
 0x3d7   : > { %v7748_v59 = vpop.eup %7747  ;;  %v4589_v25 = vxor.u32 2147483648, %v7746_v23  ;;  %v4879_v8 = vand.u32 2147483647, %v4878_v16  ;;  %v4757_v39 = vadd.s32 536870912, %v4756_v5  ;;  %v10716_v35 = vand.u32 3, %v4888_v46 }
 0x3d8   : > { %v4586_v7 = vxor.u32 2147483648, %v7748_v59  ;;  %v5013_v33 = vor.u32 8388608, %v5012_v19  ;;  %v5020_v57 = vsub.s32 32, %v5019_v36  ;;  %v4902_v22 = vand.u32 2147483647, %v10708_v49 }
 0x3d9   : > { %v4590_v20 = vsel %vm4588_vm14, %v4589_v25, %v7748_v59  ;;  %v4882_v11 = vmul.f32 %v4881_v61, %v4879_v8  ;;  %v10719_v51 = vshrl.u32 %v4757_v39, 30  ;;  %v4906_v42 = vshrl.u32 %v4905_v12, 23  ;;  %v7372_v39 = vpop.f32.mrf.mxu0 }
 0x3da   : > { %v4587_v63 = vsel %vm4585_vm12, %v7746_v23, %v4586_v7  ;;  %v5023_v4 = vshrl.u32 %v12212_v31, %v5020_v57  ;;  %v5026_v38 = vshrl.u32 %v12213_v52, %v5020_v57  ;;  %v5018_v41 = vshrl.u32 %v5017_v45, 5 }
 0x3db   : > { %v4591_v3 = vsel %vm4584_vm11, %v4587_v63, %v4590_v20  ;;  %v4883_v14 = vxor.u32 2147483648, %v4882_v11  ;;  %v4759_v17 = vshll.u32 %v10719_v51, 30  ;;  %v5022_v43 = vshll.u32 %v12211_v62, %v5019_v36 }
 0x3dc   : > { %v4592_v2 = vsel %vm4582_vm10, nan, %v4591_v3  ;;  %v5025_v60 = vshll.u32 %v12212_v31, %v5019_v36  ;;  %v5028_v34 = vshll.u32 %v12213_v52, %v5019_v36  ;;  %v5029_v9 = vshrl.u32 %v12214_v48, %v5020_v57 }
 0x3dd   : > { %6570 = vst [vmem:[%s9140_s30 + $0xa0] sm:$0xff] %v4592_v2  ;;  %v4884_v44 = vsel %vm4801_vm8, %v4883_v14, %v4882_v11  ;;  %v10735_v18 = vsub.s32 %v4756_v5, %v4759_v17  ;;  %v5031_v47 = vshll.u32 %v12214_v48, %v5019_v36  ;;  %v5032_v26 = vshrl.u32 %v12215_v21, %v5020_v57  ;;  %v12272_v2 = vld [vmem:[#allocation9_spill] sm:$0xff] }
 0x3de   : > { %v4887_v53 = vsel %vm10679_vm6, %v10477_v50, %v4884_v44  ;;  %v5024_v30 = vor.u32 %v5023_v4, %v5022_v43  ;;  %v5027_v40 = vor.u32 %v5026_v38, %v5025_v60  ;;  %v10742_v55 = vshll.u32 %v5013_v33, 8 }
 0x3df   : > { %7749 = vcosq.f32 %v4887_v53  ;;  %v4762_v58 = vsub.s32 0, %v10735_v18  ;;  %v5030_v28 = vor.u32 %v5029_v9, %v5028_v34  ;;  %v5033_v29 = vor.u32 %v5032_v26, %v5031_v47 }
 0x3e0   : > { %7751 = vsinq.f32 %v4887_v53  ;;  %v5021_v0 = vshrl.u32 %v12211_v62, %v5020_v57  ;;  %v5034_v1 = vshll.u32 %v12215_v21, %v5019_v36  ;;  %v5035_v6 = vshrl.u32 %v12216_v32, %v5020_v57 }
 0x3e1   : > { %v6760_v13 = vmin.u32 %v4762_v58, %v10735_v18  ;;  %vm5037_vm15 = vcmp.lt.s32.totalorder %v5018_v41, 1  ;;  %vm5038_vm1 = vcmp.lt.s32.totalorder %v5018_v41, 2  ;;  %v6767_v56 = vadd.s32 4294967169, %v4906_v42 }
 0x3e2   : > { %v5036_v19 = vor.u32 %v5035_v6, %v5034_v1  ;;  %vm5039_vm0 = vcmp.lt.s32.totalorder %v5018_v41, 3  ;;  %vm5040_vm2 = vcmp.lt.s32.totalorder %v5018_v41, 4  ;;  %v5041_v23 = vsel %vm5037_vm15, %v5021_v0, %v5024_v30  ;;  %v7434_v1 = vpop.f32.mrf.mxu1 }
 0x3e3   : > { %v4764_v16 = vclz %v6760_v13  ;;  %v5042_v46 = vsel %vm5040_vm2, %v5030_v28, 2102212464  ;;  %v5045_v5 = vsel %vm5037_vm15, %v5024_v30, %v5027_v40  ;;  %v5046_v45 = vsel %vm5040_vm2, %v5033_v29, 920167782 }
 0x3e4   : > { %v5043_v59 = vsel %vm5039_vm0, %v5027_v40, %v5042_v46  ;;  %v5047_v25 = vsel %vm5039_vm0, %v5030_v28, %v5046_v45  ;;  %v5049_v12 = vsel %vm5037_vm15, %v5027_v40, %v5030_v28  ;;  %v5050_v7 = vsel %vm5040_vm2, %v5036_v19, 1326507024 }
 0x3e5   : > { %v6761_v36 = vadd.s32 4294967294, %v4764_v16  ;;  %v5048_v8 = vsel %vm5038_vm1, %v5045_v5, %v5047_v25  ;;  %v5051_v61 = vsel %vm5039_vm0, %v5033_v29, %v5050_v7  ;;  %vm4698_vm3 = vcmp.lt.s32.totalorder %v10553_v10, 0 }
 0x3e6   : > { %v5044_v20 = vsel %vm5038_vm1, %v5041_v23, %v5043_v59  ;;  %v5052_v33 = vsel %vm5038_vm1, %v5049_v12, %v5051_v61  ;;  %v10754_v57 = vmul.u32.u64.low %v10742_v55, %v5048_v8  ;;  %v10755_v63 = vmul.u32.u64.high %v10742_v55, %v5048_v8, %v10754_v57 }
 0x3e7   : > { %vm6762_vm4 = vcmp.lt.s32.totalorder %v6761_v36, 0  ;;  %v10759_v11 = vmul.u32.u64.low %v10742_v55, %v5052_v33  ;;  %v10760_v3 = vmul.u32.u64.high %v10742_v55, %v5052_v33, %v10759_v11  ;;  %v4912_v4 = vadd.s32 1, %v6767_v56 }
 0x3e8   : > { %vm4893_vm5 = vcmp.lt.s32.totalorder %v10716_v35, 2  ;;  %v4767_v38 = vsel %vm6762_vm4, 0, %v6761_v36  ;;  %v4909_v42 = vand.u32 8388607, %v4902_v22  ;;  %v2049_v14 = vadd.f32 %v7372_v39, %v12272_v2 }
 0x3e9   : > { %vm4891_vm6 = vweird.f32 %v10477_v50  ;;  %v4752_v17 = vadd.s32 %v10690_v54, %v10688_v27  ;;  %v4768_v41 = vsub.s32 32, %v4767_v38  ;;  %v4772_v43 = vsub.s32 4294967266, %v4767_v38 }
 0x3ea   : > { %vm4913_vm7 = vcmp.gt.s32.totalorder %v4912_v4, 0  ;;  %v4782_v60 = vsub.s32 4, %v10719_v51  ;;  %v5060_v34 = vmul.u32 %v10742_v55, %v5044_v20  ;;  %v5063_v9 = vadd.s32 1, %v10755_v63 }
 0x3eb   : > { %v4914_v44 = vsel %vm4913_vm7, %v4912_v4, 0  ;;  %v4769_v47 = vshll.u32 %v10735_v18, %v4767_v38  ;;  %v4770_v26 = vshrl.u32 %v4752_v17, %v4768_v41  ;;  %v4773_v53 = vadd.s32 127, %v4772_v43 }
 0x3ec   : > { %vm5062_vm8 = vc.u32 %v10760_v3, %v10754_v57  ;;  %v7750_v30 = vpop.eup %7749  ;;  %vm4894_vm9 = vcmp.eq.s32.totalorder %v10716_v35, 0  ;;  %v4910_v54 = vor.u32 8388608, %v4909_v42  ;;  %v4916_v40 = vand.u32 31, %v4914_v44 }
 0x3ed   : > { %v5064_v27 = vsel %vm5062_vm8, %v5063_v9, %v10755_v63  ;;  %v7752_v58 = vpop.eup %7751  ;;  %v4898_v28 = vxor.u32 2147483648, %v7750_v30  ;;  %v4771_v55 = vor.u32 %v4770_v26, %v4769_v47  ;;  %v4774_v29 = vshll.u32 %v4773_v53, 23 }
 0x3ee   : > { %v5065_v0 = vadd.s32 %v5064_v27, %v5060_v34  ;;  %v4895_v6 = vxor.u32 2147483648, %v7752_v58  ;;  %vm4897_vm10 = vcmp.eq.s32.totalorder %v10716_v35, 2  ;;  %v4917_v18 = vsub.s32 32, %v4916_v40 }
 0x3ef   : > { %v10778_v13 = vadd.f32 %v7434_v1, %v2049_v14  ;;  %v4899_v56 = vsel %vm4897_vm10, %v4898_v28, %v7752_v58  ;;  %vm10782_vm11 = vcmp.le.f32.partialorder %v4696_v24, 0.7853982  ;;  %v4775_v23 = vor.u32 4788187, %v4774_v29 }
 0x3f0   : > { %v10789_v16 = vsel %vm4698_vm3, %v4782_v60, %v10719_v51  ;;  %v5066_v46 = vadd.s32 536870912, %v5065_v0  ;;  %v4896_v5 = vsel %vm4894_vm9, %v7750_v30, %v4895_v6  ;;  %v4778_v45 = vcvt.s32.f32 %v4771_v55 }
 0x3f1   : > { %v4920_v59 = vshrl.u32 %v12212_v31, %v4917_v18  ;;  %v10794_v25 = vshll.u32 %v4910_v54, 8  ;;  %v4900_v24 = vsel %vm4893_vm5, %v4896_v5, %v4899_v56  ;;  %v4776_v12 = vand.u32 2147483647, %v4775_v23 }
 0x3f2   : > { %v10798_v7 = vshrl.u32 %v5066_v46, 30  ;;  %v4923_v36 = vshrl.u32 %v12213_v52, %v4917_v18  ;;  %v4901_v51 = vsel %vm4891_vm6, nan, %v4900_v24  ;;  %v4915_v8 = vshrl.u32 %v4914_v44, 5 }
 0x3f3   : > { %v4926_v61 = vshrl.u32 %v12214_v48, %v4917_v18  ;;  %v5214_v39 = vand.u32 2139095040, %v10778_v13  ;;  %6573 = vst [vmem:[%s9140_s30 + $0xb8] sm:$0xff] %v4901_v51  ;;  %v4779_v20 = vmul.f32 %v4778_v45, %v4776_v12  ;;  %v4919_v35 = vshll.u32 %v12211_v62, %v4916_v40 }
 0x3f4   : > { %v5068_v33 = vshll.u32 %v10798_v7, 30  ;;  %v4922_v63 = vshll.u32 %v12212_v31, %v4916_v40  ;;  %v4925_v11 = vshll.u32 %v12213_v52, %v4916_v40  ;;  %v4928_v4 = vshll.u32 %v12214_v48, %v4916_v40 }
 0x3f5   : > { %v4929_v50 = vshrl.u32 %v12215_v21, %v4917_v18  ;;  %v4932_v38 = vshrl.u32 %v12216_v32, %v4917_v18  ;;  %v4780_v42 = vxor.u32 2147483648, %v4779_v20  ;;  %v4921_v14 = vor.u32 %v4920_v59, %v4919_v35 }
 0x3f6   : > { %v10813_v2 = vsub.s32 %v5065_v0, %v5068_v33  ;;  %v4924_v17 = vor.u32 %v4923_v36, %v4922_v63  ;;  %v4927_v41 = vor.u32 %v4926_v61, %v4925_v11  ;;  %v4931_v60 = vshll.u32 %v12215_v21, %v4916_v40  ;;  %v2042_v63 = vpop.f32.mrf.mxu0 }
 0x3f7   : > { %v4930_v43 = vor.u32 %v4929_v50, %v4928_v4  ;;  %v5211_v34 = vand.u32 2147483647, %v10778_v13  ;;  %v4781_v9 = vsel %vm4698_vm3, %v4780_v42, %v4779_v20  ;;  %v4918_v47 = vshrl.u32 %v12211_v62, %v4917_v18 }
 0x3f8   : > { %v5071_v44 = vsub.s32 0, %v10813_v2  ;;  %v5215_v26 = vshrl.u32 %v5214_v39, 23  ;;  %v4784_v53 = vsel %vm10782_vm11, %v10553_v10, %v4781_v9  ;;  %v4933_v30 = vor.u32 %v4932_v38, %v4931_v60 }
 0x3f9   : > { %vm4934_vm12 = vcmp.lt.s32.totalorder %v4915_v8, 1  ;;  %vm4935_vm13 = vcmp.lt.s32.totalorder %v4915_v8, 2  ;;  %7753 = vcosq.f32 %v4784_v53  ;;  %vm4937_vm14 = vcmp.lt.s32.totalorder %v4915_v8, 4 }
 0x3fa   : > { %v6772_v27 = vmin.u32 %v5071_v44, %v10813_v2  ;;  %v4942_v54 = vsel %vm4934_vm12, %v4921_v14, %v4924_v17  ;;  %7755 = vsinq.f32 %v4784_v53  ;;  %vm4936_vm15 = vcmp.lt.s32.totalorder %v4915_v8, 3 }
 0x3fb   : > { %v4939_v40 = vsel %vm4937_vm14, %v4927_v41, 2102212464  ;;  %v4943_v58 = vsel %vm4937_vm14, %v4930_v43, 920167782  ;;  %v4938_v55 = vsel %vm4934_vm12, %v4918_v47, %v4921_v14  ;;  %v4946_v0 = vsel %vm4934_vm12, %v4924_v17, %v4927_v41 }
 0x3fc   : > { %v5073_v28 = vclz %v6772_v27  ;;  %v4944_v29 = vsel %vm4936_vm15, %v4927_v41, %v4943_v58  ;;  %v4940_v1 = vsel %vm4936_vm15, %v4924_v17, %v4939_v40  ;;  %v4947_v18 = vsel %vm4937_vm14, %v4933_v30, 1326507024  ;;  %v12275_v41 = vld [vmem:[#allocation10_spill] sm:$0xff]  ;;  %v2348_v40 = vpop.f32.mrf.mxu1 }
 0x3fd   : > { %v4945_v6 = vsel %vm4935_vm13, %v4942_v54, %v4944_v29  ;;  %v6779_v56 = vadd.s32 4294967169, %v5215_v26  ;;  %v4948_v46 = vsel %vm4936_vm15, %v4930_v43, %v4947_v18  ;;  %v4785_v59 = vsel %vm10782_vm11, 0, %v10789_v16 }
 0x3fe   : > { %v6773_v23 = vadd.s32 4294967294, %v5073_v28  ;;  %v10827_v5 = vmul.u32.u64.low %v10794_v25, %v4945_v6  ;;  %v10828_v45 = vmul.u32.u64.high %v10794_v25, %v4945_v6, %v10827_v5  ;;  %v4949_v24 = vsel %vm4935_vm13, %v4946_v0, %v4948_v46 }
 0x3ff   : > { %v5221_v12 = vadd.s32 1, %v6779_v56  ;;  %v4941_v36 = vsel %vm4935_vm13, %v4938_v55, %v4940_v1  ;;  %v10837_v51 = vmul.u32.u64.low %v10794_v25, %v4949_v24  ;;  %v10838_v61 = vmul.u32.u64.high %v10794_v25, %v4949_v24, %v10837_v51 }
 0x400   : > { %vm6774_vm1 = vcmp.lt.s32.totalorder %v6773_v23, 0  ;;  %v5218_v20 = vand.u32 8388607, %v5211_v34  ;;  %v5061_v33 = vadd.s32 %v10754_v57, %v10760_v3  ;;  %v4960_v35 = vadd.s32 1, %v10828_v45 }
 0x401   : > { %v5076_v39 = vsel %vm6774_vm1, 0, %v6773_v23  ;;  %vm5222_vm0 = vcmp.gt.s32.totalorder %v5221_v12, 0  ;;  %v4789_v11 = vand.u32 3, %v4785_v59  ;;  %v5091_v8 = vsub.s32 4, %v10798_v7 }
 0x402   : > { %v5077_v19 = vsub.s32 32, %v5076_v39  ;;  %v5081_v16 = vsub.s32 4294967266, %v5076_v39  ;;  %v4957_v4 = vmul.u32 %v10794_v25, %v4941_v36  ;;  %v5223_v50 = vsel %vm5222_vm0, %v5221_v12, 0 }
 0x403   : > { %vm4788_vm2 = vweird.f32 %v10553_v10  ;;  %v5078_v38 = vshll.u32 %v10813_v2, %v5076_v39  ;;  %vm4959_vm3 = vc.u32 %v10838_v61, %v10827_v5  ;;  %v5219_v3 = vor.u32 8388608, %v5218_v20 }
 0x404   : > { %v5079_v42 = vshrl.u32 %v5061_v33, %v5077_v19  ;;  %v5082_v14 = vadd.s32 127, %v5081_v16  ;;  %v4961_v57 = vsel %vm4959_vm3, %v4960_v35, %v10828_v45  ;;  %v5225_v17 = vand.u32 31, %v5223_v50 }
 0x405   : > { %v2043_v43 = vadd.f32 %v2042_v63, %v12275_v41  ;;  %vm5007_vm4 = vcmp.lt.s32.totalorder %v10665_v37, 0  ;;  %v4962_v9 = vadd.s32 %v4961_v57, %v4957_v4  ;;  %vm4790_vm5 = vcmp.lt.s32.totalorder %v4789_v11, 2 }
 0x406   : > { %v5080_v60 = vor.u32 %v5079_v42, %v5078_v38  ;;  %v5083_v25 = vshll.u32 %v5082_v14, 23  ;;  %v7754_v44 = vpop.eup %7753  ;;  %vm4791_vm6 = vcmp.eq.s32.totalorder %v4789_v11, 0  ;;  %vm4794_vm7 = vcmp.eq.s32.totalorder %v4789_v11, 2 }
 0x407   : > { %v5226_v2 = vsub.s32 32, %v5225_v17  ;;  %v7756_v47 = vpop.eup %7755  ;;  %v4795_v26 = vxor.u32 2147483648, %v7754_v44  ;;  %vm10856_vm8 = vcmp.le.f32.partialorder %v5005_v15, 0.7853982  ;;  %v10863_v27 = vsel %vm5007_vm4, %v5091_v8, %v10798_v7 }
 0x408   : > { %v5084_v30 = vor.u32 4788187, %v5083_v25  ;;  %v4963_v54 = vadd.s32 536870912, %v4962_v9  ;;  %v4792_v58 = vxor.u32 2147483648, %v7756_v47  ;;  %v5224_v28 = vshrl.u32 %v5223_v50, 5 }
 0x409   : > { %v10865_v55 = vshll.u32 %v5219_v3, 8  ;;  %v10867_v29 = vadd.f32 %v2348_v40, %v2043_v43  ;;  %v4796_v0 = vsel %vm4794_vm7, %v4795_v26, %v7756_v47  ;;  %v5087_v1 = vcvt.s32.f32 %v5080_v60 }
 0x40a   : > { %v5085_v15 = vand.u32 2147483647, %v5084_v30  ;;  %v10869_v6 = vshrl.u32 %v4963_v54, 30  ;;  %v4793_v18 = vsel %vm4791_vm6, %v7754_v44, %v4792_v58  ;;  %v5229_v56 = vshrl.u32 %v12212_v31, %v5226_v2 }
 0x40b   : > { %v5232_v7 = vshrl.u32 %v12213_v52, %v5226_v2  ;;  %v5235_v23 = vshrl.u32 %v12214_v48, %v5226_v2  ;;  %v4797_v46 = vsel %vm4790_vm5, %v4793_v18, %v4796_v0  ;;  %v5228_v24 = vshll.u32 %v12211_v62, %v5225_v17 }
 0x40c   : > { %v5088_v45 = vmul.f32 %v5087_v1, %v5085_v15  ;;  %v4965_v59 = vshll.u32 %v10869_v6, 30  ;;  %v4798_v12 = vsel %vm4788_vm2, nan, %v4797_v46  ;;  %v5231_v36 = vshll.u32 %v12212_v31, %v5225_v17 }
 0x40d   : > { %v5234_v51 = vshll.u32 %v12213_v52, %v5225_v17  ;;  %v5238_v39 = vshrl.u32 %v12215_v21, %v5226_v2  ;;  %6572 = vst [vmem:[%s9140_s30 + $0xb0] sm:$0xff] %v4798_v12  ;;  %v5237_v19 = vshll.u32 %v12214_v48, %v5225_v17  ;;  %v5241_v16 = vshrl.u32 %v12216_v32, %v5226_v2 }
 0x40e   : > { %v5089_v20 = vxor.u32 2147483648, %v5088_v45  ;;  %v10884_v33 = vsub.s32 %v4962_v9, %v4965_v59  ;;  %v5230_v35 = vor.u32 %v5229_v56, %v5228_v24  ;;  %v5233_v63 = vor.u32 %v5232_v7, %v5231_v36 }
 0x40f   : > { %v5236_v11 = vor.u32 %v5235_v23, %v5234_v51  ;;  %v5240_v10 = vshll.u32 %v12215_v21, %v5225_v17  ;;  %v5239_v50 = vor.u32 %v5238_v39, %v5237_v19  ;;  %v5111_v38 = vand.u32 2139095040, %v10867_v29 }
 0x410   : > { %v5090_v8 = vsel %vm5007_vm4, %v5089_v20, %v5088_v45  ;;  %v4968_v4 = vsub.s32 0, %v10884_v33  ;;  %v5227_v14 = vshrl.u32 %v12211_v62, %v5226_v2  ;;  %vm5243_vm9 = vcmp.lt.s32.totalorder %v5224_v28, 1 }
 0x411   : > { %v5093_v42 = vsel %vm10856_vm8, %v10665_v37, %v5090_v8  ;;  %v5242_v57 = vor.u32 %v5241_v16, %v5240_v10  ;;  %vm5244_vm10 = vcmp.lt.s32.totalorder %v5224_v28, 2  ;;  %vm5246_vm11 = vcmp.lt.s32.totalorder %v5224_v28, 4 }
 0x412   : > { %7757 = vcosq.f32 %v5093_v42  ;;  %v6768_v3 = vmin.u32 %v4968_v4, %v10884_v33  ;;  %vm5245_vm12 = vcmp.lt.s32.totalorder %v5224_v28, 3  ;;  %v5248_v17 = vsel %vm5246_vm11, %v5236_v11, 2102212464 }
 0x413   : > { %7759 = vsinq.f32 %v5093_v42  ;;  %v5251_v41 = vsel %vm5243_vm9, %v5230_v35, %v5233_v63  ;;  %v5247_v60 = vsel %vm5243_vm9, %v5227_v14, %v5230_v35  ;;  %v5252_v25 = vsel %vm5246_vm11, %v5239_v50, 920167782 }
 0x414   : > { %v4970_v43 = vclz %v6768_v3  ;;  %v5255_v9 = vsel %vm5243_vm9, %v5233_v63, %v5236_v11  ;;  %v5249_v44 = vsel %vm5245_vm12, %v5233_v63, %v5248_v17  ;;  %v5253_v47 = vsel %vm5245_vm12, %v5236_v11, %v5252_v25  ;;  %v7375_v11 = vpop.f32.mrf.mxu0  ;;  %v12280_v3 = vld [vmem:[#allocation11_spill] sm:$0xff] }
 0x415   : > { %v5256_v26 = vsel %vm5246_vm11, %v5242_v57, 1326507024  ;;  %v5112_v30 = vshrl.u32 %v5111_v38, 23  ;;  %v5094_v2 = vsel %vm10856_vm8, 0, %v10863_v27  ;;  %v5254_v40 = vsel %vm5244_vm10, %v5251_v41, %v5253_v47 }
 0x416   : > { %v6769_v54 = vadd.s32 4294967294, %v4970_v43  ;;  %v5257_v58 = vsel %vm5245_vm12, %v5239_v50, %v5256_v26  ;;  %v10904_v15 = vmul.u32.u64.low %v10865_v55, %v5254_v40  ;;  %v10905_v1 = vmul.u32.u64.high %v10865_v55, %v5254_v40, %v10904_v15 }
 0x417   : > { %v5258_v0 = vsel %vm5244_vm10, %v5255_v9, %v5257_v58  ;;  %v6775_v18 = vadd.s32 4294967169, %v5112_v30  ;;  %v5250_v56 = vsel %vm5244_vm10, %v5247_v60, %v5249_v44  ;;  %vm4904_vm14 = vcmp.lt.s32.totalorder %v10708_v49, 0  ;;  %v7437_v58 = vpop.f32.mrf.mxu1 }
 0x418   : > { %vm6770_vm13 = vcmp.lt.s32.totalorder %v6769_v54, 0  ;;  %v10910_v7 = vmul.u32.u64.low %v10865_v55, %v5258_v0  ;;  %v10911_v23 = vmul.u32.u64.high %v10865_v55, %v5258_v0, %v10910_v7  ;;  %v4988_v27 = vsub.s32 4, %v10869_v6 }
 0x419   : > { %v4973_v53 = vsel %vm6770_vm13, 0, %v6769_v54  ;;  %v5118_v46 = vadd.s32 1, %v6775_v18  ;;  %v5098_v45 = vand.u32 3, %v5094_v2  ;;  %v4958_v59 = vadd.s32 %v10827_v5, %v10838_v61 }
 0x41a   : > { %v4974_v24 = vsub.s32 32, %v4973_v53  ;;  %v4978_v12 = vsub.s32 4294967266, %v4973_v53  ;;  %v5266_v36 = vmul.u32 %v10865_v55, %v5250_v56  ;;  %v5269_v28 = vadd.s32 1, %v10905_v1 }
 0x41b   : > { %v5108_v51 = vand.u32 2147483647, %v10867_v29  ;;  %vm5119_vm15 = vcmp.gt.s32.totalorder %v5118_v46, 0  ;;  %v4975_v39 = vshll.u32 %v10884_v33, %v4973_v53  ;;  %vm5268_vm1 = vc.u32 %v10911_v23, %v10904_v15 }
 0x41c   : > { %v4976_v20 = vshrl.u32 %v4958_v59, %v4974_v24  ;;  %v4979_v19 = vadd.s32 127, %v4978_v12  ;;  %vm5097_vm0 = vweird.f32 %v10665_v37  ;;  %v4989_v5 = vsel %vm4904_vm14, %v4988_v27, %v10869_v6 }
 0x41d   : > { %v5270_v61 = vsel %vm5268_vm1, %v5269_v28, %v10905_v1  ;;  %v5120_v55 = vsel %vm5119_vm15, %v5118_v46, 0  ;;  %vm10930_vm2 = vcmp.le.f32.partialorder %v4902_v22, 0.7853982  ;;  %vm5099_vm3 = vcmp.lt.s32.totalorder %v5098_v45, 2 }
 0x41e   : > { %v4977_v33 = vor.u32 %v4976_v20, %v4975_v39  ;;  %v4980_v35 = vshll.u32 %v4979_v19, 23  ;;  %v5271_v63 = vadd.s32 %v5270_v61, %v5266_v36  ;;  %vm5100_vm4 = vcmp.eq.s32.totalorder %v5098_v45, 0 }
 0x41f   : > { %v7758_v10 = vpop.eup %7757  ;;  %v5115_v8 = vand.u32 8388607, %v5108_v51  ;;  %v5122_v6 = vand.u32 31, %v5120_v55  ;;  %v4991_v22 = vsel %vm10930_vm2, 0, %v4989_v5  ;;  %vm5103_vm5 = vcmp.eq.s32.totalorder %v5098_v45, 2 }
 0x420   : > { %v7760_v4 = vpop.eup %7759  ;;  %v5104_v50 = vxor.u32 2147483648, %v7758_v10  ;;  %v4981_v38 = vor.u32 4788187, %v4980_v35  ;;  %v5272_v42 = vadd.s32 536870912, %v5271_v63  ;;  %v2061_v17 = vadd.f32 %v7375_v11, %v12280_v3 }
 0x421   : > { %v5101_v14 = vxor.u32 2147483648, %v7760_v4  ;;  %v5123_v57 = vsub.s32 32, %v5122_v6  ;;  %v4984_v60 = vcvt.s32.f32 %v4977_v33  ;;  %v10942_v44 = vand.u32 3, %v4991_v22 }
 0x422   : > { %v5105_v41 = vsel %vm5103_vm5, %v5104_v50, %v7760_v4  ;;  %v4982_v43 = vand.u32 2147483647, %v4981_v38  ;;  %v10939_v25 = vshrl.u32 %v5272_v42, 30  ;;  %v5116_v47 = vor.u32 8388608, %v5115_v8 }
 0x423   : > { %v5102_v9 = vsel %vm5100_vm4, %v7758_v10, %v5101_v14  ;;  %v5126_v26 = vshrl.u32 %v12212_v31, %v5123_v57  ;;  %v5129_v40 = vshrl.u32 %v12213_v52, %v5123_v57  ;;  %v5125_v1 = vshll.u32 %v12211_v62, %v5122_v6 }
 0x424   : > { %v5106_v30 = vsel %vm5099_vm3, %v5102_v9, %v5105_v41  ;;  %v4985_v2 = vmul.f32 %v4984_v60, %v4982_v43  ;;  %v5274_v54 = vshll.u32 %v10939_v25, 30  ;;  %v5132_v18 = vshrl.u32 %v12214_v48, %v5123_v57 }
 0x425   : > { %v5107_v0 = vsel %vm5097_vm0, nan, %v5106_v30  ;;  %v10952_v56 = vadd.f32 %v7437_v58, %v2061_v17  ;;  %v5121_v27 = vshrl.u32 %v5120_v55, 5  ;;  %v5128_v46 = vshll.u32 %v12212_v31, %v5122_v6 }
 0x426   : > { %6575 = vst [vmem:[%s9140_s30 + $0xc8] sm:$0xff] %v5107_v0  ;;  %v4986_v7 = vxor.u32 2147483648, %v4985_v2  ;;  %v10955_v53 = vsub.s32 %v5271_v63, %v5274_v54  ;;  %v5127_v45 = vor.u32 %v5126_v26, %v5125_v1  ;;  %v5131_v59 = vshll.u32 %v12213_v52, %v5122_v6 }
 0x427   : > { %v5134_v24 = vshll.u32 %v12214_v48, %v5122_v6  ;;  %v5135_v37 = vshrl.u32 %v12215_v21, %v5123_v57  ;;  %v5130_v28 = vor.u32 %v5129_v40, %v5128_v46  ;;  %v5138_v39 = vshrl.u32 %v12216_v32, %v5123_v57 }
 0x428   : > { %v4987_v12 = vsel %vm4904_vm14, %v4986_v7, %v4985_v2  ;;  %v5277_v36 = vsub.s32 0, %v10955_v53  ;;  %v5133_v19 = vor.u32 %v5132_v18, %v5131_v59  ;;  %v5137_v61 = vshll.u32 %v12215_v21, %v5122_v6 }
 0x429   : > { %v4990_v20 = vsel %vm10930_vm2, %v10708_v49, %v4987_v12  ;;  %v5136_v5 = vor.u32 %v5135_v37, %v5134_v24  ;;  %v5156_v33 = vshll.u32 %v5116_v47, 8  ;;  %v5420_v35 = vand.u32 2139095040, %v10952_v56  ;;  %v2054_v37 = vpop.f32.mrf.mxu0 }
 0x42a   : > { %7761 = vcosq.f32 %v4990_v20  ;;  %v6780_v55 = vmin.u32 %v5277_v36, %v10955_v53  ;;  %v5124_v63 = vshrl.u32 %v12211_v62, %v5123_v57  ;;  %v5139_v11 = vor.u32 %v5138_v39, %v5137_v61 }
 0x42b   : > { %7763 = vsinq.f32 %v4990_v20  ;;  %vm5140_vm6 = vcmp.lt.s32.totalorder %v5121_v27, 1  ;;  %vm5142_vm7 = vcmp.lt.s32.totalorder %v5121_v27, 3  ;;  %vm5143_vm8 = vcmp.lt.s32.totalorder %v5121_v27, 4 }
 0x42c   : > { %v5279_v10 = vclz %v6780_v55  ;;  %v5148_v16 = vsel %vm5140_vm6, %v5127_v45, %v5130_v28  ;;  %v5145_v8 = vsel %vm5143_vm8, %v5133_v19, 2102212464  ;;  %v5149_v4 = vsel %vm5143_vm8, %v5136_v5, 920167782 }
 0x42d   : > { %v5152_v50 = vsel %vm5140_vm6, %v5130_v28, %v5133_v19  ;;  %v5153_v38 = vsel %vm5143_vm8, %v5139_v11, 1326507024  ;;  %vm5141_vm9 = vcmp.lt.s32.totalorder %v5121_v27, 2  ;;  %v5150_v22 = vsel %vm5142_vm7, %v5133_v19, %v5149_v4 }
 0x42e   : > { %v6781_v6 = vadd.s32 4294967294, %v5279_v10  ;;  %v5154_v42 = vsel %vm5142_vm7, %v5136_v5, %v5153_v38  ;;  %v5144_v14 = vsel %vm5140_vm6, %v5124_v63, %v5127_v45  ;;  %v5151_v3 = vsel %vm5141_vm9, %v5148_v16, %v5150_v22 }
 0x42f   : > { %v5155_v57 = vsel %vm5141_vm9, %v5152_v50, %v5154_v42  ;;  %v5421_v17 = vshrl.u32 %v5420_v35, 23  ;;  %v5146_v41 = vsel %vm5142_vm7, %v5130_v28, %v5145_v8  ;;  %vm5213_vm11 = vcmp.lt.s32.totalorder %v10778_v13, 0  ;;  %v12283_v35 = vld [vmem:[#allocation12_spill] sm:$0xff] }
 0x430   : > { %vm6782_vm10 = vcmp.lt.s32.totalorder %v6781_v6, 0  ;;  %v10977_v43 = vmul.u32.u64.low %v5156_v33, %v5155_v57  ;;  %v10978_v60 = vmul.u32.u64.high %v5156_v33, %v5155_v57, %v10977_v43  ;;  %v5267_v2 = vadd.s32 %v10904_v15, %v10911_v23 }
 0x431   : > { %v5282_v9 = vsel %vm6782_vm10, 0, %v6781_v6  ;;  %v10980_v47 = vmul.u32.u64.low %v5156_v33, %v5151_v3  ;;  %v10981_v26 = vmul.u32.u64.high %v5156_v33, %v5151_v3, %v10980_v47  ;;  %v6787_v30 = vadd.s32 4294967169, %v5421_v17 }
 0x432   : > { %v5283_v54 = vsub.s32 32, %v5282_v9  ;;  %v5287_v40 = vsub.s32 4294967266, %v5282_v9  ;;  %v5297_v58 = vsub.s32 4, %v10939_v25  ;;  %v5147_v0 = vsel %vm5141_vm9, %v5144_v14, %v5146_v41 }
 0x433   : > { %v5417_v1 = vand.u32 2147483647, %v10952_v56  ;;  %v5427_v18 = vadd.s32 1, %v6787_v30  ;;  %vm4994_vm12 = vweird.f32 %v10708_v49  ;;  %v5284_v7 = vshll.u32 %v10955_v53, %v5282_v9 }
 0x434   : > { %v5285_v46 = vshrl.u32 %v5267_v2, %v5283_v54  ;;  %v5288_v45 = vadd.s32 127, %v5287_v40  ;;  %vm5165_vm13 = vc.u32 %v10978_v60, %v10980_v47  ;;  %vm4996_vm14 = vcmp.lt.s32.totalorder %v10942_v44, 2 }
 0x435   : > { %vm10997_vm15 = vcmp.le.f32.partialorder %v5211_v34, 0.7853982  ;;  %v5166_v23 = vadd.s32 1, %v10981_v26  ;;  %vm5428_vm1 = vcmp.gt.s32.totalorder %v5427_v18, 0  ;;  %v5163_v24 = vmul.u32 %v5156_v33, %v5147_v0 }
 0x436   : > { %v5286_v27 = vor.u32 %v5285_v46, %v5284_v7  ;;  %v5289_v59 = vshll.u32 %v5288_v45, 23  ;;  %v5429_v53 = vsel %vm5428_vm1, %v5427_v18, 0  ;;  %vm4997_vm0 = vcmp.eq.s32.totalorder %v10942_v44, 0 }
 0x437   : > { %v7762_v12 = vpop.eup %7761  ;;  %v5167_v36 = vsel %vm5165_vm13, %v5166_v23, %v10981_v26  ;;  %v5424_v28 = vand.u32 8388607, %v5417_v1  ;;  %v5431_v34 = vand.u32 31, %v5429_v53  ;;  %v5298_v5 = vsel %vm5213_vm11, %v5297_v58, %v10939_v25 }
 0x438   : > { %v7764_v39 = vpop.eup %7763  ;;  %v5001_v20 = vxor.u32 2147483648, %v7762_v12  ;;  %v5290_v19 = vor.u32 4788187, %v5289_v59  ;;  %v5168_v61 = vadd.s32 %v5167_v36, %v5163_v24  ;;  %vm5000_vm2 = vcmp.eq.s32.totalorder %v10942_v44, 2 }
 0x439   : > { %v4998_v55 = vxor.u32 2147483648, %v7764_v39  ;;  %v5432_v33 = vsub.s32 32, %v5431_v34  ;;  %v2055_v63 = vadd.f32 %v2054_v37, %v12283_v35  ;;  %v5293_v16 = vcvt.s32.f32 %v5286_v27  ;;  %v2360_v27 = vpop.f32.mrf.mxu1 }
 0x43a   : > { %v5002_v11 = vsel %vm5000_vm2, %v5001_v20, %v7764_v39  ;;  %v5291_v10 = vand.u32 2147483647, %v5290_v19  ;;  %v5169_v8 = vadd.s32 536870912, %v5168_v61  ;;  %v5300_v50 = vsel %vm10997_vm15, 0, %v5298_v5 }
 0x43b   : > { %v4999_v4 = vsel %vm4997_vm0, %v7762_v12, %v4998_v55  ;;  %v5425_v38 = vor.u32 8388608, %v5424_v28  ;;  %v5435_v25 = vshrl.u32 %v12212_v31, %v5432_v33  ;;  %v5438_v14 = vshrl.u32 %v12213_v52, %v5432_v33  ;;  %v7378_v28 = vpop.f32.mrf.mxu0 }
 0x43c   : > { %v5003_v6 = vsel %vm4996_vm14, %v4999_v4, %v5002_v11  ;;  %v5294_v22 = vmul.f32 %v5293_v16, %v5291_v10  ;;  %v11018_v42 = vshrl.u32 %v5169_v8, 30  ;;  %v5430_v57 = vshrl.u32 %v5429_v53, 5  ;;  %v12284_v11 = vld [vmem:[#allocation13_spill] sm:$0xff] }
 0x43d   : > { %v5004_v3 = vsel %vm4994_vm12, nan, %v5003_v6  ;;  %v5434_v17 = vshll.u32 %v12211_v62, %v5431_v34  ;;  %v5441_v41 = vshrl.u32 %v12214_v48, %v5432_v33  ;;  %v5437_v44 = vshll.u32 %v12212_v31, %v5431_v34 }
 0x43e   : > { %6574 = vst [vmem:[%s9140_s30 + $0xc0] sm:$0xff] %v5004_v3  ;;  %v5295_v43 = vxor.u32 2147483648, %v5294_v22  ;;  %v5171_v9 = vshll.u32 %v11018_v42, 30  ;;  %v5440_v26 = vshll.u32 %v12213_v52, %v5431_v34  ;;  %v5443_v30 = vshll.u32 %v12214_v48, %v5431_v34 }
 0x43f   : > { %v5444_v2 = vshrl.u32 %v12215_v21, %v5432_v33  ;;  %v5446_v49 = vshll.u32 %v12215_v21, %v5431_v34  ;;  %v5447_v54 = vshrl.u32 %v12216_v32, %v5432_v33  ;;  %v5436_v0 = vor.u32 %v5435_v25, %v5434_v17  ;;  %v7440_v17 = vpop.f32.mrf.mxu1 }
 0x440   : > { %v5296_v40 = vsel %vm5213_vm11, %v5295_v43, %v5294_v22  ;;  %v11035_v58 = vsub.s32 %v5168_v61, %v5171_v9  ;;  %v5439_v18 = vor.u32 %v5438_v14, %v5437_v44  ;;  %v5442_v46 = vor.u32 %v5441_v41, %v5440_v26 }
 0x441   : > { %v5299_v7 = vsel %vm10997_vm15, %v10778_v13, %v5296_v40  ;;  %v5445_v45 = vor.u32 %v5444_v2, %v5443_v30  ;;  %v5448_v23 = vor.u32 %v5447_v54, %v5446_v49  ;;  %v11040_v59 = vand.u32 3, %v5300_v50 }
 0x442   : > { %7765 = vcosq.f32 %v5299_v7  ;;  %v5174_v24 = vsub.s32 0, %v11035_v58  ;;  %v11043_v53 = vadd.f32 %v2360_v27, %v2055_v63  ;;  %v5433_v37 = vshrl.u32 %v12211_v62, %v5432_v33 }
 0x443   : > { %7767 = vsinq.f32 %v5299_v7  ;;  %vm5449_vm3 = vcmp.lt.s32.totalorder %v5430_v57, 1  ;;  %v5465_v12 = vshll.u32 %v5425_v38, 8  ;;  %vm5451_vm4 = vcmp.lt.s32.totalorder %v5430_v57, 3 }
 0x444   : > { %v6776_v36 = vmin.u32 %v5174_v24, %v11035_v58  ;;  %vm5452_vm5 = vcmp.lt.s32.totalorder %v5430_v57, 4  ;;  %v5457_v15 = vsel %vm5449_vm3, %v5436_v0, %v5439_v18  ;;  %v5461_v20 = vsel %vm5449_vm3, %v5439_v18, %v5442_v46 }
 0x445   : > { %v5454_v34 = vsel %vm5452_vm5, %v5442_v46, 2102212464  ;;  %v5458_v39 = vsel %vm5452_vm5, %v5445_v45, 920167782  ;;  %v5462_v19 = vsel %vm5452_vm5, %v5448_v23, 1326507024  ;;  %v5453_v35 = vsel %vm5449_vm3, %v5433_v37, %v5436_v0 }
 0x446   : > { %v5176_v5 = vclz %v6776_v36  ;;  %vm5450_vm6 = vcmp.lt.s32.totalorder %v5430_v57, 2  ;;  %v5459_v61 = vsel %vm5451_vm4, %v5442_v46, %v5458_v39  ;;  %v5463_v55 = vsel %vm5451_vm4, %v5445_v45, %v5462_v19 }
 0x447   : > { %v5460_v33 = vsel %vm5450_vm6, %v5457_v15, %v5459_v61  ;;  %v5464_v63 = vsel %vm5450_vm6, %v5461_v20, %v5463_v55  ;;  %v2073_v10 = vadd.f32 %v7378_v28, %v12284_v11  ;;  %v5455_v8 = vsel %vm5451_vm4, %v5439_v18, %v5454_v34 }
 0x448   : > { %v6777_v16 = vadd.s32 4294967294, %v5176_v5  ;;  %v11053_v4 = vmul.u32.u64.low %v5465_v12, %v5464_v63  ;;  %v11054_v50 = vmul.u32.u64.high %v5465_v12, %v5464_v63, %v11053_v4  ;;  %v5194_v38 = vsub.s32 4, %v11018_v42 }
 0x449   : > { %v11057_v25 = vmul.u32.u64.low %v5465_v12, %v5460_v33  ;;  %v11058_v6 = vmul.u32.u64.high %v5465_v12, %v5460_v33, %v11057_v25  ;;  %v5317_v22 = vand.u32 2139095040, %v11043_v53  ;;  %vm11063_vm7 = vcmp.le.f32.partialorder %v5108_v51, 0.7853982 }
 0x44a   : > { %vm5110_vm8 = vcmp.lt.s32.totalorder %v10867_v29, 0  ;;  %vm6778_vm9 = vcmp.lt.s32.totalorder %v6777_v16, 0  ;;  %v5314_v3 = vand.u32 2147483647, %v11043_v53  ;;  %v5456_v43 = vsel %vm5450_vm6, %v5453_v35, %v5455_v8 }
 0x44b   : > { %v5179_v41 = vsel %vm6778_vm9, 0, %v6777_v16  ;;  %v5318_v9 = vshrl.u32 %v5317_v22, 23  ;;  %v11070_v44 = vadd.f32 %v7440_v17, %v2073_v10  ;;  %vm5303_vm10 = vweird.f32 %v10778_v13 }
 0x44c   : > { %vm5305_vm11 = vcmp.lt.s32.totalorder %v11040_v59, 2  ;;  %v5164_v51 = vadd.s32 %v10980_v47, %v10978_v60  ;;  %v5180_v26 = vsub.s32 32, %v5179_v41  ;;  %v5184_v30 = vsub.s32 4294967266, %v5179_v41 }
 0x44d   : > { %v5195_v2 = vsel %vm5110_vm8, %v5194_v38, %v11018_v42  ;;  %vm5474_vm12 = vc.u32 %v11054_v50, %v11057_v25  ;;  %v5475_v57 = vadd.s32 1, %v11058_v6  ;;  %v6783_v49 = vadd.s32 4294967169, %v5318_v9 }
 0x44e   : > { %v5181_v54 = vshll.u32 %v11035_v58, %v5179_v41  ;;  %v5182_v40 = vshrl.u32 %v5164_v51, %v5180_v26  ;;  %v5185_v0 = vadd.s32 127, %v5184_v30  ;;  %v5472_v18 = vmul.u32 %v5465_v12, %v5456_v43 }
 0x44f   : > { %v7766_v7 = vpop.eup %7765  ;;  %v5476_v46 = vsel %vm5474_vm12, %v5475_v57, %v11058_v6  ;;  %v5321_v60 = vand.u32 8388607, %v5314_v3  ;;  %v5324_v47 = vadd.s32 1, %v6783_v49  ;;  %v5626_v45 = vand.u32 2139095040, %v11070_v44 }
 0x450   : > { %v7768_v42 = vpop.eup %7767  ;;  %v5310_v23 = vxor.u32 2147483648, %v7766_v7  ;;  %v5183_v27 = vor.u32 %v5182_v40, %v5181_v54  ;;  %v5186_v24 = vshll.u32 %v5185_v0, 23  ;;  %v5477_v37 = vadd.s32 %v5476_v46, %v5472_v18 }
 0x451   : > { %vm5306_vm13 = vcmp.eq.s32.totalorder %v11040_v59, 0  ;;  %v5307_v58 = vxor.u32 2147483648, %v7768_v42  ;;  %vm5309_vm14 = vcmp.eq.s32.totalorder %v11040_v59, 2  ;;  %vm5325_vm15 = vcmp.gt.s32.totalorder %v5324_v47, 0 }
 0x452   : > { %v5311_v12 = vsel %vm5309_vm14, %v5310_v23, %v7768_v42  ;;  %v5187_v36 = vor.u32 4788187, %v5186_v24  ;;  %v5197_v15 = vsel %vm11063_vm7, 0, %v5195_v2  ;;  %v5478_v28 = vadd.s32 536870912, %v5477_v37 }
 0x453   : > { %v5308_v34 = vsel %vm5306_vm13, %v7766_v7, %v5307_v58  ;;  %v5322_v39 = vor.u32 8388608, %v5321_v60  ;;  %v5326_v20 = vsel %vm5325_vm15, %v5324_v47, 0  ;;  %v5627_v19 = vshrl.u32 %v5626_v45, 23 }
 0x454   : > { %v5312_v5 = vsel %vm5305_vm11, %v5308_v34, %v5311_v12  ;;  %v5188_v61 = vand.u32 2147483647, %v5187_v36  ;;  %v5190_v55 = vcvt.s32.f32 %v5183_v27  ;;  %v11092_v35 = vshrl.u32 %v5478_v28, 30 }
 0x455   : > { %v5313_v33 = vsel %vm5303_vm10, nan, %v5312_v5  ;;  %v5328_v63 = vand.u32 31, %v5326_v20  ;;  %v11097_v10 = vand.u32 3, %v5197_v15  ;;  %v5473_v8 = vadd.s32 %v11057_v25, %v11054_v50 }
 0x456   : > { %6577 = vst [vmem:[%s9140_s30 + $0xd8] sm:$0xff] %v5313_v33  ;;  %v5191_v11 = vmul.f32 %v5190_v55, %v5188_v61  ;;  %v5480_v16 = vshll.u32 %v11092_v35, 30  ;;  %v11101_v38 = vshll.u32 %v5322_v39, 8  ;;  %v6795_v59 = vadd.s32 4294967169, %v5627_v19 }
 0x457   : > { %v5329_v4 = vsub.s32 32, %v5328_v63  ;;  %v5327_v17 = vshrl.u32 %v5326_v20, 5  ;;  %v5331_v13 = vshll.u32 %v12211_v62, %v5328_v63  ;;  %v5334_v43 = vshll.u32 %v12212_v31, %v5328_v63 }
 0x458   : > { %v5192_v6 = vxor.u32 2147483648, %v5191_v11  ;;  %v11103_v22 = vsub.s32 %v5477_v37, %v5480_v16  ;;  %v5337_v51 = vshll.u32 %v12213_v52, %v5328_v63  ;;  %v5340_v30 = vshll.u32 %v12214_v48, %v5328_v63 }
 0x459   : > { %v5332_v41 = vshrl.u32 %v12212_v31, %v5329_v4  ;;  %v5335_v9 = vshrl.u32 %v12213_v52, %v5329_v4  ;;  %v5338_v26 = vshrl.u32 %v12214_v48, %v5329_v4  ;;  %v5341_v54 = vshrl.u32 %v12215_v21, %v5329_v4 }
 0x45a   : > { %v5193_v50 = vsel %vm5110_vm8, %v5192_v6, %v5191_v11  ;;  %v5483_v25 = vsub.s32 0, %v11103_v22  ;;  %v5623_v0 = vand.u32 2147483647, %v11070_v44  ;;  %v5633_v18 = vadd.s32 1, %v6795_v59 }
 0x45b   : > { %v5196_v2 = vsel %vm11063_vm7, %v10867_v29, %v5193_v50  ;;  %v5333_v57 = vor.u32 %v5332_v41, %v5331_v13  ;;  %v5336_v49 = vor.u32 %v5335_v9, %v5334_v43  ;;  %v5339_v7 = vor.u32 %v5338_v26, %v5337_v51  ;;  %v2066_v9 = vpop.f32.mrf.mxu0 }
 0x45c   : > { %7769 = vcosq.f32 %v5196_v2  ;;  %v6788_v40 = vmin.u32 %v5483_v25, %v11103_v22  ;;  %v5342_v46 = vor.u32 %v5341_v54, %v5340_v30  ;;  %vm5346_vm1 = vcmp.lt.s32.totalorder %v5327_v17, 1  ;;  %v12287_v30 = vld [vmem:[#allocation14_spill] sm:$0xff] }
 0x45d   : > { %7771 = vsinq.f32 %v5196_v2  ;;  %v5330_v47 = vshrl.u32 %v12211_v62, %v5329_v4  ;;  %v5343_v14 = vshll.u32 %v12215_v21, %v5328_v63  ;;  %v5344_v45 = vshrl.u32 %v12216_v32, %v5329_v4 }
 0x45e   : > { %v5485_v60 = vclz %v6788_v40  ;;  %vm5347_vm0 = vcmp.lt.s32.totalorder %v5327_v17, 2  ;;  %vm5348_vm2 = vcmp.lt.s32.totalorder %v5327_v17, 3  ;;  %vm5349_vm3 = vcmp.lt.s32.totalorder %v5327_v17, 4 }
 0x45f   : > { %v5354_v42 = vsel %vm5346_vm1, %v5333_v57, %v5336_v49  ;;  %v5345_v27 = vor.u32 %v5344_v45, %v5343_v14  ;;  %v5351_v24 = vsel %vm5349_vm3, %v5339_v7, 2102212464  ;;  %v5355_v37 = vsel %vm5349_vm3, %v5342_v46, 920167782 }
 0x460   : > { %v6789_v23 = vadd.s32 4294967294, %v5485_v60  ;;  %v5350_v58 = vsel %vm5346_vm1, %v5330_v47, %v5333_v57  ;;  %v5352_v12 = vsel %vm5348_vm2, %v5336_v49, %v5351_v24  ;;  %v5356_v36 = vsel %vm5348_vm2, %v5339_v7, %v5355_v37 }
 0x461   : > { %v5358_v15 = vsel %vm5346_vm1, %v5336_v49, %v5339_v7  ;;  %v5357_v28 = vsel %vm5347_vm0, %v5354_v42, %v5356_v36  ;;  %v5359_v34 = vsel %vm5349_vm3, %v5345_v27, 1326507024  ;;  %vm5634_vm5 = vcmp.gt.s32.totalorder %v5633_v18, 0 }
 0x462   : > { %vm6790_vm4 = vcmp.lt.s32.totalorder %v6789_v23, 0  ;;  %v5360_v20 = vsel %vm5348_vm2, %v5342_v46, %v5359_v34  ;;  %v11132_v19 = vmul.u32.u64.low %v11101_v38, %v5357_v28  ;;  %v11133_v5 = vmul.u32.u64.high %v11101_v38, %v5357_v28, %v11132_v19 }
 0x463   : > { %v5488_v39 = vsel %vm6790_vm4, 0, %v6789_v23  ;;  %v5361_v33 = vsel %vm5347_vm0, %v5358_v15, %v5360_v20  ;;  %v11139_v63 = vand.u32 8388607, %v5623_v0  ;;  %v5353_v11 = vsel %vm5347_vm0, %v5350_v58, %v5352_v12 }
 0x464   : > { %v5489_v61 = vsub.s32 32, %v5488_v39  ;;  %v5493_v55 = vsub.s32 4294967266, %v5488_v39  ;;  %v11143_v16 = vmul.u32.u64.low %v11101_v38, %v5361_v33  ;;  %v11144_v4 = vmul.u32.u64.high %v11101_v38, %v5361_v33, %v11143_v16 }
 0x465   : > { %v5635_v59 = vsel %vm5634_vm5, %v5633_v18, 0  ;;  %vm5200_vm6 = vweird.f32 %v10867_v29  ;;  %v5490_v6 = vshll.u32 %v11103_v22, %v5488_v39  ;;  %vm5202_vm7 = vcmp.lt.s32.totalorder %v11097_v10, 2 }
 0x466   : > { %v5491_v13 = vshrl.u32 %v5473_v8, %v5489_v61  ;;  %v5494_v41 = vadd.s32 127, %v5493_v55  ;;  %v5637_v43 = vand.u32 31, %v5635_v59  ;;  %vm5419_vm8 = vcmp.lt.s32.totalorder %v10952_v56, 0 }
 0x467   : > { %v5503_v17 = vsub.s32 4, %v11092_v35  ;;  %v5372_v51 = vadd.s32 1, %v11133_v5  ;;  %vm5203_vm9 = vcmp.eq.s32.totalorder %v11097_v10, 0  ;;  %vm5206_vm10 = vcmp.eq.s32.totalorder %v11097_v10, 2 }
 0x468   : > { %v5492_v50 = vor.u32 %v5491_v13, %v5490_v6  ;;  %v5495_v25 = vshll.u32 %v5494_v41, 23  ;;  %v5369_v8 = vmul.u32 %v11101_v38, %v5353_v11  ;;  %vm5371_vm11 = vc.u32 %v11144_v4, %v11132_v19 }
 0x469   : > { %v7770_v26 = vpop.eup %7769  ;;  %v5638_v22 = vsub.s32 32, %v5637_v43  ;;  %v2067_v2 = vadd.f32 %v2066_v9, %v12287_v30  ;;  %v5373_v40 = vsel %vm5371_vm11, %v5372_v51, %v11133_v5  ;;  %v5631_v18 = vor.u32 8388608, %v11139_v63  ;;  %v2372_v9 = vpop.f32.mrf.mxu1 }
 0x46a   : > { %v7772_v57 = vpop.eup %7771  ;;  %v5207_v49 = vxor.u32 2147483648, %v7770_v26  ;;  %v5496_v54 = vor.u32 4788187, %v5495_v25  ;;  %v11163_v46 = vsel %vm5419_vm8, %v5503_v17, %v11092_v35  ;;  %v5374_v38 = vadd.s32 %v5373_v40, %v5369_v8 }
 0x46b   : > { %v5204_v7 = vxor.u32 2147483648, %v7772_v57  ;;  %v11165_v60 = vshrl.u32 %v5635_v59, 5  ;;  %v5499_v45 = vcvt.s32.f32 %v5492_v50  ;;  %v5640_v42 = vshll.u32 %v12211_v62, %v5637_v43 }
 0x46c   : > { %v5208_v47 = vsel %vm5206_vm10, %v5207_v49, %v7772_v57  ;;  %v5497_v14 = vand.u32 2147483647, %v5496_v54  ;;  %v5375_v27 = vadd.s32 536870912, %v5374_v38  ;;  %v5641_v24 = vshrl.u32 %v12212_v31, %v5638_v22 }
 0x46d   : > { %v5205_v23 = vsel %vm5203_vm9, %v7770_v26, %v5204_v7  ;;  %v5647_v35 = vshrl.u32 %v12214_v48, %v5638_v22  ;;  %v5643_v12 = vshll.u32 %v12212_v31, %v5637_v43  ;;  %v5644_v36 = vshrl.u32 %v12213_v52, %v5638_v22 }
 0x46e   : > { %v5209_v37 = vsel %vm5202_vm7, %v5205_v23, %v5208_v47  ;;  %v5500_v58 = vmul.f32 %v5499_v45, %v5497_v14  ;;  %v5376_v28 = vshrl.u32 %v5375_v27, 30  ;;  %v5646_v34 = vshll.u32 %v12213_v52, %v5637_v43  ;;  %v7381_v14 = vpop.f32.mrf.mxu0 }
 0x46f   : > { %v5210_v15 = vsel %vm5200_vm6, nan, %v5209_v37  ;;  %v5650_v39 = vshrl.u32 %v12215_v21, %v5638_v22  ;;  %v5649_v5 = vshll.u32 %v12214_v48, %v5637_v43  ;;  %v5652_v10 = vshll.u32 %v12215_v21, %v5637_v43 }
 0x470   : > { %6576 = vst [vmem:[%s9140_s30 + $0xd0] sm:$0xff] %v5210_v15  ;;  %v5501_v20 = vxor.u32 2147483648, %v5500_v58  ;;  %v5653_v61 = vshrl.u32 %v12216_v32, %v5638_v22  ;;  %vm11188_vm12 = vcmp.le.f32.partialorder %v5417_v1, 0.7853982  ;;  %v5377_v29 = vshll.u32 %v5376_v28, 30 }
 0x471   : > { %v5642_v33 = vor.u32 %v5641_v24, %v5640_v42  ;;  %v5648_v63 = vor.u32 %v5647_v35, %v5646_v34  ;;  %v5645_v16 = vor.u32 %v5644_v36, %v5643_v12  ;;  %v5651_v59 = vor.u32 %v5650_v39, %v5649_v5  ;;  %v12292_v36 = vld [vmem:[#allocation15_spill] sm:$0xff] }
 0x472   : > { %v5502_v11 = vsel %vm5419_vm8, %v5501_v20, %v5500_v58  ;;  %v5654_v6 = vor.u32 %v5653_v61, %v5652_v10  ;;  %v5506_v1 = vsel %vm11188_vm12, 0, %v11163_v46  ;;  %v11200_v41 = vsub.s32 %v5374_v38, %v5377_v29 }
 0x473   : > { %v5505_v13 = vsel %vm11188_vm12, %v10952_v56, %v5502_v11  ;;  %v5671_v43 = vshll.u32 %v5631_v18, 8  ;;  %v5639_v17 = vshrl.u32 %v12211_v62, %v5638_v22  ;;  %vm5658_vm13 = vcmp.lt.s32.totalorder %v11165_v60, 4 }
 0x474   : > { %7773 = vcosq.f32 %v5505_v13  ;;  %v11204_v51 = vadd.f32 %v2372_v9, %v2067_v2  ;;  %v5380_v50 = vsub.s32 0, %v11200_v41  ;;  %vm5655_vm14 = vcmp.lt.s32.totalorder %v11165_v60, 1 }
 0x475   : > { %7775 = vsinq.f32 %v5505_v13  ;;  %v5660_v25 = vsel %vm5658_vm13, %v5648_v63, 2102212464  ;;  %v5663_v26 = vsel %vm5655_vm14, %v5642_v33, %v5645_v16  ;;  %v5664_v8 = vsel %vm5658_vm13, %v5651_v59, 920167782 }
 0x476   : > { %v5667_v30 = vsel %vm5655_vm14, %v5645_v16, %v5648_v63  ;;  %v5668_v57 = vsel %vm5658_vm13, %v5654_v6, 1326507024  ;;  %v6784_v49 = vmin.u32 %v5380_v50, %v11200_v41  ;;  %v5400_v54 = vsub.s32 4, %v5376_v28 }
 0x477   : > { %vm5656_vm15 = vcmp.lt.s32.totalorder %v11165_v60, 2  ;;  %vm5657_vm1 = vcmp.lt.s32.totalorder %v11165_v60, 3  ;;  %v5659_v22 = vsel %vm5655_vm14, %v5639_v17, %v5642_v33  ;;  %v5523_v47 = vand.u32 2139095040, %v11204_v51 }
 0x478   : > { %v5661_v2 = vsel %vm5657_vm1, %v5645_v16, %v5660_v25  ;;  %v5665_v40 = vsel %vm5657_vm1, %v5648_v63, %v5664_v8  ;;  %v5669_v18 = vsel %vm5657_vm1, %v5651_v59, %v5668_v57  ;;  %v5382_v7 = vclz %v6784_v49 }
 0x479   : > { %v5666_v46 = vsel %vm5656_vm15, %v5663_v26, %v5665_v40  ;;  %v5670_v38 = vsel %vm5656_vm15, %v5667_v30, %v5669_v18  ;;  %vm5316_vm0 = vcmp.lt.s32.totalorder %v11043_v53, 0  ;;  %v5524_v35 = vshrl.u32 %v5523_v47, 23 }
 0x47a   : > { %v11216_v45 = vmul.u32.u64.low %v5671_v43, %v5670_v38  ;;  %v11217_v42 = vmul.u32.u64.high %v5671_v43, %v5670_v38, %v11216_v45  ;;  %v11219_v23 = vmul.u32.u64.low %v5671_v43, %v5666_v46  ;;  %v11220_v27 = vmul.u32.u64.high %v5671_v43, %v5666_v46, %v11219_v23 }
 0x47b   : > { %v6785_v24 = vadd.s32 4294967294, %v5382_v7  ;;  %v5510_v37 = vand.u32 3, %v5506_v1  ;;  %vm11226_vm2 = vcmp.le.f32.partialorder %v5314_v3, 0.7853982  ;;  %v5662_v12 = vsel %vm5656_vm15, %v5659_v22, %v5661_v2 }
 0x47c   : > { %v2085_v15 = vadd.f32 %v7381_v14, %v12292_v36  ;;  %v5370_v34 = vadd.s32 %v11132_v19, %v11144_v4  ;;  %v5401_v39 = vsel %vm5316_vm0, %v5400_v54, %v5376_v28  ;;  %v6791_v20 = vadd.s32 4294967169, %v5524_v35  ;;  %v7443_v19 = vpop.f32.mrf.mxu1 }
 0x47d   : > { %vm6786_vm3 = vcmp.lt.s32.totalorder %v6785_v24, 0  ;;  %vm5509_vm4 = vweird.f32 %v10952_v56  ;;  %vm5680_vm5 = vc.u32 %v11217_v42, %v11219_v23  ;;  %v5681_v3 = vadd.s32 1, %v11220_v27 }
 0x47e   : > { %v5385_v5 = vsel %vm6786_vm3, 0, %v6785_v24  ;;  %v5520_v60 = vand.u32 2147483647, %v11204_v51  ;;  %v5678_v55 = vmul.u32 %v5671_v43, %v5662_v12  ;;  %v5530_v29 = vadd.s32 1, %v6791_v20 }
 0x47f   : > { %v5386_v10 = vsub.s32 32, %v5385_v5  ;;  %v5390_v61 = vsub.s32 4294967266, %v5385_v5  ;;  %vm5515_vm6 = vcmp.eq.s32.totalorder %v5510_v37, 2  ;;  %v5387_v4 = vshll.u32 %v11200_v41, %v5385_v5 }
 0x480   : > { %v5682_v28 = vsel %vm5680_vm5, %v5681_v3, %v11220_v27  ;;  %v11244_v33 = vadd.f32 %v7443_v19, %v2085_v15  ;;  %vm5531_vm7 = vcmp.gt.s32.totalorder %v5530_v29, 0  ;;  %v5403_v1 = vsel %vm11226_vm2, 0, %v5401_v39 }
 0x481   : > { %v7774_v63 = vpop.eup %7773  ;;  %v5388_v11 = vshrl.u32 %v5370_v34, %v5386_v10  ;;  %v5391_v16 = vadd.s32 127, %v5390_v61  ;;  %v5683_v59 = vadd.s32 %v5682_v28, %v5678_v55  ;;  %v5527_v43 = vand.u32 8388607, %v5520_v60 }
 0x482   : > { %v7776_v6 = vpop.eup %7775  ;;  %v5516_v13 = vxor.u32 2147483648, %v7774_v63  ;;  %v5532_v9 = vsel %vm5531_vm7, %v5530_v29, 0  ;;  %vm5512_vm8 = vcmp.eq.s32.totalorder %v5510_v37, 0  ;;  %v5832_v30 = vand.u32 2139095040, %v11244_v33 }
 0x483   : > { %v5513_v17 = vxor.u32 2147483648, %v7776_v6  ;;  %v5389_v41 = vor.u32 %v5388_v11, %v5387_v4  ;;  %v5392_v50 = vshll.u32 %v5391_v16, 23  ;;  %v5684_v25 = vadd.s32 536870912, %v5683_v59 }
 0x484   : > { %v5517_v26 = vsel %vm5515_vm6, %v5516_v13, %v7776_v6  ;;  %v5534_v8 = vand.u32 31, %v5532_v9  ;;  %vm5511_vm9 = vcmp.lt.s32.totalorder %v5510_v37, 2  ;;  %v11254_v2 = vand.u32 3, %v5403_v1 }
 0x485   : > { %v5514_v57 = vsel %vm5512_vm8, %v7774_v63, %v5513_v17  ;;  %v5393_v49 = vor.u32 4788187, %v5392_v50  ;;  %v11252_v54 = vshrl.u32 %v5684_v25, 30  ;;  %v5528_v40 = vor.u32 8388608, %v5527_v43 }
 0x486   : > { %v5518_v22 = vsel %vm5511_vm9, %v5514_v57, %v5517_v26  ;;  %v5535_v18 = vsub.s32 32, %v5534_v8  ;;  %v5396_v38 = vcvt.s32.f32 %v5389_v41  ;;  %v5537_v14 = vshll.u32 %v12211_v62, %v5534_v8 }
 0x487   : > { %v5519_v7 = vsel %vm5509_vm4, nan, %v5518_v22  ;;  %v5394_v46 = vand.u32 2147483647, %v5393_v49  ;;  %v5686_v47 = vshll.u32 %v11252_v54, 30  ;;  %v5833_v24 = vshrl.u32 %v5832_v30, 23 }
 0x488   : > { %6579 = vst [vmem:[%s9140_s30 + $0xe8] sm:$0xff] %v5519_v7  ;;  %v5538_v45 = vshrl.u32 %v12212_v31, %v5535_v18  ;;  %v5541_v27 = vshrl.u32 %v12213_v52, %v5535_v18  ;;  %v5540_v12 = vshll.u32 %v12212_v31, %v5534_v8  ;;  %v5544_v56 = vshrl.u32 %v12214_v48, %v5535_v18 }
 0x489   : > { %v5397_v35 = vmul.f32 %v5396_v38, %v5394_v46  ;;  %v11263_v37 = vsub.s32 %v5683_v59, %v5686_v47  ;;  %v5533_v36 = vshrl.u32 %v5532_v9, 5  ;;  %v5543_v15 = vshll.u32 %v12213_v52, %v5534_v8 }
 0x48a   : > { %v11268_v34 = vshll.u32 %v5528_v40, 8  ;;  %v5829_v39 = vand.u32 2147483647, %v11244_v33  ;;  %v5539_v3 = vor.u32 %v5538_v45, %v5537_v14  ;;  %v5542_v10 = vor.u32 %v5541_v27, %v5540_v12 }
 0x48b   : > { %v5398_v20 = vxor.u32 2147483648, %v5397_v35  ;;  %v5689_v5 = vsub.s32 0, %v11263_v37  ;;  %v5546_v61 = vshll.u32 %v12214_v48, %v5534_v8  ;;  %v5547_v55 = vshrl.u32 %v12215_v21, %v5535_v18 }
 0x48c   : > { %v5549_v29 = vshll.u32 %v12215_v21, %v5534_v8  ;;  %v5550_v19 = vshrl.u32 %v12216_v32, %v5535_v18  ;;  %v5545_v63 = vor.u32 %v5544_v56, %v5543_v15  ;;  %v6803_v11 = vadd.s32 4294967169, %v5833_v24 }
 0x48d   : > { %v5399_v4 = vsel %vm5316_vm0, %v5398_v20, %v5397_v35  ;;  %v6796_v28 = vmin.u32 %v5689_v5, %v11263_v37  ;;  %v5536_v59 = vshrl.u32 %v12211_v62, %v5535_v18  ;;  %v5548_v6 = vor.u32 %v5547_v55, %v5546_v61 }
 0x48e   : > { %v5402_v16 = vsel %vm11226_vm2, %v11043_v53, %v5399_v4  ;;  %v5551_v13 = vor.u32 %v5550_v19, %v5549_v29  ;;  %vm5552_vm10 = vcmp.lt.s32.totalorder %v5533_v36, 1  ;;  %vm5553_vm11 = vcmp.lt.s32.totalorder %v5533_v36, 2 }
 0x48f   : > { %7777 = vcosq.f32 %v5402_v16  ;;  %v5691_v1 = vclz %v6796_v28  ;;  %vm5554_vm12 = vcmp.lt.s32.totalorder %v5533_v36, 3  ;;  %vm5555_vm13 = vcmp.lt.s32.totalorder %v5533_v36, 4 }
 0x490   : > { %7779 = vsinq.f32 %v5402_v16  ;;  %v5560_v43 = vsel %vm5552_vm10, %v5539_v3, %v5542_v10  ;;  %v5557_v17 = vsel %vm5555_vm13, %v5545_v63, 2102212464  ;;  %v5561_v41 = vsel %vm5555_vm13, %v5548_v6, 920167782 }
 0x491   : > { %v6797_v9 = vadd.s32 4294967294, %v5691_v1  ;;  %v5564_v50 = vsel %vm5552_vm10, %v5542_v10, %v5545_v63  ;;  %v5556_v25 = vsel %vm5552_vm10, %v5536_v59, %v5539_v3  ;;  %v5562_v26 = vsel %vm5554_vm12, %v5545_v63, %v5561_v41  ;;  %v12295_v63 = vld [vmem:[#allocation16_spill] sm:$0xff] }
 0x492   : > { %v5565_v58 = vsel %vm5555_vm13, %v5551_v13, 1326507024  ;;  %v5839_v8 = vadd.s32 1, %v6803_v11  ;;  %v5558_v30 = vsel %vm5554_vm12, %v5542_v10, %v5557_v17  ;;  %v5563_v57 = vsel %vm5553_vm11, %v5560_v43, %v5562_v26  ;;  %v2078_v10 = vpop.f32.mrf.mxu0 }
 0x493   : > { %vm6798_vm14 = vcmp.lt.s32.totalorder %v6797_v9, 0  ;;  %v5566_v49 = vsel %vm5554_vm12, %v5548_v6, %v5565_v58  ;;  %v11286_v18 = vmul.u32.u64.low %v11268_v34, %v5563_v57  ;;  %v11287_v7 = vmul.u32.u64.high %v11268_v34, %v5563_v57, %v11286_v18 }
 0x494   : > { %v5694_v22 = vsel %vm6798_vm14, 0, %v6797_v9  ;;  %v5567_v40 = vsel %vm5553_vm11, %v5564_v50, %v5566_v49  ;;  %v5679_v46 = vadd.s32 %v11219_v23, %v11217_v42  ;;  %v5709_v14 = vsub.s32 4, %v11252_v54 }
 0x495   : > { %v5695_v38 = vsub.s32 32, %v5694_v22  ;;  %v5699_v47 = vsub.s32 4294967266, %v5694_v22  ;;  %v5559_v45 = vsel %vm5553_vm11, %v5556_v25, %v5558_v30  ;;  %vm5840_vm15 = vcmp.gt.s32.totalorder %v5839_v8, 0 }
 0x496   : > { %v11295_v27 = vmul.u32.u64.low %v11268_v34, %v5567_v40  ;;  %v11296_v24 = vmul.u32.u64.high %v11268_v34, %v5567_v40, %v11295_v27  ;;  %v5696_v35 = vshll.u32 %v11263_v37, %v5694_v22  ;;  %v5841_v15 = vsel %vm5840_vm15, %v5839_v8, 0 }
 0x497   : > { %v5697_v12 = vshrl.u32 %v5679_v46, %v5695_v38  ;;  %v5700_v56 = vadd.s32 127, %v5699_v47  ;;  %vm5625_vm1 = vcmp.lt.s32.totalorder %v11070_v44, 0  ;;  %v5578_v42 = vadd.s32 1, %v11287_v7 }
 0x498   : > { %v5836_v23 = vand.u32 8388607, %v5829_v39  ;;  %v5843_v20 = vand.u32 31, %v5841_v15  ;;  %vm5406_vm0 = vweird.f32 %v11043_v53  ;;  %vm11306_vm2 = vcmp.le.f32.partialorder %v5623_v0, 0.7853982 }
 0x499   : > { %v5698_v37 = vor.u32 %v5697_v12, %v5696_v35  ;;  %v5701_v5 = vshll.u32 %v5700_v56, 23  ;;  %v5710_v3 = vsel %vm5625_vm1, %v5709_v14, %v11252_v54  ;;  %vm5408_vm3 = vcmp.lt.s32.totalorder %v11254_v2, 2 }
 0x49a   : > { %v5575_v61 = vmul.u32 %v11268_v34, %v5559_v45  ;;  %vm5577_vm4 = vc.u32 %v11296_v24, %v11286_v18  ;;  %v5844_v55 = vsub.s32 32, %v5843_v20  ;;  %vm5409_vm5 = vcmp.eq.s32.totalorder %v11254_v2, 0 }
 0x49b   : > { %vm5412_vm6 = vcmp.eq.s32.totalorder %v11254_v2, 2  ;;  %v5702_v0 = vor.u32 4788187, %v5701_v5  ;;  %v5579_v29 = vsel %vm5577_vm4, %v5578_v42, %v11287_v7  ;;  %v5712_v54 = vsel %vm11306_vm2, 0, %v5710_v3 }
 0x49c   : > { %v7778_v19 = vpop.eup %7777  ;;  %v5580_v4 = vadd.s32 %v5579_v29, %v5575_v61  ;;  %v5837_v28 = vor.u32 8388608, %v5836_v23  ;;  %v2079_v11 = vadd.f32 %v2078_v10, %v12295_v63  ;;  %v5705_v6 = vcvt.s32.f32 %v5698_v37 }
 0x49d   : > { %v7780_v34 = vpop.eup %7779  ;;  %v5413_v16 = vxor.u32 2147483648, %v7778_v19  ;;  %v5703_v59 = vand.u32 2147483647, %v5702_v0  ;;  %v11323_v13 = vshrl.u32 %v5841_v15, 5  ;;  %v5846_v9 = vshll.u32 %v12211_v62, %v5843_v20 }
 0x49e   : > { %v5410_v1 = vxor.u32 2147483648, %v7780_v34  ;;  %v5581_v43 = vadd.s32 536870912, %v5580_v4  ;;  %v5847_v17 = vshrl.u32 %v12212_v31, %v5844_v55  ;;  %v5849_v25 = vshll.u32 %v12212_v31, %v5843_v20 }
 0x49f   : > { %v5414_v41 = vsel %vm5412_vm6, %v5413_v16, %v7780_v34  ;;  %v5706_v50 = vmul.f32 %v5705_v6, %v5703_v59  ;;  %v5850_v26 = vshrl.u32 %v12213_v52, %v5844_v55  ;;  %v5853_v30 = vshrl.u32 %v12214_v48, %v5844_v55  ;;  %v7384_v34 = vpop.f32.mrf.mxu0 }
 0x4a0   : > { %v5411_v58 = vsel %vm5409_vm5, %v7778_v19, %v5410_v1  ;;  %v11333_v8 = vshrl.u32 %v5581_v43, 30  ;;  %v5856_v57 = vshrl.u32 %v12215_v21, %v5844_v55  ;;  %v5855_v40 = vshll.u32 %v12214_v48, %v5843_v20 }
 0x4a1   : > { %v5415_v49 = vsel %vm5408_vm3, %v5411_v58, %v5414_v41  ;;  %v5707_v22 = vxor.u32 2147483648, %v5706_v50  ;;  %v5859_v7 = vshrl.u32 %v12216_v32, %v5844_v55  ;;  %v5848_v47 = vor.u32 %v5847_v17, %v5846_v9 }
 0x4a2   : > { %v5416_v46 = vsel %vm5406_vm0, nan, %v5415_v49  ;;  %v5583_v38 = vshll.u32 %v11333_v8, 30  ;;  %v5852_v14 = vshll.u32 %v12213_v52, %v5843_v20  ;;  %v5851_v27 = vor.u32 %v5850_v26, %v5849_v25  ;;  %v12298_v25 = vld [vmem:[#allocation17_spill] sm:$0xff] }
 0x4a3   : > { %6578 = vst [vmem:[%s9140_s30 + $0xe0] sm:$0xff] %v5416_v46  ;;  %v5708_v45 = vsel %vm5625_vm1, %v5707_v22, %v5706_v50  ;;  %v5857_v2 = vor.u32 %v5856_v57, %v5855_v40  ;;  %v5858_v35 = vshll.u32 %v12215_v21, %v5843_v20  ;;  %v11354_v15 = vand.u32 3, %v5712_v54  ;;  %v2384_v20 = vpop.f32.mrf.mxu1 }
 0x4a4   : > { %v5711_v12 = vsel %vm11306_vm2, %v11070_v44, %v5708_v45  ;;  %v11352_v56 = vsub.s32 %v5580_v4, %v5583_v38  ;;  %v5854_v53 = vor.u32 %v5853_v30, %v5852_v14  ;;  %v5877_v23 = vshll.u32 %v5837_v28, 8 }
 0x4a5   : > { %7781 = vcosq.f32 %v5711_v12  ;;  %v5860_v42 = vor.u32 %v5859_v7, %v5858_v35  ;;  %vm5861_vm7 = vcmp.lt.s32.totalorder %v11323_v13, 1  ;;  %vm5864_vm8 = vcmp.lt.s32.totalorder %v11323_v13, 4  ;;  %v7446_v46 = vpop.f32.mrf.mxu1 }
 0x4a6   : > { %7783 = vsinq.f32 %v5711_v12  ;;  %v5586_v37 = vsub.s32 0, %v11352_v56  ;;  %v5845_v5 = vshrl.u32 %v12211_v62, %v5844_v55  ;;  %v5869_v36 = vsel %vm5861_vm7, %v5848_v47, %v5851_v27 }
 0x4a7   : > { %v5870_v3 = vsel %vm5864_vm8, %v5857_v2, 920167782  ;;  %v11362_v10 = vadd.f32 %v2384_v20, %v2079_v11  ;;  %vm5863_vm9 = vcmp.lt.s32.totalorder %v11323_v13, 3  ;;  %v5866_v0 = vsel %vm5864_vm8, %v5854_v53, 2102212464 }
 0x4a8   : > { %v6792_v61 = vmin.u32 %v5586_v37, %v11352_v56  ;;  %v5873_v29 = vsel %vm5861_vm7, %v5851_v27, %v5854_v53  ;;  %v5606_v19 = vsub.s32 4, %v11333_v8  ;;  %vm5862_vm10 = vcmp.lt.s32.totalorder %v11323_v13, 2 }
 0x4a9   : > { %v5871_v54 = vsel %vm5863_vm9, %v5854_v53, %v5870_v3  ;;  %v5874_v55 = vsel %vm5864_vm8, %v5860_v42, 1326507024  ;;  %v5865_v28 = vsel %vm5861_vm7, %v5845_v5, %v5848_v47  ;;  %v5867_v16 = vsel %vm5863_vm9, %v5851_v27, %v5866_v0 }
 0x4aa   : > { %v5588_v4 = vclz %v6792_v61  ;;  %v5872_v63 = vsel %vm5862_vm10, %v5869_v36, %v5871_v54  ;;  %v5875_v11 = vsel %vm5863_vm9, %v5857_v2, %v5874_v55  ;;  %v5729_v41 = vand.u32 2139095040, %v11362_v10 }
 0x4ab   : > { %v5876_v59 = vsel %vm5862_vm10, %v5873_v29, %v5875_v11  ;;  %v11376_v6 = vmul.u32.u64.low %v5877_v23, %v5872_v63  ;;  %v11377_v1 = vmul.u32.u64.high %v5877_v23, %v5872_v63, %v11376_v6  ;;  %vm11386_vm11 = vcmp.le.f32.partialorder %v5520_v60, 0.7853982 }
 0x4ac   : > { %v6793_v43 = vadd.s32 4294967294, %v5588_v4  ;;  %v11380_v9 = vmul.u32.u64.low %v5877_v23, %v5876_v59  ;;  %v11381_v17 = vmul.u32.u64.high %v5877_v23, %v5876_v59, %v11380_v9  ;;  %vm5522_vm12 = vcmp.lt.s32.totalorder %v11204_v51, 0 }
 0x4ad   : > { %v2097_v26 = vadd.f32 %v7384_v34, %v12298_v25  ;;  %vm5717_vm13 = vcmp.lt.s32.totalorder %v11354_v15, 2  ;;  %v5868_v58 = vsel %vm5862_vm10, %v5865_v28, %v5867_v16  ;;  %v5730_v30 = vshrl.u32 %v5729_v41, 23 }
 0x4ae   : > { %vm6794_vm14 = vcmp.lt.s32.totalorder %v6793_v43, 0  ;;  %vm5715_vm15 = vweird.f32 %v11070_v44  ;;  %vm5718_vm1 = vcmp.eq.s32.totalorder %v11354_v15, 0  ;;  %v5887_v60 = vadd.s32 1, %v11377_v1 }
 0x4af   : > { %v5591_v57 = vsel %vm6794_vm14, 0, %v6793_v43  ;;  %v5726_v49 = vand.u32 2147483647, %v11362_v10  ;;  %v5576_v22 = vadd.s32 %v11286_v18, %v11296_v24  ;;  %v5607_v13 = vsel %vm5522_vm12, %v5606_v19, %v11333_v8 }
 0x4b0   : > { %v5592_v40 = vsub.s32 32, %v5591_v57  ;;  %v5596_v7 = vsub.s32 4294967266, %v5591_v57  ;;  %v5884_v38 = vmul.u32 %v5877_v23, %v5868_v58  ;;  %vm5886_vm0 = vc.u32 %v11381_v17, %v11376_v6 }
 0x4b1   : > { %v6799_v47 = vadd.s32 4294967169, %v5730_v30  ;;  %v11406_v14 = vadd.f32 %v7446_v46, %v2097_v26  ;;  %v5593_v27 = vshll.u32 %v11352_v56, %v5591_v57  ;;  %v5888_v18 = vsel %vm5886_vm0, %v5887_v60, %v11377_v1 }
 0x4b2   : > { %v7782_v45 = vpop.eup %7781  ;;  %v5594_v2 = vshrl.u32 %v5576_v22, %v5592_v40  ;;  %v5597_v35 = vadd.s32 127, %v5596_v7  ;;  %v5889_v53 = vadd.s32 %v5888_v18, %v5884_v38  ;;  %v5733_v8 = vand.u32 8388607, %v5726_v49 }
 0x4b3   : > { %v7784_v24 = vpop.eup %7783  ;;  %v5722_v12 = vxor.u32 2147483648, %v7782_v45  ;;  %v5736_v42 = vadd.s32 1, %v6799_v47  ;;  %vm5721_vm2 = vcmp.eq.s32.totalorder %v11354_v15, 2  ;;  %v5609_v56 = vsel %vm11386_vm11, 0, %v5607_v13 }
 0x4b4   : > { %v5719_v23 = vxor.u32 2147483648, %v7784_v24  ;;  %v5595_v37 = vor.u32 %v5594_v2, %v5593_v27  ;;  %v5598_v20 = vshll.u32 %v5597_v35, 23  ;;  %v5890_v36 = vadd.s32 536870912, %v5889_v53 }
 0x4b5   : > { %v5723_v5 = vsel %vm5721_vm2, %v5722_v12, %v7784_v24  ;;  %vm5737_vm3 = vcmp.gt.s32.totalorder %v5736_v42, 0  ;;  %v6038_v29 = vand.u32 2139095040, %v11406_v14  ;;  %v5734_v55 = vor.u32 8388608, %v5733_v8 }
 0x4b6   : > { %v5720_v3 = vsel %vm5718_vm1, %v7782_v45, %v5719_v23  ;;  %v5599_v61 = vor.u32 4788187, %v5598_v20  ;;  %v5738_v0 = vsel %vm5737_vm3, %v5736_v42, 0  ;;  %v11420_v54 = vshrl.u32 %v5890_v36, 30 }
 0x4b7   : > { %v5724_v19 = vsel %vm5717_vm13, %v5720_v3, %v5723_v5  ;;  %v5740_v4 = vand.u32 31, %v5738_v0  ;;  %v5602_v11 = vcvt.s32.f32 %v5595_v37  ;;  %v11426_v1 = vand.u32 3, %v5609_v56 }
 0x4b8   : > { %v5725_v28 = vsel %vm5715_vm15, nan, %v5724_v19  ;;  %v5600_v63 = vand.u32 2147483647, %v5599_v61  ;;  %v5892_v34 = vshll.u32 %v11420_v54, 30  ;;  %v6035_v43 = vand.u32 2147483647, %v11406_v14  ;;  %v2090_v61 = vpop.f32.mrf.mxu0 }
 0x4b9   : > { %6581 = vst [vmem:[%s9140_s30 + $0xf8] sm:$0xff] %v5725_v28  ;;  %v5741_v16 = vsub.s32 32, %v5740_v4  ;;  %v6039_v15 = vshrl.u32 %v6038_v29, 23  ;;  %v5739_v41 = vshrl.u32 %v5738_v0, 5  ;;  %v11432_v26 = vshll.u32 %v5734_v55, 8 }
 0x4ba   : > { %v5603_v59 = vmul.f32 %v5602_v11, %v5600_v63  ;;  %v11429_v9 = vsub.s32 %v5889_v53, %v5892_v34  ;;  %v5743_v58 = vshll.u32 %v12211_v62, %v5740_v4  ;;  %v5746_v22 = vshll.u32 %v12212_v31, %v5740_v4 }
 0x4bb   : > { %v5744_v25 = vshrl.u32 %v12212_v31, %v5741_v16  ;;  %v5747_v30 = vshrl.u32 %v12213_v52, %v5741_v16  ;;  %v5750_v57 = vshrl.u32 %v12214_v48, %v5741_v16  ;;  %v5749_v40 = vshll.u32 %v12213_v52, %v5740_v4 }
 0x4bc   : > { %v5604_v44 = vxor.u32 2147483648, %v5603_v59  ;;  %v5895_v60 = vsub.s32 0, %v11429_v9  ;;  %v5753_v7 = vshrl.u32 %v12215_v21, %v5741_v16  ;;  %v5752_v38 = vshll.u32 %v12214_v48, %v5740_v4 }
 0x4bd   : > { %v5745_v46 = vor.u32 %v5744_v25, %v5743_v58  ;;  %v6811_v47 = vadd.s32 4294967169, %v6039_v15  ;;  %v5748_v2 = vor.u32 %v5747_v30, %v5746_v22  ;;  %v5751_v35 = vor.u32 %v5750_v57, %v5749_v40  ;;  %v12301_v15 = vld [vmem:[#allocation18_spill] sm:$0xff] }
 0x4be   : > { %v5605_v13 = vsel %vm5522_vm12, %v5604_v44, %v5603_v59  ;;  %v6804_v27 = vmin.u32 %v5895_v60, %v11429_v9  ;;  %v5754_v18 = vor.u32 %v5753_v7, %v5752_v38  ;;  %v5755_v24 = vshll.u32 %v12215_v21, %v5740_v4  ;;  %v2396_v7 = vpop.f32.mrf.mxu1 }
 0x4bf   : > { %v5608_v45 = vsel %vm11386_vm11, %v11204_v51, %v5605_v13  ;;  %v5756_v12 = vshrl.u32 %v12216_v32, %v5741_v16  ;;  %v5742_v8 = vshrl.u32 %v12211_v62, %v5741_v16  ;;  %vm5758_vm4 = vcmp.lt.s32.totalorder %v5739_v41, 1 }
 0x4c0   : > { %7785 = vcosq.f32 %v5608_v45  ;;  %v5897_v53 = vclz %v6804_v27  ;;  %vm5759_vm5 = vcmp.lt.s32.totalorder %v5739_v41, 2  ;;  %vm5760_vm6 = vcmp.lt.s32.totalorder %v5739_v41, 3 }
 0x4c1   : > { %7787 = vsinq.f32 %v5608_v45  ;;  %v5757_v42 = vor.u32 %v5756_v12, %v5755_v24  ;;  %vm5761_vm7 = vcmp.lt.s32.totalorder %v5739_v41, 4  ;;  %vm5831_vm8 = vcmp.lt.s32.totalorder %v11244_v33, 0 }
 0x4c2   : > { %v6805_v50 = vadd.s32 4294967294, %v5897_v53  ;;  %v5763_v23 = vsel %vm5761_vm7, %v5751_v35, 2102212464  ;;  %v5766_v37 = vsel %vm5758_vm4, %v5745_v46, %v5748_v2  ;;  %v5767_v20 = vsel %vm5761_vm7, %v5754_v18, 920167782 }
 0x4c3   : > { %v5762_v5 = vsel %vm5758_vm4, %v5742_v8, %v5745_v46  ;;  %v5768_v56 = vsel %vm5760_vm6, %v5751_v35, %v5767_v20  ;;  %v5770_v36 = vsel %vm5758_vm4, %v5748_v2, %v5751_v35  ;;  %v5771_v3 = vsel %vm5761_vm7, %v5757_v42, 1326507024 }
 0x4c4   : > { %vm6806_vm9 = vcmp.lt.s32.totalorder %v6805_v50, 0  ;;  %v5764_v0 = vsel %vm5760_vm6, %v5748_v2, %v5763_v23  ;;  %v5769_v29 = vsel %vm5759_vm5, %v5766_v37, %v5768_v56  ;;  %v5772_v19 = vsel %vm5760_vm6, %v5754_v18, %v5771_v3 }
 0x4c5   : > { %vm11455_vm10 = vcmp.le.f32.partialorder %v5829_v39, 0.7853982  ;;  %v5900_v4 = vsel %vm6806_vm9, 0, %v6805_v50  ;;  %v5773_v28 = vsel %vm5759_vm5, %v5770_v36, %v5772_v19  ;;  %v5885_v34 = vadd.s32 %v11376_v6, %v11381_v17 }
 0x4c6   : > { %v11461_v63 = vmul.u32.u64.low %v11432_v26, %v5769_v29  ;;  %v11462_v11 = vmul.u32.u64.high %v11432_v26, %v5769_v29, %v11461_v63  ;;  %v5901_v16 = vsub.s32 32, %v5900_v4  ;;  %v5905_v59 = vsub.s32 4294967266, %v5900_v4 }
 0x4c7   : > { %v2091_v25 = vadd.f32 %v2090_v61, %v12301_v15  ;;  %v5915_v39 = vsub.s32 4, %v11420_v54  ;;  %v11470_v44 = vmul.u32.u64.low %v11432_v26, %v5773_v28  ;;  %v11471_v58 = vmul.u32.u64.high %v11432_v26, %v5773_v28, %v11470_v44 }
 0x4c8   : > { %v6045_v30 = vadd.s32 1, %v6811_v47  ;;  %v5902_v57 = vshll.u32 %v11429_v9, %v5900_v4  ;;  %v5903_v60 = vshrl.u32 %v5885_v34, %v5901_v16  ;;  %v5906_v22 = vadd.s32 127, %v5905_v59 }
 0x4c9   : > { %v5765_v40 = vsel %vm5759_vm5, %v5762_v5, %v5764_v0  ;;  %vm5612_vm11 = vweird.f32 %v11204_v51  ;;  %vm5614_vm12 = vcmp.lt.s32.totalorder %v11426_v1, 2  ;;  %v5784_v6 = vadd.s32 1, %v11462_v11 }
 0x4ca   : > { %v11480_v17 = vand.u32 8388607, %v6035_v43  ;;  %vm6046_vm13 = vcmp.gt.s32.totalorder %v6045_v30, 0  ;;  %v5904_v13 = vor.u32 %v5903_v60, %v5902_v57  ;;  %v5907_v46 = vshll.u32 %v5906_v22, 23 }
 0x4cb   : > { %v6047_v38 = vsel %vm6046_vm13, %v6045_v30, 0  ;;  %v11482_v9 = vadd.f32 %v2396_v7, %v2091_v25  ;;  %v5916_v41 = vsel %vm5831_vm8, %v5915_v39, %v11420_v54  ;;  %v5781_v47 = vmul.u32 %v11432_v26, %v5765_v40 }
 0x4cc   : > { %vm5783_vm14 = vc.u32 %v11471_v58, %v11461_v63  ;;  %v6049_v45 = vand.u32 31, %v6047_v38  ;;  %vm5615_vm15 = vcmp.eq.s32.totalorder %v11426_v1, 0  ;;  %vm5618_vm1 = vcmp.eq.s32.totalorder %v11426_v1, 2 }
 0x4cd   : > { %v7786_v27 = vpop.eup %7785  ;;  %v5908_v2 = vor.u32 4788187, %v5907_v46  ;;  %v5785_v35 = vsel %vm5783_vm14, %v5784_v6, %v11462_v11  ;;  %v6043_v53 = vor.u32 8388608, %v11480_v17  ;;  %v5911_v42 = vcvt.s32.f32 %v5904_v13 }
 0x4ce   : > { %v7788_v18 = vpop.eup %7787  ;;  %v5619_v24 = vxor.u32 2147483648, %v7786_v27  ;;  %v5786_v12 = vadd.s32 %v5785_v35, %v5781_v47  ;;  %v6050_v54 = vsub.s32 32, %v6049_v45  ;;  %v5918_v50 = vsel %vm11455_vm10, 0, %v5916_v41 }
 0x4cf   : > { %v5616_v8 = vxor.u32 2147483648, %v7788_v18  ;;  %v5909_v26 = vand.u32 2147483647, %v5908_v2  ;;  %v5935_v5 = vand.u32 2139095040, %v11482_v9  ;;  %v6048_v3 = vshrl.u32 %v6047_v38, 5 }
 0x4d0   : > { %v5620_v23 = vsel %vm5618_vm1, %v5619_v24, %v7788_v18  ;;  %v5787_v37 = vadd.s32 536870912, %v5786_v12  ;;  %v6053_v20 = vshrl.u32 %v12212_v31, %v6050_v54  ;;  %v6056_v61 = vshrl.u32 %v12213_v52, %v6050_v54 }
 0x4d1   : > { %v5617_v56 = vsel %vm5615_vm15, %v7786_v27, %v5616_v8  ;;  %v5912_v36 = vmul.f32 %v5911_v42, %v5909_v26  ;;  %v6052_v19 = vshll.u32 %v12211_v62, %v6049_v45  ;;  %v6059_v4 = vshrl.u32 %v12214_v48, %v6050_v54 }
 0x4d2   : > { %v5621_v0 = vsel %vm5614_vm12, %v5617_v56, %v5620_v23  ;;  %v11503_v29 = vshrl.u32 %v5787_v37, 30  ;;  %v6055_v34 = vshll.u32 %v12212_v31, %v6049_v45  ;;  %v6058_v16 = vshll.u32 %v12213_v52, %v6049_v45 }
 0x4d3   : > { %v5622_v28 = vsel %vm5612_vm11, nan, %v5621_v0  ;;  %v5913_v11 = vxor.u32 2147483648, %v5912_v36  ;;  %v6054_v15 = vor.u32 %v6053_v20, %v6052_v19  ;;  %v6061_v1 = vshll.u32 %v12214_v48, %v6049_v45 }
 0x4d4   : > { %6580 = vst [vmem:[%s9140_s30 + $0xf0] sm:$0xff] %v5622_v28  ;;  %v5789_v59 = vshll.u32 %v11503_v29, 30  ;;  %v6062_v25 = vshrl.u32 %v12215_v21, %v6050_v54  ;;  %v6057_v44 = vor.u32 %v6056_v61, %v6055_v34  ;;  %v6064_v51 = vshll.u32 %v12215_v21, %v6049_v45  ;;  %v7387_v34 = vpop.f32.mrf.mxu0 }
 0x4d5   : > { %v5914_v39 = vsel %vm5831_vm8, %v5913_v11, %v5912_v36  ;;  %v6065_v30 = vshrl.u32 %v12216_v32, %v6050_v54  ;;  %v6060_v22 = vor.u32 %v6059_v4, %v6058_v16  ;;  %v11524_v6 = vand.u32 3, %v5918_v50 }
 0x4d6   : > { %v5917_v57 = vsel %vm11455_vm10, %v11244_v33, %v5914_v39  ;;  %v11522_v60 = vsub.s32 %v5786_v12, %v5789_v59  ;;  %v6063_v40 = vor.u32 %v6062_v25, %v6061_v1  ;;  %vm6067_vm0 = vcmp.lt.s32.totalorder %v6048_v3, 1 }
 0x4d7   : > { %7789 = vcosq.f32 %v5917_v57  ;;  %v6066_v17 = vor.u32 %v6065_v30, %v6064_v51  ;;  %vm6070_vm2 = vcmp.lt.s32.totalorder %v6048_v3, 4  ;;  %v6075_v13 = vsel %vm6067_vm0, %v6054_v15, %v6057_v44 }
 0x4d8   : > { %7791 = vsinq.f32 %v5917_v57  ;;  %v5792_v7 = vsub.s32 0, %v11522_v60  ;;  %v6076_v46 = vsel %vm6070_vm2, %v6063_v40, 920167782  ;;  %v6083_v38 = vshll.u32 %v6043_v53, 8 }
 0x4d9   : > { %v5936_v41 = vshrl.u32 %v5935_v5, 23  ;;  %v6051_v47 = vshrl.u32 %v12211_v62, %v6050_v54  ;;  %vm6069_vm3 = vcmp.lt.s32.totalorder %v6048_v3, 3  ;;  %v6072_v45 = vsel %vm6070_vm2, %v6060_v22, 2102212464 }
 0x4da   : > { %v6800_v55 = vmin.u32 %v5792_v7, %v11522_v60  ;;  %vm6068_vm4 = vcmp.lt.s32.totalorder %v6048_v3, 2  ;;  %v6077_v27 = vsel %vm6069_vm3, %v6060_v22, %v6076_v46  ;;  %v6079_v2 = vsel %vm6067_vm0, %v6057_v44, %v6060_v22 }
 0x4db   : > { %v6080_v35 = vsel %vm6070_vm2, %v6066_v17, 1326507024  ;;  %v6071_v24 = vsel %vm6067_vm0, %v6051_v47, %v6054_v15  ;;  %v6078_v12 = vsel %vm6068_vm4, %v6075_v13, %v6077_v27  ;;  %v6073_v26 = vsel %vm6069_vm3, %v6057_v44, %v6072_v45  ;;  %v12304_v45 = vld [vmem:[#allocation19_spill] sm:$0xff] }
 0x4dc   : > { %v5794_v18 = vclz %v6800_v55  ;;  %v6081_v8 = vsel %vm6069_vm3, %v6063_v40, %v6080_v35  ;;  %v11531_v53 = vmul.u32.u64.low %v6083_v38, %v6078_v12  ;;  %v11532_v50 = vmul.u32.u64.high %v6083_v38, %v6078_v12, %v11531_v53  ;;  %v2102_v40 = vpop.f32.mrf.mxu0 }
 0x4dd   : > { %v6082_v42 = vsel %vm6068_vm4, %v6079_v2, %v6081_v8  ;;  %v6807_v20 = vadd.s32 4294967169, %v5936_v41  ;;  %vm5728_vm5 = vcmp.lt.s32.totalorder %v11362_v10, 0  ;;  %v6074_v5 = vsel %vm6068_vm4, %v6071_v24, %v6073_v26  ;;  %v12305_v2 = vld [vmem:[#allocation20_spill] sm:$0xff] }
 0x4de   : > { %v6801_v23 = vadd.s32 4294967294, %v5794_v18  ;;  %v11535_v54 = vmul.u32.u64.low %v6083_v38, %v6082_v42  ;;  %v11536_v37 = vmul.u32.u64.high %v6083_v38, %v6082_v42, %v11535_v54  ;;  %vm5921_vm7 = vweird.f32 %v11244_v33 }
 0x4df   : > { %v5942_v56 = vadd.s32 1, %v6807_v20  ;;  %vm5924_vm8 = vcmp.eq.s32.totalorder %v11524_v6, 0  ;;  %v6093_v61 = vadd.s32 1, %v11532_v50  ;;  %v5932_v0 = vand.u32 2147483647, %v11482_v9 }
 0x4e0   : > { %vm6802_vm6 = vcmp.lt.s32.totalorder %v6801_v23, 0  ;;  %v5782_v19 = vadd.s32 %v11461_v63, %v11471_v58  ;;  %v5812_v11 = vsub.s32 4, %v11503_v29  ;;  %v6090_v16 = vmul.u32 %v6083_v38, %v6074_v5 }
 0x4e1   : > { %v5797_v36 = vsel %vm6802_vm6, 0, %v6801_v23  ;;  %vm6092_vm9 = vc.u32 %v11536_v37, %v11531_v53  ;;  %vm5943_vm10 = vcmp.gt.s32.totalorder %v5942_v56, 0  ;;  %vm5927_vm11 = vcmp.eq.s32.totalorder %v11524_v6, 2 }
 0x4e2   : > { %v5798_v4 = vsub.s32 32, %v5797_v36  ;;  %v5802_v28 = vsub.s32 4294967266, %v5797_v36  ;;  %v5799_v3 = vshll.u32 %v11522_v60, %v5797_v36  ;;  %v6094_v25 = vsel %vm6092_vm9, %v6093_v61, %v11532_v50 }
 0x4e3   : > { %v5944_v39 = vsel %vm5943_vm10, %v5942_v56, 0  ;;  %v6095_v58 = vadd.s32 %v6094_v25, %v6090_v16  ;;  %v11555_v22 = vsel %vm5728_vm5, %v5812_v11, %v11503_v29  ;;  %v5939_v13 = vand.u32 8388607, %v5932_v0  ;;  %v7449_v11 = vpop.f32.mrf.mxu1 }
 0x4e4   : > { %v7790_v59 = vpop.eup %7789  ;;  %v5800_v15 = vshrl.u32 %v5782_v19, %v5798_v4  ;;  %v5803_v1 = vadd.s32 127, %v5802_v28  ;;  %v5946_v51 = vand.u32 31, %v5944_v39  ;;  %vm5923_vm12 = vcmp.lt.s32.totalorder %v11524_v6, 2 }
 0x4e5   : > { %v7792_v44 = vpop.eup %7791  ;;  %v5928_v63 = vxor.u32 2147483648, %v7790_v59  ;;  %v6096_v7 = vadd.s32 536870912, %v6095_v58  ;;  %vm11564_vm13 = vcmp.le.f32.partialorder %v5726_v49, 0.7853982  ;;  %v2109_v27 = vadd.f32 %v7387_v34, %v12304_v45 }
 0x4e6   : > { %v5925_v30 = vxor.u32 2147483648, %v7792_v44  ;;  %v5801_v57 = vor.u32 %v5800_v15, %v5799_v3  ;;  %v5804_v60 = vshll.u32 %v5803_v1, 23  ;;  %v5947_v46 = vsub.s32 32, %v5946_v51 }
 0x4e7   : > { %v5929_v17 = vsel %vm5927_vm11, %v5928_v63, %v7792_v44  ;;  %v11568_v47 = vshrl.u32 %v6096_v7, 30  ;;  %v11572_v35 = vadd.f32 %v2102_v40, %v12305_v2  ;;  %v5815_v49 = vsel %vm11564_vm13, 0, %v11555_v22 }
 0x4e8   : > { %v5926_v38 = vsel %vm5924_vm8, %v7790_v59, %v5925_v30  ;;  %v5805_v29 = vor.u32 4788187, %v5804_v60  ;;  %v5808_v24 = vcvt.s32.f32 %v5801_v57  ;;  %v5940_v8 = vor.u32 8388608, %v5939_v13 }
 0x4e9   : > { %v5930_v55 = vsel %vm5923_vm12, %v5926_v38, %v5929_v17  ;;  %v6098_v12 = vshll.u32 %v11568_v47, 30  ;;  %v5950_v26 = vshrl.u32 %v12212_v31, %v5947_v46  ;;  %v5953_v42 = vshrl.u32 %v12213_v52, %v5947_v46 }
 0x4ea   : > { %v5931_v18 = vsel %vm5921_vm7, nan, %v5930_v55  ;;  %v5806_v6 = vand.u32 2147483647, %v5805_v29  ;;  %v5945_v23 = vshrl.u32 %v5944_v39, 5  ;;  %v5956_v54 = vshrl.u32 %v12214_v48, %v5947_v46 }
 0x4eb   : > { %6583 = vst [vmem:[%s9140_s30 + $0x108] sm:$0xff] %v5931_v18  ;;  %v5959_v33 = vshrl.u32 %v12215_v21, %v5947_v46  ;;  %v11585_v20 = vsub.s32 %v6095_v58, %v6098_v12  ;;  %v5949_v5 = vshll.u32 %v12211_v62, %v5946_v51  ;;  %v5952_v56 = vshll.u32 %v12212_v31, %v5946_v51 }
 0x4ec   : > { %v5809_v50 = vmul.f32 %v5808_v24, %v5806_v6  ;;  %v5955_v36 = vshll.u32 %v12213_v52, %v5946_v51  ;;  %v5958_v19 = vshll.u32 %v12214_v48, %v5946_v51  ;;  %v5961_v4 = vshll.u32 %v12215_v21, %v5946_v51 }
 0x4ed   : > { %v5962_v28 = vshrl.u32 %v12216_v32, %v5947_v46  ;;  %v6101_v34 = vsub.s32 0, %v11585_v20  ;;  %v5951_v3 = vor.u32 %v5950_v26, %v5949_v5  ;;  %v5954_v16 = vor.u32 %v5953_v42, %v5952_v56 }
 0x4ee   : > { %v5810_v61 = vxor.u32 2147483648, %v5809_v50  ;;  %v11594_v59 = vadd.f32 %v7449_v11, %v2109_v27  ;;  %v5957_v1 = vor.u32 %v5956_v54, %v5955_v36  ;;  %v5960_v25 = vor.u32 %v5959_v33, %v5958_v19 }
 0x4ef   : > { %v5963_v39 = vor.u32 %v5962_v28, %v5961_v4  ;;  %v6812_v63 = vmin.u32 %v6101_v34, %v11585_v20  ;;  %v5948_v58 = vshrl.u32 %v12211_v62, %v5947_v46  ;;  %v5980_v51 = vshll.u32 %v5940_v8, 8 }
 0x4f0   : > { %v5811_v15 = vsel %vm5728_vm5, %v5810_v61, %v5809_v50  ;;  %v6121_v30 = vsub.s32 4, %v11568_v47  ;;  %vm5964_vm14 = vcmp.lt.s32.totalorder %v5945_v23, 1  ;;  %vm5966_vm15 = vcmp.lt.s32.totalorder %v5945_v23, 3 }
 0x4f1   : > { %v5814_v44 = vsel %vm11564_vm13, %v11362_v10, %v5811_v15  ;;  %v6103_v57 = vclz %v6812_v63  ;;  %vm5967_vm1 = vcmp.lt.s32.totalorder %v5945_v23, 4  ;;  %v5972_v60 = vsel %vm5964_vm14, %v5951_v3, %v5954_v16 }
 0x4f2   : > { %7793 = vcosq.f32 %v5814_v44  ;;  %v5969_v22 = vsel %vm5967_vm1, %v5957_v1, 2102212464  ;;  %v5973_v40 = vsel %vm5967_vm1, %v5960_v25, 920167782  ;;  %v5976_v17 = vsel %vm5964_vm14, %v5954_v16, %v5957_v1 }
 0x4f3   : > { %7795 = vsinq.f32 %v5814_v44  ;;  %v5977_v7 = vsel %vm5967_vm1, %v5963_v39, 1326507024  ;;  %v6813_v13 = vadd.s32 4294967294, %v6103_v57  ;;  %vm5965_vm0 = vcmp.lt.s32.totalorder %v5945_v23, 2 }
 0x4f4   : > { %v5974_v38 = vsel %vm5966_vm15, %v5957_v1, %v5973_v40  ;;  %v5978_v46 = vsel %vm5966_vm15, %v5960_v25, %v5977_v7  ;;  %vm11608_vm2 = vcmp.le.f32.partialorder %v6035_v43, 0.7853982  ;;  %v5968_v29 = vsel %vm5964_vm14, %v5948_v58, %v5951_v3 }
 0x4f5   : > { %v5975_v55 = vsel %vm5965_vm0, %v5972_v60, %v5974_v38  ;;  %v5979_v45 = vsel %vm5965_vm0, %v5976_v17, %v5978_v46  ;;  %v6244_v27 = vand.u32 2139095040, %v11594_v59  ;;  %vm6814_vm3 = vcmp.lt.s32.totalorder %v6813_v13, 0 }
 0x4f6   : > { %v5970_v2 = vsel %vm5966_vm15, %v5954_v16, %v5969_v22  ;;  %v11616_v18 = vmul.u32.u64.low %v5980_v51, %v5979_v45  ;;  %v11617_v6 = vmul.u32.u64.high %v5980_v51, %v5979_v45, %v11616_v18  ;;  %v6106_v24 = vsel %vm6814_vm3, 0, %v6813_v13 }
 0x4f7   : > { %v11619_v12 = vmul.u32.u64.low %v5980_v51, %v5975_v55  ;;  %v11620_v8 = vmul.u32.u64.high %v5980_v51, %v5975_v55, %v11619_v12  ;;  %v6245_v43 = vshrl.u32 %v6244_v27, 23  ;;  %v5819_v26 = vand.u32 3, %v5815_v49  ;;  %v2408_v49 = vpop.f32.mrf.mxu1 }
 0x4f8   : > { %v6091_v42 = vadd.s32 %v11531_v53, %v11536_v37  ;;  %v6107_v50 = vsub.s32 32, %v6106_v24  ;;  %v6111_v54 = vsub.s32 4294967266, %v6106_v24  ;;  %vm6037_vm4 = vcmp.lt.s32.totalorder %v11406_v14, 0 }
 0x4f9   : > { %v5971_v33 = vsel %vm5965_vm0, %v5968_v29, %v5970_v2  ;;  %v6241_v5 = vand.u32 2147483647, %v11594_v59  ;;  %v6819_v56 = vadd.s32 4294967169, %v6245_v43  ;;  %v6108_v36 = vshll.u32 %v11585_v20, %v6106_v24 }
 0x4fa   : > { %v6109_v61 = vshrl.u32 %v6091_v42, %v6107_v50  ;;  %v6112_v19 = vadd.s32 127, %v6111_v54  ;;  %vm5989_vm5 = vc.u32 %v11617_v6, %v11619_v12  ;;  %vm5818_vm6 = vweird.f32 %v11362_v10 }
 0x4fb   : > { %v6122_v53 = vsel %vm6037_vm4, %v6121_v30, %v11568_v47  ;;  %v5990_v37 = vadd.s32 1, %v11620_v8  ;;  %v6251_v23 = vadd.s32 1, %v6819_v56  ;;  %v11637_v4 = vadd.f32 %v2408_v49, %v11572_v35 }
 0x4fc   : > { %vm5820_vm7 = vcmp.lt.s32.totalorder %v5819_v26, 2  ;;  %v6110_v20 = vor.u32 %v6109_v61, %v6108_v36  ;;  %v6113_v28 = vshll.u32 %v6112_v19, 23  ;;  %v5987_v11 = vmul.u32 %v5980_v51, %v5971_v33 }
 0x4fd   : > { %vm5821_vm8 = vcmp.eq.s32.totalorder %v5819_v26, 0  ;;  %v5991_v34 = vsel %vm5989_vm5, %v5990_v37, %v11620_v8  ;;  %v6248_v3 = vand.u32 8388607, %v6241_v5  ;;  %vm6252_vm9 = vcmp.gt.s32.totalorder %v6251_v23, 0 }
 0x4fe   : > { %v6114_v15 = vor.u32 4788187, %v6113_v28  ;;  %v6124_v47 = vsel %vm11608_vm2, 0, %v6122_v53  ;;  %v5992_v1 = vadd.s32 %v5991_v34, %v5987_v11  ;;  %v6253_v25 = vsel %vm6252_vm9, %v6251_v23, 0 }
 0x4ff   : > { %v7794_v16 = vpop.eup %7793  ;;  %vm5824_vm10 = vcmp.eq.s32.totalorder %v5819_v26, 2  ;;  %v6255_v44 = vand.u32 31, %v6253_v25  ;;  %v6141_v63 = vand.u32 2139095040, %v11637_v4  ;;  %v6117_v30 = vcvt.s32.f32 %v6110_v20 }
 0x500   : > { %v7796_v35 = vpop.eup %7795  ;;  %v5825_v39 = vxor.u32 2147483648, %v7794_v16  ;;  %v6115_v51 = vand.u32 2147483647, %v6114_v15  ;;  %v5993_v57 = vadd.s32 536870912, %v5992_v1  ;;  %v11645_v22 = vand.u32 3, %v6124_v47 }
 0x501   : > { %v5822_v58 = vxor.u32 2147483648, %v7796_v35  ;;  %v6249_v40 = vor.u32 8388608, %v6248_v3  ;;  %v6256_v17 = vsub.s32 32, %v6255_v44  ;;  %v6138_v46 = vand.u32 2147483647, %v11637_v4 }
 0x502   : > { %v5826_v60 = vsel %vm5824_vm10, %v5825_v39, %v7796_v35  ;;  %v6118_v13 = vmul.f32 %v6117_v30, %v6115_v51  ;;  %v11648_v38 = vshrl.u32 %v5993_v57, 30  ;;  %v6142_v27 = vshrl.u32 %v6141_v63, 23  ;;  %v7390_v57 = vpop.f32.mrf.mxu0 }
 0x503   : > { %v5823_v7 = vsel %vm5821_vm8, %v7794_v16, %v5822_v58  ;;  %v6259_v55 = vshrl.u32 %v12212_v31, %v6256_v17  ;;  %v6262_v45 = vshrl.u32 %v12213_v52, %v6256_v17  ;;  %v6254_v8 = vshrl.u32 %v6253_v25, 5 }
 0x504   : > { %v5827_v29 = vsel %vm5820_vm7, %v5823_v7, %v5826_v60  ;;  %v6119_v18 = vxor.u32 2147483648, %v6118_v13  ;;  %v5995_v24 = vshll.u32 %v11648_v38, 30  ;;  %v6258_v43 = vshll.u32 %v12211_v62, %v6255_v44 }
 0x505   : > { %v5828_v2 = vsel %vm5818_vm6, nan, %v5827_v29  ;;  %v6261_v42 = vshll.u32 %v12212_v31, %v6255_v44  ;;  %v6264_v26 = vshll.u32 %v12213_v52, %v6255_v44  ;;  %v6265_v50 = vshrl.u32 %v12214_v48, %v6256_v17 }
 0x506   : > { %6582 = vst [vmem:[%s9140_s30 + $0x100] sm:$0xff] %v5828_v2  ;;  %v6120_v54 = vsel %vm6037_vm4, %v6119_v18, %v6118_v13  ;;  %v11664_v33 = vsub.s32 %v5992_v1, %v5995_v24  ;;  %v6267_v10 = vshll.u32 %v12214_v48, %v6255_v44  ;;  %v6268_v56 = vshrl.u32 %v12215_v21, %v6256_v17  ;;  %v12308_v2 = vld [vmem:[#allocation21_spill] sm:$0xff] }
 0x507   : > { %v6123_v36 = vsel %vm11608_vm2, %v11406_v14, %v6120_v54  ;;  %v6260_v61 = vor.u32 %v6259_v55, %v6258_v43  ;;  %v6263_v19 = vor.u32 %v6262_v45, %v6261_v42  ;;  %v11671_v49 = vshll.u32 %v6249_v40, 8 }
 0x508   : > { %7797 = vcosq.f32 %v6123_v36  ;;  %v5998_v53 = vsub.s32 0, %v11664_v33  ;;  %v6266_v37 = vor.u32 %v6265_v50, %v6264_v26  ;;  %v6269_v23 = vor.u32 %v6268_v56, %v6267_v10 }
 0x509   : > { %7799 = vsinq.f32 %v6123_v36  ;;  %v6257_v20 = vshrl.u32 %v12211_v62, %v6256_v17  ;;  %v6270_v28 = vshll.u32 %v12215_v21, %v6255_v44  ;;  %v6271_v11 = vshrl.u32 %v12216_v32, %v6256_v17 }
 0x50a   : > { %v6808_v34 = vmin.u32 %v5998_v53, %v11664_v33  ;;  %vm6273_vm11 = vcmp.lt.s32.totalorder %v6254_v8, 1  ;;  %vm6274_vm12 = vcmp.lt.s32.totalorder %v6254_v8, 2  ;;  %v6815_v41 = vadd.s32 4294967169, %v6142_v27 }
 0x50b   : > { %v6272_v3 = vor.u32 %v6271_v11, %v6270_v28  ;;  %vm6275_vm13 = vcmp.lt.s32.totalorder %v6254_v8, 3  ;;  %vm6276_vm14 = vcmp.lt.s32.totalorder %v6254_v8, 4  ;;  %v6277_v16 = vsel %vm6273_vm11, %v6257_v20, %v6260_v61  ;;  %v7452_v28 = vpop.f32.mrf.mxu1 }
 0x50c   : > { %v6000_v15 = vclz %v6808_v34  ;;  %v6278_v47 = vsel %vm6276_vm14, %v6266_v37, 2102212464  ;;  %v6281_v1 = vsel %vm6273_vm11, %v6260_v61, %v6263_v19  ;;  %v6282_v25 = vsel %vm6276_vm14, %v6269_v23, 920167782 }
 0x50d   : > { %v6279_v35 = vsel %vm6275_vm13, %v6263_v19, %v6278_v47  ;;  %v6283_v39 = vsel %vm6275_vm13, %v6266_v37, %v6282_v25  ;;  %v6285_v63 = vsel %vm6273_vm11, %v6263_v19, %v6266_v37  ;;  %v6286_v58 = vsel %vm6276_vm14, %v6272_v3, 1326507024 }
 0x50e   : > { %v6809_v44 = vadd.s32 4294967294, %v6000_v15  ;;  %v6284_v51 = vsel %vm6274_vm12, %v6281_v1, %v6283_v39  ;;  %v6287_v30 = vsel %vm6275_vm13, %v6269_v23, %v6286_v58  ;;  %vm5934_vm15 = vcmp.lt.s32.totalorder %v11482_v9, 0 }
 0x50f   : > { %v6280_v60 = vsel %vm6274_vm12, %v6277_v16, %v6279_v35  ;;  %v6288_v40 = vsel %vm6274_vm12, %v6285_v63, %v6287_v30  ;;  %v11683_v17 = vmul.u32.u64.low %v11671_v49, %v6284_v51  ;;  %v11684_v7 = vmul.u32.u64.high %v11671_v49, %v6284_v51, %v11683_v17 }
 0x510   : > { %vm6810_vm1 = vcmp.lt.s32.totalorder %v6809_v44, 0  ;;  %v11688_v13 = vmul.u32.u64.low %v11671_v49, %v6288_v40  ;;  %v11689_v29 = vmul.u32.u64.high %v11671_v49, %v6288_v40, %v11688_v13  ;;  %v6148_v55 = vadd.s32 1, %v6815_v41 }
 0x511   : > { %vm6129_vm0 = vcmp.lt.s32.totalorder %v11645_v22, 2  ;;  %v6003_v45 = vsel %vm6810_vm1, 0, %v6809_v44  ;;  %v6145_v27 = vand.u32 8388607, %v6138_v46  ;;  %v2121_v18 = vadd.f32 %v7390_v57, %v12308_v2 }
 0x512   : > { %vm6127_vm2 = vweird.f32 %v11406_v14  ;;  %v5988_v24 = vadd.s32 %v11619_v12, %v11617_v6  ;;  %v6004_v8 = vsub.s32 32, %v6003_v45  ;;  %v6008_v43 = vsub.s32 4294967266, %v6003_v45 }
 0x513   : > { %vm6149_vm3 = vcmp.gt.s32.totalorder %v6148_v55, 0  ;;  %v6018_v42 = vsub.s32 4, %v11648_v38  ;;  %v6296_v26 = vmul.u32 %v11671_v49, %v6280_v60  ;;  %v6299_v50 = vadd.s32 1, %v11684_v7 }
 0x514   : > { %v6150_v54 = vsel %vm6149_vm3, %v6148_v55, 0  ;;  %v6005_v10 = vshll.u32 %v11664_v33, %v6003_v45  ;;  %v6006_v56 = vshrl.u32 %v5988_v24, %v6004_v8  ;;  %v6009_v36 = vadd.s32 127, %v6008_v43 }
 0x515   : > { %vm6298_vm4 = vc.u32 %v11689_v29, %v11683_v17  ;;  %v7798_v61 = vpop.eup %7797  ;;  %vm6130_vm5 = vcmp.eq.s32.totalorder %v11645_v22, 0  ;;  %v6146_v12 = vor.u32 8388608, %v6145_v27  ;;  %v6152_v19 = vand.u32 31, %v6150_v54 }
 0x516   : > { %v6300_v6 = vsel %vm6298_vm4, %v6299_v50, %v11684_v7  ;;  %v7800_v53 = vpop.eup %7799  ;;  %v6134_v37 = vxor.u32 2147483648, %v7798_v61  ;;  %v6007_v49 = vor.u32 %v6006_v56, %v6005_v10  ;;  %v6010_v23 = vshll.u32 %v6009_v36, 23 }
 0x517   : > { %v6301_v20 = vadd.s32 %v6300_v6, %v6296_v26  ;;  %v6131_v11 = vxor.u32 2147483648, %v7800_v53  ;;  %vm6133_vm6 = vcmp.eq.s32.totalorder %v11645_v22, 2  ;;  %v6153_v33 = vsub.s32 32, %v6152_v19 }
 0x518   : > { %v11707_v34 = vadd.f32 %v7452_v28, %v2121_v18  ;;  %v6135_v41 = vsel %vm6133_vm6, %v6134_v37, %v7800_v53  ;;  %vm11711_vm7 = vcmp.le.f32.partialorder %v5932_v0, 0.7853982  ;;  %v6011_v16 = vor.u32 4788187, %v6010_v23 }
 0x519   : > { %v11718_v15 = vsel %vm5934_vm15, %v6018_v42, %v11648_v38  ;;  %v6302_v47 = vadd.s32 536870912, %v6301_v20  ;;  %v6132_v1 = vsel %vm6130_vm5, %v7798_v61, %v6131_v11  ;;  %v6014_v25 = vcvt.s32.f32 %v6007_v49 }
 0x51a   : > { %v6156_v35 = vshrl.u32 %v12212_v31, %v6153_v33  ;;  %v11723_v39 = vshll.u32 %v6146_v12, 8  ;;  %v6136_v0 = vsel %vm6129_vm0, %v6132_v1, %v6135_v41  ;;  %v6012_v63 = vand.u32 2147483647, %v6011_v16 }
 0x51b   : > { %v11727_v58 = vshrl.u32 %v6302_v47, 30  ;;  %v6159_v44 = vshrl.u32 %v12213_v52, %v6153_v33  ;;  %v6137_v38 = vsel %vm6127_vm2, nan, %v6136_v0  ;;  %v6151_v51 = vshrl.u32 %v6150_v54, 5 }
 0x51c   : > { %v6162_v30 = vshrl.u32 %v12214_v48, %v6153_v33  ;;  %v6450_v57 = vand.u32 2139095040, %v11707_v34  ;;  %6585 = vst [vmem:[%s9140_s30 + $0x118] sm:$0xff] %v6137_v38  ;;  %v6015_v60 = vmul.f32 %v6014_v25, %v6012_v63  ;;  %v6155_v22 = vshll.u32 %v12211_v62, %v6152_v19 }
 0x51d   : > { %v6304_v40 = vshll.u32 %v11727_v58, 30  ;;  %v6158_v7 = vshll.u32 %v12212_v31, %v6152_v19  ;;  %v6161_v13 = vshll.u32 %v12213_v52, %v6152_v19  ;;  %v6164_v55 = vshll.u32 %v12214_v48, %v6152_v19 }
 0x51e   : > { %v6165_v14 = vshrl.u32 %v12215_v21, %v6153_v33  ;;  %v6168_v45 = vshrl.u32 %v12216_v32, %v6153_v33  ;;  %v6016_v27 = vxor.u32 2147483648, %v6015_v60  ;;  %v6157_v18 = vor.u32 %v6156_v35, %v6155_v22 }
 0x51f   : > { %v11742_v2 = vsub.s32 %v6301_v20, %v6304_v40  ;;  %v6160_v24 = vor.u32 %v6159_v44, %v6158_v7  ;;  %v6163_v8 = vor.u32 %v6162_v30, %v6161_v13  ;;  %v6167_v42 = vshll.u32 %v12215_v21, %v6152_v19  ;;  %v2114_v7 = vpop.f32.mrf.mxu0 }
 0x520   : > { %v6166_v43 = vor.u32 %v6165_v14, %v6164_v55  ;;  %v6447_v26 = vand.u32 2147483647, %v11707_v34  ;;  %v6017_v50 = vsel %vm5934_vm15, %v6016_v27, %v6015_v60  ;;  %v6154_v10 = vshrl.u32 %v12211_v62, %v6153_v33 }
 0x521   : > { %v6307_v54 = vsub.s32 0, %v11742_v2  ;;  %v6451_v56 = vshrl.u32 %v6450_v57, 23  ;;  %v6020_v36 = vsel %vm11711_vm7, %v11482_v9, %v6017_v50  ;;  %v6169_v61 = vor.u32 %v6168_v45, %v6167_v42 }
 0x522   : > { %vm6170_vm8 = vcmp.lt.s32.totalorder %v6151_v51, 1  ;;  %vm6171_vm9 = vcmp.lt.s32.totalorder %v6151_v51, 2  ;;  %7801 = vcosq.f32 %v6020_v36  ;;  %vm6173_vm10 = vcmp.lt.s32.totalorder %v6151_v51, 4 }
 0x523   : > { %v6820_v6 = vmin.u32 %v6307_v54, %v11742_v2  ;;  %v6178_v12 = vsel %vm6170_vm8, %v6157_v18, %v6160_v24  ;;  %7803 = vsinq.f32 %v6020_v36  ;;  %vm6172_vm11 = vcmp.lt.s32.totalorder %v6151_v51, 3 }
 0x524   : > { %v6175_v19 = vsel %vm6173_vm10, %v6163_v8, 2102212464  ;;  %v6179_v53 = vsel %vm6173_vm10, %v6166_v43, 920167782  ;;  %v6174_v49 = vsel %vm6170_vm8, %v6154_v10, %v6157_v18  ;;  %v6182_v20 = vsel %vm6170_vm8, %v6160_v24, %v6163_v8 }
 0x525   : > { %v6309_v37 = vclz %v6820_v6  ;;  %v6180_v23 = vsel %vm6172_vm11, %v6163_v8, %v6179_v53  ;;  %v6176_v28 = vsel %vm6172_vm11, %v6160_v24, %v6175_v19  ;;  %v6183_v33 = vsel %vm6173_vm10, %v6169_v61, 1326507024  ;;  %v12311_v8 = vld [vmem:[#allocation22_spill] sm:$0xff]  ;;  %v2420_v19 = vpop.f32.mrf.mxu1 }
 0x526   : > { %v6181_v11 = vsel %vm6171_vm9, %v6178_v12, %v6180_v23  ;;  %v6827_v41 = vadd.s32 4294967169, %v6451_v56  ;;  %v6184_v47 = vsel %vm6172_vm11, %v6166_v43, %v6183_v33  ;;  %v6021_v35 = vsel %vm11711_vm7, 0, %v11718_v15 }
 0x527   : > { %v6821_v16 = vadd.s32 4294967294, %v6309_v37  ;;  %v11756_v1 = vmul.u32.u64.low %v11723_v39, %v6181_v11  ;;  %v11757_v25 = vmul.u32.u64.high %v11723_v39, %v6181_v11, %v11756_v1  ;;  %v6185_v0 = vsel %vm6171_vm9, %v6182_v20, %v6184_v47 }
 0x528   : > { %v6457_v63 = vadd.s32 1, %v6827_v41  ;;  %v6177_v44 = vsel %vm6171_vm9, %v6174_v49, %v6176_v28  ;;  %v11766_v38 = vmul.u32.u64.low %v11723_v39, %v6185_v0  ;;  %v11767_v30 = vmul.u32.u64.high %v11723_v39, %v6185_v0, %v11766_v38 }
 0x529   : > { %vm6822_vm12 = vcmp.lt.s32.totalorder %v6821_v16, 0  ;;  %v6454_v60 = vand.u32 8388607, %v6447_v26  ;;  %v6297_v40 = vadd.s32 %v11683_v17, %v11689_v29  ;;  %v6196_v22 = vadd.s32 1, %v11757_v25 }
 0x52a   : > { %v6312_v57 = vsel %vm6822_vm12, 0, %v6821_v16  ;;  %vm6458_vm13 = vcmp.gt.s32.totalorder %v6457_v63, 0  ;;  %v6025_v13 = vand.u32 3, %v6021_v35  ;;  %v6327_v51 = vsub.s32 4, %v11727_v58 }
 0x52b   : > { %v6313_v3 = vsub.s32 32, %v6312_v57  ;;  %v6317_v15 = vsub.s32 4294967266, %v6312_v57  ;;  %v6193_v55 = vmul.u32 %v11723_v39, %v6177_v44  ;;  %v6459_v14 = vsel %vm6458_vm13, %v6457_v63, 0 }
 0x52c   : > { %vm6024_vm14 = vweird.f32 %v11482_v9  ;;  %v6314_v45 = vshll.u32 %v11742_v2, %v6312_v57  ;;  %vm6195_vm15 = vc.u32 %v11767_v30, %v11756_v1  ;;  %v6455_v29 = vor.u32 8388608, %v6454_v60 }
 0x52d   : > { %v6315_v27 = vshrl.u32 %v6297_v40, %v6313_v3  ;;  %v6318_v18 = vadd.s32 127, %v6317_v15  ;;  %v6197_v17 = vsel %vm6195_vm15, %v6196_v22, %v11757_v25  ;;  %v6461_v24 = vand.u32 31, %v6459_v14 }
 0x52e   : > { %v2115_v43 = vadd.f32 %v2114_v7, %v12311_v8  ;;  %vm6243_vm1 = vcmp.lt.s32.totalorder %v11594_v59, 0  ;;  %v6198_v50 = vadd.s32 %v6197_v17, %v6193_v55  ;;  %vm6026_vm0 = vcmp.lt.s32.totalorder %v6025_v13, 2 }
 0x52f   : > { %v6316_v42 = vor.u32 %v6315_v27, %v6314_v45  ;;  %v6319_v39 = vshll.u32 %v6318_v18, 23  ;;  %v7802_v54 = vpop.eup %7801  ;;  %vm6027_vm2 = vcmp.eq.s32.totalorder %v6025_v13, 0  ;;  %vm6030_vm3 = vcmp.eq.s32.totalorder %v6025_v13, 2 }
 0x530   : > { %v6462_v2 = vsub.s32 32, %v6461_v24  ;;  %v7804_v10 = vpop.eup %7803  ;;  %v6031_v56 = vxor.u32 2147483648, %v7802_v54  ;;  %vm11785_vm4 = vcmp.le.f32.partialorder %v6241_v5, 0.7853982  ;;  %v11792_v6 = vsel %vm6243_vm1, %v6327_v51, %v11727_v58 }
 0x531   : > { %v6320_v61 = vor.u32 4788187, %v6319_v39  ;;  %v6199_v12 = vadd.s32 536870912, %v6198_v50  ;;  %v6028_v53 = vxor.u32 2147483648, %v7804_v10  ;;  %v6460_v37 = vshrl.u32 %v6459_v14, 5 }
 0x532   : > { %v11794_v49 = vshll.u32 %v6455_v29, 8  ;;  %v11796_v23 = vadd.f32 %v2420_v19, %v2115_v43  ;;  %v6032_v20 = vsel %vm6030_vm3, %v6031_v56, %v7804_v10  ;;  %v6323_v28 = vcvt.s32.f32 %v6316_v42 }
 0x533   : > { %v6321_v5 = vand.u32 2147483647, %v6320_v61  ;;  %v11798_v11 = vshrl.u32 %v6199_v12, 30  ;;  %v6029_v33 = vsel %vm6027_vm2, %v7802_v54, %v6028_v53  ;;  %v6465_v41 = vshrl.u32 %v12212_v31, %v6462_v2 }
 0x534   : > { %v6468_v58 = vshrl.u32 %v12213_v52, %v6462_v2  ;;  %v6471_v16 = vshrl.u32 %v12214_v48, %v6462_v2  ;;  %v6033_v47 = vsel %vm6026_vm0, %v6029_v33, %v6032_v20  ;;  %v6464_v0 = vshll.u32 %v12211_v62, %v6461_v24 }
 0x535   : > { %v6324_v25 = vmul.f32 %v6323_v28, %v6321_v5  ;;  %v6201_v35 = vshll.u32 %v11798_v11, 30  ;;  %v6034_v63 = vsel %vm6024_vm14, nan, %v6033_v47  ;;  %v6467_v44 = vshll.u32 %v12212_v31, %v6461_v24 }
 0x536   : > { %v6470_v38 = vshll.u32 %v12213_v52, %v6461_v24  ;;  %v6474_v57 = vshrl.u32 %v12215_v21, %v6462_v2  ;;  %6584 = vst [vmem:[%s9140_s30 + $0x110] sm:$0xff] %v6034_v63  ;;  %v6473_v3 = vshll.u32 %v12214_v48, %v6461_v24  ;;  %v6477_v15 = vshrl.u32 %v12216_v32, %v6462_v2 }
 0x537   : > { %v6325_v60 = vxor.u32 2147483648, %v6324_v25  ;;  %v6202_v40 = vsub.s32 %v6198_v50, %v6201_v35  ;;  %v6466_v22 = vor.u32 %v6465_v41, %v6464_v0  ;;  %v6469_v7 = vor.u32 %v6468_v58, %v6467_v44 }
 0x538   : > { %v6472_v13 = vor.u32 %v6471_v16, %v6470_v38  ;;  %v6476_v51 = vshll.u32 %v12215_v21, %v6461_v24  ;;  %v6475_v14 = vor.u32 %v6474_v57, %v6473_v3  ;;  %v6347_v45 = vand.u32 2139095040, %v11796_v23 }
 0x539   : > { %v6326_v9 = vsel %vm6243_vm1, %v6325_v60, %v6324_v25  ;;  %v6204_v55 = vsub.s32 0, %v6202_v40  ;;  %v6463_v18 = vshrl.u32 %v12211_v62, %v6462_v2  ;;  %vm6479_vm5 = vcmp.lt.s32.totalorder %v6460_v37, 1 }
 0x53a   : > { %v6329_v27 = vsel %vm11785_vm4, %v11594_v59, %v6326_v9  ;;  %v6478_v17 = vor.u32 %v6477_v15, %v6476_v51  ;;  %vm6480_vm6 = vcmp.lt.s32.totalorder %v6460_v37, 2  ;;  %vm6482_vm7 = vcmp.lt.s32.totalorder %v6460_v37, 4 }
 0x53b   : > { %7805 = vcosq.f32 %v6329_v27  ;;  %v6816_v29 = vmin.u32 %v6204_v55, %v6202_v40  ;;  %vm6481_vm8 = vcmp.lt.s32.totalorder %v6460_v37, 3  ;;  %v6484_v24 = vsel %vm6482_vm7, %v6472_v13, 2102212464 }
 0x53c   : > { %7807 = vsinq.f32 %v6329_v27  ;;  %v6487_v8 = vsel %vm6479_vm5, %v6466_v22, %v6469_v7  ;;  %v6483_v42 = vsel %vm6479_vm5, %v6463_v18, %v6466_v22  ;;  %v6488_v39 = vsel %vm6482_vm7, %v6475_v14, 920167782 }
 0x53d   : > { %v6206_v43 = vclz %v6816_v29  ;;  %v6491_v50 = vsel %vm6479_vm5, %v6469_v7, %v6472_v13  ;;  %v6485_v54 = vsel %vm6481_vm8, %v6469_v7, %v6484_v24  ;;  %v6489_v10 = vsel %vm6481_vm8, %v6472_v13, %v6488_v39 }
 0x53e   : > { %v6492_v56 = vsel %vm6482_vm7, %v6478_v17, 1326507024  ;;  %v6348_v61 = vshrl.u32 %v6347_v45, 23  ;;  %v6330_v2 = vsel %vm11785_vm4, 0, %v11792_v6  ;;  %v6490_v19 = vsel %vm6480_vm6, %v6487_v8, %v6489_v10 }
 0x53f   : > { %v6817_v12 = vadd.s32 4294967294, %v6206_v43  ;;  %v6493_v53 = vsel %vm6481_vm8, %v6475_v14, %v6492_v56  ;;  %v11829_v5 = vmul.u32.u64.low %v11794_v49, %v6490_v19  ;;  %v11830_v28 = vmul.u32.u64.high %v11794_v49, %v6490_v19, %v11829_v5 }
 0x540   : > { %v6494_v20 = vsel %vm6480_vm6, %v6491_v50, %v6493_v53  ;;  %v6823_v33 = vadd.s32 4294967169, %v6348_v61  ;;  %v6486_v41 = vsel %vm6480_vm6, %v6483_v42, %v6485_v54  ;;  %v6194_v47 = vadd.s32 %v11756_v1, %v11767_v30 }
 0x541   : > { %vm6818_vm9 = vcmp.lt.s32.totalorder %v6817_v12, 0  ;;  %v11835_v58 = vmul.u32.u64.low %v11794_v49, %v6494_v20  ;;  %v11836_v16 = vmul.u32.u64.high %v11794_v49, %v6494_v20, %v11835_v58  ;;  %v6334_v0 = vand.u32 3, %v6330_v2 }
 0x542   : > { %v6209_v36 = vsel %vm6818_vm9, 0, %v6817_v12  ;;  %v6354_v6 = vadd.s32 1, %v6823_v33  ;;  %v6502_v63 = vmul.u32 %v11794_v49, %v6486_v41  ;;  %v6505_v44 = vadd.s32 1, %v11830_v28 }
 0x543   : > { %v6210_v25 = vsub.s32 32, %v6209_v36  ;;  %v6214_v35 = vsub.s32 4294967266, %v6209_v36  ;;  %v6211_v38 = vshll.u32 %v6202_v40, %v6209_v36  ;;  %vm6504_vm11 = vc.u32 %v11836_v16, %v11829_v5 }
 0x544   : > { %vm6355_vm10 = vcmp.gt.s32.totalorder %v6354_v6, 0  ;;  %v6506_v60 = vsel %vm6504_vm11, %v6505_v44, %v11830_v28  ;;  %v6344_v3 = vand.u32 2147483647, %v11796_v23  ;;  %vm6333_vm12 = vweird.f32 %v11594_v59 }
 0x545   : > { %v6212_v37 = vshrl.u32 %v6194_v47, %v6210_v25  ;;  %v6215_v57 = vadd.s32 127, %v6214_v35  ;;  %v6356_v15 = vsel %vm6355_vm10, %v6354_v6, 0  ;;  %v6507_v22 = vadd.s32 %v6506_v60, %v6502_v63 }
 0x546   : > { %vm6140_vm13 = vcmp.lt.s32.totalorder %v11637_v4, 0  ;;  %v6358_v49 = vand.u32 31, %v6356_v15  ;;  %vm6336_vm14 = vcmp.eq.s32.totalorder %v6334_v0, 0  ;;  %vm6339_vm15 = vcmp.eq.s32.totalorder %v6334_v0, 2 }
 0x547   : > { %v6213_v1 = vor.u32 %v6212_v37, %v6211_v38  ;;  %v6216_v30 = vshll.u32 %v6215_v57, 23  ;;  %v6508_v9 = vadd.s32 536870912, %v6507_v22  ;;  %v6351_v14 = vand.u32 8388607, %v6344_v3 }
 0x548   : > { %v7806_v7 = vpop.eup %7805  ;;  %v6359_v45 = vsub.s32 32, %v6358_v49  ;;  %vm6335_vm1 = vcmp.lt.s32.totalorder %v6334_v0, 2  ;;  %vm11854_vm0 = vcmp.le.f32.partialorder %v6138_v46, 0.7853982  ;;  %v6361_v61 = vshll.u32 %v12211_v62, %v6358_v49 }
 0x549   : > { %v7808_v40 = vpop.eup %7807  ;;  %v6340_v13 = vxor.u32 2147483648, %v7806_v7  ;;  %v6217_v51 = vor.u32 4788187, %v6216_v30  ;;  %v6220_v17 = vcvt.s32.f32 %v6213_v1  ;;  %v11850_v29 = vshrl.u32 %v6508_v9, 30 }
 0x54a   : > { %v6337_v55 = vxor.u32 2147483648, %v7808_v40  ;;  %v6362_v43 = vshrl.u32 %v12212_v31, %v6359_v45  ;;  %v6365_v54 = vshrl.u32 %v12213_v52, %v6359_v45  ;;  %v6352_v56 = vor.u32 8388608, %v6351_v14 }
 0x54b   : > { %v6341_v27 = vsel %vm6339_vm15, %v6340_v13, %v7808_v40  ;;  %v6218_v18 = vand.u32 2147483647, %v6217_v51  ;;  %v6510_v50 = vshll.u32 %v11850_v29, 30  ;;  %v6368_v2 = vshrl.u32 %v12214_v48, %v6359_v45 }
 0x54c   : > { %v6338_v24 = vsel %vm6336_vm14, %v7806_v7, %v6337_v55  ;;  %v6357_v19 = vshrl.u32 %v6356_v15, 5  ;;  %v6364_v53 = vshll.u32 %v12212_v31, %v6358_v49  ;;  %v6363_v20 = vor.u32 %v6362_v43, %v6361_v61 }
 0x54d   : > { %v6342_v42 = vsel %vm6335_vm1, %v6338_v24, %v6341_v27  ;;  %v6221_v39 = vmul.f32 %v6220_v17, %v6218_v18  ;;  %v6511_v12 = vsub.s32 %v6507_v22, %v6510_v50  ;;  %v6367_v28 = vshll.u32 %v12213_v52, %v6358_v49 }
 0x54e   : > { %v6343_v10 = vsel %vm6333_vm12, nan, %v6342_v42  ;;  %v6370_v33 = vshll.u32 %v12214_v48, %v6358_v49  ;;  %v6371_v41 = vshrl.u32 %v12215_v21, %v6359_v45  ;;  %v6366_v36 = vor.u32 %v6365_v54, %v6364_v53 }
 0x54f   : > { %6587 = vst [vmem:[%s9140_s30 + $0x128] sm:$0xff] %v6343_v10  ;;  %v6222_v46 = vxor.u32 2147483648, %v6221_v39  ;;  %v6513_v58 = vsub.s32 0, %v6511_v12  ;;  %v6374_v6 = vshrl.u32 %v12216_v32, %v6359_v45  ;;  %v6369_v25 = vor.u32 %v6368_v2, %v6367_v28 }
 0x550   : > { %v6372_v31 = vor.u32 %v6371_v41, %v6370_v33  ;;  %v6373_v35 = vshll.u32 %v12215_v21, %v6358_v49  ;;  %v6224_v52 = vsub.s32 4, %v11798_v11  ;;  %v6392_v0 = vshll.u32 %v6352_v56, 8 }
 0x551   : > { %v6223_v59 = vsel %vm6140_vm13, %v6222_v46, %v6221_v39  ;;  %v6828_v48 = vmin.u32 %v6513_v58, %v6511_v12  ;;  %v6360_v63 = vshrl.u32 %v12211_v62, %v6359_v45  ;;  %vm6376_vm2 = vcmp.lt.s32.totalorder %v6357_v19, 1 }
 0x552   : > { %v6226_v47 = vsel %vm11854_vm0, %v11637_v4, %v6223_v59  ;;  %v6375_v44 = vor.u32 %v6374_v6, %v6373_v35  ;;  %vm6378_vm3 = vcmp.lt.s32.totalorder %v6357_v19, 3  ;;  %vm6379_vm4 = vcmp.lt.s32.totalorder %v6357_v19, 4 }
 0x553   : > { %7809 = vcosq.f32 %v6226_v47  ;;  %v6515_v38 = vclz %v6828_v48  ;;  %v6384_v32 = vsel %vm6376_vm2, %v6363_v20, %v6366_v36  ;;  %v6381_v37 = vsel %vm6379_vm4, %v6369_v25, 2102212464 }
 0x554   : > { %7811 = vsinq.f32 %v6226_v47  ;;  %v6385_v57 = vsel %vm6379_vm4, %v6372_v31, 920167782  ;;  %v6388_v60 = vsel %vm6376_vm2, %v6366_v36, %v6369_v25  ;;  %v6389_v15 = vsel %vm6379_vm4, %v6375_v44, 1326507024 }
 0x555   : > { %v6829_v1 = vadd.s32 4294967294, %v6515_v38  ;;  %vm6377_vm5 = vcmp.lt.s32.totalorder %v6357_v19, 2  ;;  %v6386_v21 = vsel %vm6378_vm3, %v6369_v25, %v6385_v57  ;;  %v6390_v30 = vsel %vm6378_vm3, %v6372_v31, %v6389_v15 }
 0x556   : > { %v6225_v62 = vsel %vm6140_vm13, %v6224_v52, %v11798_v11  ;;  %v6380_v22 = vsel %vm6376_vm2, %v6360_v63, %v6363_v20  ;;  %v6387_v7 = vsel %vm6377_vm5, %v6384_v32, %v6386_v21  ;;  %v6391_v49 = vsel %vm6377_vm5, %v6388_v60, %v6390_v30 }
 0x557   : > { %vm6830_vm6 = vcmp.lt.s32.totalorder %v6829_v1, 0  ;;  %v6382_v40 = vsel %vm6378_vm3, %v6366_v36, %v6381_v37  ;;  %v11887_v13 = vmul.u32.u64.low %v6392_v0, %v6391_v49  ;;  %v11888_v51 = vmul.u32.u64.high %v6392_v0, %v6391_v49, %v11887_v13 }
 0x558   : > { %v6518_v9 = vsel %vm6830_vm6, 0, %v6829_v1  ;;  %v11890_v55 = vmul.u32.u64.low %v6392_v0, %v6387_v7  ;;  %v11891_v14 = vmul.u32.u64.high %v6392_v0, %v6387_v7, %v11890_v55  ;;  %v6227_v45 = vsel %vm11854_vm0, 0, %v6225_v62 }
 0x559   : > { %v6503_v11 = vadd.s32 %v11829_v5, %v11836_v16  ;;  %v6519_v27 = vsub.s32 32, %v6518_v9  ;;  %v6523_v18 = vsub.s32 4294967266, %v6518_v9  ;;  %v6383_v17 = vsel %vm6377_vm5, %v6380_v22, %v6382_v40 }
 0x55a   : > { %v6520_v24 = vshll.u32 %v6511_v12, %v6518_v9  ;;  %vm6401_vm7 = vc.u32 %v11888_v51, %v11890_v55  ;;  %v6231_v39 = vand.u32 3, %v6227_v45  ;;  %v6402_v50 = vadd.s32 1, %v11891_v14 }
 0x55b   : > { %v6521_v43 = vshrl.u32 %v6503_v11, %v6519_v27  ;;  %v6524_v42 = vadd.s32 127, %v6523_v18  ;;  %v6399_v56 = vmul.u32 %v6392_v0, %v6383_v17  ;;  %vm6230_vm11 = vweird.f32 %v11637_v4 }
 0x55c   : > { %v6403_v61 = vsel %vm6401_vm7, %v6402_v50, %v11891_v14  ;;  %vm6233_vm8 = vcmp.eq.s32.totalorder %v6231_v39, 0  ;;  %vm6236_vm9 = vcmp.eq.s32.totalorder %v6231_v39, 2  ;;  %vm6232_vm10 = vcmp.lt.s32.totalorder %v6231_v39, 2 }
 0x55d   : > { %v6522_v54 = vor.u32 %v6521_v43, %v6520_v24  ;;  %v6525_v10 = vshll.u32 %v6524_v42, 23  ;;  %v6404_v46 = vadd.s32 %v6403_v61, %v6399_v56  ;;  %vm6449_vm12 = vcmp.lt.s32.totalorder %v11707_v34, 0 }
 0x55e   : > { %vm11906_vm13 = vcmp.le.f32.partialorder %v6447_v26, 0.7853982  ;;  %v6533_v48 = vsub.s32 4, %v11850_v29  ;;  %v6400_v37 = vadd.s32 %v11890_v55, %v11888_v51  ;;  %vm6539_vm2 = vweird.f32 %v11707_v34 }
 0x55f   : > { %v6526_v16 = vor.u32 4788187, %v6525_v10  ;;  %v6529_v20 = vcvt.s32.f32 %v6522_v54  ;;  %v6405_v28 = vadd.s32 536870912, %v6404_v46  ;;  %vm6346_vm3 = vcmp.lt.s32.totalorder %v11796_v23, 0 }
 0x560   : > { %v7810_v8 = vpop.eup %7809  ;;  %v6534_v44 = vsel %vm6449_vm12, %v6533_v48, %v11850_v29  ;;  %vm6345_vm4 = vcmp.le.f32.partialorder %v6344_v3, 0.7853982 }
 0x561   : > { %v7812_v2 = vpop.eup %7811  ;;  %v6237_v5 = vxor.u32 2147483648, %v7810_v8  ;;  %v6527_v53 = vand.u32 2147483647, %v6526_v16  ;;  %v6406_v58 = vshrl.u32 %v6405_v28, 30  ;;  %v6536_v26 = vsel %vm11906_vm13, 0, %v6534_v44 }
 0x562   : > { %v6234_v12 = vxor.u32 2147483648, %v7812_v2  ;;  %v6540_v15 = vand.u32 3, %v6536_v26 }
 0x563   : > { %v6238_v19 = vsel %vm6236_vm9, %v6237_v5, %v7812_v2  ;;  %v6530_v59 = vmul.f32 %v6529_v20, %v6527_v53  ;;  %v6407_v47 = vshll.u32 %v6406_v58, 30  ;;  %v6430_v43 = vsub.s32 4, %v6406_v58 }
 0x564   : > { %v6235_v33 = vsel %vm6233_vm8, %v7810_v8, %v6234_v12  ;;  %vm6545_vm15 = vcmp.eq.s32.totalorder %v6540_v15, 2  ;;  %vm6542_vm1 = vcmp.eq.s32.totalorder %v6540_v15, 0  ;;  %vm6541_vm0 = vcmp.lt.s32.totalorder %v6540_v15, 2 }
 0x565   : > { %v6239_v41 = vsel %vm6232_vm10, %v6235_v33, %v6238_v19  ;;  %v6531_v6 = vxor.u32 2147483648, %v6530_v59  ;;  %v6408_v35 = vsub.s32 %v6404_v46, %v6407_v47  ;;  %vm6436_vm8 = vweird.f32 %v11796_v23 }
 0x566   : > { %v6240_v36 = vsel %vm6230_vm11, nan, %v6239_v41 }
 0x567   : > { %6586 = vst [vmem:[%s9140_s30 + $0x120] sm:$0xff] %v6240_v36  ;;  %v6532_v31 = vsel %vm6449_vm12, %v6531_v6, %v6530_v59  ;;  %v6410_v52 = vsub.s32 0, %v6408_v35 }
 0x568   : > { %v6535_v4 = vsel %vm11906_vm13, %v11707_v34, %v6532_v31  ;;  %v6431_v34 = vsel %vm6346_vm3, %v6430_v43, %v6406_v58 }
 0x569   : > { %7813 = vcosq.f32 %v6535_v4  ;;  %v6824_v0 = vmin.u32 %v6410_v52, %v6408_v35  ;;  %v6433_v42 = vsel %vm6345_vm4, 0, %v6431_v34 }
 0x56a   : > { %7815 = vsinq.f32 %v6535_v4  ;;  %v6437_v39 = vand.u32 3, %v6433_v42 }
 0x56b   : > { %v6412_v63 = vclz %v6824_v0 }
 0x56c   : > { %vm6442_vm5 = vcmp.eq.s32.totalorder %v6437_v39, 2  ;;  %vm6439_vm6 = vcmp.eq.s32.totalorder %v6437_v39, 0  ;;  %vm6438_vm7 = vcmp.lt.s32.totalorder %v6437_v39, 2 }
 0x56d   : > { %v6825_v38 = vadd.s32 4294967294, %v6412_v63 }
 0x56f   : > { %vm6826_vm14 = vcmp.lt.s32.totalorder %v6825_v38, 0 }
 0x570   : > { %v6415_v32 = vsel %vm6826_vm14, 0, %v6825_v38 }
 0x571   : > { %v6416_v57 = vsub.s32 32, %v6415_v32  ;;  %v6420_v60 = vsub.s32 4294967266, %v6415_v32  ;;  %v6417_v1 = vshll.u32 %v6408_v35, %v6415_v32 }
 0x573   : > { %v6418_v21 = vshrl.u32 %v6400_v37, %v6416_v57  ;;  %v6421_v30 = vadd.s32 127, %v6420_v60 }
 0x575   : > { %v6419_v49 = vor.u32 %v6418_v21, %v6417_v1  ;;  %v6422_v29 = vshll.u32 %v6421_v30, 23 }
 0x576   : > { %v7814_v62 = vpop.eup %7813 }
 0x577   : > { %v7816_v22 = vpop.eup %7815  ;;  %v6546_v7 = vxor.u32 2147483648, %v7814_v62  ;;  %v6423_v9 = vor.u32 4788187, %v6422_v29  ;;  %v6426_v45 = vcvt.s32.f32 %v6419_v49 }
 0x578   : > { %v6543_v40 = vxor.u32 2147483648, %v7816_v22 }
 0x579   : > { %v6547_v13 = vsel %vm6545_vm15, %v6546_v7, %v7816_v22  ;;  %v6424_v55 = vand.u32 2147483647, %v6423_v9 }
 0x57a   : > { %v6544_v14 = vsel %vm6542_vm1, %v7814_v62, %v6543_v40 }
 0x57b   : > { %v6548_v51 = vsel %vm6541_vm0, %v6544_v14, %v6547_v13  ;;  %v6427_v27 = vmul.f32 %v6426_v45, %v6424_v55 }
 0x57c   : > { %v6549_v11 = vsel %vm6539_vm2, nan, %v6548_v51 }
 0x57d   : > { %6589 = vst [vmem:[%s9140_s30 + $0x138] sm:$0xff] %v6549_v11  ;;  %v6428_v18 = vxor.u32 2147483648, %v6427_v27 }
 0x57f   : > { %v6429_v17 = vsel %vm6346_vm3, %v6428_v18, %v6427_v27 }
 0x580   : > { %v6432_v24 = vsel %vm6345_vm4, %v11796_v23, %v6429_v17 }
 0x581   : > { %7817 = vcosq.f32 %v6432_v24 }
 0x582   : > { %7819 = vsinq.f32 %v6432_v24 }
 0x58e   : > { %v7818_v50 = vpop.eup %7817 }
 0x58f   : > { %v7820_v54 = vpop.eup %7819  ;;  %v6443_v10 = vxor.u32 2147483648, %v7818_v50 }
 0x590   : > { %v6440_v56 = vxor.u32 2147483648, %v7820_v54 }
 0x591   : > { %v6444_v3 = vsel %vm6442_vm5, %v6443_v10, %v7820_v54 }
 0x592   : > { %v6441_v8 = vsel %vm6439_vm6, %v7818_v50, %v6440_v56 }
 0x593   : > { %v6445_v61 = vsel %vm6438_vm7, %v6441_v8, %v6444_v3 }
 0x594   : > { %v6446_v2 = vsel %vm6436_vm8, nan, %v6445_v61 }
 0x595   : > { %6588 = vst [vmem:[%s9140_s30 + $0x130] sm:$0xff] %v6446_v2 }
 0x596   : > { %7834 = shalt.err (!%p7831_p3)
}
 0x597   : > { %s7835_s21 = scalar_lea.hbm %s11929_s7, 5120  ;;  %s7839_s24 = scalar_lea.hbm %s11979_s2, 20480 }
 0x598   : > { %p7836_p4 = scmp.ne.s32.totalorder %s11929_s7, %s7835_s21  ;;  %p7840_p9 = scmp.lt.s32.totalorder %s11929_s7, %s11979_s2 }
 0x599   : > { %p7841_p10 = scmp.lt.s32.totalorder %s7839_s24, %s7835_s21 }
 0x59a   : > { %p7837_p7 = pnand %p7836_p4, %p7945_p5 }
 0x59b   : > { %p7842_p11 = por %p7841_p10, %p7840_p9 }
 0x59c   : > { %p7838_p8 = pneg %p7837_p7 }
 0x59e   : > { %p7843_p12 = pnand %p7842_p11, %p7838_p8 }
 0x5a0   : > { %7846 = shalt.err (!%p7843_p12)
}
 0x5a1   : > { %s7890_s27 = smov 128   ;;  %s7891_s28 = smov 8  }
 0x5a2   : > { %7614 = dma.vmem_to_hbm [thread:$0]  (%p7945_p5), %s11932_s4, 5120, %s11929_s7, %s11937_s8, %s7890_s27, %s7890_s27, %s7891_s28  }
 0x5a3 PF: > { %p7620_p13 = scmp.ge.s32.totalorder %s7881_s12, 2  ;;  %s6619_s29 = sand.u32 1, %s7869_s9  }
 0x5a4   : > { %s6620_s30 = scalar_lea.sflag [#allocation3], %s6619_s29 }
 0x5a5   : > { %p7617_p0 = pnand %p7620_p13, %p7949_p6 }
 0x5a7   : > { %p7618_p1 = pneg %p7617_p0 }
 0x5a9   : > { %7864 = dma.done.wait (%p7618_p1), %s6620_s30, 5120  }
 0x5aa   : > { %7866 = vsyncadd (%p7618_p1), %s6620_s30, 4294962176  ;;  %p12_p2 = scmp.ge.s32.totalorder %s7932_s15, 6   ;;  %s12318_s9 = smov %s7873_s10 }
 0x5ab   : > { %s12319_s10 = smov %s7877_s11  ;;  %s12320_s11 = smov %s7943_s18 }
 0x5ac   : > { %s12321_s12 = smov %s7932_s15  ;;  %14 = sbr.rel (!%p12_p2) target bundleno = 3 (0x3), region = 63 }
 0x5b1   :  { %6625 = vsyncpa [#allocation3], 1 }
 0x5b2   :  { %6627 = vsyncpa [#allocation3 + $0x1], 1 }

</bundles_post_ra>
